<compile_context>
chip_gen: v6e
topology: v6e:2x2x1
jax: 0.10.0
libtpu: 0.0.40
codegen_flags: <defaults>
</compile_context>

<pallas_src>
import functools

import numpy as np
import jax
import jax.numpy as jnp
from jax.experimental import pallas as pl
from jax.experimental.pallas import tpu as pltpu


# ----------------------------------------------------------------------------
# Probe single-buffering support for grid-invariant operands (pl.Buffered(1)).
# ----------------------------------------------------------------------------
def _probe_buffered_support():
    try:
        buffered = pl.Buffered(1)

        def _k(x_ref, o_ref):
            o_ref[...] = x_ref[...] + 1.0

        f = pl.pallas_call(
            _k,
            out_shape=jax.ShapeDtypeStruct((8, 128), jnp.float32),
            grid=(2,),
            in_specs=[pl.BlockSpec((8, 128), lambda i: (0, 0), pipeline_mode=buffered)],
            out_specs=pl.BlockSpec((8, 128), lambda i: (0, 0)),
        )
        jax.block_until_ready(f(jnp.zeros((8, 128), jnp.float32)))
        return True
    except Exception:
        return False


_HAS_BUFFERED = _probe_buffered_support()


def _const_spec(block_shape, index_map):
    """BlockSpec for a grid-invariant operand: single-buffered when supported."""
    if _HAS_BUFFERED:
        return pl.BlockSpec(block_shape, index_map, pipeline_mode=pl.Buffered(1))
    return pl.BlockSpec(block_shape, index_map)


def _cparams(resident_bytes=0):
    """Compiler params; raise the scoped-VMEM limit only when the resident
    operator (opT) is large enough to need it (v5e/v6e default limits)."""
    kwargs = {"dimension_semantics": ("parallel",)}
    if resident_bytes > (12 << 20):
        kwargs["vmem_limit_bytes"] = int(min(2 * resident_bytes + (16 << 20), 96 << 20))
    return pltpu.CompilerParams(**kwargs)


# ----------------------------------------------------------------------------
# Small in-kernel helpers (operate on values, not refs)
# ----------------------------------------------------------------------------
def _in_lrelu(y):
    """InstanceNorm (affine=False, eps=1e-5) over last axis + LeakyReLU(0.2).
    One-pass stats (sum & sum-of-squares)."""
    n = y.shape[-1]
    s = jnp.sum(y, axis=-1, keepdims=True)
    sq = jnp.sum(y * y, axis=-1, keepdims=True)
    mean = s * (1.0 / n)
    var = jnp.maximum(sq * (1.0 / n) - mean * mean, 0.0)
    z = (y - mean) * jax.lax.rsqrt(var + 1e-5)
    return jnp.where(z >= 0.0, z, 0.2 * z)


@functools.lru_cache(maxsize=None)
def _shifts_and_masks(Hs, Ws):
    """Per-tap lane-roll shifts and zero-padding border masks for a 3x3 conv."""
    HW = Hs * Ws
    shifts = []
    masks = np.zeros((9, HW), np.float32)
    for kh in range(3):
        for kw in range(3):
            k = kh * 3 + kw
            off = (kh - 1) * Ws + (kw - 1)
            shifts.append((-off) % HW)          # y[p] = x[p + off]
            hh = np.arange(Hs)[:, None] + (kh - 1)
            ww = np.arange(Ws)[None, :] + (kw - 1)
            valid = ((hh >= 0) & (hh < Hs) & (ww >= 0) & (ww < Ws)).astype(np.float32)
            masks[k] = valid.reshape(-1)
    return tuple(shifts), masks


@functools.lru_cache(maxsize=None)
def _pool_mat_np(Hs, Ws):
    """(HW, HW/4) 0.25-selection matrix: 2x2 average pool as one small matmul."""
    HW = Hs * Ws
    Wp = Ws // 2
    P = np.zeros((HW, (Hs // 2) * Wp), np.float32)
    for h in range(Hs):
        for w in range(Ws):
            P[h * Ws + w, (h // 2) * Wp + (w // 2)] = 0.25
    return P


def _conv3x3(x, w_ref, m9_ref, shifts):
    """Stacked-tap 3x3 conv: ONE MXU matmul with K = 9*Cin.
    x: (Cin, HW) f32; w_ref: (Cout, 9*Cin) bf16; m9_ref: (9, HW) f32."""
    patches = []
    for k, s in enumerate(shifts):
        if s == 0:                               # center tap: no shift / no mask
            patches.append(x)
        else:
            patches.append(pltpu.roll(x, shift=s, axis=1) * m9_ref[k:k + 1, :])
    pmat = jnp.concatenate(patches, axis=0).astype(jnp.bfloat16)   # (9*Cin, HW)
    return jnp.dot(w_ref[...], pmat, preferred_element_type=jnp.float32)


def _conv_block(x, w1_ref, w2_ref, m9_ref, shifts):
    """(3x3 conv -> InstanceNorm -> LeakyReLU) x 2."""
    h = _in_lrelu(_conv3x3(x, w1_ref, m9_ref, shifts))
    return _in_lrelu(_conv3x3(h, w2_ref, m9_ref, shifts))


def _dc(xk, x0, coil, opT_ref, lam):
    """SENSE data-consistency gradient step on one sample.
    xk, x0: (2, HW); coil: (2, C, HW); opT_ref: (HW, 2*HW) bf16 = [Re(K^T)|Im(K^T)]."""
    xr, xi = xk[0:1, :], xk[1:2, :]
    sr, si = coil[0], coil[1]                    # (C, HW)
    C = sr.shape[0]
    HW = sr.shape[-1]

    pr = sr * xr - si * xi                       # coil * x (complex, elementwise)
    pi = sr * xi + si * xr
    p2 = jnp.concatenate([pr, pi], axis=0).astype(jnp.bfloat16)      # (2C, HW)

    # single fused real|imag operator matmul
    t = jnp.dot(p2, opT_ref[...], preferred_element_type=jnp.float32)  # (2C, 2HW)
    tr, ti = t[:, :HW], t[:, HW:]
    kr = tr[:C] - ti[C:]                         # Re(K p)
    ki = ti[:C] + tr[C:]                         # Im(K p)

    # conj(coil) * img, summed over coils
    acc_r = jnp.sum(sr * kr + si * ki, axis=0, keepdims=True)
    acc_i = jnp.sum(sr * ki - si * kr, axis=0, keepdims=True)

    out_r = xr - lam * (acc_r - x0[0:1, :])
    out_i = xi - lam * (acc_i - x0[1:2, :])
    return out_r, out_i


# ----------------------------------------------------------------------------
# Kernels
# ----------------------------------------------------------------------------
def _dc_down_kernel(xk_ref, x0_ref, coil_ref, opT_ref, w1_ref, w2_ref, m9_ref,
                    pmat_ref, lam_ref, xdc_ref, h_ref, hp_ref, *, shifts):
    """Fused: SENSE DC + first down ConvBlock + 2x2 avg-pool."""
    out_r, out_i = _dc(xk_ref[...], x0_ref[...], coil_ref[...], opT_ref, lam_ref[0, 0])
    xdc_ref[0:1, :] = out_r
    xdc_ref[1:2, :] = out_i
    xdc = jnp.concatenate([out_r, out_i], axis=0)
    h = _conv_block(xdc, w1_ref, w2_ref, m9_ref, shifts)
    h_ref[...] = h
    hp_ref[...] = jnp.dot(h.astype(jnp.bfloat16), pmat_ref[...],
                          preferred_element_type=jnp.float32)


def _down_kernel(x_ref, w1_ref, w2_ref, m9_ref, pmat_ref, h_ref, hp_ref, *, shifts):
    """Fused: down ConvBlock + 2x2 avg-pool (pool as a tiny selection matmul)."""
    h = _conv_block(x_ref[...], w1_ref, w2_ref, m9_ref, shifts)
    h_ref[...] = h
    hp_ref[...] = jnp.dot(h.astype(jnp.bfloat16), pmat_ref[...],
                          preferred_element_type=jnp.float32)


def _mid_kernel(x_ref, w1_ref, w2_ref, m9_ref, h_ref, *, shifts):
    """Bottleneck ConvBlock."""
    h_ref[...] = _conv_block(x_ref[...], w1_ref, w2_ref, m9_ref, shifts)


def _up_kernel(xa_ref, xb_ref, w1_ref, w2_ref, m9_ref, h_ref, *, shifts):
    """Decoder ConvBlock with the skip-concat done in-kernel."""
    x = jnp.concatenate([xa_ref[...], xb_ref[...]], axis=0)
    h_ref[...] = _conv_block(x, w1_ref, w2_ref, m9_ref, shifts)


def _up_final_kernel(xa_ref, xb_ref, xdc_ref, w1_ref, w2_ref, m9_ref,
                     fw_ref, fb_ref, o_ref, *, shifts):
    """Last decoder ConvBlock + final 1x1 conv + bias + cascade residual xdc - y."""
    x = jnp.concatenate([xa_ref[...], xb_ref[...]], axis=0)
    h = _conv_block(x, w1_ref, w2_ref, m9_ref, shifts)
    y = jnp.dot(fw_ref[...], h.astype(jnp.bfloat16),
                preferred_element_type=jnp.float32) + fb_ref[...]
    o_ref[...] = xdc_ref[...] - y


def _upconv_kernel(x_ref, w_ref, o_ref):
    """ConvTranspose2d(2,2,stride=2) as ONE stacked matmul + fused IN + LeakyReLU.
    x: (Cin, HW); w: (4*Cout, Cin) bf16; o: (Cout, 4*HW) tap-grouped."""
    HW = x_ref.shape[-1]
    Cout = o_ref.shape[0]
    y = jnp.dot(w_ref[...], x_ref[...].astype(jnp.bfloat16),
                preferred_element_type=jnp.float32)          # (4*Cout, HW)
    n = 4.0 * HW
    s = jnp.zeros((Cout, 1), jnp.float32)
    sq = jnp.zeros((Cout, 1), jnp.float32)
    for k in range(4):
        yk = y[k * Cout:(k + 1) * Cout]
        s = s + jnp.sum(yk, axis=-1, keepdims=True)
        sq = sq + jnp.sum(yk * yk, axis=-1, keepdims=True)
    mean = s * (1.0 / n)
    var = jnp.maximum(sq * (1.0 / n) - mean * mean, 0.0)
    inv = jax.lax.rsqrt(var + 1e-5)
    for k in range(4):
        z = (y[k * Cout:(k + 1) * Cout] - mean) * inv
        o_ref[:, k * HW:(k + 1) * HW] = jnp.where(z >= 0.0, z, 0.2 * z)


# ----------------------------------------------------------------------------
# Wrappers (pallas_call plumbing)
# ----------------------------------------------------------------------------
def dc_down_block(lam, xk, x0, coil2, opT, p, Hs, Ws):
    B, _, HW = xk.shape
    C = coil2.shape[2]
    Cout = p["w1"].shape[0]
    HWp = HW // 4
    shifts, masks = _shifts_and_masks(Hs, Ws)
    m9 = jnp.asarray(masks)
    pmat = jnp.asarray(_pool_mat_np(Hs, Ws)).astype(jnp.bfloat16)
    kern = functools.partial(_dc_down_kernel, shifts=shifts)
    return pl.pallas_call(
        kern,
        out_shape=(
            jax.ShapeDtypeStruct((B, 2, HW), jnp.float32),
            jax.ShapeDtypeStruct((B, Cout, HW), jnp.float32),
            jax.ShapeDtypeStruct((B, Cout, HWp), jnp.float32),
        ),
        grid=(B,),
        in_specs=[
            pl.BlockSpec((None, 2, HW), lambda b: (b, 0, 0)),
            pl.BlockSpec((None, 2, HW), lambda b: (b, 0, 0)),
            pl.BlockSpec((None, 2, C, HW), lambda b: (b, 0, 0, 0)),
            _const_spec((HW, 2 * HW), lambda b: (0, 0)),
            _const_spec(p["w1"].shape, lambda b: (0, 0)),
            _const_spec(p["w2"].shape, lambda b: (0, 0)),
            _const_spec((9, HW), lambda b: (0, 0)),
            _const_spec((HW, HWp), lambda b: (0, 0)),
            pl.BlockSpec(memory_space=pltpu.MemorySpace.SMEM),
        ],
        out_specs=(
            pl.BlockSpec((None, 2, HW), lambda b: (b, 0, 0)),
            pl.BlockSpec((None, Cout, HW), lambda b: (b, 0, 0)),
            pl.BlockSpec((None, Cout, HWp), lambda b: (b, 0, 0)),
        ),
        compiler_params=_cparams(opT.size * opT.dtype.itemsize),
    )(xk, x0, coil2, opT, p["w1"], p["w2"], m9, pmat, lam)


def down_block(p, x, Hs, Ws):
    B, Cin, HW = x.shape
    Cout = p["w1"].shape[0]
    HWp = HW // 4
    shifts, masks = _shifts_and_masks(Hs, Ws)
    kern = functools.partial(_down_kernel, shifts=shifts)
    return pl.pallas_call(
        kern,
        out_shape=(
            jax.ShapeDtypeStruct((B, Cout, HW), jnp.float32),
            jax.ShapeDtypeStruct((B, Cout, HWp), jnp.float32),
        ),
        grid=(B,),
        in_specs=[
            pl.BlockSpec((None, Cin, HW), lambda b: (b, 0, 0)),
            _const_spec(p["w1"].shape, lambda b: (0, 0)),
            _const_spec(p["w2"].shape, lambda b: (0, 0)),
            _const_spec((9, HW), lambda b: (0, 0)),
            _const_spec((HW, HWp), lambda b: (0, 0)),
        ],
        out_specs=(
            pl.BlockSpec((None, Cout, HW), lambda b: (b, 0, 0)),
            pl.BlockSpec((None, Cout, HWp), lambda b: (b, 0, 0)),
        ),
        compiler_params=_cparams(),
    )(x, p["w1"], p["w2"], jnp.asarray(masks),
      jnp.asarray(_pool_mat_np(Hs, Ws)).astype(jnp.bfloat16))


def mid_block(p, x, Hs, Ws):
    B, Cin, HW = x.shape
    Cout = p["w1"].shape[0]
    shifts, masks = _shifts_and_masks(Hs, Ws)
    kern = functools.partial(_mid_kernel, shifts=shifts)
    return pl.pallas_call(
        kern,
        out_shape=jax.ShapeDtypeStruct((B, Cout, HW), jnp.float32),
        grid=(B,),
        in_specs=[
            pl.BlockSpec((None, Cin, HW), lambda b: (b, 0, 0)),
            _const_spec(p["w1"].shape, lambda b: (0, 0)),
            _const_spec(p["w2"].shape, lambda b: (0, 0)),
            _const_spec((9, HW), lambda b: (0, 0)),
        ],
        out_specs=pl.BlockSpec((None, Cout, HW), lambda b: (b, 0, 0)),
        compiler_params=_cparams(),
    )(x, p["w1"], p["w2"], jnp.asarray(masks))


def up_block(p, xa, xb, Hs, Ws):
    B, Ca, HW = xa.shape
    Cb = xb.shape[1]
    Cout = p["w1"].shape[0]
    shifts, masks = _shifts_and_masks(Hs, Ws)
    kern = functools.partial(_up_kernel, shifts=shifts)
    return pl.pallas_call(
        kern,
        out_shape=jax.ShapeDtypeStruct((B, Cout, HW), jnp.float32),
        grid=(B,),
        in_specs=[
            pl.BlockSpec((None, Ca, HW), lambda b: (b, 0, 0)),
            pl.BlockSpec((None, Cb, HW), lambda b: (b, 0, 0)),
            _const_spec(p["w1"].shape, lambda b: (0, 0)),
            _const_spec(p["w2"].shape, lambda b: (0, 0)),
            _const_spec((9, HW), lambda b: (0, 0)),
        ],
        out_specs=pl.BlockSpec((None, Cout, HW), lambda b: (b, 0, 0)),
        compiler_params=_cparams(),
    )(xa, xb, p["w1"], p["w2"], jnp.asarray(masks))


def up_final_block(p, fw, fb, xa, xb, xdc, Hs, Ws):
    B, Ca, HW = xa.shape
    Cb = xb.shape[1]
    shifts, masks = _shifts_and_masks(Hs, Ws)
    kern = functools.partial(_up_final_kernel, shifts=shifts)
    return pl.pallas_call(
        kern,
        out_shape=jax.ShapeDtypeStruct((B, 2, HW), jnp.float32),
        grid=(B,),
        in_specs=[
            pl.BlockSpec((None, Ca, HW), lambda b: (b, 0, 0)),
            pl.BlockSpec((None, Cb, HW), lambda b: (b, 0, 0)),
            pl.BlockSpec((None, 2, HW), lambda b: (b, 0, 0)),
            _const_spec(p["w1"].shape, lambda b: (0, 0)),
            _const_spec(p["w2"].shape, lambda b: (0, 0)),
            _const_spec((9, HW), lambda b: (0, 0)),
            _const_spec(fw.shape, lambda b: (0, 0)),
            _const_spec(fb.shape, lambda b: (0, 0)),
        ],
        out_specs=pl.BlockSpec((None, 2, HW), lambda b: (b, 0, 0)),
        compiler_params=_cparams(),
    )(xa, xb, xdc, p["w1"], p["w2"], jnp.asarray(masks), fw, fb)


def upconv_in_lrelu(p, x):
    """x: [B, Cin, HW] -> [B, Cout, 4*HW] grouped as [tap (i*2+j), hw]."""
    B, Cin, HW = x.shape
    Cout = p["w"].shape[0] // 4
    return pl.pallas_call(
        _upconv_kernel,
        out_shape=jax.ShapeDtypeStruct((B, Cout, 4 * HW), jnp.float32),
        grid=(B,),
        in_specs=[
            pl.BlockSpec((None, Cin, HW), lambda b: (b, 0, 0)),
            _const_spec(p["w"].shape, lambda b: (0, 0)),
        ],
        out_specs=pl.BlockSpec((None, Cout, 4 * HW), lambda b: (b, 0, 0)),
        compiler_params=_cparams(),
    )(x, p["w"])


def _interleave_up(y, Hs, Ws):
    """[B,C,4*Hs*Ws] (tap-grouped) -> [B,C,(2Hs)*(2Ws)] spatial layout."""
    B, Ch, _ = y.shape
    y = y.reshape(B, Ch, 2, 2, Hs, Ws)          # [b,c,i,j,h,w]
    y = y.transpose(0, 1, 4, 2, 5, 3)           # [b,c,h,i,w,j]
    return y.reshape(B, Ch, 4 * Hs * Ws)


# ----------------------------------------------------------------------------
# Parameter init / packing (weights pre-packed lane-dense, pre-cast to bf16)
# ----------------------------------------------------------------------------
def _winit(key, shape, fan_in):
    return (jax.random.normal(key, shape, jnp.float32) / np.sqrt(fan_in)).astype(jnp.float32)


def _pack3x3(w):
    """Conv2d weight (Cout,Cin,3,3) -> (Cout, 9*Cin) bf16, col = (kh*3+kw)*Cin + cin."""
    Cout, Cin = w.shape[0], w.shape[1]
    return jnp.transpose(w, (0, 2, 3, 1)).reshape(Cout, 9 * Cin).astype(jnp.bfloat16)


def _pack_up(w):
    """ConvTranspose2d weight (Cin,Cout,2,2) -> (4*Cout, Cin) bf16, row = (i*2+j)*Cout+cout."""
    Cin, Cout = w.shape[0], w.shape[1]
    return jnp.transpose(w, (2, 3, 1, 0)).reshape(4 * Cout, Cin).astype(jnp.bfloat16)


def init_conv_block(key, cin, cout):
    k1, k2 = jax.random.split(key)
    w1 = _winit(k1, (cout, cin, 3, 3), cin * 9)
    w2 = _winit(k2, (cout, cout, 3, 3), cout * 9)
    return {"w1": _pack3x3(w1), "w2": _pack3x3(w2)}


def init_unet(key, in_chans, out_chans, chans, num_pool_layers):
    keys = list(jax.random.split(key, 4 * num_pool_layers + 4))
    it = iter(keys)
    params = {"down": [], "up_t": [], "up_c": []}
    ch = chans
    params["down"].append(init_conv_block(next(it), in_chans, chans))
    for _ in range(num_pool_layers - 1):
        params["down"].append(init_conv_block(next(it), ch, ch * 2))
        ch *= 2
    params["bottleneck"] = init_conv_block(next(it), ch, ch * 2)
    for _ in range(num_pool_layers - 1):
        params["up_t"].append({"w": _pack_up(_winit(next(it), (ch * 2, ch, 2, 2), ch * 2 * 4))})
        params["up_c"].append(init_conv_block(next(it), ch * 2, ch))
        ch //= 2
    params["up_t"].append({"w": _pack_up(_winit(next(it), (ch * 2, ch, 2, 2), ch * 2 * 4))})
    params["up_c"].append(init_conv_block(next(it), ch * 2, ch))
    params["final_w"] = _winit(next(it), (out_chans, ch), ch).astype(jnp.bfloat16)
    params["final_b"] = jnp.zeros((out_chans, 1), jnp.float32)
    return params


def init_varnet(key, n_layers, k_iters, chans):
    keys = jax.random.split(key, k_iters)
    return {
        "lam": jnp.full((1, 1), 0.01, jnp.float32),
        "unets": [init_unet(keys[i], 2, 2, chans, n_layers) for i in range(k_iters)],
    }


# ----------------------------------------------------------------------------
# Masked 2-D DFT operator (host-side, computed ONCE outside the jitted forward)
# ----------------------------------------------------------------------------
def centered_dft_mats(n):
    eye = np.eye(n)
    fwd = np.fft.fftshift(np.fft.fft(np.fft.ifftshift(eye, axes=0), axis=0, norm="ortho"), axes=0)
    inv = np.fft.fftshift(np.fft.ifft(np.fft.ifftshift(eye, axes=0), axis=0, norm="ortho"), axes=0)
    return fwd.astype(np.complex64), inv.astype(np.complex64)


def build_masked_op(mask, H, W):
    """[Re(K^T) | Im(K^T)] as (HW, 2*HW) bf16, where
    K = IFFT2c . diag(vec(mask)^2) . FFT2c  (= A^H A of the SENSE k-space mask;
    mask^2 == mask for binary masks)."""
    fh, ifh = centered_dft_mats(H)
    fw, ifw = centered_dft_mats(W)
    F2 = np.kron(fh, fw)            # acts on row-major vec'd images
    IF2 = np.kron(ifh, ifw)
    m = np.asarray(mask, np.float32).reshape(-1, 1)
    m = m * m
    K = IF2 @ (m * F2)
    KT = K.T
    opT = np.concatenate([KT.real, KT.imag], axis=1).astype(np.float32)
    return jnp.asarray(opT).astype(jnp.bfloat16)


# ----------------------------------------------------------------------------
# One VarNet cascade: fused DC+first-conv, U-Net trunk, fused final+residual
# ----------------------------------------------------------------------------
def cascade(up_params, lam, xk, x0f, coil2, opT, H, W):
    down = up_params["down"]
    xdc, feat, pooled = dc_down_block(lam, xk, x0f, coil2, opT, down[0], H, W)
    skips = [feat]
    sizes = [(H, W)]
    hs, ws = H // 2, W // 2
    feat = pooled
    for p in down[1:]:
        full, pooled = down_block(p, feat, hs, ws)
        skips.append(full)
        sizes.append((hs, ws))
        feat = pooled
        hs, ws = hs // 2, ws // 2
    feat = mid_block(up_params["bottleneck"], feat, hs, ws)
    n_up = len(up_params["up_t"])
    for i, (pt, pc) in enumerate(zip(up_params["up_t"], up_params["up_c"])):
        skip = skips.pop()
        sh, sw = sizes.pop()
        upz = upconv_in_lrelu(pt, feat)            # (B, C, 4*hs*ws), tap-grouped
        upz = _interleave_up(upz, hs, ws)          # (B, C, sh*sw)
        hs, ws = sh, sw
        if i < n_up - 1:
            feat = up_block(pc, upz, skip, hs, ws)
        else:
            feat = up_final_block(pc, up_params["final_w"], up_params["final_b"],
                                  upz, skip, xdc, hs, ws)
    return feat                                    # (B, 2, HW) = xdc - unet(xdc)


@jax.jit
def varnet_forward(params, x0, coil, opT):
    B, _, H, W = x0.shape
    HW = H * W
    x0f = x0.reshape(B, 2, HW)
    coil2 = coil.transpose(0, 2, 1, 3, 4).reshape(B, 2, coil.shape[1], HW)
    xk = x0f                                       # xk = x0.clone()
    for unet_params in params["unets"]:
        xk = cascade(unet_params, params["lam"], xk, x0f, coil2, opT, H, W)
    return xk.reshape(B, 2, H, W)


# ----------------------------------------------------------------------------
if __name__ == "__main__":
    B, C, H, W = 2, 4, 16, 16
    N_LAYERS, K_ITERS, CHANS = 2, 2, 8   # CHANS small for the synthetic run

    key = jax.random.PRNGKey(0)
    k_x, k_coil, k_params = jax.random.split(key, 3)

    x0 = jax.random.normal(k_x, (B, 2, H, W), jnp.float32)
    coil = jax.random.normal(k_coil, (B, C, 2, H, W), jnp.float32) / np.sqrt(C)
    cols = np.arange(W)
    keep = (cols % 2 == 0) | ((cols >= W // 2 - 2) & (cols < W // 2 + 2))
    mask = np.broadcast_to(keep.astype(np.float32)[None, :], (H, W))

    params = init_varnet(k_params, N_LAYERS, K_ITERS, CHANS)
    opT = build_masked_op(mask, H, W)    # precomputed once, outside the jit

    out = varnet_forward(params, x0, coil, opT)
    out = jax.block_until_ready(out)
    assert out.shape == (B, 2, H, W) and out.dtype == jnp.float32
    assert bool(jnp.all(jnp.isfinite(out)))
    print("KERNEL_OK")
</pallas_src>

<mosaic_0001>
module attributes {stable_mosaic.version = 11 : i64} {
  func.func @_k(%arg0: i32, %arg1: memref<8x128xf32, #tpu.memory_space<vmem>>, %arg2: memref<8x128xf32, #tpu.memory_space<vmem>>) attributes {dimension_semantics = [#tpu.dimension_semantics<arbitrary>], iteration_bounds = array<i64: 2>, scalar_prefetch = 0 : i64, scratch_operands = 0 : i64, tpu.core_type = #tpu.core_type<tc>, window_params = [{pipeline_mode = #tpu.pipeline_mode<synchronous>, transform_indices = @transform_0, window_bounds = array<i64: 8, 128>}, {pipeline_mode = #tpu.pipeline_mode<synchronous>, transform_indices = @transform_1, window_bounds = array<i64: 8, 128>}]} {
    %c0 = arith.constant 0 : index
    %c0_0 = arith.constant 0 : index
    %0 = vector.load %arg1[%c0, %c0_0] : memref<8x128xf32, #tpu.memory_space<vmem>>, vector<8x128xf32>
    %cst = arith.constant 1.000000e+00 : f32
    %1 = vector.broadcast %cst : f32 to vector<8x128xf32>
    %2 = arith.addf %0, %1 : vector<8x128xf32>
    %c0_1 = arith.constant 0 : index
    %c0_2 = arith.constant 0 : index
    %3 = vector.load %arg2[%c0_1, %c0_2] : memref<8x128xf32, #tpu.memory_space<vmem>>, vector<8x128xf32>
    tpu.vector_store %arg2[%c0_1, %c0_2], %2 {strides = array<i32>} : memref<8x128xf32, #tpu.memory_space<vmem>>, vector<8x128xf32>,
    return
  }
  func.func @transform_0(%arg0: i32) -> (i32, i32) {
    %c0_i32 = arith.constant 0 : i32
    %c0_i32_0 = arith.constant 0 : i32
    %c0_i32_1 = arith.constant 0 : i32
    return %c0_i32, %c0_i32_0 : i32, i32
  }
  func.func @transform_1(%arg0: i32) -> (i32, i32) {
    %c0_i32 = arith.constant 0 : i32
    %c0_i32_0 = arith.constant 0 : i32
    %c0_i32_1 = arith.constant 0 : i32
    return %c0_i32, %c0_i32_0 : i32, i32
  }
}

module attributes {stable_mosaic.version = 11 : i64} {
  func.func @_dc_down_kernel(%arg0: i32, %arg1: memref<1x2x256xf32, #tpu.memory_space<vmem>>, %arg2: memref<1x2x256xf32, #tpu.memory_space<vmem>>, %arg3: memref<1x2x4x256xf32, #tpu.memory_space<vmem>>, %arg4: memref<256x512xbf16, #tpu.memory_space<vmem>>, %arg5: memref<8x18xbf16, #tpu.memory_space<vmem>>, %arg6: memref<8x72xbf16, #tpu.memory_space<vmem>>, %arg7: memref<9x256xf32, #tpu.memory_space<vmem>>, %arg8: memref<256x64xbf16, #tpu.memory_space<vmem>>, %arg9: memref<1x1xf32, #tpu.memory_space<smem>>, %arg10: memref<1x2x256xf32, #tpu.memory_space<vmem>>, %arg11: memref<1x8x256xf32, #tpu.memory_space<vmem>>, %arg12: memref<1x8x64xf32, #tpu.memory_space<vmem>>) attributes {dimension_semantics = [#tpu.dimension_semantics<parallel>], iteration_bounds = array<i64: 2>, scalar_prefetch = 0 : i64, scratch_operands = 0 : i64, tpu.core_type = #tpu.core_type<tc>, window_params = [{transform_indices = @transform_0, window_bounds = array<i64: 1, 2, 256>}, {transform_indices = @transform_1, window_bounds = array<i64: 1, 2, 256>}, {transform_indices = @transform_2, window_bounds = array<i64: 1, 2, 4, 256>}, {pipeline_mode = #tpu.pipeline_mode<synchronous>, transform_indices = @transform_3, window_bounds = array<i64: 256, 512>}, {pipeline_mode = #tpu.pipeline_mode<synchronous>, transform_indices = @transform_4, window_bounds = array<i64: 8, 18>}, {pipeline_mode = #tpu.pipeline_mode<synchronous>, transform_indices = @transform_5, window_bounds = array<i64: 8, 72>}, {pipeline_mode = #tpu.pipeline_mode<synchronous>, transform_indices = @transform_6, window_bounds = array<i64: 9, 256>}, {pipeline_mode = #tpu.pipeline_mode<synchronous>, transform_indices = @transform_7, window_bounds = array<i64: 256, 64>}, {transform_indices = @transform_8, window_bounds = array<i64: 1, 1>}, {transform_indices = @transform_9, window_bounds = array<i64: 1, 2, 256>}, {transform_indices = @transform_10, window_bounds = array<i64: 1, 8, 256>}, {transform_indices = @transform_11, window_bounds = array<i64: 1, 8, 64>}]} {
    %c0 = arith.constant 0 : index
    %c0_0 = arith.constant 0 : index
    %c0_1 = arith.constant 0 : index
    %0 = vector.load %arg1[%c0, %c0_0, %c0_1] : memref<1x2x256xf32, #tpu.memory_space<vmem>>, vector<1x2x256xf32>
    %1 = vector.shape_cast %0 : vector<1x2x256xf32> to vector<2x256xf32>
    %c0_2 = arith.constant 0 : index
    %c0_3 = arith.constant 0 : index
    %c0_4 = arith.constant 0 : index
    %2 = vector.load %arg2[%c0_2, %c0_3, %c0_4] : memref<1x2x256xf32, #tpu.memory_space<vmem>>, vector<1x2x256xf32>
    %3 = vector.shape_cast %2 : vector<1x2x256xf32> to vector<2x256xf32>
    %c0_5 = arith.constant 0 : index
    %c0_6 = arith.constant 0 : index
    %c0_7 = arith.constant 0 : index
    %c0_8 = arith.constant 0 : index
    %4 = vector.load %arg3[%c0_5, %c0_6, %c0_7, %c0_8] : memref<1x2x4x256xf32, #tpu.memory_space<vmem>>, vector<1x2x4x256xf32>
    %5 = vector.shape_cast %4 : vector<1x2x4x256xf32> to vector<2x4x256xf32>
    %c0_9 = arith.constant 0 : index
    %c0_10 = arith.constant 0 : index
    %6 = memref.load %arg9[%c0_9, %c0_10] : memref<1x1xf32, #tpu.memory_space<smem>>
    %7 = vector.extract_strided_slice %1 {offsets = [0, 0], sizes = [1, 256], strides = [1, 1]} : vector<2x256xf32> to vector<1x256xf32>
    %8 = vector.extract_strided_slice %1 {offsets = [1, 0], sizes = [1, 256], strides = [1, 1]} : vector<2x256xf32> to vector<1x256xf32>
    %9 = vector.extract_strided_slice %5 {offsets = [0, 0, 0], sizes = [1, 4, 256], strides = [1, 1, 1]} : vector<2x4x256xf32> to vector<1x4x256xf32>
    %10 = vector.shape_cast %9 : vector<1x4x256xf32> to vector<4x256xf32>
    %11 = vector.extract_strided_slice %5 {offsets = [1, 0, 0], sizes = [1, 4, 256], strides = [1, 1, 1]} : vector<2x4x256xf32> to vector<1x4x256xf32>
    %12 = vector.shape_cast %11 : vector<1x4x256xf32> to vector<4x256xf32>
    %13 = vector.broadcast %7 : vector<1x256xf32> to vector<4x256xf32>
    %14 = arith.mulf %10, %13 : vector<4x256xf32>
    %15 = vector.broadcast %8 : vector<1x256xf32> to vector<4x256xf32>
    %16 = arith.mulf %12, %15 : vector<4x256xf32>
    %17 = arith.subf %14, %16 : vector<4x256xf32>
    %18 = vector.broadcast %8 : vector<1x256xf32> to vector<4x256xf32>
    %19 = arith.mulf %10, %18 : vector<4x256xf32>
    %20 = vector.broadcast %7 : vector<1x256xf32> to vector<4x256xf32>
    %21 = arith.mulf %12, %20 : vector<4x256xf32>
    %22 = arith.addf %19, %21 : vector<4x256xf32>
    %23 = tpu.concatenate %17, %22 in 0 : vector<4x256xf32>, vector<4x256xf32> -> vector<8x256xf32>
    %24 = arith.truncf %23 : vector<8x256xf32> to vector<8x256xbf16>
    %c0_11 = arith.constant 0 : index
    %c0_12 = arith.constant 0 : index
    %25 = vector.load %arg4[%c0_11, %c0_12] : memref<256x512xbf16, #tpu.memory_space<vmem>>, vector<256x512xbf16>
    %cst = arith.constant dense<0.000000e+00> : vector<8x512xf32>
    %26 = tpu.matmul %24, %25, %cst {dimension_numbers = #tpu.dot_dimension_numbers<[1], [0], [0], [1], [0, 0, 1, 1], [], []>} : vector<8x256xbf16>, vector<256x512xbf16>, vector<8x512xf32> -> vector<8x512xf32>
    %27 = vector.extract_strided_slice %26 {offsets = [0, 0], sizes = [8, 256], strides = [1, 1]} : vector<8x512xf32> to vector<8x256xf32>
    %28 = vector.extract_strided_slice %26 {offsets = [0, 256], sizes = [8, 256], strides = [1, 1]} : vector<8x512xf32> to vector<8x256xf32>
    %29 = vector.extract_strided_slice %27 {offsets = [0, 0], sizes = [4, 256], strides = [1, 1]} : vector<8x256xf32> to vector<4x256xf32>
    %30 = vector.extract_strided_slice %28 {offsets = [4, 0], sizes = [4, 256], strides = [1, 1]} : vector<8x256xf32> to vector<4x256xf32>
    %31 = arith.subf %29, %30 : vector<4x256xf32>
    %32 = vector.extract_strided_slice %28 {offsets = [0, 0], sizes = [4, 256], strides = [1, 1]} : vector<8x256xf32> to vector<4x256xf32>
    %33 = vector.extract_strided_slice %27 {offsets = [4, 0], sizes = [4, 256], strides = [1, 1]} : vector<8x256xf32> to vector<4x256xf32>
    %34 = arith.addf %32, %33 : vector<4x256xf32>
    %35 = arith.mulf %10, %31 : vector<4x256xf32>
    %36 = arith.mulf %12, %34 : vector<4x256xf32>
    %37 = arith.addf %35, %36 : vector<4x256xf32>
    %cst_13 = arith.constant dense<0.000000e+00> : vector<256xf32>
    %38 = vector.multi_reduction <add>, %37, %cst_13 [0] : vector<4x256xf32> to vector<256xf32>
    %39 = vector.shape_cast %38 : vector<256xf32> to vector<1x256xf32>
    %40 = arith.mulf %10, %34 : vector<4x256xf32>
    %41 = arith.mulf %12, %31 : vector<4x256xf32>
    %42 = arith.subf %40, %41 : vector<4x256xf32>
    %cst_14 = arith.constant dense<0.000000e+00> : vector<256xf32>
    %43 = vector.multi_reduction <add>, %42, %cst_14 [0] : vector<4x256xf32> to vector<256xf32>
    %44 = vector.shape_cast %43 : vector<256xf32> to vector<1x256xf32>
    %45 = vector.extract_strided_slice %3 {offsets = [0, 0], sizes = [1, 256], strides = [1, 1]} : vector<2x256xf32> to vector<1x256xf32>
    %46 = arith.subf %39, %45 : vector<1x256xf32>
    %47 = vector.broadcast %6 : f32 to vector<1x256xf32>
    %48 = arith.mulf %47, %46 : vector<1x256xf32>
    %49 = arith.subf %7, %48 : vector<1x256xf32>
    %50 = vector.extract_strided_slice %3 {offsets = [1, 0], sizes = [1, 256], strides = [1, 1]} : vector<2x256xf32> to vector<1x256xf32>
    %51 = arith.subf %44, %50 : vector<1x256xf32>
    %52 = vector.broadcast %6 : f32 to vector<1x256xf32>
    %53 = arith.mulf %52, %51 : vector<1x256xf32>
    %54 = arith.subf %8, %53 : vector<1x256xf32>
    %c0_15 = arith.constant 0 : index
    %c0_16 = arith.constant 0 : index
    %c0_17 = arith.constant 0 : index
    %55 = vector.load %arg10[%c0_15, %c0_16, %c0_17] : memref<1x2x256xf32, #tpu.memory_space<vmem>>, vector<1x1x256xf32>
    %56 = vector.shape_cast %55 : vector<1x1x256xf32> to vector<1x256xf32>
    %57 = vector.shape_cast %49 : vector<1x256xf32> to vector<1x1x256xf32>
    tpu.vector_store %arg10[%c0_15, %c0_16, %c0_17], %57 {strides = array<i32>} : memref<1x2x256xf32, #tpu.memory_space<vmem>>, vector<1x1x256xf32>,
    %c0_18 = arith.constant 0 : index
    %c1 = arith.constant 1 : index
    %c0_19 = arith.constant 0 : index
    %58 = vector.load %arg10[%c0_18, %c1, %c0_19] : memref<1x2x256xf32, #tpu.memory_space<vmem>>, vector<1x1x256xf32>
    %59 = vector.shape_cast %58 : vector<1x1x256xf32> to vector<1x256xf32>
    %60 = vector.shape_cast %54 : vector<1x256xf32> to vector<1x1x256xf32>
    tpu.vector_store %arg10[%c0_18, %c1, %c0_19], %60 {strides = array<i32>} : memref<1x2x256xf32, #tpu.memory_space<vmem>>, vector<1x1x256xf32>,
    %61 = tpu.concatenate %49, %54 in 0 : vector<1x256xf32>, vector<1x256xf32> -> vector<2x256xf32>
    %c17_i32 = arith.constant 17 : i32
    %62 = tpu.dynamic_rotate %61 by %c17_i32 dim 1 : vector<2x256xf32>, i32 -> vector<2x256xf32>
    %c0_20 = arith.constant 0 : index
    %c0_21 = arith.constant 0 : index
    %63 = vector.load %arg7[%c0_20, %c0_21] : memref<9x256xf32, #tpu.memory_space<vmem>>, vector<1x256xf32>
    %64 = vector.broadcast %63 : vector<1x256xf32> to vector<2x256xf32>
    %65 = arith.mulf %62, %64 : vector<2x256xf32>
    %c16_i32 = arith.constant 16 : i32
    %66 = tpu.dynamic_rotate %61 by %c16_i32 dim 1 : vector<2x256xf32>, i32 -> vector<2x256xf32>
    %c1_22 = arith.constant 1 : index
    %c0_23 = arith.constant 0 : index
    %67 = vector.load %arg7[%c1_22, %c0_23] : memref<9x256xf32, #tpu.memory_space<vmem>>, vector<1x256xf32>
    %68 = vector.broadcast %67 : vector<1x256xf32> to vector<2x256xf32>
    %69 = arith.mulf %66, %68 : vector<2x256xf32>
    %c15_i32 = arith.constant 15 : i32
    %70 = tpu.dynamic_rotate %61 by %c15_i32 dim 1 : vector<2x256xf32>, i32 -> vector<2x256xf32>
    %c2 = arith.constant 2 : index
    %c0_24 = arith.constant 0 : index
    %71 = vector.load %arg7[%c2, %c0_24] : memref<9x256xf32, #tpu.memory_space<vmem>>, vector<1x256xf32>
    %72 = vector.broadcast %71 : vector<1x256xf32> to vector<2x256xf32>
    %73 = arith.mulf %70, %72 : vector<2x256xf32>
    %c1_i32 = arith.constant 1 : i32
    %74 = tpu.dynamic_rotate %61 by %c1_i32 dim 1 : vector<2x256xf32>, i32 -> vector<2x256xf32>
    %c3 = arith.constant 3 : index
    %c0_25 = arith.constant 0 : index
    %75 = vector.load %arg7[%c3, %c0_25] : memref<9x256xf32, #tpu.memory_space<vmem>>, vector<1x256xf32>
    %76 = vector.broadcast %75 : vector<1x256xf32> to vector<2x256xf32>
    %77 = arith.mulf %74, %76 : vector<2x256xf32>
    %c255_i32 = arith.constant 255 : i32
    %78 = tpu.dynamic_rotate %61 by %c255_i32 dim 1 : vector<2x256xf32>, i32 -> vector<2x256xf32>
    %c5 = arith.constant 5 : index
    %c0_26 = arith.constant 0 : index
    %79 = vector.load %arg7[%c5, %c0_26] : memref<9x256xf32, #tpu.memory_space<vmem>>, vector<1x256xf32>
    %80 = vector.broadcast %79 : vector<1x256xf32> to vector<2x256xf32>
    %81 = arith.mulf %78, %80 : vector<2x256xf32>
    %c241_i32 = arith.constant 241 : i32
    %82 = tpu.dynamic_rotate %61 by %c241_i32 dim 1 : vector<2x256xf32>, i32 -> vector<2x256xf32>
    %c6 = arith.constant 6 : index
    %c0_27 = arith.constant 0 : index
    %83 = vector.load %arg7[%c6, %c0_27] : memref<9x256xf32, #tpu.memory_space<vmem>>, vector<1x256xf32>
    %84 = vector.broadcast %83 : vector<1x256xf32> to vector<2x256xf32>
    %85 = arith.mulf %82, %84 : vector<2x256xf32>
    %c240_i32 = arith.constant 240 : i32
    %86 = tpu.dynamic_rotate %61 by %c240_i32 dim 1 : vector<2x256xf32>, i32 -> vector<2x256xf32>
    %c7 = arith.constant 7 : index
    %c0_28 = arith.constant 0 : index
    %87 = vector.load %arg7[%c7, %c0_28] : memref<9x256xf32, #tpu.memory_space<vmem>>, vector<1x256xf32>
    %88 = vector.broadcast %87 : vector<1x256xf32> to vector<2x256xf32>
    %89 = arith.mulf %86, %88 : vector<2x256xf32>
    %c239_i32 = arith.constant 239 : i32
    %90 = tpu.dynamic_rotate %61 by %c239_i32 dim 1 : vector<2x256xf32>, i32 -> vector<2x256xf32>
    %c8 = arith.constant 8 : index
    %c0_29 = arith.constant 0 : index
    %91 = vector.load %arg7[%c8, %c0_29] : memref<9x256xf32, #tpu.memory_space<vmem>>, vector<1x256xf32>
    %92 = vector.broadcast %91 : vector<1x256xf32> to vector<2x256xf32>
    %93 = arith.mulf %90, %92 : vector<2x256xf32>
    %94 = tpu.concatenate %65, %69, %73, %77, %61, %81, %85, %89, %93 in 0 : vector<2x256xf32>, vector<2x256xf32>, vector<2x256xf32>, vector<2x256xf32>, vector<2x256xf32>, vector<2x256xf32>, vector<2x256xf32>, vector<2x256xf32>, vector<2x256xf32> -> vector<18x256xf32>
    %95 = arith.truncf %94 : vector<18x256xf32> to vector<18x256xbf16>
    %c0_30 = arith.constant 0 : index
    %c0_31 = arith.constant 0 : index
    %96 = vector.load %arg5[%c0_30, %c0_31] : memref<8x18xbf16, #tpu.memory_space<vmem>>, vector<8x18xbf16>
    %cst_32 = arith.constant dense<0.000000e+00> : vector<8x256xf32>
    %97 = tpu.matmul %96, %95, %cst_32 {dimension_numbers = #tpu.dot_dimension_numbers<[1], [0], [0], [1], [0, 0, 1, 1], [], []>} : vector<8x18xbf16>, vector<18x256xbf16>, vector<8x256xf32> -> vector<8x256xf32>
    %cst_33 = arith.constant dense<0.000000e+00> : vector<8xf32>
    %98 = vector.multi_reduction <add>, %97, %cst_33 [1] : vector<8x256xf32> to vector<8xf32>
    %99 = vector.shape_cast %98 : vector<8xf32> to vector<8x1xf32>
    %100 = arith.mulf %97, %97 : vector<8x256xf32>
    %cst_34 = arith.constant dense<0.000000e+00> : vector<8xf32>
    %101 = vector.multi_reduction <add>, %100, %cst_34 [1] : vector<8x256xf32> to vector<8xf32>
    %102 = vector.shape_cast %101 : vector<8xf32> to vector<8x1xf32>
    %cst_35 = arith.constant 3.906250e-03 : f32
    %103 = vector.broadcast %cst_35 : f32 to vector<8x1xf32>
    %104 = arith.mulf %99, %103 : vector<8x1xf32>
    %cst_36 = arith.constant 3.906250e-03 : f32
    %105 = vector.broadcast %cst_36 : f32 to vector<8x1xf32>
    %106 = arith.mulf %102, %105 : vector<8x1xf32>
    %107 = arith.mulf %104, %104 : vector<8x1xf32>
    %108 = arith.subf %106, %107 : vector<8x1xf32>
    %cst_37 = arith.constant 0.000000e+00 : f32
    %109 = vector.broadcast %cst_37 : f32 to vector<8x1xf32>
    %110 = arith.maximumf %108, %109 : vector<8x1xf32>
    %111 = vector.broadcast %104 : vector<8x1xf32> to vector<8x256xf32>
    %112 = arith.subf %97, %111 : vector<8x256xf32>
    %cst_38 = arith.constant 9.99999974E-6 : f32
    %113 = vector.broadcast %cst_38 : f32 to vector<8x1xf32>
    %114 = arith.addf %110, %113 : vector<8x1xf32>
    %115 = math.rsqrt %114 : vector<8x1xf32>
    %116 = vector.broadcast %115 : vector<8x1xf32> to vector<8x256xf32>
    %117 = arith.mulf %112, %116 : vector<8x256xf32>
    %cst_39 = arith.constant 0.000000e+00 : f32
    %118 = vector.broadcast %cst_39 : f32 to vector<8x256xf32>
    %119 = arith.cmpf oge, %117, %118 : vector<8x256xf32>
    %cst_40 = arith.constant 2.000000e-01 : f32
    %120 = vector.broadcast %cst_40 : f32 to vector<8x256xf32>
    %121 = arith.mulf %120, %117 : vector<8x256xf32>
    %122 = arith.select %119, %117, %121 : vector<8x256xi1>, vector<8x256xf32>
    %c17_i32_41 = arith.constant 17 : i32
    %123 = tpu.dynamic_rotate %122 by %c17_i32_41 dim 1 : vector<8x256xf32>, i32 -> vector<8x256xf32>
    %c0_42 = arith.constant 0 : index
    %c0_43 = arith.constant 0 : index
    %124 = vector.load %arg7[%c0_42, %c0_43] : memref<9x256xf32, #tpu.memory_space<vmem>>, vector<1x256xf32>
    %125 = vector.broadcast %124 : vector<1x256xf32> to vector<8x256xf32>
    %126 = arith.mulf %123, %125 : vector<8x256xf32>
    %c16_i32_44 = arith.constant 16 : i32
    %127 = tpu.dynamic_rotate %122 by %c16_i32_44 dim 1 : vector<8x256xf32>, i32 -> vector<8x256xf32>
    %c1_45 = arith.constant 1 : index
    %c0_46 = arith.constant 0 : index
    %128 = vector.load %arg7[%c1_45, %c0_46] : memref<9x256xf32, #tpu.memory_space<vmem>>, vector<1x256xf32>
    %129 = vector.broadcast %128 : vector<1x256xf32> to vector<8x256xf32>
    %130 = arith.mulf %127, %129 : vector<8x256xf32>
    %c15_i32_47 = arith.constant 15 : i32
    %131 = tpu.dynamic_rotate %122 by %c15_i32_47 dim 1 : vector<8x256xf32>, i32 -> vector<8x256xf32>
    %c2_48 = arith.constant 2 : index
    %c0_49 = arith.constant 0 : index
    %132 = vector.load %arg7[%c2_48, %c0_49] : memref<9x256xf32, #tpu.memory_space<vmem>>, vector<1x256xf32>
    %133 = vector.broadcast %132 : vector<1x256xf32> to vector<8x256xf32>
    %134 = arith.mulf %131, %133 : vector<8x256xf32>
    %c1_i32_50 = arith.constant 1 : i32
    %135 = tpu.dynamic_rotate %122 by %c1_i32_50 dim 1 : vector<8x256xf32>, i32 -> vector<8x256xf32>
    %c3_51 = arith.constant 3 : index
    %c0_52 = arith.constant 0 : index
    %136 = vector.load %arg7[%c3_51, %c0_52] : memref<9x256xf32, #tpu.memory_space<vmem>>, vector<1x256xf32>
    %137 = vector.broadcast %136 : vector<1x256xf32> to vector<8x256xf32>
    %138 = arith.mulf %135, %137 : vector<8x256xf32>
    %c255_i32_53 = arith.constant 255 : i32
    %139 = tpu.dynamic_rotate %122 by %c255_i32_53 dim 1 : vector<8x256xf32>, i32 -> vector<8x256xf32>
    %c5_54 = arith.constant 5 : index
    %c0_55 = arith.constant 0 : index
    %140 = vector.load %arg7[%c5_54, %c0_55] : memref<9x256xf32, #tpu.memory_space<vmem>>, vector<1x256xf32>
    %141 = vector.broadcast %140 : vector<1x256xf32> to vector<8x256xf32>
    %142 = arith.mulf %139, %141 : vector<8x256xf32>
    %c241_i32_56 = arith.constant 241 : i32
    %143 = tpu.dynamic_rotate %122 by %c241_i32_56 dim 1 : vector<8x256xf32>, i32 -> vector<8x256xf32>
    %c6_57 = arith.constant 6 : index
    %c0_58 = arith.constant 0 : index
    %144 = vector.load %arg7[%c6_57, %c0_58] : memref<9x256xf32, #tpu.memory_space<vmem>>, vector<1x256xf32>
    %145 = vector.broadcast %144 : vector<1x256xf32> to vector<8x256xf32>
    %146 = arith.mulf %143, %145 : vector<8x256xf32>
    %c240_i32_59 = arith.constant 240 : i32
    %147 = tpu.dynamic_rotate %122 by %c240_i32_59 dim 1 : vector<8x256xf32>, i32 -> vector<8x256xf32>
    %c7_60 = arith.constant 7 : index
    %c0_61 = arith.constant 0 : index
    %148 = vector.load %arg7[%c7_60, %c0_61] : memref<9x256xf32, #tpu.memory_space<vmem>>, vector<1x256xf32>
    %149 = vector.broadcast %148 : vector<1x256xf32> to vector<8x256xf32>
    %150 = arith.mulf %147, %149 : vector<8x256xf32>
    %c239_i32_62 = arith.constant 239 : i32
    %151 = tpu.dynamic_rotate %122 by %c239_i32_62 dim 1 : vector<8x256xf32>, i32 -> vector<8x256xf32>
    %c8_63 = arith.constant 8 : index
    %c0_64 = arith.constant 0 : index
    %152 = vector.load %arg7[%c8_63, %c0_64] : memref<9x256xf32, #tpu.memory_space<vmem>>, vector<1x256xf32>
    %153 = vector.broadcast %152 : vector<1x256xf32> to vector<8x256xf32>
    %154 = arith.mulf %151, %153 : vector<8x256xf32>
    %155 = tpu.concatenate %126, %130, %134, %138, %122, %142, %146, %150, %154 in 0 : vector<8x256xf32>, vector<8x256xf32>, vector<8x256xf32>, vector<8x256xf32>, vector<8x256xf32>, vector<8x256xf32>, vector<8x256xf32>, vector<8x256xf32>, vector<8x256xf32> -> vector<72x256xf32>
    %156 = arith.truncf %155 : vector<72x256xf32> to vector<72x256xbf16>
    %c0_65 = arith.constant 0 : index
    %c0_66 = arith.constant 0 : index
    %157 = vector.load %arg6[%c0_65, %c0_66] : memref<8x72xbf16, #tpu.memory_space<vmem>>, vector<8x72xbf16>
    %cst_67 = arith.constant dense<0.000000e+00> : vector<8x256xf32>
    %158 = tpu.matmul %157, %156, %cst_67 {dimension_numbers = #tpu.dot_dimension_numbers<[1], [0], [0], [1], [0, 0, 1, 1], [], []>} : vector<8x72xbf16>, vector<72x256xbf16>, vector<8x256xf32> -> vector<8x256xf32>
    %cst_68 = arith.constant dense<0.000000e+00> : vector<8xf32>
    %159 = vector.multi_reduction <add>, %158, %cst_68 [1] : vector<8x256xf32> to vector<8xf32>
    %160 = vector.shape_cast %159 : vector<8xf32> to vector<8x1xf32>
    %161 = arith.mulf %158, %158 : vector<8x256xf32>
    %cst_69 = arith.constant dense<0.000000e+00> : vector<8xf32>
    %162 = vector.multi_reduction <add>, %161, %cst_69 [1] : vector<8x256xf32> to vector<8xf32>
    %163 = vector.shape_cast %162 : vector<8xf32> to vector<8x1xf32>
    %cst_70 = arith.constant 3.906250e-03 : f32
    %164 = vector.broadcast %cst_70 : f32 to vector<8x1xf32>
    %165 = arith.mulf %160, %164 : vector<8x1xf32>
    %cst_71 = arith.constant 3.906250e-03 : f32
    %166 = vector.broadcast %cst_71 : f32 to vector<8x1xf32>
    %167 = arith.mulf %163, %166 : vector<8x1xf32>
    %168 = arith.mulf %165, %165 : vector<8x1xf32>
    %169 = arith.subf %167, %168 : vector<8x1xf32>
    %cst_72 = arith.constant 0.000000e+00 : f32
    %170 = vector.broadcast %cst_72 : f32 to vector<8x1xf32>
    %171 = arith.maximumf %169, %170 : vector<8x1xf32>
    %172 = vector.broadcast %165 : vector<8x1xf32> to vector<8x256xf32>
    %173 = arith.subf %158, %172 : vector<8x256xf32>
    %cst_73 = arith.constant 9.99999974E-6 : f32
    %174 = vector.broadcast %cst_73 : f32 to vector<8x1xf32>
    %175 = arith.addf %171, %174 : vector<8x1xf32>
    %176 = math.rsqrt %175 : vector<8x1xf32>
    %177 = vector.broadcast %176 : vector<8x1xf32> to vector<8x256xf32>
    %178 = arith.mulf %173, %177 : vector<8x256xf32>
    %cst_74 = arith.constant 0.000000e+00 : f32
    %179 = vector.broadcast %cst_74 : f32 to vector<8x256xf32>
    %180 = arith.cmpf oge, %178, %179 : vector<8x256xf32>
    %cst_75 = arith.constant 2.000000e-01 : f32
    %181 = vector.broadcast %cst_75 : f32 to vector<8x256xf32>
    %182 = arith.mulf %181, %178 : vector<8x256xf32>
    %183 = arith.select %180, %178, %182 : vector<8x256xi1>, vector<8x256xf32>
    %c0_76 = arith.constant 0 : index
    %c0_77 = arith.constant 0 : index
    %c0_78 = arith.constant 0 : index
    %184 = vector.load %arg11[%c0_76, %c0_77, %c0_78] : memref<1x8x256xf32, #tpu.memory_space<vmem>>, vector<1x8x256xf32>
    %185 = vector.shape_cast %184 : vector<1x8x256xf32> to vector<8x256xf32>
    %186 = vector.shape_cast %183 : vector<8x256xf32> to vector<1x8x256xf32>
    tpu.vector_store %arg11[%c0_76, %c0_77, %c0_78], %186 {strides = array<i32>} : memref<1x8x256xf32, #tpu.memory_space<vmem>>, vector<1x8x256xf32>,
    %187 = arith.truncf %183 : vector<8x256xf32> to vector<8x256xbf16>
    %c0_79 = arith.constant 0 : index
    %c0_80 = arith.constant 0 : index
    %188 = vector.load %arg8[%c0_79, %c0_80] : memref<256x64xbf16, #tpu.memory_space<vmem>>, vector<256x64xbf16>
    %cst_81 = arith.constant dense<0.000000e+00> : vector<8x64xf32>
    %189 = tpu.matmul %187, %188, %cst_81 {dimension_numbers = #tpu.dot_dimension_numbers<[1], [0], [0], [1], [0, 0, 1, 1], [], []>} : vector<8x256xbf16>, vector<256x64xbf16>, vector<8x64xf32> -> vector<8x64xf32>
    %c0_82 = arith.constant 0 : index
    %c0_83 = arith.constant 0 : index
    %c0_84 = arith.constant 0 : index
    %190 = vector.load %arg12[%c0_82, %c0_83, %c0_84] : memref<1x8x64xf32, #tpu.memory_space<vmem>>, vector<1x8x64xf32>
    %191 = vector.shape_cast %190 : vector<1x8x64xf32> to vector<8x64xf32>
    %192 = vector.shape_cast %189 : vector<8x64xf32> to vector<1x8x64xf32>
    tpu.vector_store %arg12[%c0_82, %c0_83, %c0_84], %192 {strides = array<i32>} : memref<1x8x64xf32, #tpu.memory_space<vmem>>, vector<1x8x64xf32>,
    return
  }
  func.func @transform_0(%arg0: i32) -> (i32, i32, i32) {
    %c0_i32 = arith.constant 0 : i32
    %c0_i32_0 = arith.constant 0 : i32
    %c0_i32_1 = arith.constant 0 : i32
    return %arg0, %c0_i32, %c0_i32_0 : i32, i32, i32
  }
  func.func @transform_1(%arg0: i32) -> (i32, i32, i32) {
    %c0_i32 = arith.constant 0 : i32
    %c0_i32_0 = arith.constant 0 : i32
    %c0_i32_1 = arith.constant 0 : i32
    return %arg0, %c0_i32, %c0_i32_0 : i32, i32, i32
  }
  func.func @transform_2(%arg0: i32) -> (i32, i32, i32, i32) {
    %c0_i32 = arith.constant 0 : i32
    %c0_i32_0 = arith.constant 0 : i32
    %c0_i32_1 = arith.constant 0 : i32
    %c0_i32_2 = arith.constant 0 : i32
    return %arg0, %c0_i32, %c0_i32_0, %c0_i32_1 : i32, i32, i32, i32
  }
  func.func @transform_3(%arg0: i32) -> (i32, i32) {
    %c0_i32 = arith.constant 0 : i32
    %c0_i32_0 = arith.constant 0 : i32
    %c0_i32_1 = arith.constant 0 : i32
    return %c0_i32, %c0_i32_0 : i32, i32
  }
  func.func @transform_4(%arg0: i32) -> (i32, i32) {
    %c0_i32 = arith.constant 0 : i32
    %c0_i32_0 = arith.constant 0 : i32
    %c0_i32_1 = arith.constant 0 : i32
    return %c0_i32, %c0_i32_0 : i32, i32
  }
  func.func @transform_5(%arg0: i32) -> (i32, i32) {
    %c0_i32 = arith.constant 0 : i32
    %c0_i32_0 = arith.constant 0 : i32
    %c0_i32_1 = arith.constant 0 : i32
    return %c0_i32, %c0_i32_0 : i32, i32
  }
  func.func @transform_6(%arg0: i32) -> (i32, i32) {
    %c0_i32 = arith.constant 0 : i32
    %c0_i32_0 = arith.constant 0 : i32
    %c0_i32_1 = arith.constant 0 : i32
    return %c0_i32, %c0_i32_0 : i32, i32
  }
  func.func @transform_7(%arg0: i32) -> (i32, i32) {
    %c0_i32 = arith.constant 0 : i32
    %c0_i32_0 = arith.constant 0 : i32
    %c0_i32_1 = arith.constant 0 : i32
    return %c0_i32, %c0_i32_0 : i32, i32
  }
  func.func @transform_8(%arg0: i32) -> (i32, i32) {
    %c0_i32 = arith.constant 0 : i32
    %c0_i32_0 = arith.constant 0 : i32
    %c0_i32_1 = arith.constant 0 : i32
    return %c0_i32, %c0_i32_0 : i32, i32
  }
  func.func @transform_9(%arg0: i32) -> (i32, i32, i32) {
    %c0_i32 = arith.constant 0 : i32
    %c0_i32_0 = arith.constant 0 : i32
    %c0_i32_1 = arith.constant 0 : i32
    return %arg0, %c0_i32, %c0_i32_0 : i32, i32, i32
  }
  func.func @transform_10(%arg0: i32) -> (i32, i32, i32) {
    %c0_i32 = arith.constant 0 : i32
    %c0_i32_0 = arith.constant 0 : i32
    %c0_i32_1 = arith.constant 0 : i32
    return %arg0, %c0_i32, %c0_i32_0 : i32, i32, i32
  }
  func.func @transform_11(%arg0: i32) -> (i32, i32, i32) {
    %c0_i32 = arith.constant 0 : i32
    %c0_i32_0 = arith.constant 0 : i32
    %c0_i32_1 = arith.constant 0 : i32
    return %arg0, %c0_i32, %c0_i32_0 : i32, i32, i32
  }
}

module attributes {stable_mosaic.version = 11 : i64} {
  func.func @_down_kernel(%arg0: i32, %arg1: memref<1x8x64xf32, #tpu.memory_space<vmem>>, %arg2: memref<16x72xbf16, #tpu.memory_space<vmem>>, %arg3: memref<16x144xbf16, #tpu.memory_space<vmem>>, %arg4: memref<9x64xf32, #tpu.memory_space<vmem>>, %arg5: memref<64x16xbf16, #tpu.memory_space<vmem>>, %arg6: memref<1x16x64xf32, #tpu.memory_space<vmem>>, %arg7: memref<1x16x16xf32, #tpu.memory_space<vmem>>) attributes {dimension_semantics = [#tpu.dimension_semantics<parallel>], iteration_bounds = array<i64: 2>, scalar_prefetch = 0 : i64, scratch_operands = 0 : i64, tpu.core_type = #tpu.core_type<tc>, window_params = [{transform_indices = @transform_0, window_bounds = array<i64: 1, 8, 64>}, {pipeline_mode = #tpu.pipeline_mode<synchronous>, transform_indices = @transform_1, window_bounds = array<i64: 16, 72>}, {pipeline_mode = #tpu.pipeline_mode<synchronous>, transform_indices = @transform_2, window_bounds = array<i64: 16, 144>}, {pipeline_mode = #tpu.pipeline_mode<synchronous>, transform_indices = @transform_3, window_bounds = array<i64: 9, 64>}, {pipeline_mode = #tpu.pipeline_mode<synchronous>, transform_indices = @transform_4, window_bounds = array<i64: 64, 16>}, {transform_indices = @transform_5, window_bounds = array<i64: 1, 16, 64>}, {transform_indices = @transform_6, window_bounds = array<i64: 1, 16, 16>}]} {
    %c0 = arith.constant 0 : index
    %c0_0 = arith.constant 0 : index
    %c0_1 = arith.constant 0 : index
    %0 = vector.load %arg1[%c0, %c0_0, %c0_1] : memref<1x8x64xf32, #tpu.memory_space<vmem>>, vector<1x8x64xf32>
    %1 = vector.shape_cast %0 : vector<1x8x64xf32> to vector<8x64xf32>
    %c9_i32 = arith.constant 9 : i32
    %2 = tpu.dynamic_rotate %1 by %c9_i32 dim 1 : vector<8x64xf32>, i32 -> vector<8x64xf32>
    %c0_2 = arith.constant 0 : index
    %c0_3 = arith.constant 0 : index
    %3 = vector.load %arg4[%c0_2, %c0_3] : memref<9x64xf32, #tpu.memory_space<vmem>>, vector<1x64xf32>
    %4 = vector.broadcast %3 : vector<1x64xf32> to vector<8x64xf32>
    %5 = arith.mulf %2, %4 : vector<8x64xf32>
    %c8_i32 = arith.constant 8 : i32
    %6 = tpu.dynamic_rotate %1 by %c8_i32 dim 1 : vector<8x64xf32>, i32 -> vector<8x64xf32>
    %c1 = arith.constant 1 : index
    %c0_4 = arith.constant 0 : index
    %7 = vector.load %arg4[%c1, %c0_4] : memref<9x64xf32, #tpu.memory_space<vmem>>, vector<1x64xf32>
    %8 = vector.broadcast %7 : vector<1x64xf32> to vector<8x64xf32>
    %9 = arith.mulf %6, %8 : vector<8x64xf32>
    %c7_i32 = arith.constant 7 : i32
    %10 = tpu.dynamic_rotate %1 by %c7_i32 dim 1 : vector<8x64xf32>, i32 -> vector<8x64xf32>
    %c2 = arith.constant 2 : index
    %c0_5 = arith.constant 0 : index
    %11 = vector.load %arg4[%c2, %c0_5] : memref<9x64xf32, #tpu.memory_space<vmem>>, vector<1x64xf32>
    %12 = vector.broadcast %11 : vector<1x64xf32> to vector<8x64xf32>
    %13 = arith.mulf %10, %12 : vector<8x64xf32>
    %c1_i32 = arith.constant 1 : i32
    %14 = tpu.dynamic_rotate %1 by %c1_i32 dim 1 : vector<8x64xf32>, i32 -> vector<8x64xf32>
    %c3 = arith.constant 3 : index
    %c0_6 = arith.constant 0 : index
    %15 = vector.load %arg4[%c3, %c0_6] : memref<9x64xf32, #tpu.memory_space<vmem>>, vector<1x64xf32>
    %16 = vector.broadcast %15 : vector<1x64xf32> to vector<8x64xf32>
    %17 = arith.mulf %14, %16 : vector<8x64xf32>
    %c63_i32 = arith.constant 63 : i32
    %18 = tpu.dynamic_rotate %1 by %c63_i32 dim 1 : vector<8x64xf32>, i32 -> vector<8x64xf32>
    %c5 = arith.constant 5 : index
    %c0_7 = arith.constant 0 : index
    %19 = vector.load %arg4[%c5, %c0_7] : memref<9x64xf32, #tpu.memory_space<vmem>>, vector<1x64xf32>
    %20 = vector.broadcast %19 : vector<1x64xf32> to vector<8x64xf32>
    %21 = arith.mulf %18, %20 : vector<8x64xf32>
    %c57_i32 = arith.constant 57 : i32
    %22 = tpu.dynamic_rotate %1 by %c57_i32 dim 1 : vector<8x64xf32>, i32 -> vector<8x64xf32>
    %c6 = arith.constant 6 : index
    %c0_8 = arith.constant 0 : index
    %23 = vector.load %arg4[%c6, %c0_8] : memref<9x64xf32, #tpu.memory_space<vmem>>, vector<1x64xf32>
    %24 = vector.broadcast %23 : vector<1x64xf32> to vector<8x64xf32>
    %25 = arith.mulf %22, %24 : vector<8x64xf32>
    %c56_i32 = arith.constant 56 : i32
    %26 = tpu.dynamic_rotate %1 by %c56_i32 dim 1 : vector<8x64xf32>, i32 -> vector<8x64xf32>
    %c7 = arith.constant 7 : index
    %c0_9 = arith.constant 0 : index
    %27 = vector.load %arg4[%c7, %c0_9] : memref<9x64xf32, #tpu.memory_space<vmem>>, vector<1x64xf32>
    %28 = vector.broadcast %27 : vector<1x64xf32> to vector<8x64xf32>
    %29 = arith.mulf %26, %28 : vector<8x64xf32>
    %c55_i32 = arith.constant 55 : i32
    %30 = tpu.dynamic_rotate %1 by %c55_i32 dim 1 : vector<8x64xf32>, i32 -> vector<8x64xf32>
    %c8 = arith.constant 8 : index
    %c0_10 = arith.constant 0 : index
    %31 = vector.load %arg4[%c8, %c0_10] : memref<9x64xf32, #tpu.memory_space<vmem>>, vector<1x64xf32>
    %32 = vector.broadcast %31 : vector<1x64xf32> to vector<8x64xf32>
    %33 = arith.mulf %30, %32 : vector<8x64xf32>
    %34 = tpu.concatenate %5, %9, %13, %17, %1, %21, %25, %29, %33 in 0 : vector<8x64xf32>, vector<8x64xf32>, vector<8x64xf32>, vector<8x64xf32>, vector<8x64xf32>, vector<8x64xf32>, vector<8x64xf32>, vector<8x64xf32>, vector<8x64xf32> -> vector<72x64xf32>
    %35 = arith.truncf %34 : vector<72x64xf32> to vector<72x64xbf16>
    %c0_11 = arith.constant 0 : index
    %c0_12 = arith.constant 0 : index
    %36 = vector.load %arg2[%c0_11, %c0_12] : memref<16x72xbf16, #tpu.memory_space<vmem>>, vector<16x72xbf16>
    %cst = arith.constant dense<0.000000e+00> : vector<16x64xf32>
    %37 = tpu.matmul %36, %35, %cst {dimension_numbers = #tpu.dot_dimension_numbers<[1], [0], [0], [1], [0, 0, 1, 1], [], []>} : vector<16x72xbf16>, vector<72x64xbf16>, vector<16x64xf32> -> vector<16x64xf32>
    %cst_13 = arith.constant dense<0.000000e+00> : vector<16xf32>
    %38 = vector.multi_reduction <add>, %37, %cst_13 [1] : vector<16x64xf32> to vector<16xf32>
    %39 = vector.shape_cast %38 : vector<16xf32> to vector<16x1xf32>
    %40 = arith.mulf %37, %37 : vector<16x64xf32>
    %cst_14 = arith.constant dense<0.000000e+00> : vector<16xf32>
    %41 = vector.multi_reduction <add>, %40, %cst_14 [1] : vector<16x64xf32> to vector<16xf32>
    %42 = vector.shape_cast %41 : vector<16xf32> to vector<16x1xf32>
    %cst_15 = arith.constant 1.562500e-02 : f32
    %43 = vector.broadcast %cst_15 : f32 to vector<16x1xf32>
    %44 = arith.mulf %39, %43 : vector<16x1xf32>
    %cst_16 = arith.constant 1.562500e-02 : f32
    %45 = vector.broadcast %cst_16 : f32 to vector<16x1xf32>
    %46 = arith.mulf %42, %45 : vector<16x1xf32>
    %47 = arith.mulf %44, %44 : vector<16x1xf32>
    %48 = arith.subf %46, %47 : vector<16x1xf32>
    %cst_17 = arith.constant 0.000000e+00 : f32
    %49 = vector.broadcast %cst_17 : f32 to vector<16x1xf32>
    %50 = arith.maximumf %48, %49 : vector<16x1xf32>
    %51 = vector.broadcast %44 : vector<16x1xf32> to vector<16x64xf32>
    %52 = arith.subf %37, %51 : vector<16x64xf32>
    %cst_18 = arith.constant 9.99999974E-6 : f32
    %53 = vector.broadcast %cst_18 : f32 to vector<16x1xf32>
    %54 = arith.addf %50, %53 : vector<16x1xf32>
    %55 = math.rsqrt %54 : vector<16x1xf32>
    %56 = vector.broadcast %55 : vector<16x1xf32> to vector<16x64xf32>
    %57 = arith.mulf %52, %56 : vector<16x64xf32>
    %cst_19 = arith.constant 0.000000e+00 : f32
    %58 = vector.broadcast %cst_19 : f32 to vector<16x64xf32>
    %59 = arith.cmpf oge, %57, %58 : vector<16x64xf32>
    %cst_20 = arith.constant 2.000000e-01 : f32
    %60 = vector.broadcast %cst_20 : f32 to vector<16x64xf32>
    %61 = arith.mulf %60, %57 : vector<16x64xf32>
    %62 = arith.select %59, %57, %61 : vector<16x64xi1>, vector<16x64xf32>
    %c9_i32_21 = arith.constant 9 : i32
    %63 = tpu.dynamic_rotate %62 by %c9_i32_21 dim 1 : vector<16x64xf32>, i32 -> vector<16x64xf32>
    %c0_22 = arith.constant 0 : index
    %c0_23 = arith.constant 0 : index
    %64 = vector.load %arg4[%c0_22, %c0_23] : memref<9x64xf32, #tpu.memory_space<vmem>>, vector<1x64xf32>
    %65 = vector.broadcast %64 : vector<1x64xf32> to vector<16x64xf32>
    %66 = arith.mulf %63, %65 : vector<16x64xf32>
    %c8_i32_24 = arith.constant 8 : i32
    %67 = tpu.dynamic_rotate %62 by %c8_i32_24 dim 1 : vector<16x64xf32>, i32 -> vector<16x64xf32>
    %c1_25 = arith.constant 1 : index
    %c0_26 = arith.constant 0 : index
    %68 = vector.load %arg4[%c1_25, %c0_26] : memref<9x64xf32, #tpu.memory_space<vmem>>, vector<1x64xf32>
    %69 = vector.broadcast %68 : vector<1x64xf32> to vector<16x64xf32>
    %70 = arith.mulf %67, %69 : vector<16x64xf32>
    %c7_i32_27 = arith.constant 7 : i32
    %71 = tpu.dynamic_rotate %62 by %c7_i32_27 dim 1 : vector<16x64xf32>, i32 -> vector<16x64xf32>
    %c2_28 = arith.constant 2 : index
    %c0_29 = arith.constant 0 : index
    %72 = vector.load %arg4[%c2_28, %c0_29] : memref<9x64xf32, #tpu.memory_space<vmem>>, vector<1x64xf32>
    %73 = vector.broadcast %72 : vector<1x64xf32> to vector<16x64xf32>
    %74 = arith.mulf %71, %73 : vector<16x64xf32>
    %c1_i32_30 = arith.constant 1 : i32
    %75 = tpu.dynamic_rotate %62 by %c1_i32_30 dim 1 : vector<16x64xf32>, i32 -> vector<16x64xf32>
    %c3_31 = arith.constant 3 : index
    %c0_32 = arith.constant 0 : index
    %76 = vector.load %arg4[%c3_31, %c0_32] : memref<9x64xf32, #tpu.memory_space<vmem>>, vector<1x64xf32>
    %77 = vector.broadcast %76 : vector<1x64xf32> to vector<16x64xf32>
    %78 = arith.mulf %75, %77 : vector<16x64xf32>
    %c63_i32_33 = arith.constant 63 : i32
    %79 = tpu.dynamic_rotate %62 by %c63_i32_33 dim 1 : vector<16x64xf32>, i32 -> vector<16x64xf32>
    %c5_34 = arith.constant 5 : index
    %c0_35 = arith.constant 0 : index
    %80 = vector.load %arg4[%c5_34, %c0_35] : memref<9x64xf32, #tpu.memory_space<vmem>>, vector<1x64xf32>
    %81 = vector.broadcast %80 : vector<1x64xf32> to vector<16x64xf32>
    %82 = arith.mulf %79, %81 : vector<16x64xf32>
    %c57_i32_36 = arith.constant 57 : i32
    %83 = tpu.dynamic_rotate %62 by %c57_i32_36 dim 1 : vector<16x64xf32>, i32 -> vector<16x64xf32>
    %c6_37 = arith.constant 6 : index
    %c0_38 = arith.constant 0 : index
    %84 = vector.load %arg4[%c6_37, %c0_38] : memref<9x64xf32, #tpu.memory_space<vmem>>, vector<1x64xf32>
    %85 = vector.broadcast %84 : vector<1x64xf32> to vector<16x64xf32>
    %86 = arith.mulf %83, %85 : vector<16x64xf32>
    %c56_i32_39 = arith.constant 56 : i32
    %87 = tpu.dynamic_rotate %62 by %c56_i32_39 dim 1 : vector<16x64xf32>, i32 -> vector<16x64xf32>
    %c7_40 = arith.constant 7 : index
    %c0_41 = arith.constant 0 : index
    %88 = vector.load %arg4[%c7_40, %c0_41] : memref<9x64xf32, #tpu.memory_space<vmem>>, vector<1x64xf32>
    %89 = vector.broadcast %88 : vector<1x64xf32> to vector<16x64xf32>
    %90 = arith.mulf %87, %89 : vector<16x64xf32>
    %c55_i32_42 = arith.constant 55 : i32
    %91 = tpu.dynamic_rotate %62 by %c55_i32_42 dim 1 : vector<16x64xf32>, i32 -> vector<16x64xf32>
    %c8_43 = arith.constant 8 : index
    %c0_44 = arith.constant 0 : index
    %92 = vector.load %arg4[%c8_43, %c0_44] : memref<9x64xf32, #tpu.memory_space<vmem>>, vector<1x64xf32>
    %93 = vector.broadcast %92 : vector<1x64xf32> to vector<16x64xf32>
    %94 = arith.mulf %91, %93 : vector<16x64xf32>
    %95 = tpu.concatenate %66, %70, %74, %78, %62, %82, %86, %90, %94 in 0 : vector<16x64xf32>, vector<16x64xf32>, vector<16x64xf32>, vector<16x64xf32>, vector<16x64xf32>, vector<16x64xf32>, vector<16x64xf32>, vector<16x64xf32>, vector<16x64xf32> -> vector<144x64xf32>
    %96 = arith.truncf %95 : vector<144x64xf32> to vector<144x64xbf16>
    %c0_45 = arith.constant 0 : index
    %c0_46 = arith.constant 0 : index
    %97 = vector.load %arg3[%c0_45, %c0_46] : memref<16x144xbf16, #tpu.memory_space<vmem>>, vector<16x144xbf16>
    %cst_47 = arith.constant dense<0.000000e+00> : vector<16x64xf32>
    %98 = tpu.matmul %97, %96, %cst_47 {dimension_numbers = #tpu.dot_dimension_numbers<[1], [0], [0], [1], [0, 0, 1, 1], [], []>} : vector<16x144xbf16>, vector<144x64xbf16>, vector<16x64xf32> -> vector<16x64xf32>
    %cst_48 = arith.constant dense<0.000000e+00> : vector<16xf32>
    %99 = vector.multi_reduction <add>, %98, %cst_48 [1] : vector<16x64xf32> to vector<16xf32>
    %100 = vector.shape_cast %99 : vector<16xf32> to vector<16x1xf32>
    %101 = arith.mulf %98, %98 : vector<16x64xf32>
    %cst_49 = arith.constant dense<0.000000e+00> : vector<16xf32>
    %102 = vector.multi_reduction <add>, %101, %cst_49 [1] : vector<16x64xf32> to vector<16xf32>
    %103 = vector.shape_cast %102 : vector<16xf32> to vector<16x1xf32>
    %cst_50 = arith.constant 1.562500e-02 : f32
    %104 = vector.broadcast %cst_50 : f32 to vector<16x1xf32>
    %105 = arith.mulf %100, %104 : vector<16x1xf32>
    %cst_51 = arith.constant 1.562500e-02 : f32
    %106 = vector.broadcast %cst_51 : f32 to vector<16x1xf32>
    %107 = arith.mulf %103, %106 : vector<16x1xf32>
    %108 = arith.mulf %105, %105 : vector<16x1xf32>
    %109 = arith.subf %107, %108 : vector<16x1xf32>
    %cst_52 = arith.constant 0.000000e+00 : f32
    %110 = vector.broadcast %cst_52 : f32 to vector<16x1xf32>
    %111 = arith.maximumf %109, %110 : vector<16x1xf32>
    %112 = vector.broadcast %105 : vector<16x1xf32> to vector<16x64xf32>
    %113 = arith.subf %98, %112 : vector<16x64xf32>
    %cst_53 = arith.constant 9.99999974E-6 : f32
    %114 = vector.broadcast %cst_53 : f32 to vector<16x1xf32>
    %115 = arith.addf %111, %114 : vector<16x1xf32>
    %116 = math.rsqrt %115 : vector<16x1xf32>
    %117 = vector.broadcast %116 : vector<16x1xf32> to vector<16x64xf32>
    %118 = arith.mulf %113, %117 : vector<16x64xf32>
    %cst_54 = arith.constant 0.000000e+00 : f32
    %119 = vector.broadcast %cst_54 : f32 to vector<16x64xf32>
    %120 = arith.cmpf oge, %118, %119 : vector<16x64xf32>
    %cst_55 = arith.constant 2.000000e-01 : f32
    %121 = vector.broadcast %cst_55 : f32 to vector<16x64xf32>
    %122 = arith.mulf %121, %118 : vector<16x64xf32>
    %123 = arith.select %120, %118, %122 : vector<16x64xi1>, vector<16x64xf32>
    %c0_56 = arith.constant 0 : index
    %c0_57 = arith.constant 0 : index
    %c0_58 = arith.constant 0 : index
    %124 = vector.load %arg6[%c0_56, %c0_57, %c0_58] : memref<1x16x64xf32, #tpu.memory_space<vmem>>, vector<1x16x64xf32>
    %125 = vector.shape_cast %124 : vector<1x16x64xf32> to vector<16x64xf32>
    %126 = vector.shape_cast %123 : vector<16x64xf32> to vector<1x16x64xf32>
    tpu.vector_store %arg6[%c0_56, %c0_57, %c0_58], %126 {strides = array<i32>} : memref<1x16x64xf32, #tpu.memory_space<vmem>>, vector<1x16x64xf32>,
    %127 = arith.truncf %123 : vector<16x64xf32> to vector<16x64xbf16>
    %c0_59 = arith.constant 0 : index
    %c0_60 = arith.constant 0 : index
    %128 = vector.load %arg5[%c0_59, %c0_60] : memref<64x16xbf16, #tpu.memory_space<vmem>>, vector<64x16xbf16>
    %cst_61 = arith.constant dense<0.000000e+00> : vector<16x16xf32>
    %129 = tpu.matmul %127, %128, %cst_61 {dimension_numbers = #tpu.dot_dimension_numbers<[1], [0], [0], [1], [0, 0, 1, 1], [], []>} : vector<16x64xbf16>, vector<64x16xbf16>, vector<16x16xf32> -> vector<16x16xf32>
    %c0_62 = arith.constant 0 : index
    %c0_63 = arith.constant 0 : index
    %c0_64 = arith.constant 0 : index
    %130 = vector.load %arg7[%c0_62, %c0_63, %c0_64] : memref<1x16x16xf32, #tpu.memory_space<vmem>>, vector<1x16x16xf32>
    %131 = vector.shape_cast %130 : vector<1x16x16xf32> to vector<16x16xf32>
    %132 = vector.shape_cast %129 : vector<16x16xf32> to vector<1x16x16xf32>
    tpu.vector_store %arg7[%c0_62, %c0_63, %c0_64], %132 {strides = array<i32>} : memref<1x16x16xf32, #tpu.memory_space<vmem>>, vector<1x16x16xf32>,
    return
  }
  func.func @transform_0(%arg0: i32) -> (i32, i32, i32) {
    %c0_i32 = arith.constant 0 : i32
    %c0_i32_0 = arith.constant 0 : i32
    %c0_i32_1 = arith.constant 0 : i32
    return %arg0, %c0_i32, %c0_i32_0 : i32, i32, i32
  }
  func.func @transform_1(%arg0: i32) -> (i32, i32) {
    %c0_i32 = arith.constant 0 : i32
    %c0_i32_0 = arith.constant 0 : i32
    %c0_i32_1 = arith.constant 0 : i32
    return %c0_i32, %c0_i32_0 : i32, i32
  }
  func.func @transform_2(%arg0: i32) -> (i32, i32) {
    %c0_i32 = arith.constant 0 : i32
    %c0_i32_0 = arith.constant 0 : i32
    %c0_i32_1 = arith.constant 0 : i32
    return %c0_i32, %c0_i32_0 : i32, i32
  }
  func.func @transform_3(%arg0: i32) -> (i32, i32) {
    %c0_i32 = arith.constant 0 : i32
    %c0_i32_0 = arith.constant 0 : i32
    %c0_i32_1 = arith.constant 0 : i32
    return %c0_i32, %c0_i32_0 : i32, i32
  }
  func.func @transform_4(%arg0: i32) -> (i32, i32) {
    %c0_i32 = arith.constant 0 : i32
    %c0_i32_0 = arith.constant 0 : i32
    %c0_i32_1 = arith.constant 0 : i32
    return %c0_i32, %c0_i32_0 : i32, i32
  }
  func.func @transform_5(%arg0: i32) -> (i32, i32, i32) {
    %c0_i32 = arith.constant 0 : i32
    %c0_i32_0 = arith.constant 0 : i32
    %c0_i32_1 = arith.constant 0 : i32
    return %arg0, %c0_i32, %c0_i32_0 : i32, i32, i32
  }
  func.func @transform_6(%arg0: i32) -> (i32, i32, i32) {
    %c0_i32 = arith.constant 0 : i32
    %c0_i32_0 = arith.constant 0 : i32
    %c0_i32_1 = arith.constant 0 : i32
    return %arg0, %c0_i32, %c0_i32_0 : i32, i32, i32
  }
}

module attributes {stable_mosaic.version = 11 : i64} {
  func.func @_mid_kernel(%arg0: i32, %arg1: memref<1x16x16xf32, #tpu.memory_space<vmem>>, %arg2: memref<32x144xbf16, #tpu.memory_space<vmem>>, %arg3: memref<32x288xbf16, #tpu.memory_space<vmem>>, %arg4: memref<9x16xf32, #tpu.memory_space<vmem>>, %arg5: memref<1x32x16xf32, #tpu.memory_space<vmem>>) attributes {dimension_semantics = [#tpu.dimension_semantics<parallel>], iteration_bounds = array<i64: 2>, scalar_prefetch = 0 : i64, scratch_operands = 0 : i64, tpu.core_type = #tpu.core_type<tc>, window_params = [{transform_indices = @transform_0, window_bounds = array<i64: 1, 16, 16>}, {pipeline_mode = #tpu.pipeline_mode<synchronous>, transform_indices = @transform_1, window_bounds = array<i64: 32, 144>}, {pipeline_mode = #tpu.pipeline_mode<synchronous>, transform_indices = @transform_2, window_bounds = array<i64: 32, 288>}, {pipeline_mode = #tpu.pipeline_mode<synchronous>, transform_indices = @transform_3, window_bounds = array<i64: 9, 16>}, {transform_indices = @transform_4, window_bounds = array<i64: 1, 32, 16>}]} {
    %c0 = arith.constant 0 : index
    %c0_0 = arith.constant 0 : index
    %c0_1 = arith.constant 0 : index
    %0 = vector.load %arg1[%c0, %c0_0, %c0_1] : memref<1x16x16xf32, #tpu.memory_space<vmem>>, vector<1x16x16xf32>
    %1 = vector.shape_cast %0 : vector<1x16x16xf32> to vector<16x16xf32>
    %c5_i32 = arith.constant 5 : i32
    %2 = tpu.dynamic_rotate %1 by %c5_i32 dim 1 : vector<16x16xf32>, i32 -> vector<16x16xf32>
    %c0_2 = arith.constant 0 : index
    %c0_3 = arith.constant 0 : index
    %3 = vector.load %arg4[%c0_2, %c0_3] : memref<9x16xf32, #tpu.memory_space<vmem>>, vector<1x16xf32>
    %4 = vector.broadcast %3 : vector<1x16xf32> to vector<16x16xf32>
    %5 = arith.mulf %2, %4 : vector<16x16xf32>
    %c4_i32 = arith.constant 4 : i32
    %6 = tpu.dynamic_rotate %1 by %c4_i32 dim 1 : vector<16x16xf32>, i32 -> vector<16x16xf32>
    %c1 = arith.constant 1 : index
    %c0_4 = arith.constant 0 : index
    %7 = vector.load %arg4[%c1, %c0_4] : memref<9x16xf32, #tpu.memory_space<vmem>>, vector<1x16xf32>
    %8 = vector.broadcast %7 : vector<1x16xf32> to vector<16x16xf32>
    %9 = arith.mulf %6, %8 : vector<16x16xf32>
    %c3_i32 = arith.constant 3 : i32
    %10 = tpu.dynamic_rotate %1 by %c3_i32 dim 1 : vector<16x16xf32>, i32 -> vector<16x16xf32>
    %c2 = arith.constant 2 : index
    %c0_5 = arith.constant 0 : index
    %11 = vector.load %arg4[%c2, %c0_5] : memref<9x16xf32, #tpu.memory_space<vmem>>, vector<1x16xf32>
    %12 = vector.broadcast %11 : vector<1x16xf32> to vector<16x16xf32>
    %13 = arith.mulf %10, %12 : vector<16x16xf32>
    %c1_i32 = arith.constant 1 : i32
    %14 = tpu.dynamic_rotate %1 by %c1_i32 dim 1 : vector<16x16xf32>, i32 -> vector<16x16xf32>
    %c3 = arith.constant 3 : index
    %c0_6 = arith.constant 0 : index
    %15 = vector.load %arg4[%c3, %c0_6] : memref<9x16xf32, #tpu.memory_space<vmem>>, vector<1x16xf32>
    %16 = vector.broadcast %15 : vector<1x16xf32> to vector<16x16xf32>
    %17 = arith.mulf %14, %16 : vector<16x16xf32>
    %c15_i32 = arith.constant 15 : i32
    %18 = tpu.dynamic_rotate %1 by %c15_i32 dim 1 : vector<16x16xf32>, i32 -> vector<16x16xf32>
    %c5 = arith.constant 5 : index
    %c0_7 = arith.constant 0 : index
    %19 = vector.load %arg4[%c5, %c0_7] : memref<9x16xf32, #tpu.memory_space<vmem>>, vector<1x16xf32>
    %20 = vector.broadcast %19 : vector<1x16xf32> to vector<16x16xf32>
    %21 = arith.mulf %18, %20 : vector<16x16xf32>
    %c13_i32 = arith.constant 13 : i32
    %22 = tpu.dynamic_rotate %1 by %c13_i32 dim 1 : vector<16x16xf32>, i32 -> vector<16x16xf32>
    %c6 = arith.constant 6 : index
    %c0_8 = arith.constant 0 : index
    %23 = vector.load %arg4[%c6, %c0_8] : memref<9x16xf32, #tpu.memory_space<vmem>>, vector<1x16xf32>
    %24 = vector.broadcast %23 : vector<1x16xf32> to vector<16x16xf32>
    %25 = arith.mulf %22, %24 : vector<16x16xf32>
    %c12_i32 = arith.constant 12 : i32
    %26 = tpu.dynamic_rotate %1 by %c12_i32 dim 1 : vector<16x16xf32>, i32 -> vector<16x16xf32>
    %c7 = arith.constant 7 : index
    %c0_9 = arith.constant 0 : index
    %27 = vector.load %arg4[%c7, %c0_9] : memref<9x16xf32, #tpu.memory_space<vmem>>, vector<1x16xf32>
    %28 = vector.broadcast %27 : vector<1x16xf32> to vector<16x16xf32>
    %29 = arith.mulf %26, %28 : vector<16x16xf32>
    %c11_i32 = arith.constant 11 : i32
    %30 = tpu.dynamic_rotate %1 by %c11_i32 dim 1 : vector<16x16xf32>, i32 -> vector<16x16xf32>
    %c8 = arith.constant 8 : index
    %c0_10 = arith.constant 0 : index
    %31 = vector.load %arg4[%c8, %c0_10] : memref<9x16xf32, #tpu.memory_space<vmem>>, vector<1x16xf32>
    %32 = vector.broadcast %31 : vector<1x16xf32> to vector<16x16xf32>
    %33 = arith.mulf %30, %32 : vector<16x16xf32>
    %34 = tpu.concatenate %5, %9, %13, %17, %1, %21, %25, %29, %33 in 0 : vector<16x16xf32>, vector<16x16xf32>, vector<16x16xf32>, vector<16x16xf32>, vector<16x16xf32>, vector<16x16xf32>, vector<16x16xf32>, vector<16x16xf32>, vector<16x16xf32> -> vector<144x16xf32>
    %35 = arith.truncf %34 : vector<144x16xf32> to vector<144x16xbf16>
    %c0_11 = arith.constant 0 : index
    %c0_12 = arith.constant 0 : index
    %36 = vector.load %arg2[%c0_11, %c0_12] : memref<32x144xbf16, #tpu.memory_space<vmem>>, vector<32x144xbf16>
    %cst = arith.constant dense<0.000000e+00> : vector<32x16xf32>
    %37 = tpu.matmul %36, %35, %cst {dimension_numbers = #tpu.dot_dimension_numbers<[1], [0], [0], [1], [0, 0, 1, 1], [], []>} : vector<32x144xbf16>, vector<144x16xbf16>, vector<32x16xf32> -> vector<32x16xf32>
    %cst_13 = arith.constant dense<0.000000e+00> : vector<32xf32>
    %38 = vector.multi_reduction <add>, %37, %cst_13 [1] : vector<32x16xf32> to vector<32xf32>
    %39 = vector.shape_cast %38 : vector<32xf32> to vector<32x1xf32>
    %40 = arith.mulf %37, %37 : vector<32x16xf32>
    %cst_14 = arith.constant dense<0.000000e+00> : vector<32xf32>
    %41 = vector.multi_reduction <add>, %40, %cst_14 [1] : vector<32x16xf32> to vector<32xf32>
    %42 = vector.shape_cast %41 : vector<32xf32> to vector<32x1xf32>
    %cst_15 = arith.constant 6.250000e-02 : f32
    %43 = vector.broadcast %cst_15 : f32 to vector<32x1xf32>
    %44 = arith.mulf %39, %43 : vector<32x1xf32>
    %cst_16 = arith.constant 6.250000e-02 : f32
    %45 = vector.broadcast %cst_16 : f32 to vector<32x1xf32>
    %46 = arith.mulf %42, %45 : vector<32x1xf32>
    %47 = arith.mulf %44, %44 : vector<32x1xf32>
    %48 = arith.subf %46, %47 : vector<32x1xf32>
    %cst_17 = arith.constant 0.000000e+00 : f32
    %49 = vector.broadcast %cst_17 : f32 to vector<32x1xf32>
    %50 = arith.maximumf %48, %49 : vector<32x1xf32>
    %51 = vector.broadcast %44 : vector<32x1xf32> to vector<32x16xf32>
    %52 = arith.subf %37, %51 : vector<32x16xf32>
    %cst_18 = arith.constant 9.99999974E-6 : f32
    %53 = vector.broadcast %cst_18 : f32 to vector<32x1xf32>
    %54 = arith.addf %50, %53 : vector<32x1xf32>
    %55 = math.rsqrt %54 : vector<32x1xf32>
    %56 = vector.broadcast %55 : vector<32x1xf32> to vector<32x16xf32>
    %57 = arith.mulf %52, %56 : vector<32x16xf32>
    %cst_19 = arith.constant 0.000000e+00 : f32
    %58 = vector.broadcast %cst_19 : f32 to vector<32x16xf32>
    %59 = arith.cmpf oge, %57, %58 : vector<32x16xf32>
    %cst_20 = arith.constant 2.000000e-01 : f32
    %60 = vector.broadcast %cst_20 : f32 to vector<32x16xf32>
    %61 = arith.mulf %60, %57 : vector<32x16xf32>
    %62 = arith.select %59, %57, %61 : vector<32x16xi1>, vector<32x16xf32>
    %c5_i32_21 = arith.constant 5 : i32
    %63 = tpu.dynamic_rotate %62 by %c5_i32_21 dim 1 : vector<32x16xf32>, i32 -> vector<32x16xf32>
    %c0_22 = arith.constant 0 : index
    %c0_23 = arith.constant 0 : index
    %64 = vector.load %arg4[%c0_22, %c0_23] : memref<9x16xf32, #tpu.memory_space<vmem>>, vector<1x16xf32>
    %65 = vector.broadcast %64 : vector<1x16xf32> to vector<32x16xf32>
    %66 = arith.mulf %63, %65 : vector<32x16xf32>
    %c4_i32_24 = arith.constant 4 : i32
    %67 = tpu.dynamic_rotate %62 by %c4_i32_24 dim 1 : vector<32x16xf32>, i32 -> vector<32x16xf32>
    %c1_25 = arith.constant 1 : index
    %c0_26 = arith.constant 0 : index
    %68 = vector.load %arg4[%c1_25, %c0_26] : memref<9x16xf32, #tpu.memory_space<vmem>>, vector<1x16xf32>
    %69 = vector.broadcast %68 : vector<1x16xf32> to vector<32x16xf32>
    %70 = arith.mulf %67, %69 : vector<32x16xf32>
    %c3_i32_27 = arith.constant 3 : i32
    %71 = tpu.dynamic_rotate %62 by %c3_i32_27 dim 1 : vector<32x16xf32>, i32 -> vector<32x16xf32>
    %c2_28 = arith.constant 2 : index
    %c0_29 = arith.constant 0 : index
    %72 = vector.load %arg4[%c2_28, %c0_29] : memref<9x16xf32, #tpu.memory_space<vmem>>, vector<1x16xf32>
    %73 = vector.broadcast %72 : vector<1x16xf32> to vector<32x16xf32>
    %74 = arith.mulf %71, %73 : vector<32x16xf32>
    %c1_i32_30 = arith.constant 1 : i32
    %75 = tpu.dynamic_rotate %62 by %c1_i32_30 dim 1 : vector<32x16xf32>, i32 -> vector<32x16xf32>
    %c3_31 = arith.constant 3 : index
    %c0_32 = arith.constant 0 : index
    %76 = vector.load %arg4[%c3_31, %c0_32] : memref<9x16xf32, #tpu.memory_space<vmem>>, vector<1x16xf32>
    %77 = vector.broadcast %76 : vector<1x16xf32> to vector<32x16xf32>
    %78 = arith.mulf %75, %77 : vector<32x16xf32>
    %c15_i32_33 = arith.constant 15 : i32
    %79 = tpu.dynamic_rotate %62 by %c15_i32_33 dim 1 : vector<32x16xf32>, i32 -> vector<32x16xf32>
    %c5_34 = arith.constant 5 : index
    %c0_35 = arith.constant 0 : index
    %80 = vector.load %arg4[%c5_34, %c0_35] : memref<9x16xf32, #tpu.memory_space<vmem>>, vector<1x16xf32>
    %81 = vector.broadcast %80 : vector<1x16xf32> to vector<32x16xf32>
    %82 = arith.mulf %79, %81 : vector<32x16xf32>
    %c13_i32_36 = arith.constant 13 : i32
    %83 = tpu.dynamic_rotate %62 by %c13_i32_36 dim 1 : vector<32x16xf32>, i32 -> vector<32x16xf32>
    %c6_37 = arith.constant 6 : index
    %c0_38 = arith.constant 0 : index
    %84 = vector.load %arg4[%c6_37, %c0_38] : memref<9x16xf32, #tpu.memory_space<vmem>>, vector<1x16xf32>
    %85 = vector.broadcast %84 : vector<1x16xf32> to vector<32x16xf32>
    %86 = arith.mulf %83, %85 : vector<32x16xf32>
    %c12_i32_39 = arith.constant 12 : i32
    %87 = tpu.dynamic_rotate %62 by %c12_i32_39 dim 1 : vector<32x16xf32>, i32 -> vector<32x16xf32>
    %c7_40 = arith.constant 7 : index
    %c0_41 = arith.constant 0 : index
    %88 = vector.load %arg4[%c7_40, %c0_41] : memref<9x16xf32, #tpu.memory_space<vmem>>, vector<1x16xf32>
    %89 = vector.broadcast %88 : vector<1x16xf32> to vector<32x16xf32>
    %90 = arith.mulf %87, %89 : vector<32x16xf32>
    %c11_i32_42 = arith.constant 11 : i32
    %91 = tpu.dynamic_rotate %62 by %c11_i32_42 dim 1 : vector<32x16xf32>, i32 -> vector<32x16xf32>
    %c8_43 = arith.constant 8 : index
    %c0_44 = arith.constant 0 : index
    %92 = vector.load %arg4[%c8_43, %c0_44] : memref<9x16xf32, #tpu.memory_space<vmem>>, vector<1x16xf32>
    %93 = vector.broadcast %92 : vector<1x16xf32> to vector<32x16xf32>
    %94 = arith.mulf %91, %93 : vector<32x16xf32>
    %95 = tpu.concatenate %66, %70, %74, %78, %62, %82, %86, %90, %94 in 0 : vector<32x16xf32>, vector<32x16xf32>, vector<32x16xf32>, vector<32x16xf32>, vector<32x16xf32>, vector<32x16xf32>, vector<32x16xf32>, vector<32x16xf32>, vector<32x16xf32> -> vector<288x16xf32>
    %96 = arith.truncf %95 : vector<288x16xf32> to vector<288x16xbf16>
    %c0_45 = arith.constant 0 : index
    %c0_46 = arith.constant 0 : index
    %97 = vector.load %arg3[%c0_45, %c0_46] : memref<32x288xbf16, #tpu.memory_space<vmem>>, vector<32x288xbf16>
    %cst_47 = arith.constant dense<0.000000e+00> : vector<32x16xf32>
    %98 = tpu.matmul %97, %96, %cst_47 {dimension_numbers = #tpu.dot_dimension_numbers<[1], [0], [0], [1], [0, 0, 1, 1], [], []>} : vector<32x288xbf16>, vector<288x16xbf16>, vector<32x16xf32> -> vector<32x16xf32>
    %cst_48 = arith.constant dense<0.000000e+00> : vector<32xf32>
    %99 = vector.multi_reduction <add>, %98, %cst_48 [1] : vector<32x16xf32> to vector<32xf32>
    %100 = vector.shape_cast %99 : vector<32xf32> to vector<32x1xf32>
    %101 = arith.mulf %98, %98 : vector<32x16xf32>
    %cst_49 = arith.constant dense<0.000000e+00> : vector<32xf32>
    %102 = vector.multi_reduction <add>, %101, %cst_49 [1] : vector<32x16xf32> to vector<32xf32>
    %103 = vector.shape_cast %102 : vector<32xf32> to vector<32x1xf32>
    %cst_50 = arith.constant 6.250000e-02 : f32
    %104 = vector.broadcast %cst_50 : f32 to vector<32x1xf32>
    %105 = arith.mulf %100, %104 : vector<32x1xf32>
    %cst_51 = arith.constant 6.250000e-02 : f32
    %106 = vector.broadcast %cst_51 : f32 to vector<32x1xf32>
    %107 = arith.mulf %103, %106 : vector<32x1xf32>
    %108 = arith.mulf %105, %105 : vector<32x1xf32>
    %109 = arith.subf %107, %108 : vector<32x1xf32>
    %cst_52 = arith.constant 0.000000e+00 : f32
    %110 = vector.broadcast %cst_52 : f32 to vector<32x1xf32>
    %111 = arith.maximumf %109, %110 : vector<32x1xf32>
    %112 = vector.broadcast %105 : vector<32x1xf32> to vector<32x16xf32>
    %113 = arith.subf %98, %112 : vector<32x16xf32>
    %cst_53 = arith.constant 9.99999974E-6 : f32
    %114 = vector.broadcast %cst_53 : f32 to vector<32x1xf32>
    %115 = arith.addf %111, %114 : vector<32x1xf32>
    %116 = math.rsqrt %115 : vector<32x1xf32>
    %117 = vector.broadcast %116 : vector<32x1xf32> to vector<32x16xf32>
    %118 = arith.mulf %113, %117 : vector<32x16xf32>
    %cst_54 = arith.constant 0.000000e+00 : f32
    %119 = vector.broadcast %cst_54 : f32 to vector<32x16xf32>
    %120 = arith.cmpf oge, %118, %119 : vector<32x16xf32>
    %cst_55 = arith.constant 2.000000e-01 : f32
    %121 = vector.broadcast %cst_55 : f32 to vector<32x16xf32>
    %122 = arith.mulf %121, %118 : vector<32x16xf32>
    %123 = arith.select %120, %118, %122 : vector<32x16xi1>, vector<32x16xf32>
    %c0_56 = arith.constant 0 : index
    %c0_57 = arith.constant 0 : index
    %c0_58 = arith.constant 0 : index
    %124 = vector.load %arg5[%c0_56, %c0_57, %c0_58] : memref<1x32x16xf32, #tpu.memory_space<vmem>>, vector<1x32x16xf32>
    %125 = vector.shape_cast %124 : vector<1x32x16xf32> to vector<32x16xf32>
    %126 = vector.shape_cast %123 : vector<32x16xf32> to vector<1x32x16xf32>
    tpu.vector_store %arg5[%c0_56, %c0_57, %c0_58], %126 {strides = array<i32>} : memref<1x32x16xf32, #tpu.memory_space<vmem>>, vector<1x32x16xf32>,
    return
  }
  func.func @transform_0(%arg0: i32) -> (i32, i32, i32) {
    %c0_i32 = arith.constant 0 : i32
    %c0_i32_0 = arith.constant 0 : i32
    %c0_i32_1 = arith.constant 0 : i32
    return %arg0, %c0_i32, %c0_i32_0 : i32, i32, i32
  }
  func.func @transform_1(%arg0: i32) -> (i32, i32) {
    %c0_i32 = arith.constant 0 : i32
    %c0_i32_0 = arith.constant 0 : i32
    %c0_i32_1 = arith.constant 0 : i32
    return %c0_i32, %c0_i32_0 : i32, i32
  }
  func.func @transform_2(%arg0: i32) -> (i32, i32) {
    %c0_i32 = arith.constant 0 : i32
    %c0_i32_0 = arith.constant 0 : i32
    %c0_i32_1 = arith.constant 0 : i32
    return %c0_i32, %c0_i32_0 : i32, i32
  }
  func.func @transform_3(%arg0: i32) -> (i32, i32) {
    %c0_i32 = arith.constant 0 : i32
    %c0_i32_0 = arith.constant 0 : i32
    %c0_i32_1 = arith.constant 0 : i32
    return %c0_i32, %c0_i32_0 : i32, i32
  }
  func.func @transform_4(%arg0: i32) -> (i32, i32, i32) {
    %c0_i32 = arith.constant 0 : i32
    %c0_i32_0 = arith.constant 0 : i32
    %c0_i32_1 = arith.constant 0 : i32
    return %arg0, %c0_i32, %c0_i32_0 : i32, i32, i32
  }
}

module attributes {stable_mosaic.version = 11 : i64} {
  func.func @_upconv_kernel(%arg0: i32, %arg1: memref<1x32x16xf32, #tpu.memory_space<vmem>>, %arg2: memref<64x32xbf16, #tpu.memory_space<vmem>>, %arg3: memref<1x16x64xf32, #tpu.memory_space<vmem>>) attributes {dimension_semantics = [#tpu.dimension_semantics<parallel>], iteration_bounds = array<i64: 2>, scalar_prefetch = 0 : i64, scratch_operands = 0 : i64, tpu.core_type = #tpu.core_type<tc>, window_params = [{transform_indices = @transform_0, window_bounds = array<i64: 1, 32, 16>}, {pipeline_mode = #tpu.pipeline_mode<synchronous>, transform_indices = @transform_1, window_bounds = array<i64: 64, 32>}, {transform_indices = @transform_2, window_bounds = array<i64: 1, 16, 64>}]} {
    %c0 = arith.constant 0 : index
    %c0_0 = arith.constant 0 : index
    %0 = vector.load %arg2[%c0, %c0_0] : memref<64x32xbf16, #tpu.memory_space<vmem>>, vector<64x32xbf16>
    %c0_1 = arith.constant 0 : index
    %c0_2 = arith.constant 0 : index
    %c0_3 = arith.constant 0 : index
    %1 = vector.load %arg1[%c0_1, %c0_2, %c0_3] : memref<1x32x16xf32, #tpu.memory_space<vmem>>, vector<1x32x16xf32>
    %2 = vector.shape_cast %1 : vector<1x32x16xf32> to vector<32x16xf32>
    %3 = arith.truncf %2 : vector<32x16xf32> to vector<32x16xbf16>
    %cst = arith.constant dense<0.000000e+00> : vector<64x16xf32>
    %4 = tpu.matmul %0, %3, %cst {dimension_numbers = #tpu.dot_dimension_numbers<[1], [0], [0], [1], [0, 0, 1, 1], [], []>} : vector<64x32xbf16>, vector<32x16xbf16>, vector<64x16xf32> -> vector<64x16xf32>
    %cst_4 = arith.constant 0.000000e+00 : f32
    %5 = vector.broadcast %cst_4 : f32 to vector<16x1xf32>
    %cst_5 = arith.constant 0.000000e+00 : f32
    %6 = vector.broadcast %cst_5 : f32 to vector<16x1xf32>
    %7 = vector.extract_strided_slice %4 {offsets = [0, 0], sizes = [16, 16], strides = [1, 1]} : vector<64x16xf32> to vector<16x16xf32>
    %cst_6 = arith.constant dense<0.000000e+00> : vector<16xf32>
    %8 = vector.multi_reduction <add>, %7, %cst_6 [1] : vector<16x16xf32> to vector<16xf32>
    %9 = vector.shape_cast %8 : vector<16xf32> to vector<16x1xf32>
    %10 = arith.addf %5, %9 : vector<16x1xf32>
    %11 = arith.mulf %7, %7 : vector<16x16xf32>
    %cst_7 = arith.constant dense<0.000000e+00> : vector<16xf32>
    %12 = vector.multi_reduction <add>, %11, %cst_7 [1] : vector<16x16xf32> to vector<16xf32>
    %13 = vector.shape_cast %12 : vector<16xf32> to vector<16x1xf32>
    %14 = arith.addf %6, %13 : vector<16x1xf32>
    %15 = vector.extract_strided_slice %4 {offsets = [16, 0], sizes = [16, 16], strides = [1, 1]} : vector<64x16xf32> to vector<16x16xf32>
    %cst_8 = arith.constant dense<0.000000e+00> : vector<16xf32>
    %16 = vector.multi_reduction <add>, %15, %cst_8 [1] : vector<16x16xf32> to vector<16xf32>
    %17 = vector.shape_cast %16 : vector<16xf32> to vector<16x1xf32>
    %18 = arith.addf %10, %17 : vector<16x1xf32>
    %19 = arith.mulf %15, %15 : vector<16x16xf32>
    %cst_9 = arith.constant dense<0.000000e+00> : vector<16xf32>
    %20 = vector.multi_reduction <add>, %19, %cst_9 [1] : vector<16x16xf32> to vector<16xf32>
    %21 = vector.shape_cast %20 : vector<16xf32> to vector<16x1xf32>
    %22 = arith.addf %14, %21 : vector<16x1xf32>
    %23 = vector.extract_strided_slice %4 {offsets = [32, 0], sizes = [16, 16], strides = [1, 1]} : vector<64x16xf32> to vector<16x16xf32>
    %cst_10 = arith.constant dense<0.000000e+00> : vector<16xf32>
    %24 = vector.multi_reduction <add>, %23, %cst_10 [1] : vector<16x16xf32> to vector<16xf32>
    %25 = vector.shape_cast %24 : vector<16xf32> to vector<16x1xf32>
    %26 = arith.addf %18, %25 : vector<16x1xf32>
    %27 = arith.mulf %23, %23 : vector<16x16xf32>
    %cst_11 = arith.constant dense<0.000000e+00> : vector<16xf32>
    %28 = vector.multi_reduction <add>, %27, %cst_11 [1] : vector<16x16xf32> to vector<16xf32>
    %29 = vector.shape_cast %28 : vector<16xf32> to vector<16x1xf32>
    %30 = arith.addf %22, %29 : vector<16x1xf32>
    %31 = vector.extract_strided_slice %4 {offsets = [48, 0], sizes = [16, 16], strides = [1, 1]} : vector<64x16xf32> to vector<16x16xf32>
    %cst_12 = arith.constant dense<0.000000e+00> : vector<16xf32>
    %32 = vector.multi_reduction <add>, %31, %cst_12 [1] : vector<16x16xf32> to vector<16xf32>
    %33 = vector.shape_cast %32 : vector<16xf32> to vector<16x1xf32>
    %34 = arith.addf %26, %33 : vector<16x1xf32>
    %35 = arith.mulf %31, %31 : vector<16x16xf32>
    %cst_13 = arith.constant dense<0.000000e+00> : vector<16xf32>
    %36 = vector.multi_reduction <add>, %35, %cst_13 [1] : vector<16x16xf32> to vector<16xf32>
    %37 = vector.shape_cast %36 : vector<16xf32> to vector<16x1xf32>
    %38 = arith.addf %30, %37 : vector<16x1xf32>
    %cst_14 = arith.constant 1.562500e-02 : f32
    %39 = vector.broadcast %cst_14 : f32 to vector<16x1xf32>
    %40 = arith.mulf %34, %39 : vector<16x1xf32>
    %cst_15 = arith.constant 1.562500e-02 : f32
    %41 = vector.broadcast %cst_15 : f32 to vector<16x1xf32>
    %42 = arith.mulf %38, %41 : vector<16x1xf32>
    %43 = arith.mulf %40, %40 : vector<16x1xf32>
    %44 = arith.subf %42, %43 : vector<16x1xf32>
    %cst_16 = arith.constant 0.000000e+00 : f32
    %45 = vector.broadcast %cst_16 : f32 to vector<16x1xf32>
    %46 = arith.maximumf %44, %45 : vector<16x1xf32>
    %cst_17 = arith.constant 9.99999974E-6 : f32
    %47 = vector.broadcast %cst_17 : f32 to vector<16x1xf32>
    %48 = arith.addf %46, %47 : vector<16x1xf32>
    %49 = math.rsqrt %48 : vector<16x1xf32>
    %50 = vector.extract_strided_slice %4 {offsets = [0, 0], sizes = [16, 16], strides = [1, 1]} : vector<64x16xf32> to vector<16x16xf32>
    %51 = vector.broadcast %40 : vector<16x1xf32> to vector<16x16xf32>
    %52 = arith.subf %50, %51 : vector<16x16xf32>
    %53 = vector.broadcast %49 : vector<16x1xf32> to vector<16x16xf32>
    %54 = arith.mulf %52, %53 : vector<16x16xf32>
    %cst_18 = arith.constant 0.000000e+00 : f32
    %55 = vector.broadcast %cst_18 : f32 to vector<16x16xf32>
    %56 = arith.cmpf oge, %54, %55 : vector<16x16xf32>
    %cst_19 = arith.constant 2.000000e-01 : f32
    %57 = vector.broadcast %cst_19 : f32 to vector<16x16xf32>
    %58 = arith.mulf %57, %54 : vector<16x16xf32>
    %59 = arith.select %56, %54, %58 : vector<16x16xi1>, vector<16x16xf32>
    %c0_20 = arith.constant 0 : index
    %c0_21 = arith.constant 0 : index
    %c0_22 = arith.constant 0 : index
    %60 = vector.load %arg3[%c0_20, %c0_21, %c0_22] : memref<1x16x64xf32, #tpu.memory_space<vmem>>, vector<1x16x16xf32>
    %61 = vector.shape_cast %60 : vector<1x16x16xf32> to vector<16x16xf32>
    %62 = vector.shape_cast %59 : vector<16x16xf32> to vector<1x16x16xf32>
    tpu.vector_store %arg3[%c0_20, %c0_21, %c0_22], %62 {strides = array<i32>} : memref<1x16x64xf32, #tpu.memory_space<vmem>>, vector<1x16x16xf32>,
    %63 = vector.extract_strided_slice %4 {offsets = [16, 0], sizes = [16, 16], strides = [1, 1]} : vector<64x16xf32> to vector<16x16xf32>
    %64 = vector.broadcast %40 : vector<16x1xf32> to vector<16x16xf32>
    %65 = arith.subf %63, %64 : vector<16x16xf32>
    %66 = vector.broadcast %49 : vector<16x1xf32> to vector<16x16xf32>
    %67 = arith.mulf %65, %66 : vector<16x16xf32>
    %cst_23 = arith.constant 0.000000e+00 : f32
    %68 = vector.broadcast %cst_23 : f32 to vector<16x16xf32>
    %69 = arith.cmpf oge, %67, %68 : vector<16x16xf32>
    %cst_24 = arith.constant 2.000000e-01 : f32
    %70 = vector.broadcast %cst_24 : f32 to vector<16x16xf32>
    %71 = arith.mulf %70, %67 : vector<16x16xf32>
    %72 = arith.select %69, %67, %71 : vector<16x16xi1>, vector<16x16xf32>
    %c0_25 = arith.constant 0 : index
    %c0_26 = arith.constant 0 : index
    %c16 = arith.constant 16 : index
    %73 = vector.load %arg3[%c0_25, %c0_26, %c16] : memref<1x16x64xf32, #tpu.memory_space<vmem>>, vector<1x16x16xf32>
    %74 = vector.shape_cast %73 : vector<1x16x16xf32> to vector<16x16xf32>
    %75 = vector.shape_cast %72 : vector<16x16xf32> to vector<1x16x16xf32>
    tpu.vector_store %arg3[%c0_25, %c0_26, %c16], %75 {strides = array<i32>} : memref<1x16x64xf32, #tpu.memory_space<vmem>>, vector<1x16x16xf32>,
    %76 = vector.extract_strided_slice %4 {offsets = [32, 0], sizes = [16, 16], strides = [1, 1]} : vector<64x16xf32> to vector<16x16xf32>
    %77 = vector.broadcast %40 : vector<16x1xf32> to vector<16x16xf32>
    %78 = arith.subf %76, %77 : vector<16x16xf32>
    %79 = vector.broadcast %49 : vector<16x1xf32> to vector<16x16xf32>
    %80 = arith.mulf %78, %79 : vector<16x16xf32>
    %cst_27 = arith.constant 0.000000e+00 : f32
    %81 = vector.broadcast %cst_27 : f32 to vector<16x16xf32>
    %82 = arith.cmpf oge, %80, %81 : vector<16x16xf32>
    %cst_28 = arith.constant 2.000000e-01 : f32
    %83 = vector.broadcast %cst_28 : f32 to vector<16x16xf32>
    %84 = arith.mulf %83, %80 : vector<16x16xf32>
    %85 = arith.select %82, %80, %84 : vector<16x16xi1>, vector<16x16xf32>
    %c0_29 = arith.constant 0 : index
    %c0_30 = arith.constant 0 : index
    %c32 = arith.constant 32 : index
    %86 = vector.load %arg3[%c0_29, %c0_30, %c32] : memref<1x16x64xf32, #tpu.memory_space<vmem>>, vector<1x16x16xf32>
    %87 = vector.shape_cast %86 : vector<1x16x16xf32> to vector<16x16xf32>
    %88 = vector.shape_cast %85 : vector<16x16xf32> to vector<1x16x16xf32>
    tpu.vector_store %arg3[%c0_29, %c0_30, %c32], %88 {strides = array<i32>} : memref<1x16x64xf32, #tpu.memory_space<vmem>>, vector<1x16x16xf32>,
    %89 = vector.extract_strided_slice %4 {offsets = [48, 0], sizes = [16, 16], strides = [1, 1]} : vector<64x16xf32> to vector<16x16xf32>
    %90 = vector.broadcast %40 : vector<16x1xf32> to vector<16x16xf32>
    %91 = arith.subf %89, %90 : vector<16x16xf32>
    %92 = vector.broadcast %49 : vector<16x1xf32> to vector<16x16xf32>
    %93 = arith.mulf %91, %92 : vector<16x16xf32>
    %cst_31 = arith.constant 0.000000e+00 : f32
    %94 = vector.broadcast %cst_31 : f32 to vector<16x16xf32>
    %95 = arith.cmpf oge, %93, %94 : vector<16x16xf32>
    %cst_32 = arith.constant 2.000000e-01 : f32
    %96 = vector.broadcast %cst_32 : f32 to vector<16x16xf32>
    %97 = arith.mulf %96, %93 : vector<16x16xf32>
    %98 = arith.select %95, %93, %97 : vector<16x16xi1>, vector<16x16xf32>
    %c0_33 = arith.constant 0 : index
    %c0_34 = arith.constant 0 : index
    %c48 = arith.constant 48 : index
    %99 = vector.load %arg3[%c0_33, %c0_34, %c48] : memref<1x16x64xf32, #tpu.memory_space<vmem>>, vector<1x16x16xf32>
    %100 = vector.shape_cast %99 : vector<1x16x16xf32> to vector<16x16xf32>
    %101 = vector.shape_cast %98 : vector<16x16xf32> to vector<1x16x16xf32>
    tpu.vector_store %arg3[%c0_33, %c0_34, %c48], %101 {strides = array<i32>} : memref<1x16x64xf32, #tpu.memory_space<vmem>>, vector<1x16x16xf32>,
    return
  }
  func.func @transform_0(%arg0: i32) -> (i32, i32, i32) {
    %c0_i32 = arith.constant 0 : i32
    %c0_i32_0 = arith.constant 0 : i32
    %c0_i32_1 = arith.constant 0 : i32
    return %arg0, %c0_i32, %c0_i32_0 : i32, i32, i32
  }
  func.func @transform_1(%arg0: i32) -> (i32, i32) {
    %c0_i32 = arith.constant 0 : i32
    %c0_i32_0 = arith.constant 0 : i32
    %c0_i32_1 = arith.constant 0 : i32
    return %c0_i32, %c0_i32_0 : i32, i32
  }
  func.func @transform_2(%arg0: i32) -> (i32, i32, i32) {
    %c0_i32 = arith.constant 0 : i32
    %c0_i32_0 = arith.constant 0 : i32
    %c0_i32_1 = arith.constant 0 : i32
    return %arg0, %c0_i32, %c0_i32_0 : i32, i32, i32
  }
}

module attributes {stable_mosaic.version = 11 : i64} {
  func.func @_upconv_kernel(%arg0: i32, %arg1: memref<1x16x64xf32, #tpu.memory_space<vmem>>, %arg2: memref<32x16xbf16, #tpu.memory_space<vmem>>, %arg3: memref<1x8x256xf32, #tpu.memory_space<vmem>>) attributes {dimension_semantics = [#tpu.dimension_semantics<parallel>], iteration_bounds = array<i64: 2>, scalar_prefetch = 0 : i64, scratch_operands = 0 : i64, tpu.core_type = #tpu.core_type<tc>, window_params = [{transform_indices = @transform_0, window_bounds = array<i64: 1, 16, 64>}, {pipeline_mode = #tpu.pipeline_mode<synchronous>, transform_indices = @transform_1, window_bounds = array<i64: 32, 16>}, {transform_indices = @transform_2, window_bounds = array<i64: 1, 8, 256>}]} {
    %c0 = arith.constant 0 : index
    %c0_0 = arith.constant 0 : index
    %0 = vector.load %arg2[%c0, %c0_0] : memref<32x16xbf16, #tpu.memory_space<vmem>>, vector<32x16xbf16>
    %c0_1 = arith.constant 0 : index
    %c0_2 = arith.constant 0 : index
    %c0_3 = arith.constant 0 : index
    %1 = vector.load %arg1[%c0_1, %c0_2, %c0_3] : memref<1x16x64xf32, #tpu.memory_space<vmem>>, vector<1x16x64xf32>
    %2 = vector.shape_cast %1 : vector<1x16x64xf32> to vector<16x64xf32>
    %3 = arith.truncf %2 : vector<16x64xf32> to vector<16x64xbf16>
    %cst = arith.constant dense<0.000000e+00> : vector<32x64xf32>
    %4 = tpu.matmul %0, %3, %cst {dimension_numbers = #tpu.dot_dimension_numbers<[1], [0], [0], [1], [0, 0, 1, 1], [], []>} : vector<32x16xbf16>, vector<16x64xbf16>, vector<32x64xf32> -> vector<32x64xf32>
    %cst_4 = arith.constant 0.000000e+00 : f32
    %5 = vector.broadcast %cst_4 : f32 to vector<8x1xf32>
    %cst_5 = arith.constant 0.000000e+00 : f32
    %6 = vector.broadcast %cst_5 : f32 to vector<8x1xf32>
    %7 = vector.extract_strided_slice %4 {offsets = [0, 0], sizes = [8, 64], strides = [1, 1]} : vector<32x64xf32> to vector<8x64xf32>
    %cst_6 = arith.constant dense<0.000000e+00> : vector<8xf32>
    %8 = vector.multi_reduction <add>, %7, %cst_6 [1] : vector<8x64xf32> to vector<8xf32>
    %9 = vector.shape_cast %8 : vector<8xf32> to vector<8x1xf32>
    %10 = arith.addf %5, %9 : vector<8x1xf32>
    %11 = arith.mulf %7, %7 : vector<8x64xf32>
    %cst_7 = arith.constant dense<0.000000e+00> : vector<8xf32>
    %12 = vector.multi_reduction <add>, %11, %cst_7 [1] : vector<8x64xf32> to vector<8xf32>
    %13 = vector.shape_cast %12 : vector<8xf32> to vector<8x1xf32>
    %14 = arith.addf %6, %13 : vector<8x1xf32>
    %15 = vector.extract_strided_slice %4 {offsets = [8, 0], sizes = [8, 64], strides = [1, 1]} : vector<32x64xf32> to vector<8x64xf32>
    %cst_8 = arith.constant dense<0.000000e+00> : vector<8xf32>
    %16 = vector.multi_reduction <add>, %15, %cst_8 [1] : vector<8x64xf32> to vector<8xf32>
    %17 = vector.shape_cast %16 : vector<8xf32> to vector<8x1xf32>
    %18 = arith.addf %10, %17 : vector<8x1xf32>
    %19 = arith.mulf %15, %15 : vector<8x64xf32>
    %cst_9 = arith.constant dense<0.000000e+00> : vector<8xf32>
    %20 = vector.multi_reduction <add>, %19, %cst_9 [1] : vector<8x64xf32> to vector<8xf32>
    %21 = vector.shape_cast %20 : vector<8xf32> to vector<8x1xf32>
    %22 = arith.addf %14, %21 : vector<8x1xf32>
    %23 = vector.extract_strided_slice %4 {offsets = [16, 0], sizes = [8, 64], strides = [1, 1]} : vector<32x64xf32> to vector<8x64xf32>
    %cst_10 = arith.constant dense<0.000000e+00> : vector<8xf32>
    %24 = vector.multi_reduction <add>, %23, %cst_10 [1] : vector<8x64xf32> to vector<8xf32>
    %25 = vector.shape_cast %24 : vector<8xf32> to vector<8x1xf32>
    %26 = arith.addf %18, %25 : vector<8x1xf32>
    %27 = arith.mulf %23, %23 : vector<8x64xf32>
    %cst_11 = arith.constant dense<0.000000e+00> : vector<8xf32>
    %28 = vector.multi_reduction <add>, %27, %cst_11 [1] : vector<8x64xf32> to vector<8xf32>
    %29 = vector.shape_cast %28 : vector<8xf32> to vector<8x1xf32>
    %30 = arith.addf %22, %29 : vector<8x1xf32>
    %31 = vector.extract_strided_slice %4 {offsets = [24, 0], sizes = [8, 64], strides = [1, 1]} : vector<32x64xf32> to vector<8x64xf32>
    %cst_12 = arith.constant dense<0.000000e+00> : vector<8xf32>
    %32 = vector.multi_reduction <add>, %31, %cst_12 [1] : vector<8x64xf32> to vector<8xf32>
    %33 = vector.shape_cast %32 : vector<8xf32> to vector<8x1xf32>
    %34 = arith.addf %26, %33 : vector<8x1xf32>
    %35 = arith.mulf %31, %31 : vector<8x64xf32>
    %cst_13 = arith.constant dense<0.000000e+00> : vector<8xf32>
    %36 = vector.multi_reduction <add>, %35, %cst_13 [1] : vector<8x64xf32> to vector<8xf32>
    %37 = vector.shape_cast %36 : vector<8xf32> to vector<8x1xf32>
    %38 = arith.addf %30, %37 : vector<8x1xf32>
    %cst_14 = arith.constant 3.906250e-03 : f32
    %39 = vector.broadcast %cst_14 : f32 to vector<8x1xf32>
    %40 = arith.mulf %34, %39 : vector<8x1xf32>
    %cst_15 = arith.constant 3.906250e-03 : f32
    %41 = vector.broadcast %cst_15 : f32 to vector<8x1xf32>
    %42 = arith.mulf %38, %41 : vector<8x1xf32>
    %43 = arith.mulf %40, %40 : vector<8x1xf32>
    %44 = arith.subf %42, %43 : vector<8x1xf32>
    %cst_16 = arith.constant 0.000000e+00 : f32
    %45 = vector.broadcast %cst_16 : f32 to vector<8x1xf32>
    %46 = arith.maximumf %44, %45 : vector<8x1xf32>
    %cst_17 = arith.constant 9.99999974E-6 : f32
    %47 = vector.broadcast %cst_17 : f32 to vector<8x1xf32>
    %48 = arith.addf %46, %47 : vector<8x1xf32>
    %49 = math.rsqrt %48 : vector<8x1xf32>
    %50 = vector.extract_strided_slice %4 {offsets = [0, 0], sizes = [8, 64], strides = [1, 1]} : vector<32x64xf32> to vector<8x64xf32>
    %51 = vector.broadcast %40 : vector<8x1xf32> to vector<8x64xf32>
    %52 = arith.subf %50, %51 : vector<8x64xf32>
    %53 = vector.broadcast %49 : vector<8x1xf32> to vector<8x64xf32>
    %54 = arith.mulf %52, %53 : vector<8x64xf32>
    %cst_18 = arith.constant 0.000000e+00 : f32
    %55 = vector.broadcast %cst_18 : f32 to vector<8x64xf32>
    %56 = arith.cmpf oge, %54, %55 : vector<8x64xf32>
    %cst_19 = arith.constant 2.000000e-01 : f32
    %57 = vector.broadcast %cst_19 : f32 to vector<8x64xf32>
    %58 = arith.mulf %57, %54 : vector<8x64xf32>
    %59 = arith.select %56, %54, %58 : vector<8x64xi1>, vector<8x64xf32>
    %c0_20 = arith.constant 0 : index
    %c0_21 = arith.constant 0 : index
    %c0_22 = arith.constant 0 : index
    %60 = vector.load %arg3[%c0_20, %c0_21, %c0_22] : memref<1x8x256xf32, #tpu.memory_space<vmem>>, vector<1x8x64xf32>
    %61 = vector.shape_cast %60 : vector<1x8x64xf32> to vector<8x64xf32>
    %62 = vector.shape_cast %59 : vector<8x64xf32> to vector<1x8x64xf32>
    tpu.vector_store %arg3[%c0_20, %c0_21, %c0_22], %62 {strides = array<i32>} : memref<1x8x256xf32, #tpu.memory_space<vmem>>, vector<1x8x64xf32>,
    %63 = vector.extract_strided_slice %4 {offsets = [8, 0], sizes = [8, 64], strides = [1, 1]} : vector<32x64xf32> to vector<8x64xf32>
    %64 = vector.broadcast %40 : vector<8x1xf32> to vector<8x64xf32>
    %65 = arith.subf %63, %64 : vector<8x64xf32>
    %66 = vector.broadcast %49 : vector<8x1xf32> to vector<8x64xf32>
    %67 = arith.mulf %65, %66 : vector<8x64xf32>
    %cst_23 = arith.constant 0.000000e+00 : f32
    %68 = vector.broadcast %cst_23 : f32 to vector<8x64xf32>
    %69 = arith.cmpf oge, %67, %68 : vector<8x64xf32>
    %cst_24 = arith.constant 2.000000e-01 : f32
    %70 = vector.broadcast %cst_24 : f32 to vector<8x64xf32>
    %71 = arith.mulf %70, %67 : vector<8x64xf32>
    %72 = arith.select %69, %67, %71 : vector<8x64xi1>, vector<8x64xf32>
    %c0_25 = arith.constant 0 : index
    %c0_26 = arith.constant 0 : index
    %c64 = arith.constant 64 : index
    %73 = vector.load %arg3[%c0_25, %c0_26, %c64] : memref<1x8x256xf32, #tpu.memory_space<vmem>>, vector<1x8x64xf32>
    %74 = vector.shape_cast %73 : vector<1x8x64xf32> to vector<8x64xf32>
    %75 = vector.shape_cast %72 : vector<8x64xf32> to vector<1x8x64xf32>
    tpu.vector_store %arg3[%c0_25, %c0_26, %c64], %75 {strides = array<i32>} : memref<1x8x256xf32, #tpu.memory_space<vmem>>, vector<1x8x64xf32>,
    %76 = vector.extract_strided_slice %4 {offsets = [16, 0], sizes = [8, 64], strides = [1, 1]} : vector<32x64xf32> to vector<8x64xf32>
    %77 = vector.broadcast %40 : vector<8x1xf32> to vector<8x64xf32>
    %78 = arith.subf %76, %77 : vector<8x64xf32>
    %79 = vector.broadcast %49 : vector<8x1xf32> to vector<8x64xf32>
    %80 = arith.mulf %78, %79 : vector<8x64xf32>
    %cst_27 = arith.constant 0.000000e+00 : f32
    %81 = vector.broadcast %cst_27 : f32 to vector<8x64xf32>
    %82 = arith.cmpf oge, %80, %81 : vector<8x64xf32>
    %cst_28 = arith.constant 2.000000e-01 : f32
    %83 = vector.broadcast %cst_28 : f32 to vector<8x64xf32>
    %84 = arith.mulf %83, %80 : vector<8x64xf32>
    %85 = arith.select %82, %80, %84 : vector<8x64xi1>, vector<8x64xf32>
    %c0_29 = arith.constant 0 : index
    %c0_30 = arith.constant 0 : index
    %c128 = arith.constant 128 : index
    %86 = vector.load %arg3[%c0_29, %c0_30, %c128] : memref<1x8x256xf32, #tpu.memory_space<vmem>>, vector<1x8x64xf32>
    %87 = vector.shape_cast %86 : vector<1x8x64xf32> to vector<8x64xf32>
    %88 = vector.shape_cast %85 : vector<8x64xf32> to vector<1x8x64xf32>
    tpu.vector_store %arg3[%c0_29, %c0_30, %c128], %88 {strides = array<i32>} : memref<1x8x256xf32, #tpu.memory_space<vmem>>, vector<1x8x64xf32>,
    %89 = vector.extract_strided_slice %4 {offsets = [24, 0], sizes = [8, 64], strides = [1, 1]} : vector<32x64xf32> to vector<8x64xf32>
    %90 = vector.broadcast %40 : vector<8x1xf32> to vector<8x64xf32>
    %91 = arith.subf %89, %90 : vector<8x64xf32>
    %92 = vector.broadcast %49 : vector<8x1xf32> to vector<8x64xf32>
    %93 = arith.mulf %91, %92 : vector<8x64xf32>
    %cst_31 = arith.constant 0.000000e+00 : f32
    %94 = vector.broadcast %cst_31 : f32 to vector<8x64xf32>
    %95 = arith.cmpf oge, %93, %94 : vector<8x64xf32>
    %cst_32 = arith.constant 2.000000e-01 : f32
    %96 = vector.broadcast %cst_32 : f32 to vector<8x64xf32>
    %97 = arith.mulf %96, %93 : vector<8x64xf32>
    %98 = arith.select %95, %93, %97 : vector<8x64xi1>, vector<8x64xf32>
    %c0_33 = arith.constant 0 : index
    %c0_34 = arith.constant 0 : index
    %c192 = arith.constant 192 : index
    %99 = vector.load %arg3[%c0_33, %c0_34, %c192] : memref<1x8x256xf32, #tpu.memory_space<vmem>>, vector<1x8x64xf32>
    %100 = vector.shape_cast %99 : vector<1x8x64xf32> to vector<8x64xf32>
    %101 = vector.shape_cast %98 : vector<8x64xf32> to vector<1x8x64xf32>
    tpu.vector_store %arg3[%c0_33, %c0_34, %c192], %101 {strides = array<i32>} : memref<1x8x256xf32, #tpu.memory_space<vmem>>, vector<1x8x64xf32>,
    return
  }
  func.func @transform_0(%arg0: i32) -> (i32, i32, i32) {
    %c0_i32 = arith.constant 0 : i32
    %c0_i32_0 = arith.constant 0 : i32
    %c0_i32_1 = arith.constant 0 : i32
    return %arg0, %c0_i32, %c0_i32_0 : i32, i32, i32
  }
  func.func @transform_1(%arg0: i32) -> (i32, i32) {
    %c0_i32 = arith.constant 0 : i32
    %c0_i32_0 = arith.constant 0 : i32
    %c0_i32_1 = arith.constant 0 : i32
    return %c0_i32, %c0_i32_0 : i32, i32
  }
  func.func @transform_2(%arg0: i32) -> (i32, i32, i32) {
    %c0_i32 = arith.constant 0 : i32
    %c0_i32_0 = arith.constant 0 : i32
    %c0_i32_1 = arith.constant 0 : i32
    return %arg0, %c0_i32, %c0_i32_0 : i32, i32, i32
  }
}

module attributes {stable_mosaic.version = 11 : i64} {
  func.func @_up_kernel(%arg0: i32, %arg1: memref<1x16x64xf32, #tpu.memory_space<vmem>>, %arg2: memref<1x16x64xf32, #tpu.memory_space<vmem>>, %arg3: memref<16x288xbf16, #tpu.memory_space<vmem>>, %arg4: memref<16x144xbf16, #tpu.memory_space<vmem>>, %arg5: memref<9x64xf32, #tpu.memory_space<vmem>>, %arg6: memref<1x16x64xf32, #tpu.memory_space<vmem>>) attributes {dimension_semantics = [#tpu.dimension_semantics<parallel>], iteration_bounds = array<i64: 2>, scalar_prefetch = 0 : i64, scratch_operands = 0 : i64, tpu.core_type = #tpu.core_type<tc>, window_params = [{transform_indices = @transform_0, window_bounds = array<i64: 1, 16, 64>}, {transform_indices = @transform_1, window_bounds = array<i64: 1, 16, 64>}, {pipeline_mode = #tpu.pipeline_mode<synchronous>, transform_indices = @transform_2, window_bounds = array<i64: 16, 288>}, {pipeline_mode = #tpu.pipeline_mode<synchronous>, transform_indices = @transform_3, window_bounds = array<i64: 16, 144>}, {pipeline_mode = #tpu.pipeline_mode<synchronous>, transform_indices = @transform_4, window_bounds = array<i64: 9, 64>}, {transform_indices = @transform_5, window_bounds = array<i64: 1, 16, 64>}]} {
    %c0 = arith.constant 0 : index
    %c0_0 = arith.constant 0 : index
    %c0_1 = arith.constant 0 : index
    %0 = vector.load %arg1[%c0, %c0_0, %c0_1] : memref<1x16x64xf32, #tpu.memory_space<vmem>>, vector<1x16x64xf32>
    %1 = vector.shape_cast %0 : vector<1x16x64xf32> to vector<16x64xf32>
    %c0_2 = arith.constant 0 : index
    %c0_3 = arith.constant 0 : index
    %c0_4 = arith.constant 0 : index
    %2 = vector.load %arg2[%c0_2, %c0_3, %c0_4] : memref<1x16x64xf32, #tpu.memory_space<vmem>>, vector<1x16x64xf32>
    %3 = vector.shape_cast %2 : vector<1x16x64xf32> to vector<16x64xf32>
    %4 = tpu.concatenate %1, %3 in 0 : vector<16x64xf32>, vector<16x64xf32> -> vector<32x64xf32>
    %c9_i32 = arith.constant 9 : i32
    %5 = tpu.dynamic_rotate %4 by %c9_i32 dim 1 : vector<32x64xf32>, i32 -> vector<32x64xf32>
    %c0_5 = arith.constant 0 : index
    %c0_6 = arith.constant 0 : index
    %6 = vector.load %arg5[%c0_5, %c0_6] : memref<9x64xf32, #tpu.memory_space<vmem>>, vector<1x64xf32>
    %7 = vector.broadcast %6 : vector<1x64xf32> to vector<32x64xf32>
    %8 = arith.mulf %5, %7 : vector<32x64xf32>
    %c8_i32 = arith.constant 8 : i32
    %9 = tpu.dynamic_rotate %4 by %c8_i32 dim 1 : vector<32x64xf32>, i32 -> vector<32x64xf32>
    %c1 = arith.constant 1 : index
    %c0_7 = arith.constant 0 : index
    %10 = vector.load %arg5[%c1, %c0_7] : memref<9x64xf32, #tpu.memory_space<vmem>>, vector<1x64xf32>
    %11 = vector.broadcast %10 : vector<1x64xf32> to vector<32x64xf32>
    %12 = arith.mulf %9, %11 : vector<32x64xf32>
    %c7_i32 = arith.constant 7 : i32
    %13 = tpu.dynamic_rotate %4 by %c7_i32 dim 1 : vector<32x64xf32>, i32 -> vector<32x64xf32>
    %c2 = arith.constant 2 : index
    %c0_8 = arith.constant 0 : index
    %14 = vector.load %arg5[%c2, %c0_8] : memref<9x64xf32, #tpu.memory_space<vmem>>, vector<1x64xf32>
    %15 = vector.broadcast %14 : vector<1x64xf32> to vector<32x64xf32>
    %16 = arith.mulf %13, %15 : vector<32x64xf32>
    %c1_i32 = arith.constant 1 : i32
    %17 = tpu.dynamic_rotate %4 by %c1_i32 dim 1 : vector<32x64xf32>, i32 -> vector<32x64xf32>
    %c3 = arith.constant 3 : index
    %c0_9 = arith.constant 0 : index
    %18 = vector.load %arg5[%c3, %c0_9] : memref<9x64xf32, #tpu.memory_space<vmem>>, vector<1x64xf32>
    %19 = vector.broadcast %18 : vector<1x64xf32> to vector<32x64xf32>
    %20 = arith.mulf %17, %19 : vector<32x64xf32>
    %c63_i32 = arith.constant 63 : i32
    %21 = tpu.dynamic_rotate %4 by %c63_i32 dim 1 : vector<32x64xf32>, i32 -> vector<32x64xf32>
    %c5 = arith.constant 5 : index
    %c0_10 = arith.constant 0 : index
    %22 = vector.load %arg5[%c5, %c0_10] : memref<9x64xf32, #tpu.memory_space<vmem>>, vector<1x64xf32>
    %23 = vector.broadcast %22 : vector<1x64xf32> to vector<32x64xf32>
    %24 = arith.mulf %21, %23 : vector<32x64xf32>
    %c57_i32 = arith.constant 57 : i32
    %25 = tpu.dynamic_rotate %4 by %c57_i32 dim 1 : vector<32x64xf32>, i32 -> vector<32x64xf32>
    %c6 = arith.constant 6 : index
    %c0_11 = arith.constant 0 : index
    %26 = vector.load %arg5[%c6, %c0_11] : memref<9x64xf32, #tpu.memory_space<vmem>>, vector<1x64xf32>
    %27 = vector.broadcast %26 : vector<1x64xf32> to vector<32x64xf32>
    %28 = arith.mulf %25, %27 : vector<32x64xf32>
    %c56_i32 = arith.constant 56 : i32
    %29 = tpu.dynamic_rotate %4 by %c56_i32 dim 1 : vector<32x64xf32>, i32 -> vector<32x64xf32>
    %c7 = arith.constant 7 : index
    %c0_12 = arith.constant 0 : index
    %30 = vector.load %arg5[%c7, %c0_12] : memref<9x64xf32, #tpu.memory_space<vmem>>, vector<1x64xf32>
    %31 = vector.broadcast %30 : vector<1x64xf32> to vector<32x64xf32>
    %32 = arith.mulf %29, %31 : vector<32x64xf32>
    %c55_i32 = arith.constant 55 : i32
    %33 = tpu.dynamic_rotate %4 by %c55_i32 dim 1 : vector<32x64xf32>, i32 -> vector<32x64xf32>
    %c8 = arith.constant 8 : index
    %c0_13 = arith.constant 0 : index
    %34 = vector.load %arg5[%c8, %c0_13] : memref<9x64xf32, #tpu.memory_space<vmem>>, vector<1x64xf32>
    %35 = vector.broadcast %34 : vector<1x64xf32> to vector<32x64xf32>
    %36 = arith.mulf %33, %35 : vector<32x64xf32>
    %37 = tpu.concatenate %8, %12, %16, %20, %4, %24, %28, %32, %36 in 0 : vector<32x64xf32>, vector<32x64xf32>, vector<32x64xf32>, vector<32x64xf32>, vector<32x64xf32>, vector<32x64xf32>, vector<32x64xf32>, vector<32x64xf32>, vector<32x64xf32> -> vector<288x64xf32>
    %38 = arith.truncf %37 : vector<288x64xf32> to vector<288x64xbf16>
    %c0_14 = arith.constant 0 : index
    %c0_15 = arith.constant 0 : index
    %39 = vector.load %arg3[%c0_14, %c0_15] : memref<16x288xbf16, #tpu.memory_space<vmem>>, vector<16x288xbf16>
    %cst = arith.constant dense<0.000000e+00> : vector<16x64xf32>
    %40 = tpu.matmul %39, %38, %cst {dimension_numbers = #tpu.dot_dimension_numbers<[1], [0], [0], [1], [0, 0, 1, 1], [], []>} : vector<16x288xbf16>, vector<288x64xbf16>, vector<16x64xf32> -> vector<16x64xf32>
    %cst_16 = arith.constant dense<0.000000e+00> : vector<16xf32>
    %41 = vector.multi_reduction <add>, %40, %cst_16 [1] : vector<16x64xf32> to vector<16xf32>
    %42 = vector.shape_cast %41 : vector<16xf32> to vector<16x1xf32>
    %43 = arith.mulf %40, %40 : vector<16x64xf32>
    %cst_17 = arith.constant dense<0.000000e+00> : vector<16xf32>
    %44 = vector.multi_reduction <add>, %43, %cst_17 [1] : vector<16x64xf32> to vector<16xf32>
    %45 = vector.shape_cast %44 : vector<16xf32> to vector<16x1xf32>
    %cst_18 = arith.constant 1.562500e-02 : f32
    %46 = vector.broadcast %cst_18 : f32 to vector<16x1xf32>
    %47 = arith.mulf %42, %46 : vector<16x1xf32>
    %cst_19 = arith.constant 1.562500e-02 : f32
    %48 = vector.broadcast %cst_19 : f32 to vector<16x1xf32>
    %49 = arith.mulf %45, %48 : vector<16x1xf32>
    %50 = arith.mulf %47, %47 : vector<16x1xf32>
    %51 = arith.subf %49, %50 : vector<16x1xf32>
    %cst_20 = arith.constant 0.000000e+00 : f32
    %52 = vector.broadcast %cst_20 : f32 to vector<16x1xf32>
    %53 = arith.maximumf %51, %52 : vector<16x1xf32>
    %54 = vector.broadcast %47 : vector<16x1xf32> to vector<16x64xf32>
    %55 = arith.subf %40, %54 : vector<16x64xf32>
    %cst_21 = arith.constant 9.99999974E-6 : f32
    %56 = vector.broadcast %cst_21 : f32 to vector<16x1xf32>
    %57 = arith.addf %53, %56 : vector<16x1xf32>
    %58 = math.rsqrt %57 : vector<16x1xf32>
    %59 = vector.broadcast %58 : vector<16x1xf32> to vector<16x64xf32>
    %60 = arith.mulf %55, %59 : vector<16x64xf32>
    %cst_22 = arith.constant 0.000000e+00 : f32
    %61 = vector.broadcast %cst_22 : f32 to vector<16x64xf32>
    %62 = arith.cmpf oge, %60, %61 : vector<16x64xf32>
    %cst_23 = arith.constant 2.000000e-01 : f32
    %63 = vector.broadcast %cst_23 : f32 to vector<16x64xf32>
    %64 = arith.mulf %63, %60 : vector<16x64xf32>
    %65 = arith.select %62, %60, %64 : vector<16x64xi1>, vector<16x64xf32>
    %c9_i32_24 = arith.constant 9 : i32
    %66 = tpu.dynamic_rotate %65 by %c9_i32_24 dim 1 : vector<16x64xf32>, i32 -> vector<16x64xf32>
    %c0_25 = arith.constant 0 : index
    %c0_26 = arith.constant 0 : index
    %67 = vector.load %arg5[%c0_25, %c0_26] : memref<9x64xf32, #tpu.memory_space<vmem>>, vector<1x64xf32>
    %68 = vector.broadcast %67 : vector<1x64xf32> to vector<16x64xf32>
    %69 = arith.mulf %66, %68 : vector<16x64xf32>
    %c8_i32_27 = arith.constant 8 : i32
    %70 = tpu.dynamic_rotate %65 by %c8_i32_27 dim 1 : vector<16x64xf32>, i32 -> vector<16x64xf32>
    %c1_28 = arith.constant 1 : index
    %c0_29 = arith.constant 0 : index
    %71 = vector.load %arg5[%c1_28, %c0_29] : memref<9x64xf32, #tpu.memory_space<vmem>>, vector<1x64xf32>
    %72 = vector.broadcast %71 : vector<1x64xf32> to vector<16x64xf32>
    %73 = arith.mulf %70, %72 : vector<16x64xf32>
    %c7_i32_30 = arith.constant 7 : i32
    %74 = tpu.dynamic_rotate %65 by %c7_i32_30 dim 1 : vector<16x64xf32>, i32 -> vector<16x64xf32>
    %c2_31 = arith.constant 2 : index
    %c0_32 = arith.constant 0 : index
    %75 = vector.load %arg5[%c2_31, %c0_32] : memref<9x64xf32, #tpu.memory_space<vmem>>, vector<1x64xf32>
    %76 = vector.broadcast %75 : vector<1x64xf32> to vector<16x64xf32>
    %77 = arith.mulf %74, %76 : vector<16x64xf32>
    %c1_i32_33 = arith.constant 1 : i32
    %78 = tpu.dynamic_rotate %65 by %c1_i32_33 dim 1 : vector<16x64xf32>, i32 -> vector<16x64xf32>
    %c3_34 = arith.constant 3 : index
    %c0_35 = arith.constant 0 : index
    %79 = vector.load %arg5[%c3_34, %c0_35] : memref<9x64xf32, #tpu.memory_space<vmem>>, vector<1x64xf32>
    %80 = vector.broadcast %79 : vector<1x64xf32> to vector<16x64xf32>
    %81 = arith.mulf %78, %80 : vector<16x64xf32>
    %c63_i32_36 = arith.constant 63 : i32
    %82 = tpu.dynamic_rotate %65 by %c63_i32_36 dim 1 : vector<16x64xf32>, i32 -> vector<16x64xf32>
    %c5_37 = arith.constant 5 : index
    %c0_38 = arith.constant 0 : index
    %83 = vector.load %arg5[%c5_37, %c0_38] : memref<9x64xf32, #tpu.memory_space<vmem>>, vector<1x64xf32>
    %84 = vector.broadcast %83 : vector<1x64xf32> to vector<16x64xf32>
    %85 = arith.mulf %82, %84 : vector<16x64xf32>
    %c57_i32_39 = arith.constant 57 : i32
    %86 = tpu.dynamic_rotate %65 by %c57_i32_39 dim 1 : vector<16x64xf32>, i32 -> vector<16x64xf32>
    %c6_40 = arith.constant 6 : index
    %c0_41 = arith.constant 0 : index
    %87 = vector.load %arg5[%c6_40, %c0_41] : memref<9x64xf32, #tpu.memory_space<vmem>>, vector<1x64xf32>
    %88 = vector.broadcast %87 : vector<1x64xf32> to vector<16x64xf32>
    %89 = arith.mulf %86, %88 : vector<16x64xf32>
    %c56_i32_42 = arith.constant 56 : i32
    %90 = tpu.dynamic_rotate %65 by %c56_i32_42 dim 1 : vector<16x64xf32>, i32 -> vector<16x64xf32>
    %c7_43 = arith.constant 7 : index
    %c0_44 = arith.constant 0 : index
    %91 = vector.load %arg5[%c7_43, %c0_44] : memref<9x64xf32, #tpu.memory_space<vmem>>, vector<1x64xf32>
    %92 = vector.broadcast %91 : vector<1x64xf32> to vector<16x64xf32>
    %93 = arith.mulf %90, %92 : vector<16x64xf32>
    %c55_i32_45 = arith.constant 55 : i32
    %94 = tpu.dynamic_rotate %65 by %c55_i32_45 dim 1 : vector<16x64xf32>, i32 -> vector<16x64xf32>
    %c8_46 = arith.constant 8 : index
    %c0_47 = arith.constant 0 : index
    %95 = vector.load %arg5[%c8_46, %c0_47] : memref<9x64xf32, #tpu.memory_space<vmem>>, vector<1x64xf32>
    %96 = vector.broadcast %95 : vector<1x64xf32> to vector<16x64xf32>
    %97 = arith.mulf %94, %96 : vector<16x64xf32>
    %98 = tpu.concatenate %69, %73, %77, %81, %65, %85, %89, %93, %97 in 0 : vector<16x64xf32>, vector<16x64xf32>, vector<16x64xf32>, vector<16x64xf32>, vector<16x64xf32>, vector<16x64xf32>, vector<16x64xf32>, vector<16x64xf32>, vector<16x64xf32> -> vector<144x64xf32>
    %99 = arith.truncf %98 : vector<144x64xf32> to vector<144x64xbf16>
    %c0_48 = arith.constant 0 : index
    %c0_49 = arith.constant 0 : index
    %100 = vector.load %arg4[%c0_48, %c0_49] : memref<16x144xbf16, #tpu.memory_space<vmem>>, vector<16x144xbf16>
    %cst_50 = arith.constant dense<0.000000e+00> : vector<16x64xf32>
    %101 = tpu.matmul %100, %99, %cst_50 {dimension_numbers = #tpu.dot_dimension_numbers<[1], [0], [0], [1], [0, 0, 1, 1], [], []>} : vector<16x144xbf16>, vector<144x64xbf16>, vector<16x64xf32> -> vector<16x64xf32>
    %cst_51 = arith.constant dense<0.000000e+00> : vector<16xf32>
    %102 = vector.multi_reduction <add>, %101, %cst_51 [1] : vector<16x64xf32> to vector<16xf32>
    %103 = vector.shape_cast %102 : vector<16xf32> to vector<16x1xf32>
    %104 = arith.mulf %101, %101 : vector<16x64xf32>
    %cst_52 = arith.constant dense<0.000000e+00> : vector<16xf32>
    %105 = vector.multi_reduction <add>, %104, %cst_52 [1] : vector<16x64xf32> to vector<16xf32>
    %106 = vector.shape_cast %105 : vector<16xf32> to vector<16x1xf32>
    %cst_53 = arith.constant 1.562500e-02 : f32
    %107 = vector.broadcast %cst_53 : f32 to vector<16x1xf32>
    %108 = arith.mulf %103, %107 : vector<16x1xf32>
    %cst_54 = arith.constant 1.562500e-02 : f32
    %109 = vector.broadcast %cst_54 : f32 to vector<16x1xf32>
    %110 = arith.mulf %106, %109 : vector<16x1xf32>
    %111 = arith.mulf %108, %108 : vector<16x1xf32>
    %112 = arith.subf %110, %111 : vector<16x1xf32>
    %cst_55 = arith.constant 0.000000e+00 : f32
    %113 = vector.broadcast %cst_55 : f32 to vector<16x1xf32>
    %114 = arith.maximumf %112, %113 : vector<16x1xf32>
    %115 = vector.broadcast %108 : vector<16x1xf32> to vector<16x64xf32>
    %116 = arith.subf %101, %115 : vector<16x64xf32>
    %cst_56 = arith.constant 9.99999974E-6 : f32
    %117 = vector.broadcast %cst_56 : f32 to vector<16x1xf32>
    %118 = arith.addf %114, %117 : vector<16x1xf32>
    %119 = math.rsqrt %118 : vector<16x1xf32>
    %120 = vector.broadcast %119 : vector<16x1xf32> to vector<16x64xf32>
    %121 = arith.mulf %116, %120 : vector<16x64xf32>
    %cst_57 = arith.constant 0.000000e+00 : f32
    %122 = vector.broadcast %cst_57 : f32 to vector<16x64xf32>
    %123 = arith.cmpf oge, %121, %122 : vector<16x64xf32>
    %cst_58 = arith.constant 2.000000e-01 : f32
    %124 = vector.broadcast %cst_58 : f32 to vector<16x64xf32>
    %125 = arith.mulf %124, %121 : vector<16x64xf32>
    %126 = arith.select %123, %121, %125 : vector<16x64xi1>, vector<16x64xf32>
    %c0_59 = arith.constant 0 : index
    %c0_60 = arith.constant 0 : index
    %c0_61 = arith.constant 0 : index
    %127 = vector.load %arg6[%c0_59, %c0_60, %c0_61] : memref<1x16x64xf32, #tpu.memory_space<vmem>>, vector<1x16x64xf32>
    %128 = vector.shape_cast %127 : vector<1x16x64xf32> to vector<16x64xf32>
    %129 = vector.shape_cast %126 : vector<16x64xf32> to vector<1x16x64xf32>
    tpu.vector_store %arg6[%c0_59, %c0_60, %c0_61], %129 {strides = array<i32>} : memref<1x16x64xf32, #tpu.memory_space<vmem>>, vector<1x16x64xf32>,
    return
  }
  func.func @transform_0(%arg0: i32) -> (i32, i32, i32) {
    %c0_i32 = arith.constant 0 : i32
    %c0_i32_0 = arith.constant 0 : i32
    %c0_i32_1 = arith.constant 0 : i32
    return %arg0, %c0_i32, %c0_i32_0 : i32, i32, i32
  }
  func.func @transform_1(%arg0: i32) -> (i32, i32, i32) {
    %c0_i32 = arith.constant 0 : i32
    %c0_i32_0 = arith.constant 0 : i32
    %c0_i32_1 = arith.constant 0 : i32
    return %arg0, %c0_i32, %c0_i32_0 : i32, i32, i32
  }
  func.func @transform_2(%arg0: i32) -> (i32, i32) {
    %c0_i32 = arith.constant 0 : i32
    %c0_i32_0 = arith.constant 0 : i32
    %c0_i32_1 = arith.constant 0 : i32
    return %c0_i32, %c0_i32_0 : i32, i32
  }
  func.func @transform_3(%arg0: i32) -> (i32, i32) {
    %c0_i32 = arith.constant 0 : i32
    %c0_i32_0 = arith.constant 0 : i32
    %c0_i32_1 = arith.constant 0 : i32
    return %c0_i32, %c0_i32_0 : i32, i32
  }
  func.func @transform_4(%arg0: i32) -> (i32, i32) {
    %c0_i32 = arith.constant 0 : i32
    %c0_i32_0 = arith.constant 0 : i32
    %c0_i32_1 = arith.constant 0 : i32
    return %c0_i32, %c0_i32_0 : i32, i32
  }
  func.func @transform_5(%arg0: i32) -> (i32, i32, i32) {
    %c0_i32 = arith.constant 0 : i32
    %c0_i32_0 = arith.constant 0 : i32
    %c0_i32_1 = arith.constant 0 : i32
    return %arg0, %c0_i32, %c0_i32_0 : i32, i32, i32
  }
}

module attributes {stable_mosaic.version = 11 : i64} {
  func.func @_up_final_kernel(%arg0: i32, %arg1: memref<1x8x256xf32, #tpu.memory_space<vmem>>, %arg2: memref<1x8x256xf32, #tpu.memory_space<vmem>>, %arg3: memref<1x2x256xf32, #tpu.memory_space<vmem>>, %arg4: memref<8x144xbf16, #tpu.memory_space<vmem>>, %arg5: memref<8x72xbf16, #tpu.memory_space<vmem>>, %arg6: memref<9x256xf32, #tpu.memory_space<vmem>>, %arg7: memref<2x8xbf16, #tpu.memory_space<vmem>>, %arg8: memref<2x1xf32, #tpu.memory_space<vmem>>, %arg9: memref<1x2x256xf32, #tpu.memory_space<vmem>>) attributes {dimension_semantics = [#tpu.dimension_semantics<parallel>], iteration_bounds = array<i64: 2>, scalar_prefetch = 0 : i64, scratch_operands = 0 : i64, tpu.core_type = #tpu.core_type<tc>, window_params = [{transform_indices = @transform_0, window_bounds = array<i64: 1, 8, 256>}, {transform_indices = @transform_1, window_bounds = array<i64: 1, 8, 256>}, {transform_indices = @transform_2, window_bounds = array<i64: 1, 2, 256>}, {pipeline_mode = #tpu.pipeline_mode<synchronous>, transform_indices = @transform_3, window_bounds = array<i64: 8, 144>}, {pipeline_mode = #tpu.pipeline_mode<synchronous>, transform_indices = @transform_4, window_bounds = array<i64: 8, 72>}, {pipeline_mode = #tpu.pipeline_mode<synchronous>, transform_indices = @transform_5, window_bounds = array<i64: 9, 256>}, {pipeline_mode = #tpu.pipeline_mode<synchronous>, transform_indices = @transform_6, window_bounds = array<i64: 2, 8>}, {pipeline_mode = #tpu.pipeline_mode<synchronous>, transform_indices = @transform_7, window_bounds = array<i64: 2, 1>}, {transform_indices = @transform_8, window_bounds = array<i64: 1, 2, 256>}]} {
    %c0 = arith.constant 0 : index
    %c0_0 = arith.constant 0 : index
    %c0_1 = arith.constant 0 : index
    %0 = vector.load %arg1[%c0, %c0_0, %c0_1] : memref<1x8x256xf32, #tpu.memory_space<vmem>>, vector<1x8x256xf32>
    %1 = vector.shape_cast %0 : vector<1x8x256xf32> to vector<8x256xf32>
    %c0_2 = arith.constant 0 : index
    %c0_3 = arith.constant 0 : index
    %c0_4 = arith.constant 0 : index
    %2 = vector.load %arg2[%c0_2, %c0_3, %c0_4] : memref<1x8x256xf32, #tpu.memory_space<vmem>>, vector<1x8x256xf32>
    %3 = vector.shape_cast %2 : vector<1x8x256xf32> to vector<8x256xf32>
    %4 = tpu.concatenate %1, %3 in 0 : vector<8x256xf32>, vector<8x256xf32> -> vector<16x256xf32>
    %c17_i32 = arith.constant 17 : i32
    %5 = tpu.dynamic_rotate %4 by %c17_i32 dim 1 : vector<16x256xf32>, i32 -> vector<16x256xf32>
    %c0_5 = arith.constant 0 : index
    %c0_6 = arith.constant 0 : index
    %6 = vector.load %arg6[%c0_5, %c0_6] : memref<9x256xf32, #tpu.memory_space<vmem>>, vector<1x256xf32>
    %7 = vector.broadcast %6 : vector<1x256xf32> to vector<16x256xf32>
    %8 = arith.mulf %5, %7 : vector<16x256xf32>
    %c16_i32 = arith.constant 16 : i32
    %9 = tpu.dynamic_rotate %4 by %c16_i32 dim 1 : vector<16x256xf32>, i32 -> vector<16x256xf32>
    %c1 = arith.constant 1 : index
    %c0_7 = arith.constant 0 : index
    %10 = vector.load %arg6[%c1, %c0_7] : memref<9x256xf32, #tpu.memory_space<vmem>>, vector<1x256xf32>
    %11 = vector.broadcast %10 : vector<1x256xf32> to vector<16x256xf32>
    %12 = arith.mulf %9, %11 : vector<16x256xf32>
    %c15_i32 = arith.constant 15 : i32
    %13 = tpu.dynamic_rotate %4 by %c15_i32 dim 1 : vector<16x256xf32>, i32 -> vector<16x256xf32>
    %c2 = arith.constant 2 : index
    %c0_8 = arith.constant 0 : index
    %14 = vector.load %arg6[%c2, %c0_8] : memref<9x256xf32, #tpu.memory_space<vmem>>, vector<1x256xf32>
    %15 = vector.broadcast %14 : vector<1x256xf32> to vector<16x256xf32>
    %16 = arith.mulf %13, %15 : vector<16x256xf32>
    %c1_i32 = arith.constant 1 : i32
    %17 = tpu.dynamic_rotate %4 by %c1_i32 dim 1 : vector<16x256xf32>, i32 -> vector<16x256xf32>
    %c3 = arith.constant 3 : index
    %c0_9 = arith.constant 0 : index
    %18 = vector.load %arg6[%c3, %c0_9] : memref<9x256xf32, #tpu.memory_space<vmem>>, vector<1x256xf32>
    %19 = vector.broadcast %18 : vector<1x256xf32> to vector<16x256xf32>
    %20 = arith.mulf %17, %19 : vector<16x256xf32>
    %c255_i32 = arith.constant 255 : i32
    %21 = tpu.dynamic_rotate %4 by %c255_i32 dim 1 : vector<16x256xf32>, i32 -> vector<16x256xf32>
    %c5 = arith.constant 5 : index
    %c0_10 = arith.constant 0 : index
    %22 = vector.load %arg6[%c5, %c0_10] : memref<9x256xf32, #tpu.memory_space<vmem>>, vector<1x256xf32>
    %23 = vector.broadcast %22 : vector<1x256xf32> to vector<16x256xf32>
    %24 = arith.mulf %21, %23 : vector<16x256xf32>
    %c241_i32 = arith.constant 241 : i32
    %25 = tpu.dynamic_rotate %4 by %c241_i32 dim 1 : vector<16x256xf32>, i32 -> vector<16x256xf32>
    %c6 = arith.constant 6 : index
    %c0_11 = arith.constant 0 : index
    %26 = vector.load %arg6[%c6, %c0_11] : memref<9x256xf32, #tpu.memory_space<vmem>>, vector<1x256xf32>
    %27 = vector.broadcast %26 : vector<1x256xf32> to vector<16x256xf32>
    %28 = arith.mulf %25, %27 : vector<16x256xf32>
    %c240_i32 = arith.constant 240 : i32
    %29 = tpu.dynamic_rotate %4 by %c240_i32 dim 1 : vector<16x256xf32>, i32 -> vector<16x256xf32>
    %c7 = arith.constant 7 : index
    %c0_12 = arith.constant 0 : index
    %30 = vector.load %arg6[%c7, %c0_12] : memref<9x256xf32, #tpu.memory_space<vmem>>, vector<1x256xf32>
    %31 = vector.broadcast %30 : vector<1x256xf32> to vector<16x256xf32>
    %32 = arith.mulf %29, %31 : vector<16x256xf32>
    %c239_i32 = arith.constant 239 : i32
    %33 = tpu.dynamic_rotate %4 by %c239_i32 dim 1 : vector<16x256xf32>, i32 -> vector<16x256xf32>
    %c8 = arith.constant 8 : index
    %c0_13 = arith.constant 0 : index
    %34 = vector.load %arg6[%c8, %c0_13] : memref<9x256xf32, #tpu.memory_space<vmem>>, vector<1x256xf32>
    %35 = vector.broadcast %34 : vector<1x256xf32> to vector<16x256xf32>
    %36 = arith.mulf %33, %35 : vector<16x256xf32>
    %37 = tpu.concatenate %8, %12, %16, %20, %4, %24, %28, %32, %36 in 0 : vector<16x256xf32>, vector<16x256xf32>, vector<16x256xf32>, vector<16x256xf32>, vector<16x256xf32>, vector<16x256xf32>, vector<16x256xf32>, vector<16x256xf32>, vector<16x256xf32> -> vector<144x256xf32>
    %38 = arith.truncf %37 : vector<144x256xf32> to vector<144x256xbf16>
    %c0_14 = arith.constant 0 : index
    %c0_15 = arith.constant 0 : index
    %39 = vector.load %arg4[%c0_14, %c0_15] : memref<8x144xbf16, #tpu.memory_space<vmem>>, vector<8x144xbf16>
    %cst = arith.constant dense<0.000000e+00> : vector<8x256xf32>
    %40 = tpu.matmul %39, %38, %cst {dimension_numbers = #tpu.dot_dimension_numbers<[1], [0], [0], [1], [0, 0, 1, 1], [], []>} : vector<8x144xbf16>, vector<144x256xbf16>, vector<8x256xf32> -> vector<8x256xf32>
    %cst_16 = arith.constant dense<0.000000e+00> : vector<8xf32>
    %41 = vector.multi_reduction <add>, %40, %cst_16 [1] : vector<8x256xf32> to vector<8xf32>
    %42 = vector.shape_cast %41 : vector<8xf32> to vector<8x1xf32>
    %43 = arith.mulf %40, %40 : vector<8x256xf32>
    %cst_17 = arith.constant dense<0.000000e+00> : vector<8xf32>
    %44 = vector.multi_reduction <add>, %43, %cst_17 [1] : vector<8x256xf32> to vector<8xf32>
    %45 = vector.shape_cast %44 : vector<8xf32> to vector<8x1xf32>
    %cst_18 = arith.constant 3.906250e-03 : f32
    %46 = vector.broadcast %cst_18 : f32 to vector<8x1xf32>
    %47 = arith.mulf %42, %46 : vector<8x1xf32>
    %cst_19 = arith.constant 3.906250e-03 : f32
    %48 = vector.broadcast %cst_19 : f32 to vector<8x1xf32>
    %49 = arith.mulf %45, %48 : vector<8x1xf32>
    %50 = arith.mulf %47, %47 : vector<8x1xf32>
    %51 = arith.subf %49, %50 : vector<8x1xf32>
    %cst_20 = arith.constant 0.000000e+00 : f32
    %52 = vector.broadcast %cst_20 : f32 to vector<8x1xf32>
    %53 = arith.maximumf %51, %52 : vector<8x1xf32>
    %54 = vector.broadcast %47 : vector<8x1xf32> to vector<8x256xf32>
    %55 = arith.subf %40, %54 : vector<8x256xf32>
    %cst_21 = arith.constant 9.99999974E-6 : f32
    %56 = vector.broadcast %cst_21 : f32 to vector<8x1xf32>
    %57 = arith.addf %53, %56 : vector<8x1xf32>
    %58 = math.rsqrt %57 : vector<8x1xf32>
    %59 = vector.broadcast %58 : vector<8x1xf32> to vector<8x256xf32>
    %60 = arith.mulf %55, %59 : vector<8x256xf32>
    %cst_22 = arith.constant 0.000000e+00 : f32
    %61 = vector.broadcast %cst_22 : f32 to vector<8x256xf32>
    %62 = arith.cmpf oge, %60, %61 : vector<8x256xf32>
    %cst_23 = arith.constant 2.000000e-01 : f32
    %63 = vector.broadcast %cst_23 : f32 to vector<8x256xf32>
    %64 = arith.mulf %63, %60 : vector<8x256xf32>
    %65 = arith.select %62, %60, %64 : vector<8x256xi1>, vector<8x256xf32>
    %c17_i32_24 = arith.constant 17 : i32
    %66 = tpu.dynamic_rotate %65 by %c17_i32_24 dim 1 : vector<8x256xf32>, i32 -> vector<8x256xf32>
    %c0_25 = arith.constant 0 : index
    %c0_26 = arith.constant 0 : index
    %67 = vector.load %arg6[%c0_25, %c0_26] : memref<9x256xf32, #tpu.memory_space<vmem>>, vector<1x256xf32>
    %68 = vector.broadcast %67 : vector<1x256xf32> to vector<8x256xf32>
    %69 = arith.mulf %66, %68 : vector<8x256xf32>
    %c16_i32_27 = arith.constant 16 : i32
    %70 = tpu.dynamic_rotate %65 by %c16_i32_27 dim 1 : vector<8x256xf32>, i32 -> vector<8x256xf32>
    %c1_28 = arith.constant 1 : index
    %c0_29 = arith.constant 0 : index
    %71 = vector.load %arg6[%c1_28, %c0_29] : memref<9x256xf32, #tpu.memory_space<vmem>>, vector<1x256xf32>
    %72 = vector.broadcast %71 : vector<1x256xf32> to vector<8x256xf32>
    %73 = arith.mulf %70, %72 : vector<8x256xf32>
    %c15_i32_30 = arith.constant 15 : i32
    %74 = tpu.dynamic_rotate %65 by %c15_i32_30 dim 1 : vector<8x256xf32>, i32 -> vector<8x256xf32>
    %c2_31 = arith.constant 2 : index
    %c0_32 = arith.constant 0 : index
    %75 = vector.load %arg6[%c2_31, %c0_32] : memref<9x256xf32, #tpu.memory_space<vmem>>, vector<1x256xf32>
    %76 = vector.broadcast %75 : vector<1x256xf32> to vector<8x256xf32>
    %77 = arith.mulf %74, %76 : vector<8x256xf32>
    %c1_i32_33 = arith.constant 1 : i32
    %78 = tpu.dynamic_rotate %65 by %c1_i32_33 dim 1 : vector<8x256xf32>, i32 -> vector<8x256xf32>
    %c3_34 = arith.constant 3 : index
    %c0_35 = arith.constant 0 : index
    %79 = vector.load %arg6[%c3_34, %c0_35] : memref<9x256xf32, #tpu.memory_space<vmem>>, vector<1x256xf32>
    %80 = vector.broadcast %79 : vector<1x256xf32> to vector<8x256xf32>
    %81 = arith.mulf %78, %80 : vector<8x256xf32>
    %c255_i32_36 = arith.constant 255 : i32
    %82 = tpu.dynamic_rotate %65 by %c255_i32_36 dim 1 : vector<8x256xf32>, i32 -> vector<8x256xf32>
    %c5_37 = arith.constant 5 : index
    %c0_38 = arith.constant 0 : index
    %83 = vector.load %arg6[%c5_37, %c0_38] : memref<9x256xf32, #tpu.memory_space<vmem>>, vector<1x256xf32>
    %84 = vector.broadcast %83 : vector<1x256xf32> to vector<8x256xf32>
    %85 = arith.mulf %82, %84 : vector<8x256xf32>
    %c241_i32_39 = arith.constant 241 : i32
    %86 = tpu.dynamic_rotate %65 by %c241_i32_39 dim 1 : vector<8x256xf32>, i32 -> vector<8x256xf32>
    %c6_40 = arith.constant 6 : index
    %c0_41 = arith.constant 0 : index
    %87 = vector.load %arg6[%c6_40, %c0_41] : memref<9x256xf32, #tpu.memory_space<vmem>>, vector<1x256xf32>
    %88 = vector.broadcast %87 : vector<1x256xf32> to vector<8x256xf32>
    %89 = arith.mulf %86, %88 : vector<8x256xf32>
    %c240_i32_42 = arith.constant 240 : i32
    %90 = tpu.dynamic_rotate %65 by %c240_i32_42 dim 1 : vector<8x256xf32>, i32 -> vector<8x256xf32>
    %c7_43 = arith.constant 7 : index
    %c0_44 = arith.constant 0 : index
    %91 = vector.load %arg6[%c7_43, %c0_44] : memref<9x256xf32, #tpu.memory_space<vmem>>, vector<1x256xf32>
    %92 = vector.broadcast %91 : vector<1x256xf32> to vector<8x256xf32>
    %93 = arith.mulf %90, %92 : vector<8x256xf32>
    %c239_i32_45 = arith.constant 239 : i32
    %94 = tpu.dynamic_rotate %65 by %c239_i32_45 dim 1 : vector<8x256xf32>, i32 -> vector<8x256xf32>
    %c8_46 = arith.constant 8 : index
    %c0_47 = arith.constant 0 : index
    %95 = vector.load %arg6[%c8_46, %c0_47] : memref<9x256xf32, #tpu.memory_space<vmem>>, vector<1x256xf32>
    %96 = vector.broadcast %95 : vector<1x256xf32> to vector<8x256xf32>
    %97 = arith.mulf %94, %96 : vector<8x256xf32>
    %98 = tpu.concatenate %69, %73, %77, %81, %65, %85, %89, %93, %97 in 0 : vector<8x256xf32>, vector<8x256xf32>, vector<8x256xf32>, vector<8x256xf32>, vector<8x256xf32>, vector<8x256xf32>, vector<8x256xf32>, vector<8x256xf32>, vector<8x256xf32> -> vector<72x256xf32>
    %99 = arith.truncf %98 : vector<72x256xf32> to vector<72x256xbf16>
    %c0_48 = arith.constant 0 : index
    %c0_49 = arith.constant 0 : index
    %100 = vector.load %arg5[%c0_48, %c0_49] : memref<8x72xbf16, #tpu.memory_space<vmem>>, vector<8x72xbf16>
    %cst_50 = arith.constant dense<0.000000e+00> : vector<8x256xf32>
    %101 = tpu.matmul %100, %99, %cst_50 {dimension_numbers = #tpu.dot_dimension_numbers<[1], [0], [0], [1], [0, 0, 1, 1], [], []>} : vector<8x72xbf16>, vector<72x256xbf16>, vector<8x256xf32> -> vector<8x256xf32>
    %cst_51 = arith.constant dense<0.000000e+00> : vector<8xf32>
    %102 = vector.multi_reduction <add>, %101, %cst_51 [1] : vector<8x256xf32> to vector<8xf32>
    %103 = vector.shape_cast %102 : vector<8xf32> to vector<8x1xf32>
    %104 = arith.mulf %101, %101 : vector<8x256xf32>
    %cst_52 = arith.constant dense<0.000000e+00> : vector<8xf32>
    %105 = vector.multi_reduction <add>, %104, %cst_52 [1] : vector<8x256xf32> to vector<8xf32>
    %106 = vector.shape_cast %105 : vector<8xf32> to vector<8x1xf32>
    %cst_53 = arith.constant 3.906250e-03 : f32
    %107 = vector.broadcast %cst_53 : f32 to vector<8x1xf32>
    %108 = arith.mulf %103, %107 : vector<8x1xf32>
    %cst_54 = arith.constant 3.906250e-03 : f32
    %109 = vector.broadcast %cst_54 : f32 to vector<8x1xf32>
    %110 = arith.mulf %106, %109 : vector<8x1xf32>
    %111 = arith.mulf %108, %108 : vector<8x1xf32>
    %112 = arith.subf %110, %111 : vector<8x1xf32>
    %cst_55 = arith.constant 0.000000e+00 : f32
    %113 = vector.broadcast %cst_55 : f32 to vector<8x1xf32>
    %114 = arith.maximumf %112, %113 : vector<8x1xf32>
    %115 = vector.broadcast %108 : vector<8x1xf32> to vector<8x256xf32>
    %116 = arith.subf %101, %115 : vector<8x256xf32>
    %cst_56 = arith.constant 9.99999974E-6 : f32
    %117 = vector.broadcast %cst_56 : f32 to vector<8x1xf32>
    %118 = arith.addf %114, %117 : vector<8x1xf32>
    %119 = math.rsqrt %118 : vector<8x1xf32>
    %120 = vector.broadcast %119 : vector<8x1xf32> to vector<8x256xf32>
    %121 = arith.mulf %116, %120 : vector<8x256xf32>
    %cst_57 = arith.constant 0.000000e+00 : f32
    %122 = vector.broadcast %cst_57 : f32 to vector<8x256xf32>
    %123 = arith.cmpf oge, %121, %122 : vector<8x256xf32>
    %cst_58 = arith.constant 2.000000e-01 : f32
    %124 = vector.broadcast %cst_58 : f32 to vector<8x256xf32>
    %125 = arith.mulf %124, %121 : vector<8x256xf32>
    %126 = arith.select %123, %121, %125 : vector<8x256xi1>, vector<8x256xf32>
    %c0_59 = arith.constant 0 : index
    %c0_60 = arith.constant 0 : index
    %127 = vector.load %arg7[%c0_59, %c0_60] : memref<2x8xbf16, #tpu.memory_space<vmem>>, vector<2x8xbf16>
    %128 = arith.truncf %126 : vector<8x256xf32> to vector<8x256xbf16>
    %cst_61 = arith.constant dense<0.000000e+00> : vector<2x256xf32>
    %129 = tpu.matmul %127, %128, %cst_61 {dimension_numbers = #tpu.dot_dimension_numbers<[1], [0], [0], [1], [0, 0, 1, 1], [], []>} : vector<2x8xbf16>, vector<8x256xbf16>, vector<2x256xf32> -> vector<2x256xf32>
    %c0_62 = arith.constant 0 : index
    %c0_63 = arith.constant 0 : index
    %130 = vector.load %arg8[%c0_62, %c0_63] : memref<2x1xf32, #tpu.memory_space<vmem>>, vector<2x1xf32>
    %131 = vector.broadcast %130 : vector<2x1xf32> to vector<2x256xf32>
    %132 = arith.addf %129, %131 : vector<2x256xf32>
    %c0_64 = arith.constant 0 : index
    %c0_65 = arith.constant 0 : index
    %c0_66 = arith.constant 0 : index
    %133 = vector.load %arg3[%c0_64, %c0_65, %c0_66] : memref<1x2x256xf32, #tpu.memory_space<vmem>>, vector<1x2x256xf32>
    %134 = vector.shape_cast %133 : vector<1x2x256xf32> to vector<2x256xf32>
    %135 = arith.subf %134, %132 : vector<2x256xf32>
    %c0_67 = arith.constant 0 : index
    %c0_68 = arith.constant 0 : index
    %c0_69 = arith.constant 0 : index
    %136 = vector.load %arg9[%c0_67, %c0_68, %c0_69] : memref<1x2x256xf32, #tpu.memory_space<vmem>>, vector<1x2x256xf32>
    %137 = vector.shape_cast %136 : vector<1x2x256xf32> to vector<2x256xf32>
    %138 = vector.shape_cast %135 : vector<2x256xf32> to vector<1x2x256xf32>
    tpu.vector_store %arg9[%c0_67, %c0_68, %c0_69], %138 {strides = array<i32>} : memref<1x2x256xf32, #tpu.memory_space<vmem>>, vector<1x2x256xf32>,
    return
  }
  func.func @transform_0(%arg0: i32) -> (i32, i32, i32) {
    %c0_i32 = arith.constant 0 : i32
    %c0_i32_0 = arith.constant 0 : i32
    %c0_i32_1 = arith.constant 0 : i32
    return %arg0, %c0_i32, %c0_i32_0 : i32, i32, i32
  }
  func.func @transform_1(%arg0: i32) -> (i32, i32, i32) {
    %c0_i32 = arith.constant 0 : i32
    %c0_i32_0 = arith.constant 0 : i32
    %c0_i32_1 = arith.constant 0 : i32
    return %arg0, %c0_i32, %c0_i32_0 : i32, i32, i32
  }
  func.func @transform_2(%arg0: i32) -> (i32, i32, i32) {
    %c0_i32 = arith.constant 0 : i32
    %c0_i32_0 = arith.constant 0 : i32
    %c0_i32_1 = arith.constant 0 : i32
    return %arg0, %c0_i32, %c0_i32_0 : i32, i32, i32
  }
  func.func @transform_3(%arg0: i32) -> (i32, i32) {
    %c0_i32 = arith.constant 0 : i32
    %c0_i32_0 = arith.constant 0 : i32
    %c0_i32_1 = arith.constant 0 : i32
    return %c0_i32, %c0_i32_0 : i32, i32
  }
  func.func @transform_4(%arg0: i32) -> (i32, i32) {
    %c0_i32 = arith.constant 0 : i32
    %c0_i32_0 = arith.constant 0 : i32
    %c0_i32_1 = arith.constant 0 : i32
    return %c0_i32, %c0_i32_0 : i32, i32
  }
  func.func @transform_5(%arg0: i32) -> (i32, i32) {
    %c0_i32 = arith.constant 0 : i32
    %c0_i32_0 = arith.constant 0 : i32
    %c0_i32_1 = arith.constant 0 : i32
    return %c0_i32, %c0_i32_0 : i32, i32
  }
  func.func @transform_6(%arg0: i32) -> (i32, i32) {
    %c0_i32 = arith.constant 0 : i32
    %c0_i32_0 = arith.constant 0 : i32
    %c0_i32_1 = arith.constant 0 : i32
    return %c0_i32, %c0_i32_0 : i32, i32
  }
  func.func @transform_7(%arg0: i32) -> (i32, i32) {
    %c0_i32 = arith.constant 0 : i32
    %c0_i32_0 = arith.constant 0 : i32
    %c0_i32_1 = arith.constant 0 : i32
    return %c0_i32, %c0_i32_0 : i32, i32
  }
  func.func @transform_8(%arg0: i32) -> (i32, i32, i32) {
    %c0_i32 = arith.constant 0 : i32
    %c0_i32_0 = arith.constant 0 : i32
    %c0_i32_1 = arith.constant 0 : i32
    return %arg0, %c0_i32, %c0_i32_0 : i32, i32, i32
  }
}

module attributes {stable_mosaic.version = 11 : i64} {
  func.func @_dc_down_kernel(%arg0: i32, %arg1: memref<1x2x256xf32, #tpu.memory_space<vmem>>, %arg2: memref<1x2x256xf32, #tpu.memory_space<vmem>>, %arg3: memref<1x2x4x256xf32, #tpu.memory_space<vmem>>, %arg4: memref<256x512xbf16, #tpu.memory_space<vmem>>, %arg5: memref<8x18xbf16, #tpu.memory_space<vmem>>, %arg6: memref<8x72xbf16, #tpu.memory_space<vmem>>, %arg7: memref<9x256xf32, #tpu.memory_space<vmem>>, %arg8: memref<256x64xbf16, #tpu.memory_space<vmem>>, %arg9: memref<1x1xf32, #tpu.memory_space<smem>>, %arg10: memref<1x2x256xf32, #tpu.memory_space<vmem>>, %arg11: memref<1x8x256xf32, #tpu.memory_space<vmem>>, %arg12: memref<1x8x64xf32, #tpu.memory_space<vmem>>) attributes {dimension_semantics = [#tpu.dimension_semantics<parallel>], iteration_bounds = array<i64: 2>, scalar_prefetch = 0 : i64, scratch_operands = 0 : i64, tpu.core_type = #tpu.core_type<tc>, window_params = [{transform_indices = @transform_0, window_bounds = array<i64: 1, 2, 256>}, {transform_indices = @transform_1, window_bounds = array<i64: 1, 2, 256>}, {transform_indices = @transform_2, window_bounds = array<i64: 1, 2, 4, 256>}, {pipeline_mode = #tpu.pipeline_mode<synchronous>, transform_indices = @transform_3, window_bounds = array<i64: 256, 512>}, {pipeline_mode = #tpu.pipeline_mode<synchronous>, transform_indices = @transform_4, window_bounds = array<i64: 8, 18>}, {pipeline_mode = #tpu.pipeline_mode<synchronous>, transform_indices = @transform_5, window_bounds = array<i64: 8, 72>}, {pipeline_mode = #tpu.pipeline_mode<synchronous>, transform_indices = @transform_6, window_bounds = array<i64: 9, 256>}, {pipeline_mode = #tpu.pipeline_mode<synchronous>, transform_indices = @transform_7, window_bounds = array<i64: 256, 64>}, {transform_indices = @transform_8, window_bounds = array<i64: 1, 1>}, {transform_indices = @transform_9, window_bounds = array<i64: 1, 2, 256>}, {transform_indices = @transform_10, window_bounds = array<i64: 1, 8, 256>}, {transform_indices = @transform_11, window_bounds = array<i64: 1, 8, 64>}]} {
    %c0 = arith.constant 0 : index
    %c0_0 = arith.constant 0 : index
    %c0_1 = arith.constant 0 : index
    %0 = vector.load %arg1[%c0, %c0_0, %c0_1] : memref<1x2x256xf32, #tpu.memory_space<vmem>>, vector<1x2x256xf32>
    %1 = vector.shape_cast %0 : vector<1x2x256xf32> to vector<2x256xf32>
    %c0_2 = arith.constant 0 : index
    %c0_3 = arith.constant 0 : index
    %c0_4 = arith.constant 0 : index
    %2 = vector.load %arg2[%c0_2, %c0_3, %c0_4] : memref<1x2x256xf32, #tpu.memory_space<vmem>>, vector<1x2x256xf32>
    %3 = vector.shape_cast %2 : vector<1x2x256xf32> to vector<2x256xf32>
    %c0_5 = arith.constant 0 : index
    %c0_6 = arith.constant 0 : index
    %c0_7 = arith.constant 0 : index
    %c0_8 = arith.constant 0 : index
    %4 = vector.load %arg3[%c0_5, %c0_6, %c0_7, %c0_8] : memref<1x2x4x256xf32, #tpu.memory_space<vmem>>, vector<1x2x4x256xf32>
    %5 = vector.shape_cast %4 : vector<1x2x4x256xf32> to vector<2x4x256xf32>
    %c0_9 = arith.constant 0 : index
    %c0_10 = arith.constant 0 : index
    %6 = memref.load %arg9[%c0_9, %c0_10] : memref<1x1xf32, #tpu.memory_space<smem>>
    %7 = vector.extract_strided_slice %1 {offsets = [0, 0], sizes = [1, 256], strides = [1, 1]} : vector<2x256xf32> to vector<1x256xf32>
    %8 = vector.extract_strided_slice %1 {offsets = [1, 0], sizes = [1, 256], strides = [1, 1]} : vector<2x256xf32> to vector<1x256xf32>
    %9 = vector.extract_strided_slice %5 {offsets = [0, 0, 0], sizes = [1, 4, 256], strides = [1, 1, 1]} : vector<2x4x256xf32> to vector<1x4x256xf32>
    %10 = vector.shape_cast %9 : vector<1x4x256xf32> to vector<4x256xf32>
    %11 = vector.extract_strided_slice %5 {offsets = [1, 0, 0], sizes = [1, 4, 256], strides = [1, 1, 1]} : vector<2x4x256xf32> to vector<1x4x256xf32>
    %12 = vector.shape_cast %11 : vector<1x4x256xf32> to vector<4x256xf32>
    %13 = vector.broadcast %7 : vector<1x256xf32> to vector<4x256xf32>
    %14 = arith.mulf %10, %13 : vector<4x256xf32>
    %15 = vector.broadcast %8 : vector<1x256xf32> to vector<4x256xf32>
    %16 = arith.mulf %12, %15 : vector<4x256xf32>
    %17 = arith.subf %14, %16 : vector<4x256xf32>
    %18 = vector.broadcast %8 : vector<1x256xf32> to vector<4x256xf32>
    %19 = arith.mulf %10, %18 : vector<4x256xf32>
    %20 = vector.broadcast %7 : vector<1x256xf32> to vector<4x256xf32>
    %21 = arith.mulf %12, %20 : vector<4x256xf32>
    %22 = arith.addf %19, %21 : vector<4x256xf32>
    %23 = tpu.concatenate %17, %22 in 0 : vector<4x256xf32>, vector<4x256xf32> -> vector<8x256xf32>
    %24 = arith.truncf %23 : vector<8x256xf32> to vector<8x256xbf16>
    %c0_11 = arith.constant 0 : index
    %c0_12 = arith.constant 0 : index
    %25 = vector.load %arg4[%c0_11, %c0_12] : memref<256x512xbf16, #tpu.memory_space<vmem>>, vector<256x512xbf16>
    %cst = arith.constant dense<0.000000e+00> : vector<8x512xf32>
    %26 = tpu.matmul %24, %25, %cst {dimension_numbers = #tpu.dot_dimension_numbers<[1], [0], [0], [1], [0, 0, 1, 1], [], []>} : vector<8x256xbf16>, vector<256x512xbf16>, vector<8x512xf32> -> vector<8x512xf32>
    %27 = vector.extract_strided_slice %26 {offsets = [0, 0], sizes = [8, 256], strides = [1, 1]} : vector<8x512xf32> to vector<8x256xf32>
    %28 = vector.extract_strided_slice %26 {offsets = [0, 256], sizes = [8, 256], strides = [1, 1]} : vector<8x512xf32> to vector<8x256xf32>
    %29 = vector.extract_strided_slice %27 {offsets = [0, 0], sizes = [4, 256], strides = [1, 1]} : vector<8x256xf32> to vector<4x256xf32>
    %30 = vector.extract_strided_slice %28 {offsets = [4, 0], sizes = [4, 256], strides = [1, 1]} : vector<8x256xf32> to vector<4x256xf32>
    %31 = arith.subf %29, %30 : vector<4x256xf32>
    %32 = vector.extract_strided_slice %28 {offsets = [0, 0], sizes = [4, 256], strides = [1, 1]} : vector<8x256xf32> to vector<4x256xf32>
    %33 = vector.extract_strided_slice %27 {offsets = [4, 0], sizes = [4, 256], strides = [1, 1]} : vector<8x256xf32> to vector<4x256xf32>
    %34 = arith.addf %32, %33 : vector<4x256xf32>
    %35 = arith.mulf %10, %31 : vector<4x256xf32>
    %36 = arith.mulf %12, %34 : vector<4x256xf32>
    %37 = arith.addf %35, %36 : vector<4x256xf32>
    %cst_13 = arith.constant dense<0.000000e+00> : vector<256xf32>
    %38 = vector.multi_reduction <add>, %37, %cst_13 [0] : vector<4x256xf32> to vector<256xf32>
    %39 = vector.shape_cast %38 : vector<256xf32> to vector<1x256xf32>
    %40 = arith.mulf %10, %34 : vector<4x256xf32>
    %41 = arith.mulf %12, %31 : vector<4x256xf32>
    %42 = arith.subf %40, %41 : vector<4x256xf32>
    %cst_14 = arith.constant dense<0.000000e+00> : vector<256xf32>
    %43 = vector.multi_reduction <add>, %42, %cst_14 [0] : vector<4x256xf32> to vector<256xf32>
    %44 = vector.shape_cast %43 : vector<256xf32> to vector<1x256xf32>
    %45 = vector.extract_strided_slice %3 {offsets = [0, 0], sizes = [1, 256], strides = [1, 1]} : vector<2x256xf32> to vector<1x256xf32>
    %46 = arith.subf %39, %45 : vector<1x256xf32>
    %47 = vector.broadcast %6 : f32 to vector<1x256xf32>
    %48 = arith.mulf %47, %46 : vector<1x256xf32>
    %49 = arith.subf %7, %48 : vector<1x256xf32>
    %50 = vector.extract_strided_slice %3 {offsets = [1, 0], sizes = [1, 256], strides = [1, 1]} : vector<2x256xf32> to vector<1x256xf32>
    %51 = arith.subf %44, %50 : vector<1x256xf32>
    %52 = vector.broadcast %6 : f32 to vector<1x256xf32>
    %53 = arith.mulf %52, %51 : vector<1x256xf32>
    %54 = arith.subf %8, %53 : vector<1x256xf32>
    %c0_15 = arith.constant 0 : index
    %c0_16 = arith.constant 0 : index
    %c0_17 = arith.constant 0 : index
    %55 = vector.load %arg10[%c0_15, %c0_16, %c0_17] : memref<1x2x256xf32, #tpu.memory_space<vmem>>, vector<1x1x256xf32>
    %56 = vector.shape_cast %55 : vector<1x1x256xf32> to vector<1x256xf32>
    %57 = vector.shape_cast %49 : vector<1x256xf32> to vector<1x1x256xf32>
    tpu.vector_store %arg10[%c0_15, %c0_16, %c0_17], %57 {strides = array<i32>} : memref<1x2x256xf32, #tpu.memory_space<vmem>>, vector<1x1x256xf32>,
    %c0_18 = arith.constant 0 : index
    %c1 = arith.constant 1 : index
    %c0_19 = arith.constant 0 : index
    %58 = vector.load %arg10[%c0_18, %c1, %c0_19] : memref<1x2x256xf32, #tpu.memory_space<vmem>>, vector<1x1x256xf32>
    %59 = vector.shape_cast %58 : vector<1x1x256xf32> to vector<1x256xf32>
    %60 = vector.shape_cast %54 : vector<1x256xf32> to vector<1x1x256xf32>
    tpu.vector_store %arg10[%c0_18, %c1, %c0_19], %60 {strides = array<i32>} : memref<1x2x256xf32, #tpu.memory_space<vmem>>, vector<1x1x256xf32>,
    %61 = tpu.concatenate %49, %54 in 0 : vector<1x256xf32>, vector<1x256xf32> -> vector<2x256xf32>
    %c17_i32 = arith.constant 17 : i32
    %62 = tpu.dynamic_rotate %61 by %c17_i32 dim 1 : vector<2x256xf32>, i32 -> vector<2x256xf32>
    %c0_20 = arith.constant 0 : index
    %c0_21 = arith.constant 0 : index
    %63 = vector.load %arg7[%c0_20, %c0_21] : memref<9x256xf32, #tpu.memory_space<vmem>>, vector<1x256xf32>
    %64 = vector.broadcast %63 : vector<1x256xf32> to vector<2x256xf32>
    %65 = arith.mulf %62, %64 : vector<2x256xf32>
    %c16_i32 = arith.constant 16 : i32
    %66 = tpu.dynamic_rotate %61 by %c16_i32 dim 1 : vector<2x256xf32>, i32 -> vector<2x256xf32>
    %c1_22 = arith.constant 1 : index
    %c0_23 = arith.constant 0 : index
    %67 = vector.load %arg7[%c1_22, %c0_23] : memref<9x256xf32, #tpu.memory_space<vmem>>, vector<1x256xf32>
    %68 = vector.broadcast %67 : vector<1x256xf32> to vector<2x256xf32>
    %69 = arith.mulf %66, %68 : vector<2x256xf32>
    %c15_i32 = arith.constant 15 : i32
    %70 = tpu.dynamic_rotate %61 by %c15_i32 dim 1 : vector<2x256xf32>, i32 -> vector<2x256xf32>
    %c2 = arith.constant 2 : index
    %c0_24 = arith.constant 0 : index
    %71 = vector.load %arg7[%c2, %c0_24] : memref<9x256xf32, #tpu.memory_space<vmem>>, vector<1x256xf32>
    %72 = vector.broadcast %71 : vector<1x256xf32> to vector<2x256xf32>
    %73 = arith.mulf %70, %72 : vector<2x256xf32>
    %c1_i32 = arith.constant 1 : i32
    %74 = tpu.dynamic_rotate %61 by %c1_i32 dim 1 : vector<2x256xf32>, i32 -> vector<2x256xf32>
    %c3 = arith.constant 3 : index
    %c0_25 = arith.constant 0 : index
    %75 = vector.load %arg7[%c3, %c0_25] : memref<9x256xf32, #tpu.memory_space<vmem>>, vector<1x256xf32>
    %76 = vector.broadcast %75 : vector<1x256xf32> to vector<2x256xf32>
    %77 = arith.mulf %74, %76 : vector<2x256xf32>
    %c255_i32 = arith.constant 255 : i32
    %78 = tpu.dynamic_rotate %61 by %c255_i32 dim 1 : vector<2x256xf32>, i32 -> vector<2x256xf32>
    %c5 = arith.constant 5 : index
    %c0_26 = arith.constant 0 : index
    %79 = vector.load %arg7[%c5, %c0_26] : memref<9x256xf32, #tpu.memory_space<vmem>>, vector<1x256xf32>
    %80 = vector.broadcast %79 : vector<1x256xf32> to vector<2x256xf32>
    %81 = arith.mulf %78, %80 : vector<2x256xf32>
    %c241_i32 = arith.constant 241 : i32
    %82 = tpu.dynamic_rotate %61 by %c241_i32 dim 1 : vector<2x256xf32>, i32 -> vector<2x256xf32>
    %c6 = arith.constant 6 : index
    %c0_27 = arith.constant 0 : index
    %83 = vector.load %arg7[%c6, %c0_27] : memref<9x256xf32, #tpu.memory_space<vmem>>, vector<1x256xf32>
    %84 = vector.broadcast %83 : vector<1x256xf32> to vector<2x256xf32>
    %85 = arith.mulf %82, %84 : vector<2x256xf32>
    %c240_i32 = arith.constant 240 : i32
    %86 = tpu.dynamic_rotate %61 by %c240_i32 dim 1 : vector<2x256xf32>, i32 -> vector<2x256xf32>
    %c7 = arith.constant 7 : index
    %c0_28 = arith.constant 0 : index
    %87 = vector.load %arg7[%c7, %c0_28] : memref<9x256xf32, #tpu.memory_space<vmem>>, vector<1x256xf32>
    %88 = vector.broadcast %87 : vector<1x256xf32> to vector<2x256xf32>
    %89 = arith.mulf %86, %88 : vector<2x256xf32>
    %c239_i32 = arith.constant 239 : i32
    %90 = tpu.dynamic_rotate %61 by %c239_i32 dim 1 : vector<2x256xf32>, i32 -> vector<2x256xf32>
    %c8 = arith.constant 8 : index
    %c0_29 = arith.constant 0 : index
    %91 = vector.load %arg7[%c8, %c0_29] : memref<9x256xf32, #tpu.memory_space<vmem>>, vector<1x256xf32>
    %92 = vector.broadcast %91 : vector<1x256xf32> to vector<2x256xf32>
    %93 = arith.mulf %90, %92 : vector<2x256xf32>
    %94 = tpu.concatenate %65, %69, %73, %77, %61, %81, %85, %89, %93 in 0 : vector<2x256xf32>, vector<2x256xf32>, vector<2x256xf32>, vector<2x256xf32>, vector<2x256xf32>, vector<2x256xf32>, vector<2x256xf32>, vector<2x256xf32>, vector<2x256xf32> -> vector<18x256xf32>
    %95 = arith.truncf %94 : vector<18x256xf32> to vector<18x256xbf16>
    %c0_30 = arith.constant 0 : index
    %c0_31 = arith.constant 0 : index
    %96 = vector.load %arg5[%c0_30, %c0_31] : memref<8x18xbf16, #tpu.memory_space<vmem>>, vector<8x18xbf16>
    %cst_32 = arith.constant dense<0.000000e+00> : vector<8x256xf32>
    %97 = tpu.matmul %96, %95, %cst_32 {dimension_numbers = #tpu.dot_dimension_numbers<[1], [0], [0], [1], [0, 0, 1, 1], [], []>} : vector<8x18xbf16>, vector<18x256xbf16>, vector<8x256xf32> -> vector<8x256xf32>
    %cst_33 = arith.constant dense<0.000000e+00> : vector<8xf32>
    %98 = vector.multi_reduction <add>, %97, %cst_33 [1] : vector<8x256xf32> to vector<8xf32>
    %99 = vector.shape_cast %98 : vector<8xf32> to vector<8x1xf32>
    %100 = arith.mulf %97, %97 : vector<8x256xf32>
    %cst_34 = arith.constant dense<0.000000e+00> : vector<8xf32>
    %101 = vector.multi_reduction <add>, %100, %cst_34 [1] : vector<8x256xf32> to vector<8xf32>
    %102 = vector.shape_cast %101 : vector<8xf32> to vector<8x1xf32>
    %cst_35 = arith.constant 3.906250e-03 : f32
    %103 = vector.broadcast %cst_35 : f32 to vector<8x1xf32>
    %104 = arith.mulf %99, %103 : vector<8x1xf32>
    %cst_36 = arith.constant 3.906250e-03 : f32
    %105 = vector.broadcast %cst_36 : f32 to vector<8x1xf32>
    %106 = arith.mulf %102, %105 : vector<8x1xf32>
    %107 = arith.mulf %104, %104 : vector<8x1xf32>
    %108 = arith.subf %106, %107 : vector<8x1xf32>
    %cst_37 = arith.constant 0.000000e+00 : f32
    %109 = vector.broadcast %cst_37 : f32 to vector<8x1xf32>
    %110 = arith.maximumf %108, %109 : vector<8x1xf32>
    %111 = vector.broadcast %104 : vector<8x1xf32> to vector<8x256xf32>
    %112 = arith.subf %97, %111 : vector<8x256xf32>
    %cst_38 = arith.constant 9.99999974E-6 : f32
    %113 = vector.broadcast %cst_38 : f32 to vector<8x1xf32>
    %114 = arith.addf %110, %113 : vector<8x1xf32>
    %115 = math.rsqrt %114 : vector<8x1xf32>
    %116 = vector.broadcast %115 : vector<8x1xf32> to vector<8x256xf32>
    %117 = arith.mulf %112, %116 : vector<8x256xf32>
    %cst_39 = arith.constant 0.000000e+00 : f32
    %118 = vector.broadcast %cst_39 : f32 to vector<8x256xf32>
    %119 = arith.cmpf oge, %117, %118 : vector<8x256xf32>
    %cst_40 = arith.constant 2.000000e-01 : f32
    %120 = vector.broadcast %cst_40 : f32 to vector<8x256xf32>
    %121 = arith.mulf %120, %117 : vector<8x256xf32>
    %122 = arith.select %119, %117, %121 : vector<8x256xi1>, vector<8x256xf32>
    %c17_i32_41 = arith.constant 17 : i32
    %123 = tpu.dynamic_rotate %122 by %c17_i32_41 dim 1 : vector<8x256xf32>, i32 -> vector<8x256xf32>
    %c0_42 = arith.constant 0 : index
    %c0_43 = arith.constant 0 : index
    %124 = vector.load %arg7[%c0_42, %c0_43] : memref<9x256xf32, #tpu.memory_space<vmem>>, vector<1x256xf32>
    %125 = vector.broadcast %124 : vector<1x256xf32> to vector<8x256xf32>
    %126 = arith.mulf %123, %125 : vector<8x256xf32>
    %c16_i32_44 = arith.constant 16 : i32
    %127 = tpu.dynamic_rotate %122 by %c16_i32_44 dim 1 : vector<8x256xf32>, i32 -> vector<8x256xf32>
    %c1_45 = arith.constant 1 : index
    %c0_46 = arith.constant 0 : index
    %128 = vector.load %arg7[%c1_45, %c0_46] : memref<9x256xf32, #tpu.memory_space<vmem>>, vector<1x256xf32>
    %129 = vector.broadcast %128 : vector<1x256xf32> to vector<8x256xf32>
    %130 = arith.mulf %127, %129 : vector<8x256xf32>
    %c15_i32_47 = arith.constant 15 : i32
    %131 = tpu.dynamic_rotate %122 by %c15_i32_47 dim 1 : vector<8x256xf32>, i32 -> vector<8x256xf32>
    %c2_48 = arith.constant 2 : index
    %c0_49 = arith.constant 0 : index
    %132 = vector.load %arg7[%c2_48, %c0_49] : memref<9x256xf32, #tpu.memory_space<vmem>>, vector<1x256xf32>
    %133 = vector.broadcast %132 : vector<1x256xf32> to vector<8x256xf32>
    %134 = arith.mulf %131, %133 : vector<8x256xf32>
    %c1_i32_50 = arith.constant 1 : i32
    %135 = tpu.dynamic_rotate %122 by %c1_i32_50 dim 1 : vector<8x256xf32>, i32 -> vector<8x256xf32>
    %c3_51 = arith.constant 3 : index
    %c0_52 = arith.constant 0 : index
    %136 = vector.load %arg7[%c3_51, %c0_52] : memref<9x256xf32, #tpu.memory_space<vmem>>, vector<1x256xf32>
    %137 = vector.broadcast %136 : vector<1x256xf32> to vector<8x256xf32>
    %138 = arith.mulf %135, %137 : vector<8x256xf32>
    %c255_i32_53 = arith.constant 255 : i32
    %139 = tpu.dynamic_rotate %122 by %c255_i32_53 dim 1 : vector<8x256xf32>, i32 -> vector<8x256xf32>
    %c5_54 = arith.constant 5 : index
    %c0_55 = arith.constant 0 : index
    %140 = vector.load %arg7[%c5_54, %c0_55] : memref<9x256xf32, #tpu.memory_space<vmem>>, vector<1x256xf32>
    %141 = vector.broadcast %140 : vector<1x256xf32> to vector<8x256xf32>
    %142 = arith.mulf %139, %141 : vector<8x256xf32>
    %c241_i32_56 = arith.constant 241 : i32
    %143 = tpu.dynamic_rotate %122 by %c241_i32_56 dim 1 : vector<8x256xf32>, i32 -> vector<8x256xf32>
    %c6_57 = arith.constant 6 : index
    %c0_58 = arith.constant 0 : index
    %144 = vector.load %arg7[%c6_57, %c0_58] : memref<9x256xf32, #tpu.memory_space<vmem>>, vector<1x256xf32>
    %145 = vector.broadcast %144 : vector<1x256xf32> to vector<8x256xf32>
    %146 = arith.mulf %143, %145 : vector<8x256xf32>
    %c240_i32_59 = arith.constant 240 : i32
    %147 = tpu.dynamic_rotate %122 by %c240_i32_59 dim 1 : vector<8x256xf32>, i32 -> vector<8x256xf32>
    %c7_60 = arith.constant 7 : index
    %c0_61 = arith.constant 0 : index
    %148 = vector.load %arg7[%c7_60, %c0_61] : memref<9x256xf32, #tpu.memory_space<vmem>>, vector<1x256xf32>
    %149 = vector.broadcast %148 : vector<1x256xf32> to vector<8x256xf32>
    %150 = arith.mulf %147, %149 : vector<8x256xf32>
    %c239_i32_62 = arith.constant 239 : i32
    %151 = tpu.dynamic_rotate %122 by %c239_i32_62 dim 1 : vector<8x256xf32>, i32 -> vector<8x256xf32>
    %c8_63 = arith.constant 8 : index
    %c0_64 = arith.constant 0 : index
    %152 = vector.load %arg7[%c8_63, %c0_64] : memref<9x256xf32, #tpu.memory_space<vmem>>, vector<1x256xf32>
    %153 = vector.broadcast %152 : vector<1x256xf32> to vector<8x256xf32>
    %154 = arith.mulf %151, %153 : vector<8x256xf32>
    %155 = tpu.concatenate %126, %130, %134, %138, %122, %142, %146, %150, %154 in 0 : vector<8x256xf32>, vector<8x256xf32>, vector<8x256xf32>, vector<8x256xf32>, vector<8x256xf32>, vector<8x256xf32>, vector<8x256xf32>, vector<8x256xf32>, vector<8x256xf32> -> vector<72x256xf32>
    %156 = arith.truncf %155 : vector<72x256xf32> to vector<72x256xbf16>
    %c0_65 = arith.constant 0 : index
    %c0_66 = arith.constant 0 : index
    %157 = vector.load %arg6[%c0_65, %c0_66] : memref<8x72xbf16, #tpu.memory_space<vmem>>, vector<8x72xbf16>
    %cst_67 = arith.constant dense<0.000000e+00> : vector<8x256xf32>
    %158 = tpu.matmul %157, %156, %cst_67 {dimension_numbers = #tpu.dot_dimension_numbers<[1], [0], [0], [1], [0, 0, 1, 1], [], []>} : vector<8x72xbf16>, vector<72x256xbf16>, vector<8x256xf32> -> vector<8x256xf32>
    %cst_68 = arith.constant dense<0.000000e+00> : vector<8xf32>
    %159 = vector.multi_reduction <add>, %158, %cst_68 [1] : vector<8x256xf32> to vector<8xf32>
    %160 = vector.shape_cast %159 : vector<8xf32> to vector<8x1xf32>
    %161 = arith.mulf %158, %158 : vector<8x256xf32>
    %cst_69 = arith.constant dense<0.000000e+00> : vector<8xf32>
    %162 = vector.multi_reduction <add>, %161, %cst_69 [1] : vector<8x256xf32> to vector<8xf32>
    %163 = vector.shape_cast %162 : vector<8xf32> to vector<8x1xf32>
    %cst_70 = arith.constant 3.906250e-03 : f32
    %164 = vector.broadcast %cst_70 : f32 to vector<8x1xf32>
    %165 = arith.mulf %160, %164 : vector<8x1xf32>
    %cst_71 = arith.constant 3.906250e-03 : f32
    %166 = vector.broadcast %cst_71 : f32 to vector<8x1xf32>
    %167 = arith.mulf %163, %166 : vector<8x1xf32>
    %168 = arith.mulf %165, %165 : vector<8x1xf32>
    %169 = arith.subf %167, %168 : vector<8x1xf32>
    %cst_72 = arith.constant 0.000000e+00 : f32
    %170 = vector.broadcast %cst_72 : f32 to vector<8x1xf32>
    %171 = arith.maximumf %169, %170 : vector<8x1xf32>
    %172 = vector.broadcast %165 : vector<8x1xf32> to vector<8x256xf32>
    %173 = arith.subf %158, %172 : vector<8x256xf32>
    %cst_73 = arith.constant 9.99999974E-6 : f32
    %174 = vector.broadcast %cst_73 : f32 to vector<8x1xf32>
    %175 = arith.addf %171, %174 : vector<8x1xf32>
    %176 = math.rsqrt %175 : vector<8x1xf32>
    %177 = vector.broadcast %176 : vector<8x1xf32> to vector<8x256xf32>
    %178 = arith.mulf %173, %177 : vector<8x256xf32>
    %cst_74 = arith.constant 0.000000e+00 : f32
    %179 = vector.broadcast %cst_74 : f32 to vector<8x256xf32>
    %180 = arith.cmpf oge, %178, %179 : vector<8x256xf32>
    %cst_75 = arith.constant 2.000000e-01 : f32
    %181 = vector.broadcast %cst_75 : f32 to vector<8x256xf32>
    %182 = arith.mulf %181, %178 : vector<8x256xf32>
    %183 = arith.select %180, %178, %182 : vector<8x256xi1>, vector<8x256xf32>
    %c0_76 = arith.constant 0 : index
    %c0_77 = arith.constant 0 : index
    %c0_78 = arith.constant 0 : index
    %184 = vector.load %arg11[%c0_76, %c0_77, %c0_78] : memref<1x8x256xf32, #tpu.memory_space<vmem>>, vector<1x8x256xf32>
    %185 = vector.shape_cast %184 : vector<1x8x256xf32> to vector<8x256xf32>
    %186 = vector.shape_cast %183 : vector<8x256xf32> to vector<1x8x256xf32>
    tpu.vector_store %arg11[%c0_76, %c0_77, %c0_78], %186 {strides = array<i32>} : memref<1x8x256xf32, #tpu.memory_space<vmem>>, vector<1x8x256xf32>,
    %187 = arith.truncf %183 : vector<8x256xf32> to vector<8x256xbf16>
    %c0_79 = arith.constant 0 : index
    %c0_80 = arith.constant 0 : index
    %188 = vector.load %arg8[%c0_79, %c0_80] : memref<256x64xbf16, #tpu.memory_space<vmem>>, vector<256x64xbf16>
    %cst_81 = arith.constant dense<0.000000e+00> : vector<8x64xf32>
    %189 = tpu.matmul %187, %188, %cst_81 {dimension_numbers = #tpu.dot_dimension_numbers<[1], [0], [0], [1], [0, 0, 1, 1], [], []>} : vector<8x256xbf16>, vector<256x64xbf16>, vector<8x64xf32> -> vector<8x64xf32>
    %c0_82 = arith.constant 0 : index
    %c0_83 = arith.constant 0 : index
    %c0_84 = arith.constant 0 : index
    %190 = vector.load %arg12[%c0_82, %c0_83, %c0_84] : memref<1x8x64xf32, #tpu.memory_space<vmem>>, vector<1x8x64xf32>
    %191 = vector.shape_cast %190 : vector<1x8x64xf32> to vector<8x64xf32>
    %192 = vector.shape_cast %189 : vector<8x64xf32> to vector<1x8x64xf32>
    tpu.vector_store %arg12[%c0_82, %c0_83, %c0_84], %192 {strides = array<i32>} : memref<1x8x64xf32, #tpu.memory_space<vmem>>, vector<1x8x64xf32>,
    return
  }
  func.func @transform_0(%arg0: i32) -> (i32, i32, i32) {
    %c0_i32 = arith.constant 0 : i32
    %c0_i32_0 = arith.constant 0 : i32
    %c0_i32_1 = arith.constant 0 : i32
    return %arg0, %c0_i32, %c0_i32_0 : i32, i32, i32
  }
  func.func @transform_1(%arg0: i32) -> (i32, i32, i32) {
    %c0_i32 = arith.constant 0 : i32
    %c0_i32_0 = arith.constant 0 : i32
    %c0_i32_1 = arith.constant 0 : i32
    return %arg0, %c0_i32, %c0_i32_0 : i32, i32, i32
  }
  func.func @transform_2(%arg0: i32) -> (i32, i32, i32, i32) {
    %c0_i32 = arith.constant 0 : i32
    %c0_i32_0 = arith.constant 0 : i32
    %c0_i32_1 = arith.constant 0 : i32
    %c0_i32_2 = arith.constant 0 : i32
    return %arg0, %c0_i32, %c0_i32_0, %c0_i32_1 : i32, i32, i32, i32
  }
  func.func @transform_3(%arg0: i32) -> (i32, i32) {
    %c0_i32 = arith.constant 0 : i32
    %c0_i32_0 = arith.constant 0 : i32
    %c0_i32_1 = arith.constant 0 : i32
    return %c0_i32, %c0_i32_0 : i32, i32
  }
  func.func @transform_4(%arg0: i32) -> (i32, i32) {
    %c0_i32 = arith.constant 0 : i32
    %c0_i32_0 = arith.constant 0 : i32
    %c0_i32_1 = arith.constant 0 : i32
    return %c0_i32, %c0_i32_0 : i32, i32
  }
  func.func @transform_5(%arg0: i32) -> (i32, i32) {
    %c0_i32 = arith.constant 0 : i32
    %c0_i32_0 = arith.constant 0 : i32
    %c0_i32_1 = arith.constant 0 : i32
    return %c0_i32, %c0_i32_0 : i32, i32
  }
  func.func @transform_6(%arg0: i32) -> (i32, i32) {
    %c0_i32 = arith.constant 0 : i32
    %c0_i32_0 = arith.constant 0 : i32
    %c0_i32_1 = arith.constant 0 : i32
    return %c0_i32, %c0_i32_0 : i32, i32
  }
  func.func @transform_7(%arg0: i32) -> (i32, i32) {
    %c0_i32 = arith.constant 0 : i32
    %c0_i32_0 = arith.constant 0 : i32
    %c0_i32_1 = arith.constant 0 : i32
    return %c0_i32, %c0_i32_0 : i32, i32
  }
  func.func @transform_8(%arg0: i32) -> (i32, i32) {
    %c0_i32 = arith.constant 0 : i32
    %c0_i32_0 = arith.constant 0 : i32
    %c0_i32_1 = arith.constant 0 : i32
    return %c0_i32, %c0_i32_0 : i32, i32
  }
  func.func @transform_9(%arg0: i32) -> (i32, i32, i32) {
    %c0_i32 = arith.constant 0 : i32
    %c0_i32_0 = arith.constant 0 : i32
    %c0_i32_1 = arith.constant 0 : i32
    return %arg0, %c0_i32, %c0_i32_0 : i32, i32, i32
  }
  func.func @transform_10(%arg0: i32) -> (i32, i32, i32) {
    %c0_i32 = arith.constant 0 : i32
    %c0_i32_0 = arith.constant 0 : i32
    %c0_i32_1 = arith.constant 0 : i32
    return %arg0, %c0_i32, %c0_i32_0 : i32, i32, i32
  }
  func.func @transform_11(%arg0: i32) -> (i32, i32, i32) {
    %c0_i32 = arith.constant 0 : i32
    %c0_i32_0 = arith.constant 0 : i32
    %c0_i32_1 = arith.constant 0 : i32
    return %arg0, %c0_i32, %c0_i32_0 : i32, i32, i32
  }
}

</mosaic_0001>

<bundles_post_ra>
// kernel: tpu_custom_call.1
= control target key start
LH: loop header
LB: loop body
LE: loop exit
PB: predicated region body
PF: predicated region fallthrough
CT: control target
= control target key end

     0   :  { %6 = vsyncpa [#allocation3], 0  ;;  %s305_s0 = inlined_call_operand.hbm [shape: f32[8,128], index: 0, kind: input, shape index: {}]   ;;  %s306_s1 = inlined_call_operand.hbm [shape: f32[8,128], index: 1, kind: output, shape index: {}]  }
   0x1   :  { %7 = vsyncpa [#allocation4], 0  ;;  %s258_s6 = smov 0  }
   0x2 LB: > { %s145_s7 = sadd.s32 4294967295, %s244_s6   ;;  %p146_p0 = scmp.ge.s32.totalorder %s244_s6, 1  ;;  %s244_s6 = sphi %s258_s6, %s13_s6  }
   0x3   : > { %p60_p1 = scmp.lt.s32.totalorder %s244_s6, 3  ;;  %p270_p3 = scmp.eq.s32.totalorder %s145_s7, 0 }
   0x4   : > { %s246_s10 = smov [#allocation2]  }
   0x5   : > { %p266_p2 = pnand %p146_p0, %p60_p1  ;;  %s73_s11 = sshll.u32 %s246_s10, 4  ;;  %s74_s11 = int_to_ptr.vmem [resolvable:$true] %s73_s11 }
   0x6   : > { %s191_s12 = scalar_lea.vmem %s74_s11, 128  ;;  %p199_p10 = scmp.lt.s32.totalorder %s74_s11, %s74_s11 }
   0x7   : > { %p162_p4 = pneg %p266_p2  ;;  %p192_p7 = scmp.ne.s32.totalorder %s74_s11, %s191_s12 }
   0x8   : > { %p200_p11 = scmp.lt.s32.totalorder %s191_s12, %s191_s12 }
   0x9   : > { %p163_p5 = pnand %p270_p3, %p162_p4 }
   0xa   : > { %p201_p12 = por %p200_p11, %p199_p10 }
   0xb   : > { %p182_p6 = pneg %p163_p5 }
   0xd   : > { %p194_p8 = pnand %p192_p7, %p182_p6 }
   0xf   : > { %p195_p9 = pneg %p194_p8 }
  0x11   : > { %p202_p13 = pnand %p201_p12, %p195_p9 }
  0x13   : > { %205 = shalt.err (!%p202_p13)
}
  0x14   : > { %165 = dma.hbm_to_vmem [thread:$0]  (!%p163_p5), %s305_s0, 128, %s74_s11, [#allocation3]  }
  0x15   : > { %86 = sbr.rel (%p266_p2) target bundleno = 42 (0x2a), region = 24 }
  0x1a   : > { %235 = dma.done.wait (%p270_p3), [#allocation3], 128  }
  0x1b   : > { %237 = vsyncadd (%p270_p3), [#allocation3], 4294967168  ;;  %s247_s15 = smov [#allocation5]   ;;  %v96_v0 = vld [vmem:[#allocation2] sm:$0xff]  ;;  %p287_p0 = scmp.eq.s32.totalorder %s145_s7, 1 }
  0x1c   : > { %s106_s16 = sshll.u32 %s247_s15, 4  ;;  %v97_v1 = vadd.f32 1.0, %v96_v0  ;;  %s107_s16 = int_to_ptr.vmem [resolvable:$true] %s106_s16 }
  0x1d   : > { %s206_s18 = scalar_lea.vmem %s107_s16, 128  ;;  %p213_p5 = scmp.lt.s32.totalorder %s107_s16, %s107_s16 }
  0x1e   : > { %98 = vst [vmem:[#allocation5] sm:$0xff] %v97_v1  ;;  %p207_p1 = scmp.ne.s32.totalorder %s107_s16, %s206_s18  ;;  %p214_p6 = scmp.lt.s32.totalorder %s206_s18, %s206_s18 }
  0x20   : > { %p208_p2 = pnand %p207_p1, %p287_p0  ;;  %p215_p7 = por %p214_p6, %p213_p5 }
  0x22   : > { %p209_p4 = pneg %p208_p2 }
  0x24   : > { %p216_p3 = pnand %p215_p7, %p209_p4 }
  0x26   : > { %219 = shalt.err (!%p216_p3)
}
  0x27   : > { %159 = dma.vmem_to_hbm [thread:$0]  (%p287_p0), %s107_s16, 128, %s306_s1, [#allocation4]  }
  0x28   : > { %239 = dma.done.wait (%p287_p0), [#allocation4], 128  }
  0x29   : > { %241 = vsyncadd (%p287_p0), [#allocation4], 4294967168 }
  0x2a PF: > { %s13_s6 = sadd.s32 1, %s244_s6  }
  0x2b   : > { %p10_p8 = scmp.ge.s32.totalorder %s13_s6, 4  }
  0x2d   :  { %12 = sbr.rel (!%p10_p8) target bundleno = 2 (0x2), region = 53 }
  0x32   :  { %119 = vsyncpa [#allocation3], 1 }
  0x33   :  { %121 = vsyncpa [#allocation3 + $0x1], 1 }
  0x34   :  { %122 = vsyncpa [#allocation4], 1 }
  0x35   :  { %124 = vsyncpa [#allocation4 + $0x1], 1 }

// kernel: varnet_forward.15
= control target key start
LH: loop header
LB: loop body
LE: loop exit
PB: predicated region body
PF: predicated region fallthrough
CT: control target
= control target key end

     0   :  { %s1118_s21 = smov 0   ;;  %s1312_s0 = inlined_call_operand.vmem [shape: f32[2,8,64], index: 0, kind: input, shape index: {}]   ;;  %s1313_s1 = inlined_call_operand.vmem [shape: bf16[16,72], index: 1, kind: input, shape index: {}]   ;;  %s1314_s2 = inlined_call_operand.vmem [shape: bf16[16,144], index: 2, kind: input, shape index: {}]   ;;  %s1315_s3 = inlined_call_operand.vmem [shape: f32[9,64], index: 3, kind: input, shape index: {}]   ;;  %s1316_s4 = inlined_call_operand.vmem [shape: bf16[64,16], index: 4, kind: input, shape index: {}]   ;;  %s1317_s5 = inlined_call_operand.vmem [shape: f32[2,16,64], index: 5, kind: output, shape index: {0}]   ;;  %s1318_s6 = inlined_call_operand.vmem [shape: f32[2,16,16], index: 6, kind: output, shape index: {1}]  }
   0x1 LB: > { %s902_s22 = sadd.s32 4294967295, %s1061_s21   ;;  %p906_p0 = scmp.ge.s32.totalorder %s1061_s21, 1  ;;  %s1061_s21 = sphi %s1118_s21, %s17_s21  }
   0x2   : > { %p214_p1 = scmp.lt.s32.totalorder %s1061_s21, 3 }
   0x4   : > { %p215_p2 = pnand %p906_p0, %p214_p1 }
   0x5   : > { %p248_p3 = scmp.lt.s32.totalorder (!%p215_p2), %s902_s22, 1  ;;  %s1063_s25 = smov (!%p215_p2), 9  }
   0x6   : > { %218 = sbr.rel (%p215_p2) target bundleno = 1941 (0x795), region = 40  ;;  %s1064_s10 = smov (!%p215_p2), 7  }
   0x7   : > { %s1065_s11 = smov (!%p215_p2), 64   ;;  %s1066_s12 = smov (!%p215_p2), 1  }
   0x8   : > { %s1067_s15 = smov (!%p215_p2), 63   ;;  %s1068_s18 = smov (!%p215_p2), 8  }
   0x9   : > { %s1069_s23 = smov (!%p215_p2), 57   ;;  %s1070_s26 = smov (!%p215_p2), 56  }
   0xa   : > { %s1071_s27 = smov (!%p215_p2), 46   ;;  %s1073_s29 = smov (!%p215_p2), 55  }
   0xb   : > { %v919_v0 = vld [vmem:[%s1315_s3 + $0x8] ss:$0 sm:$0xff]  ;;  %s1320_s22 = smov (!%p248_p3, %s902_s22), 1  ;;  %v917_v1 = vld [vmem:[%s1315_s3 + $0x6] ss:$0 sm:$0xff]  ;;  %vm264_vm0 = vcmask 1048064  }
   0xc   : > { %347 = vrot.lane.b32.xlu1 %v919_v0, %s1063_s25  ;;  %s907_s28 = sshll.u32 %s1320_s22, 3  ;;  %v916_v2 = vld [vmem:[%s1315_s3 + $0x5] ss:$0 sm:$0xff]  ;;  %v915_v4 = vld [vmem:[%s1315_s3 + $0x3] ss:$0 sm:$0xff]  ;;  %s1074_s30 = smov 47  }
   0xd   : > { %s251_s7 = scalar_lea.vmem %s1312_s0, %s907_s28  ;;  %v918_v7 = vld [vmem:[%s1315_s3 + $0x7] ss:$0 sm:$0xff]  ;;  %v914_v8 = vld [vmem:[%s1315_s3 + $0x2] ss:$0 sm:$0xff]  ;;  %v913_v9 = vld [vmem:[%s1315_s3 + $0x1] ss:$0 sm:$0xff] }
   0xe   : > { %v263_v3 = vld [vmem:[%s251_s7] sm:$0xff]  ;;  %s1072_s28 = smov 48   ;;  %s1075_s7 = smov 54   ;;  %v1079_v27 = vmov 0.0   ;;  %vm1081_vm1 = vmmov 0   ;;  %vm418_vm2 = vcmask 1043456  }
   0xf   : > { %265 = vrot.lane.b32.xlu0 %v263_v3, %s1065_s11  ;;  %s1076_s8 = smov 126   ;;  %v912_v23 = vld [vmem:[%s1315_s3] ss:$0 sm:$0xff]  ;;  %s1078_s13 = smov 127   ;;  %945 = vmatprep.subr.bf16.mxu0 %v1079_v27  ;;  %vm414_vm3 = vcmask 588800   ;;  %vm463_vm4 = vcmask 523264  }
  0x10   : > { %327 = vrot.lane.b32.xlu1 %v917_v1, %s1064_s10  ;;  %s1080_s14 = smov 73   ;;  %955 = vmatprep.mubr.msk.bf16.mxu0 %vm1081_vm1, %v1079_v27  ;;  %v1039_v49 = vld [vmem:[%s1313_s1] sm:$0xff]   ;;  %vm650_vm7 = vcmask 130048  }
  0x14   : > { %317 = vrot.lane.b32.xlu1 %v916_v2, %s1066_s12  ;;  %s1077_s12 = smov 120  }
  0x18   : > { %307 = vrot.lane.b32.xlu1 %v915_v4, %s1067_s15 }
  0x7e   : > { %v1156_v10 = vpop.permute.xlu1 %347 }
  0x81   : > { %v266_v5 = vpop.permute.xlu0 %265 }
  0x82   : > { %v267_v6 = vsel %vm264_vm0, %v266_v5, %v263_v3  ;;  %v1158_v11 = vpop.permute.xlu1 %327 }
  0x83   : > { %268 = vrot.lane.b32.xlu0 %v267_v6, %s1065_s11 }
  0x86   : > { %v1167_v17 = vpop.permute.xlu1 %317 }
  0x87   : > { %337 = vrot.lane.b32.xlu0 %v918_v7, %s1068_s18 }
  0x8a   : > { %v1176_v22 = vpop.permute.xlu1 %307 }
  0x8b   : > { %297 = vrot.lane.b32.xlu0 %v914_v8, %s1069_s23 }
  0x8f   : > { %287 = vrot.lane.b32.xlu0 %v913_v9, %s1070_s26 }
  0xf5   : > { %v269_v12 = vpop.permute.xlu0 %268 }
  0xf6   : > { %v270_v13 = vsel %vm264_vm0, %v269_v12, %v263_v3 }
  0xf7   : > { %v350_v14 = vmul.f32 %v1156_v10, %v270_v13  ;;  %v330_v15 = vmul.f32 %v1158_v11, %v270_v13  ;;  %v320_v21 = vmul.f32 %v1167_v17, %v270_v13  ;;  %v310_v24 = vmul.f32 %v1176_v22, %v270_v13 }
  0xf9   : > { %380 = vrot.lane.b32.xlu1 %v350_v14, %s1071_s27  ;;  %372 = vrot.lane.b32.xlu0 %v330_v15, %s1072_s28  ;;  %v1165_v16 = vpop.permute.xlu0 %337 }
  0xfa   : > { %v340_v18 = vmul.f32 %v1165_v16, %v270_v13 }
  0xfd   : > { %364 = vrot.lane.b32.xlu0 %v263_v3, %s1073_s29  ;;  %376 = vrot.lane.b32.xlu1 %v340_v18, %s1074_s30  ;;  %v1172_v19 = vpop.permute.xlu0 %297 }
  0xfe   : > { %v300_v20 = vmul.f32 %v1172_v19, %v270_v13 }
 0x101   : > { %368 = vrot.lane.b32.xlu1 %v320_v21, %s1075_s7  ;;  %356 = vrot.lane.b32.xlu0 %v300_v20, %s1076_s8  ;;  %v1184_v25 = vpop.permute.xlu0 %287 }
 0x102   : > { %v290_v26 = vmul.f32 %v1184_v25, %v270_v13 }
 0x105   : > { %360 = vrot.lane.b32.xlu1 %v310_v24, %s1077_s12  ;;  %277 = vrot.lane.b32.xlu0 %v912_v23, %s1073_s29 }
 0x109   : > { %352 = vrot.lane.b32.xlu1 %v290_v26, %s1078_s13 }
 0x16b   : > { %v381_v28 = vpop.permute.xlu1 %380  ;;  %v373_v29 = vpop.permute.xlu0 %372 }
 0x16c   : > { %v387_v30 = vpack.c.bf16 %v381_v28, %v381_v28 }
 0x16e   : > { %408 = vrot.lane.b32.xlu0 %v387_v30, %s1080_s14 }
 0x16f   : > { %v377_v31 = vpop.permute.xlu1 %376  ;;  %v365_v32 = vpop.permute.xlu0 %364 }
 0x170   : > { %v386_v33 = vpack.c.bf16 %v377_v31, %v373_v29 }
 0x172   : > { %406 = vrot.lane.b32.xlu1 %v386_v33, %s1080_s14 }
 0x173   : > { %v369_v34 = vpop.permute.xlu1 %368  ;;  %v357_v35 = vpop.permute.xlu0 %356 }
 0x174   : > { %v385_v36 = vpack.c.bf16 %v369_v34, %v365_v32 }
 0x176   : > { %404 = vrot.lane.b32.xlu0 %v385_v36, %s1080_s14 }
 0x177   : > { %v361_v37 = vpop.permute.xlu1 %360  ;;  %v1196_v38 = vpop.permute.xlu0 %277 }
 0x178   : > { %v384_v39 = vpack.c.bf16 %v361_v37, %v357_v35  ;;  %v280_v40 = vmul.f32 %v1196_v38, %v270_v13 }
 0x17a   : > { %402 = vrot.lane.b32.xlu1 %v384_v39, %s1080_s14 }
 0x17b   : > { %v353_v41 = vpop.permute.xlu1 %352 }
 0x17c   : > { %v383_v42 = vpack.c.bf16 %v353_v41, %v280_v40 }
 0x17e   : > { %400 = vrot.lane.b32.xlu0 %v383_v42, %s1080_s14 }
 0x1e0   : > { %v409_v43 = vpop.permute.xlu0 %408 }
 0x1e1   : > { %v420_v44 = vsel %vm418_vm2, %v409_v43, 0 }
 0x1e2   : > { %946 = vmatpush3.bf16.msra.mxu0 %v420_v44 }
 0x1e3   : > { %947 = vmatprep.subr.bf16.mxu0 %v1079_v27 }
 0x1e4   : > { %v407_v45 = vpop.permute.xlu1 %406 }
 0x1e6   : > { %948 = vmatpush3.bf16.msra.mxu0 %v407_v45 }
 0x1e7   : > { %949 = vmatprep.subr.bf16.mxu0 %v1079_v27 }
 0x1e8   : > { %v405_v46 = vpop.permute.xlu0 %404 }
 0x1ea   : > { %950 = vmatpush3.bf16.msra.mxu0 %v405_v46 }
 0x1eb   : > { %951 = vmatprep.subr.bf16.mxu0 %v1079_v27 }
 0x1ec   : > { %v403_v47 = vpop.permute.xlu1 %402 }
 0x1ee   : > { %952 = vmatpush3.bf16.msra.mxu0 %v403_v47 }
 0x1ef   : > { %953 = vmatprep.subr.bf16.mxu0 %v1079_v27 }
 0x1f0   : > { %v401_v48 = vpop.permute.xlu0 %400 }
 0x1f2   : > { %954 = vmatpush3.bf16.msra.mxu0 %v401_v48 }
 0x1f3   : > { %959 = vmatprep.subr.bf16.mxu0 %v1079_v27 }
 0x1f5   : > { %956 = vmatmul.mubr.msk.bf16.vlgmr.msra.gmra.mxu0 %vm414_vm3, %v1039_v49 }
 0x1f6   : > { %967 = vmatprep.mubr.msk.bf16.mxu0 %vm1081_vm1, %v1079_v27 }
 0x2b5   : > { %v456_v50 = vpop.f32.mrf.mxu0 }
 0x2b6   : > { %v464_v51 = vsel %vm463_vm4, %v456_v50, 0.0  ;;  %v470_v56 = vmul.f32 %v456_v50, %v456_v50 }
 0x2b7   : > { %465 = vadd.xlane.f32.xlu1 %v464_v51  ;;  %v957_v52 = vpop.f32.mrf.mxu0 }
 0x2b8   : > { %v472_v59 = vsel %vm463_vm4, %v470_v56, 0.0 }
 0x2b9   : > { %v459_v53 = vpop.f32.mrf.mxu0 }
 0x2ba   : > { %v467_v54 = vsel %vm463_vm4, %v459_v53, 0.0  ;;  %v471_v55 = vmul.f32 %v459_v53, %v459_v53 }
 0x2bb   : > { %468 = vadd.xlane.f32.xlu0 %v467_v54  ;;  %v958_v57 = vpop.f32.mrf.mxu0 }
 0x2bc   : > { %v475_v58 = vsel %vm463_vm4, %v471_v55, 0.0 }
 0x2bd   : > { %476 = vadd.xlane.f32.xlu1 %v475_v58  ;;  %v1082_v58 = vmov 0  }
 0x2be   : > { %654 = vmatprep.subr.bf16.mxu1 %v1082_v58 }
 0x2bf   : > { %473 = vadd.xlane.f32.xlu0 %v472_v59 }
 0x340   : > { %v466_v60 = vpop.xlane.xlu1 %465 }
 0x341   : > { %v478_v62 = vmul.f32 0.015625, %v466_v60 }
 0x343   : > { %v482_v4 = vmul.f32 %v478_v62, %v478_v62  ;;  %v488_v18 = vsub.f32 %v456_v50, %v478_v62 }
 0x344   : > { %v469_v61 = vpop.xlane.xlu0 %468 }
 0x345   : > { %v479_v63 = vmul.f32 0.015625, %v469_v61 }
 0x346   : > { %v477_v0 = vpop.xlane.xlu1 %476 }
 0x347   : > { %v483_v1 = vmul.f32 %v479_v63, %v479_v63  ;;  %v481_v2 = vmul.f32 0.015625, %v477_v0  ;;  %v489_v14 = vsub.f32 %v459_v53, %v479_v63 }
 0x348   : > { %v474_v3 = vpop.xlane.xlu0 %473 }
 0x349   : > { %v485_v5 = vsub.f32 %v481_v2, %v483_v1  ;;  %v480_v6 = vmul.f32 0.015625, %v474_v3 }
 0x34b   : > { %v487_v7 = vmax.f32 %v485_v5, 0.0  ;;  %v484_v8 = vsub.f32 %v480_v6, %v482_v4 }
 0x34d   : > { %v491_v9 = vadd.f32 1e-05, %v487_v7  ;;  %v486_v12 = vmax.f32 %v484_v8, 0.0 }
 0x34f   : > { %1047 = vrsqrt.f32 %v491_v9  ;;  %v490_v13 = vadd.f32 1e-05, %v486_v12 }
 0x351   : > { %1049 = vrsqrt.f32 %v490_v13 }
 0x35c   : > { %v1048_v15 = vpop.eup %1047 }
 0x35d   : > { %v495_v20 = vmul.f32 %v1048_v15, %v489_v14 }
 0x35e   : > { %v1050_v21 = vpop.eup %1049 }
 0x35f   : > { %vm497_vm5 = vcmp.ge.f32.partialorder %v495_v20, 0.0  ;;  %v499_v23 = vmul.f32 0.2, %v495_v20  ;;  %v494_v24 = vmul.f32 %v1050_v21, %v488_v18 }
 0x361   : > { %v501_v26 = vsel %vm497_vm5, %v495_v20, %v499_v23  ;;  %vm496_vm6 = vcmp.ge.f32.partialorder %v494_v24, 0.0  ;;  %v498_v28 = vmul.f32 0.2, %v494_v24 }
 0x362   : > { %505 = vrot.lane.b32.xlu1 %v501_v26, %s1065_s11 }
 0x363   : > { %v500_v29 = vsel %vm496_vm6, %v494_v24, %v498_v28 }
 0x364   : > { %502 = vrot.lane.b32.xlu0 %v500_v29, %s1065_s11 }
 0x3d4   : > { %v506_v30 = vpop.permute.xlu1 %505 }
 0x3d5   : > { %v507_v31 = vsel %vm264_vm0, %v506_v30, %v501_v26 }
 0x3d6   : > { %510 = vrot.lane.b32.xlu0 %v507_v31, %s1065_s11  ;;  %v503_v32 = vpop.permute.xlu0 %502 }
 0x3d7   : > { %v504_v33 = vsel %vm264_vm0, %v503_v32, %v500_v29 }
 0x3d8   : > { %508 = vrot.lane.b32.xlu1 %v504_v33, %s1065_s11  ;;  %v1042_v33 = vld [vmem:[%s1314_s2 + $0x4] ss:$8 sps:$4 sm:$0xff]  }
 0x3d9   : > { %924 = vmatprep.mubr.msk.bf16.mxu1 %vm650_vm7, %v1042_v33 }
 0x448   : > { %v511_v34 = vpop.permute.xlu0 %510 }
 0x449   : > { %v513_v35 = vsel %vm264_vm0, %v511_v34, %v501_v26 }
 0x44a   : > { %v509_v36 = vpop.permute.xlu1 %508  ;;  %v527_v40 = vmul.f32 %v513_v35, %v1165_v16  ;;  %v525_v42 = vmul.f32 %v513_v35, %v1158_v11  ;;  %v1232_v47 = vmul.f32 %v513_v35, %v1196_v38  ;;  %v519_v52 = vmul.f32 %v513_v35, %v1172_v19 }
 0x44b   : > { %v512_v37 = vsel %vm264_vm0, %v509_v36, %v500_v29  ;;  %v529_v56 = vmul.f32 %v513_v35, %v1156_v10  ;;  %v517_v57 = vmul.f32 %v513_v35, %v1184_v25 }
 0x44c   : > { %v526_v39 = vmul.f32 %v512_v37, %v1165_v16  ;;  %v524_v41 = vmul.f32 %v512_v37, %v1158_v11  ;;  %v1228_v43 = vmul.f32 %v512_v37, %v1196_v38  ;;  %v522_v46 = vmul.f32 %v512_v37, %v1167_v17 }
 0x44d   : > { %v523_v16 = vmul.f32 %v513_v35, %v1167_v17  ;;  %v1014_v11 = vpack.i.bf16 %v501_v26, %v500_v29  ;;  %v520_v50 = vmul.f32 %v512_v37, %v1176_v22  ;;  %v518_v51 = vmul.f32 %v512_v37, %v1172_v19 }
 0x44e   : > { %v999_v44 = vpack.i.bf16 %v527_v40, %v526_v39  ;;  %v1004_v45 = vpack.i.bf16 %v525_v42, %v524_v41  ;;  %v594_v48 = vpack.c.bf16 %v1232_v47, %v1228_v43  ;;  %v521_v38 = vmul.f32 %v513_v35, %v1176_v22 }
 0x44f   : > { %v1009_v49 = vpack.i.bf16 %v523_v16, %v522_v46  ;;  %v1024_v54 = vpack.i.bf16 %v519_v52, %v518_v51  ;;  %v528_v17 = vmul.f32 %v512_v37, %v1156_v10  ;;  %v516_v55 = vmul.f32 %v512_v37, %v1184_v25  ;;  %v1043_v52 = vld [vmem:[%s1316_s4 + $0x18] sm:$0xff]  }
 0x450   : > { %1000 = vrot.lane.b32.xlu1 %v999_v44, %s1074_s30  ;;  %1005 = vrot.lane.b32.xlu0 %v1004_v45, %s1072_s28  ;;  %v1019_v53 = vpack.i.bf16 %v521_v38, %v520_v50  ;;  %v1040_v44 = vld [vmem:[%s1314_s2] ss:$8 sps:$4 sm:$0xff]   ;;  %s932_s30 = sshll.u32 %s1320_s22, 4 }
 0x451   : > { %v1034_v22 = vpack.i.bf16 %v529_v56, %v528_v17  ;;  %v1029_v59 = vpack.i.bf16 %v517_v57, %v516_v55  ;;  %960 = vmatpush3.bf16.msra.mxu0 %v1043_v52  ;;  %v1046_v17 = vld [vmem:[%s1316_s4] sm:$0xff]   ;;  %s256_s9 = scalar_lea.vmem %s1317_s5, %s932_s30 }
 0x452   : > { %961 = vmatprep.subr.bf16.mxu0 %v1079_v27 }
 0x454   : > { %1015 = vrot.lane.b32.xlu0 %v1014_v11, %s1073_s29  ;;  %1010 = vrot.lane.b32.xlu1 %v1009_v49, %s1075_s7 }
 0x458   : > { %1020 = vrot.lane.b32.xlu1 %v1019_v53, %s1077_s12  ;;  %1025 = vrot.lane.b32.xlu0 %v1024_v54, %s1076_s8  ;;  %v1044_v53 = vld [vmem:[%s1316_s4 + $0x10] sm:$0xff]   ;;  %v1045_v54 = vld [vmem:[%s1316_s4 + $0x8] sm:$0xff]   ;;  %s261_s12 = scalar_lea.vmem %s1318_s6, %s932_s30 }
 0x459   : > { %962 = vmatpush3.bf16.msra.mxu0 %v1044_v53 }
 0x45a   : > { %963 = vmatprep.subr.bf16.mxu0 %v1079_v27 }
 0x45c   : > { %1035 = vrot.lane.b32.xlu0 %v1034_v22, %s1071_s27  ;;  %1030 = vrot.lane.b32.xlu1 %v1029_v59, %s1078_s13 }
 0x45d   : > { %964 = vmatpush3.bf16.msra.mxu0 %v1045_v54 }
 0x45e   : > { %965 = vmatprep.subr.bf16.mxu0 %v1079_v27 }
 0x461   : > { %966 = vmatpush3.bf16.msra.mxu0 %v1046_v17 }
 0x4c2   : > { %v1001_v19 = vpop.permute.xlu1 %1000  ;;  %v1006_v60 = vpop.permute.xlu0 %1005 }
 0x4c3   : > { %v1003_v61 = vunpack.i.h.bf16 %v1001_v19  ;;  %v1002_v62 = vunpack.i.l.bf16 %v1001_v19  ;;  %v1008_v63 = vunpack.i.h.bf16 %v1006_v60  ;;  %v1007_v0 = vunpack.i.l.bf16 %v1006_v60 }
 0x4c5   : > { %v601_v1 = vpack.c.bf16 %v1003_v61, %v1002_v62  ;;  %v600_v2 = vpack.c.bf16 %v1008_v63, %v1007_v0 }
 0x4c6   : > { %v1016_v10 = vpop.permute.xlu0 %1015  ;;  %v1011_v3 = vpop.permute.xlu1 %1010 }
 0x4c7   : > { %v1018_v25 = vunpack.i.h.bf16 %v1016_v10  ;;  %v1017_v4 = vunpack.i.l.bf16 %v1016_v10  ;;  %v1013_v5 = vunpack.i.h.bf16 %v1011_v3  ;;  %v1012_v6 = vunpack.i.l.bf16 %v1011_v3  ;;  %635 = vrot.lane.b32.xlu0 %v600_v2, %s1080_s14  ;;  %637 = vrot.lane.b32.xlu1 %v601_v1, %s1080_s14 }
 0x4c9   : > { %v598_v7 = vpack.c.bf16 %v1018_v25, %v1017_v4  ;;  %v599_v8 = vpack.c.bf16 %v1013_v5, %v1012_v6 }
 0x4ca   : > { %v1021_v9 = vpop.permute.xlu1 %1020  ;;  %v1026_v12 = vpop.permute.xlu0 %1025 }
 0x4cb   : > { %v1023_v13 = vunpack.i.h.bf16 %v1021_v9  ;;  %v1022_v14 = vunpack.i.l.bf16 %v1021_v9  ;;  %v1028_v15 = vunpack.i.h.bf16 %v1026_v12  ;;  %v1027_v18 = vunpack.i.l.bf16 %v1026_v12  ;;  %631 = vrot.lane.b32.xlu0 %v598_v7, %s1080_s14  ;;  %633 = vrot.lane.b32.xlu1 %v599_v8, %s1080_s14 }
 0x4cd   : > { %v597_v20 = vpack.c.bf16 %v1023_v13, %v1022_v14  ;;  %v596_v21 = vpack.c.bf16 %v1028_v15, %v1027_v18 }
 0x4ce   : > { %v1036_v23 = vpop.permute.xlu0 %1035  ;;  %v1031_v24 = vpop.permute.xlu1 %1030 }
 0x4cf   : > { %v1033_v26 = vunpack.i.h.bf16 %v1031_v24  ;;  %v1032_v28 = vunpack.i.l.bf16 %v1031_v24  ;;  %627 = vrot.lane.b32.xlu0 %v596_v21, %s1080_s14  ;;  %629 = vrot.lane.b32.xlu1 %v597_v20, %s1080_s14  ;;  %v1038_v29 = vunpack.i.h.bf16 %v1036_v23  ;;  %v1037_v30 = vunpack.i.l.bf16 %v1036_v23 }
 0x4d1   : > { %v595_v31 = vpack.c.bf16 %v1033_v26, %v1032_v28  ;;  %v602_v32 = vpack.c.bf16 %v1038_v29, %v1037_v30 }
 0x4d3   : > { %625 = vrot.lane.b32.xlu1 %v595_v31, %s1080_s14  ;;  %623 = vrot.lane.b32.xlu0 %v594_v48, %s1080_s14 }
 0x4d7   : > { %639 = vrot.lane.b32.xlu1 %v602_v32, %s1080_s14 }
 0x539   : > { %v638_v34 = vpop.permute.xlu1 %637  ;;  %v636_v35 = vpop.permute.xlu0 %635 }
 0x53a   : > { %655 = vmatpush1.bf16.msra.mxu1 %v638_v34 }
 0x53b   : > { %656 = vmatprep.subr.bf16.mxu1 %v1082_v58 }
 0x53d   : > { %v634_v36 = vpop.permute.xlu1 %633  ;;  %v632_v37 = vpop.permute.xlu0 %631 }
 0x53e   : > { %657 = vmatpush1.bf16.msra.mxu1 %v636_v35 }
 0x53f   : > { %658 = vmatprep.subr.bf16.mxu1 %v1082_v58 }
 0x541   : > { %v630_v39 = vpop.permute.xlu1 %629  ;;  %v628_v40 = vpop.permute.xlu0 %627 }
 0x542   : > { %659 = vmatpush1.bf16.msra.mxu1 %v634_v36 }
 0x543   : > { %660 = vmatprep.subr.bf16.mxu1 %v1082_v58 }
 0x545   : > { %v626_v41 = vpop.permute.xlu1 %625  ;;  %v624_v42 = vpop.permute.xlu0 %623 }
 0x546   : > { %661 = vmatpush1.bf16.msra.mxu1 %v632_v37 }
 0x547   : > { %662 = vmatprep.subr.bf16.mxu1 %v1082_v58 }
 0x549   : > { %v640_v43 = vpop.permute.xlu1 %639 }
 0x54a   : > { %663 = vmatpush1.bf16.msra.mxu1 %v630_v39 }
 0x54b   : > { %664 = vmatprep.subr.bf16.mxu1 %v1082_v58 }
 0x54e   : > { %665 = vmatpush1.bf16.msra.mxu1 %v628_v40 }
 0x54f   : > { %666 = vmatprep.subr.bf16.mxu1 %v1082_v58 }
 0x552   : > { %667 = vmatpush1.bf16.msra.mxu1 %v626_v41 }
 0x553   : > { %668 = vmatprep.subr.bf16.mxu1 %v1082_v58 }
 0x556   : > { %669 = vmatpush1.bf16.msra.mxu1 %v624_v42 }
 0x557   : > { %684 = vmatprep.subr.bf16.mxu1 %v1082_v58 }
 0x55a   : > { %685 = vmatpush2.bf16.msra.mxu1 %v640_v43 }
 0x55d   : > { %687 = vmatmul.mubr.bf16.vlgmr.msra.gmra.mxu1 %v1040_v44 }
 0x61d   : > { %v688_v45 = vpop.f32.mrf.mxu1 }
 0x61e   : > { %v695_v46 = vsel %vm463_vm4, %v688_v45, 0.0  ;;  %v701_v47 = vmul.f32 %v688_v45, %v688_v45 }
 0x61f   : > { %696 = vadd.xlane.f32.xlu0 %v695_v46  ;;  %v690_v16 = vpop.f32.mrf.mxu1 }
 0x620   : > { %v703_v11 = vsel %vm463_vm4, %v701_v47, 0.0 }
 0x621   : > { %v691_v48 = vpop.f32.mrf.mxu1 }
 0x622   : > { %v698_v49 = vsel %vm463_vm4, %v691_v48, 0.0  ;;  %v702_v50 = vmul.f32 %v691_v48, %v691_v48 }
 0x623   : > { %704 = vadd.xlane.f32.xlu0 %v703_v11  ;;  %699 = vadd.xlane.f32.xlu1 %v698_v49  ;;  %v693_v51 = vpop.f32.mrf.mxu1 }
 0x624   : > { %v706_v38 = vsel %vm463_vm4, %v702_v50, 0.0 }
 0x627   : > { %707 = vadd.xlane.f32.xlu0 %v706_v38 }
 0x6a8   : > { %v697_v55 = vpop.xlane.xlu0 %696 }
 0x6a9   : > { %v709_v56 = vmul.f32 0.015625, %v697_v55 }
 0x6ab   : > { %v713_v22 = vmul.f32 %v709_v56, %v709_v56  ;;  %v719_v27 = vsub.f32 %v688_v45, %v709_v56 }
 0x6ac   : > { %v705_v57 = vpop.xlane.xlu0 %704  ;;  %v700_v58 = vpop.xlane.xlu1 %699 }
 0x6ad   : > { %v711_v59 = vmul.f32 0.015625, %v705_v57  ;;  %v710_v19 = vmul.f32 0.015625, %v700_v58 }
 0x6af   : > { %v715_v60 = vsub.f32 %v711_v59, %v713_v22  ;;  %v714_v63 = vmul.f32 %v710_v19, %v710_v19  ;;  %v720_v5 = vsub.f32 %v691_v48, %v710_v19 }
 0x6b0   : > { %v708_v61 = vpop.xlane.xlu0 %707 }
 0x6b1   : > { %v717_v62 = vmax.f32 %v715_v60, 0.0  ;;  %v712_v0 = vmul.f32 0.015625, %v708_v61 }
 0x6b3   : > { %v721_v1 = vadd.f32 1e-05, %v717_v62  ;;  %v716_v2 = vsub.f32 %v712_v0, %v714_v63 }
 0x6b5   : > { %1051 = vrsqrt.f32 %v721_v1  ;;  %v718_v10 = vmax.f32 %v716_v2, 0.0 }
 0x6b7   : > { %v722_v3 = vadd.f32 1e-05, %v718_v10 }
 0x6b9   : > { %1053 = vrsqrt.f32 %v722_v3 }
 0x6c2   : > { %v1052_v25 = vpop.eup %1051 }
 0x6c3   : > { %v725_v4 = vmul.f32 %v1052_v25, %v719_v27 }
 0x6c5   : > { %vm727_vm8 = vcmp.ge.f32.partialorder %v725_v4, 0.0  ;;  %v729_v6 = vmul.f32 0.2, %v725_v4 }
 0x6c6   : > { %v1054_v7 = vpop.eup %1053 }
 0x6c7   : > { %v726_v8 = vmul.f32 %v1054_v7, %v720_v5  ;;  %v731_v9 = vsel %vm727_vm8, %v725_v4, %v729_v6 }
 0x6c8   : > { %733 = vst.msk [vmem:[%s256_s9] sm:$0xff] %vm463_vm4, %v731_v9 }
 0x6c9   : > { %vm728_vm9 = vcmp.ge.f32.partialorder %v726_v8, 0.0  ;;  %v730_v12 = vmul.f32 0.2, %v726_v8 }
 0x6cb   : > { %v732_v13 = vsel %vm728_vm9, %v726_v8, %v730_v12 }
 0x6cc   : > { %v735_v14 = vpack.c.bf16 %v732_v13, %v731_v9  ;;  %734 = vst.msk [vmem:[%s256_s9 + $0x8] sm:$0xff] %vm463_vm4, %v732_v13 }
 0x6ce   : > { %968 = vmatmul.mubr.msk.bf16.vlgmr.msra.gmra.mxu0 %vm463_vm4, %v735_v14 }
 0x78e   : > { %v805_v15 = vpop.f32.mrf.mxu0 }
 0x78f   : > { %812 = vst.msk [vmem:[%s261_s12] sm:$0xff] %vm650_vm7, %v805_v15 }
 0x790   : > { %v969_v18 = vpop.f32.mrf.mxu0 }
 0x792   : > { %v808_v20 = vpop.f32.mrf.mxu0 }
 0x793   : > { %813 = vst.msk [vmem:[%s261_s12 + $0x8] sm:$0xff] %vm650_vm7, %v808_v20 }
 0x794   : > { %v970_v21 = vpop.f32.mrf.mxu0 }
 0x795 PF: > { %s17_s21 = sadd.s32 1, %s1061_s21  }
 0x796   : > { %p14_p4 = scmp.ge.s32.totalorder %s17_s21, 4  }
 0x798   :  { %16 = sbr.rel (!%p14_p4) target bundleno = 1 (0x1), region = 82 }

// kernel: varnet_forward.17
= control target key start
LH: loop header
LB: loop body
LE: loop exit
PB: predicated region body
PF: predicated region fallthrough
CT: control target
= control target key end

     0   :  { %s562_s9 = smov 0   ;;  %s675_s0 = inlined_call_operand.vmem [shape: f32[2,32,16], index: 0, kind: input, shape index: {}]   ;;  %s676_s1 = inlined_call_operand.vmem [shape: bf16[64,32], index: 1, kind: input, shape index: {}]   ;;  %s677_s2 = inlined_call_operand.vmem [shape: f32[2,16,64], index: 2, kind: output, shape index: {}]  }
   0x1 LB: > { %s474_s10 = sadd.s32 4294967295, %s542_s9   ;;  %p478_p0 = scmp.ge.s32.totalorder %s542_s9, 1  ;;  %s542_s9 = sphi %s562_s9, %s12_s9  }
   0x2   : > { %p112_p1 = scmp.lt.s32.totalorder %s542_s9, 3 }
   0x4   : > { %p113_p2 = pnand %p478_p0, %p112_p1 }
   0x5   : > { %p134_p3 = scmp.lt.s32.totalorder (!%p113_p2), %s474_s10, 1  ;;  %s544_s27 = smov (!%p113_p2), 32  }
   0x6   : > { %116 = sbr.rel (%p113_p2) target bundleno = 544 (0x220), region = 28  ;;  %s545_s28 = smov (!%p113_p2), 16  }
   0x7   : > { %s546_s29 = smov (!%p113_p2), 48  }
   0xb   : > { %v528_v0 = vld [vmem:[%s676_s1] sm:$0xff]   ;;  %vm179_vm0 = vcmask 261120   ;;  %s679_s10 = smov (!%p134_p3, %s474_s10), 1  ;;  %v530_v1 = vld [vmem:[%s676_s1 + $0x10] sm:$0xff]   ;;  %v529_v8 = vld [vmem:[%s676_s1 + $0x8] sm:$0xff]   ;;  %vm257_vm1 = vcmask 130048  }
   0xc   : > { %505 = vmatprep.mubr.msk.bf16.mxu0 %vm179_vm0, %v528_v0  ;;  %s493_s15 = sshll.u32 %s679_s10, 5  ;;  %509 = vmatprep.mubr.msk.bf16.mxu1 %vm179_vm0, %v530_v1  ;;  %v531_v9 = vld [vmem:[%s676_s1 + $0x18] sm:$0xff]   ;;  %s494_s23 = sshll.u32 %s679_s10, 4  ;;  %vm374_vm10 = vcmask 261248   ;;  %vm395_vm11 = vcmask 392448   ;;  %vm416_vm12 = vcmask 523648  }
   0xd   : > { %s138_s18 = scalar_lea.vmem %s675_s0, %s493_s15  ;;  %s659_s26 = scalar_lea.vmem %s677_s2, %s494_s23 }
   0xe   : > { %v155_v2 = vld [vmem:[%s138_s18 + $0x10] sm:$0xff]  ;;  %v156_v3 = vld [vmem:[%s138_s18 + $0x18] sm:$0xff]  ;;  %v153_v4 = vld [vmem:[%s138_s18] sm:$0xff] }
   0xf   : > { %v158_v5 = vpack.c.bf16 %v156_v3, %v155_v2  ;;  %v154_v6 = vld [vmem:[%s138_s18 + $0x8] sm:$0xff] }
  0x10   : > { %v157_v7 = vpack.c.bf16 %v154_v6, %v153_v4 }
  0x11   : > { %501 = vmatprep.subr.bf16.mxu0 %v158_v5  ;;  %513 = vmatprep.subr.bf16.mxu1 %v158_v5 }
  0x12   : > { %502 = vmatpush3.bf16.msra.mxu0 %v158_v5  ;;  %515 = vmatpush3.bf16.msra.mxu1 %v158_v5 }
  0x13   : > { %503 = vmatprep.subr.bf16.mxu0 %v157_v7  ;;  %514 = vmatprep.subr.bf16.mxu1 %v157_v7 }
  0x16   : > { %504 = vmatpush3.bf16.msra.mxu0 %v157_v7  ;;  %516 = vmatpush3.bf16.msra.mxu1 %v157_v7 }
  0x19   : > { %506 = vmatmul.mubr.msk.bf16.vlgmr.msra.gmra.mxu0 %vm179_vm0, %v529_v8  ;;  %510 = vmatmul.mubr.msk.bf16.vlgmr.msra.gmra.mxu1 %vm179_vm0, %v531_v9 }
  0xd9   : > { %v592_v10 = vpop.f32.mrf.mxu0  ;;  %v594_v11 = vpop.f32.mrf.mxu1 }
  0xda   : > { %v276_v12 = vsel %vm257_vm1, %v592_v10, 0.0  ;;  %v284_v16 = vmul.f32 %v592_v10, %v592_v10  ;;  %v312_v38 = vsel %vm257_vm1, %v594_v11, 0.0  ;;  %v320_v39 = vmul.f32 %v594_v11, %v594_v11 }
  0xdb   : > { %277 = vadd.xlane.f32.xlu1 %v276_v12  ;;  %v598_v13 = vpop.f32.mrf.mxu0  ;;  %v600_v14 = vpop.f32.mrf.mxu1 }
  0xdc   : > { %v258_v15 = vsel %vm257_vm1, %v598_v13, 0.0  ;;  %v286_v20 = vsel %vm257_vm1, %v284_v16, 0.0  ;;  %v294_v23 = vsel %vm257_vm1, %v600_v14, 0.0  ;;  %v266_v24 = vmul.f32 %v598_v13, %v598_v13 }
  0xdd   : > { %259 = vadd.xlane.f32.xlu0 %v258_v15  ;;  %v606_v17 = vpop.f32.mrf.mxu0  ;;  %v610_v19 = vpop.f32.mrf.mxu1  ;;  %v302_v29 = vmul.f32 %v600_v14, %v600_v14  ;;  %v322_v41 = vsel %vm257_vm1, %v320_v39, 0.0 }
  0xde   : > { %v279_v18 = vsel %vm257_vm1, %v606_v17, 0.0  ;;  %v315_v21 = vsel %vm257_vm1, %v610_v19, 0.0  ;;  %v285_v22 = vmul.f32 %v606_v17, %v606_v17  ;;  %v268_v28 = vsel %vm257_vm1, %v266_v24, 0.0 }
  0xdf   : > { %280 = vadd.xlane.f32.xlu1 %v279_v18  ;;  %v622_v26 = vpop.f32.mrf.mxu0  ;;  %v624_v27 = vpop.f32.mrf.mxu1  ;;  %v304_v32 = vsel %vm257_vm1, %v302_v29, 0.0  ;;  %v321_v37 = vmul.f32 %v610_v19, %v610_v19 }
  0xe0   : > { %v289_v25 = vsel %vm257_vm1, %v285_v22, 0.0  ;;  %v267_v30 = vmul.f32 %v622_v26, %v622_v26  ;;  %v297_v31 = vsel %vm257_vm1, %v624_v27, 0.0  ;;  %v303_v33 = vmul.f32 %v624_v27, %v624_v27 }
  0xe1   : > { %287 = vadd.xlane.f32.xlu0 %v286_v20  ;;  %v261_v35 = vsel %vm257_vm1, %v622_v26, 0.0  ;;  %v325_v40 = vsel %vm257_vm1, %v321_v37, 0.0 }
  0xe2   : > { %v271_v34 = vsel %vm257_vm1, %v267_v30, 0.0  ;;  %v307_v36 = vsel %vm257_vm1, %v303_v33, 0.0 }
  0xe3   : > { %316 = vadd.xlane.f32.xlu1 %v315_v21 }
  0xe5   : > { %295 = vadd.xlane.f32.xlu0 %v294_v23 }
  0xe7   : > { %290 = vadd.xlane.f32.xlu1 %v289_v25 }
  0xe9   : > { %269 = vadd.xlane.f32.xlu0 %v268_v28 }
  0xeb   : > { %298 = vadd.xlane.f32.xlu1 %v297_v31 }
  0xed   : > { %305 = vadd.xlane.f32.xlu0 %v304_v32 }
  0xef   : > { %272 = vadd.xlane.f32.xlu1 %v271_v34 }
  0xf1   : > { %262 = vadd.xlane.f32.xlu0 %v261_v35 }
  0xf3   : > { %308 = vadd.xlane.f32.xlu1 %v307_v36 }
  0xf5   : > { %313 = vadd.xlane.f32.xlu0 %v312_v38 }
  0xf7   : > { %326 = vadd.xlane.f32.xlu1 %v325_v40 }
  0xf9   : > { %323 = vadd.xlane.f32.xlu0 %v322_v41 }
 0x164   : > { %v278_v42 = vpop.xlane.xlu1 %277 }
 0x166   : > { %v260_v43 = vpop.xlane.xlu0 %259 }
 0x167   : > { %v282_v54 = vadd.f32 %v278_v42, %v260_v43 }
 0x168   : > { %v281_v44 = vpop.xlane.xlu1 %280 }
 0x16a   : > { %v288_v45 = vpop.xlane.xlu0 %287 }
 0x16c   : > { %v317_v46 = vpop.xlane.xlu1 %316 }
 0x16e   : > { %v296_v47 = vpop.xlane.xlu0 %295 }
 0x16f   : > { %v300_v57 = vadd.f32 %v296_v47, %v282_v54 }
 0x170   : > { %v291_v48 = vpop.xlane.xlu1 %290 }
 0x172   : > { %v270_v49 = vpop.xlane.xlu0 %269 }
 0x173   : > { %v292_v0 = vadd.f32 %v288_v45, %v270_v49 }
 0x174   : > { %v299_v50 = vpop.xlane.xlu1 %298 }
 0x176   : > { %v306_v51 = vpop.xlane.xlu0 %305 }
 0x177   : > { %v310_v4 = vadd.f32 %v306_v51, %v292_v0 }
 0x178   : > { %v273_v52 = vpop.xlane.xlu1 %272 }
 0x179   : > { %v293_v58 = vadd.f32 %v291_v48, %v273_v52 }
 0x17a   : > { %v263_v53 = vpop.xlane.xlu0 %262 }
 0x17b   : > { %v283_v55 = vadd.f32 %v281_v44, %v263_v53 }
 0x17c   : > { %v309_v56 = vpop.xlane.xlu1 %308 }
 0x17d   : > { %v301_v59 = vadd.f32 %v299_v50, %v283_v55  ;;  %v311_v62 = vadd.f32 %v309_v56, %v293_v58 }
 0x17e   : > { %v314_v60 = vpop.xlane.xlu0 %313 }
 0x17f   : > { %v319_v61 = vadd.f32 %v317_v46, %v301_v59  ;;  %v318_v63 = vadd.f32 %v314_v60, %v300_v57 }
 0x180   : > { %v327_v1 = vpop.xlane.xlu1 %326 }
 0x181   : > { %v331_v2 = vmul.f32 0.015625, %v319_v61  ;;  %v329_v3 = vadd.f32 %v327_v1, %v311_v62  ;;  %v330_v5 = vmul.f32 0.015625, %v318_v63 }
 0x182   : > { %v324_v6 = vpop.xlane.xlu0 %323 }
 0x183   : > { %v333_v7 = vmul.f32 0.015625, %v329_v3  ;;  %v335_v8 = vmul.f32 %v331_v2, %v331_v2  ;;  %v328_v9 = vadd.f32 %v324_v6, %v310_v4  ;;  %v334_v15 = vmul.f32 %v330_v5, %v330_v5 }
 0x184   : > { %v357_v25 = vsub.f32 %v606_v17, %v331_v2  ;;  %v377_v28 = vsub.f32 %v600_v14, %v330_v5  ;;  %v356_v29 = vsub.f32 %v592_v10, %v330_v5  ;;  %v398_v30 = vsub.f32 %v594_v11, %v330_v5 }
 0x185   : > { %v337_v12 = vsub.f32 %v333_v7, %v335_v8  ;;  %v332_v16 = vmul.f32 0.015625, %v328_v9  ;;  %v345_v31 = vsub.f32 %v622_v26, %v331_v2  ;;  %v344_v33 = vsub.f32 %v598_v13, %v330_v5 }
 0x186   : > { %v378_v39 = vsub.f32 %v624_v27, %v331_v2  ;;  %v399_v43 = vsub.f32 %v610_v19, %v331_v2 }
 0x187   : > { %v339_v18 = vmax.f32 %v337_v12, 0.0  ;;  %v336_v20 = vsub.f32 %v332_v16, %v334_v15 }
 0x189   : > { %v341_v21 = vadd.f32 1e-05, %v339_v18  ;;  %v338_v22 = vmax.f32 %v336_v20, 0.0 }
 0x18b   : > { %532 = vrsqrt.f32 %v341_v21  ;;  %v340_v23 = vadd.f32 1e-05, %v338_v22 }
 0x18d   : > { %534 = vrsqrt.f32 %v340_v23 }
 0x198   : > { %v533_v24 = vpop.eup %532 }
 0x199   : > { %v359_v34 = vmul.f32 %v533_v24, %v357_v25  ;;  %v347_v38 = vmul.f32 %v533_v24, %v345_v31  ;;  %v380_v41 = vmul.f32 %v533_v24, %v378_v39  ;;  %v401_v49 = vmul.f32 %v533_v24, %v399_v43 }
 0x19a   : > { %v535_v32 = vpop.eup %534 }
 0x19b   : > { %v379_v35 = vmul.f32 %v535_v32, %v377_v28  ;;  %v358_v36 = vmul.f32 %v535_v32, %v356_v29  ;;  %v400_v37 = vmul.f32 %v535_v32, %v398_v30  ;;  %v346_v17 = vmul.f32 %v535_v32, %v344_v33 }
 0x19c   : > { %v363_v40 = vmul.f32 0.2, %v359_v34  ;;  %vm349_vm5 = vcmp.ge.f32.partialorder %v347_v38, 0.0  ;;  %vm361_vm6 = vcmp.ge.f32.partialorder %v359_v34, 0.0  ;;  %v351_v27 = vmul.f32 0.2, %v347_v38 }
 0x19d   : > { %vm381_vm2 = vcmp.ge.f32.partialorder %v379_v35, 0.0  ;;  %v383_v14 = vmul.f32 0.2, %v379_v35  ;;  %vm360_vm3 = vcmp.ge.f32.partialorder %v358_v36, 0.0  ;;  %v362_v10 = vmul.f32 0.2, %v358_v36 }
 0x19e   : > { %v404_v11 = vmul.f32 0.2, %v400_v37  ;;  %vm348_vm4 = vcmp.ge.f32.partialorder %v346_v17, 0.0  ;;  %v350_v13 = vmul.f32 0.2, %v346_v17  ;;  %vm402_vm7 = vcmp.ge.f32.partialorder %v400_v37, 0.0 }
 0x19f   : > { %v385_v26 = vsel %vm381_vm2, %v379_v35, %v383_v14  ;;  %v364_v42 = vsel %vm360_vm3, %v358_v36, %v362_v10  ;;  %v353_v45 = vsel %vm349_vm5, %v347_v38, %v351_v27  ;;  %v365_v46 = vsel %vm361_vm6, %v359_v34, %v363_v40 }
 0x1a0   : > { %389 = vrot.lane.b32.xlu1 %v385_v26, %s544_s27  ;;  %368 = vrot.lane.b32.xlu0 %v364_v42, %s545_s28  ;;  %v352_v44 = vsel %vm348_vm4, %v346_v17, %v350_v13  ;;  %v406_v47 = vsel %vm402_vm7, %v400_v37, %v404_v11  ;;  %v384_v48 = vmul.f32 0.2, %v380_v41  ;;  %355 = vst.msk [vmem:[%s659_s26 + $0x8] sm:$0xff] %vm257_vm1, %v353_v45  ;;  %vm382_vm8 = vcmp.ge.f32.partialorder %v380_v41, 0.0 }
 0x1a1   : > { %354 = vst.msk [vmem:[%s659_s26] sm:$0xff] %vm257_vm1, %v352_v44  ;;  %v405_v19 = vmul.f32 0.2, %v401_v49  ;;  %vm403_vm9 = vcmp.ge.f32.partialorder %v401_v49, 0.0 }
 0x1a2   : > { %v386_v50 = vsel %vm382_vm8, %v380_v41, %v384_v48 }
 0x1a3   : > { %v407_v51 = vsel %vm403_vm9, %v401_v49, %v405_v19 }
 0x1a4   : > { %370 = vrot.lane.b32.xlu1 %v365_v46, %s545_s28  ;;  %410 = vrot.lane.b32.xlu0 %v406_v47, %s546_s29 }
 0x1a8   : > { %391 = vrot.lane.b32.xlu1 %v386_v50, %s544_s27 }
 0x1ac   : > { %412 = vrot.lane.b32.xlu1 %v407_v51, %s546_s29 }
 0x212   : > { %v390_v52 = vpop.permute.xlu1 %389  ;;  %v369_v53 = vpop.permute.xlu0 %368 }
 0x213   : > { %375 = vst.msk [vmem:[%s659_s26] sm:$0xff] %vm374_vm10, %v369_v53 }
 0x214   : > { %396 = vst.msk [vmem:[%s659_s26] sm:$0xff] %vm395_vm11, %v390_v52 }
 0x216   : > { %v371_v54 = vpop.permute.xlu1 %370  ;;  %v411_v55 = vpop.permute.xlu0 %410 }
 0x217   : > { %376 = vst.msk [vmem:[%s659_s26 + $0x8] sm:$0xff] %vm374_vm10, %v371_v54 }
 0x218   : > { %417 = vst.msk [vmem:[%s659_s26] sm:$0xff] %vm416_vm12, %v411_v55 }
 0x21a   : > { %v392_v56 = vpop.permute.xlu1 %391 }
 0x21b   : > { %397 = vst.msk [vmem:[%s659_s26 + $0x8] sm:$0xff] %vm395_vm11, %v392_v56 }
 0x21e   : > { %v413_v57 = vpop.permute.xlu1 %412 }
 0x21f   : > { %418 = vst.msk [vmem:[%s659_s26 + $0x8] sm:$0xff] %vm416_vm12, %v413_v57 }
 0x220 PF: > { %s12_s9 = sadd.s32 1, %s542_s9  }
 0x221   : > { %p9_p4 = scmp.ge.s32.totalorder %s12_s9, 4  }
 0x223   :  { %11 = sbr.rel (!%p9_p4) target bundleno = 1 (0x1), region = 58 }

// kernel: varnet_forward.16
= control target key start
LH: loop header
LB: loop body
LE: loop exit
PB: predicated region body
PF: predicated region fallthrough
CT: control target
= control target key end

     0   :  { %s1419_s15 = smov 0   ;;  %s1791_s0 = inlined_call_operand.vmem [shape: f32[2,16,16], index: 0, kind: input, shape index: {}]   ;;  %s1792_s1 = inlined_call_operand.vmem [shape: bf16[32,144], index: 1, kind: input, shape index: {}]   ;;  %s1793_s2 = inlined_call_operand.vmem [shape: bf16[32,288], index: 2, kind: input, shape index: {}]   ;;  %s1794_s3 = inlined_call_operand.vmem [shape: f32[9,16], index: 3, kind: input, shape index: {}]   ;;  %s1795_s4 = inlined_call_operand.vmem [shape: f32[2,32,16], index: 4, kind: output, shape index: {}]  }
   0x1 LB: > { %s1117_s16 = sadd.s32 4294967295, %s1374_s15   ;;  %p1121_p0 = scmp.ge.s32.totalorder %s1374_s15, 1  ;;  %s1374_s15 = sphi %s1419_s15, %s14_s15  }
   0x2   : > { %p162_p1 = scmp.lt.s32.totalorder %s1374_s15, 3 }
   0x4   : > { %p163_p2 = pnand %p1121_p0, %p162_p1 }
   0x5   : > { %p188_p3 = scmp.lt.s32.totalorder (!%p163_p2), %s1117_s16, 1  ;;  %s1376_s21 = smov (!%p163_p2), 16  }
   0x6   : > { %166 = sbr.rel (%p163_p2) target bundleno = 1795 (0x703), region = 36  ;;  %s1377_s24 = smov (!%p163_p2), 4  }
   0x7   : > { %s1378_s27 = smov (!%p163_p2), 1   ;;  %s1379_s30 = smov (!%p163_p2), 13  }
   0x8   : > { %s1380_s7 = smov (!%p163_p2), 5   ;;  %s1381_s10 = smov (!%p163_p2), 3  }
   0x9   : > { %s1382_s13 = smov (!%p163_p2), 15   ;;  %s1383_s18 = smov (!%p163_p2), 12  }
   0xa   : > { %s1384_s19 = smov (!%p163_p2), 7   ;;  %s1386_s22 = smov (!%p163_p2), 10  }
   0xb   : > { %s1797_s16 = smov (!%p188_p3, %s1117_s16), 1  ;;  %v1132_v2 = vld [vmem:[%s1794_s3 + $0x7] ss:$0 sm:$0xff]  ;;  %v1130_v3 = vld [vmem:[%s1794_s3 + $0x5] ss:$0 sm:$0xff]  ;;  %vm201_vm0 = vcmask 1047680  }
   0xc   : > { %s1150_s17 = sshll.u32 %s1797_s16, 4  ;;  %v1128_v4 = vld [vmem:[%s1794_s3 + $0x2] ss:$0 sm:$0xff]  ;;  %v1133_v5 = vld [vmem:[%s1794_s3 + $0x8] ss:$0 sm:$0xff]  ;;  %s1387_s23 = smov 11  }
   0xd   : > { %s192_s20 = scalar_lea.vmem %s1791_s0, %s1150_s17  ;;  %v1131_v10 = vld [vmem:[%s1794_s3 + $0x6] ss:$0 sm:$0xff]  ;;  %v1129_v11 = vld [vmem:[%s1794_s3 + $0x3] ss:$0 sm:$0xff]  ;;  %v1127_v12 = vld [vmem:[%s1794_s3 + $0x1] ss:$0 sm:$0xff] }
   0xe   : > { %v1433_v0 = vld [vmem:[%s192_s20] sm:$0xff]  ;;  %v200_v1 = vld [vmem:[%s192_s20 + $0x8] sm:$0xff]  ;;  %s1385_s20 = smov 8   ;;  %v1389_v40 = vmov 0   ;;  %s1390_s25 = smov 126   ;;  %vm433_vm1 = vcmask 130048  }
   0xf   : > { %202 = vrot.lane.b32.xlu0 %v1433_v0, %s1376_s21  ;;  %v1233_v31 = vpack.i.bf16 %v200_v1, %v1433_v0  ;;  %440 = vmatprep.subr.bf16.mxu0 %v1389_v40  ;;  %s1391_s26 = smov 127   ;;  %v1126_v45 = vld [vmem:[%s1794_s3] ss:$0 sm:$0xff]  ;;  %s1392_s29 = smov 6   ;;  %vm877_vm6 = vcmask 261120  }
  0x13   : > { %205 = vrot.lane.b32.xlu0 %v200_v1, %s1376_s21 }
  0x17   : > { %286 = vrot.lane.b32.xlu0 %v1132_v2, %s1377_s24  ;;  %s1388_s24 = smov 124  }
  0x1b   : > { %264 = vrot.lane.b32.xlu0 %v1130_v3, %s1378_s27  ;;  %s1151_s27 = sshll.u32 %s1797_s16, 5 }
  0x1f   : > { %242 = vrot.lane.b32.xlu0 %v1128_v4, %s1379_s30  ;;  %s1393_s30 = smov 117  }
  0x23   : > { %297 = vrot.lane.b32.xlu0 %v1133_v5, %s1380_s7 }
  0x81   : > { %v203_v6 = vpop.permute.xlu0 %202 }
  0x82   : > { %v204_v7 = vsel %vm201_vm0, %v203_v6, %v1433_v0 }
  0x83   : > { %208 = vrot.lane.b32.xlu1 %v204_v7, %s1376_s21 }
  0x85   : > { %v206_v8 = vpop.permute.xlu0 %205 }
  0x86   : > { %v207_v9 = vsel %vm201_vm0, %v206_v8, %v200_v1 }
  0x87   : > { %210 = vrot.lane.b32.xlu1 %v207_v9, %s1376_s21 }
  0x89   : > { %v1464_v14 = vpop.permute.xlu0 %286 }
  0x8b   : > { %275 = vrot.lane.b32.xlu1 %v1131_v10, %s1381_s10 }
  0x8d   : > { %v1477_v20 = vpop.permute.xlu0 %264 }
  0x8f   : > { %253 = vrot.lane.b32.xlu1 %v1129_v11, %s1382_s13 }
  0x91   : > { %v1492_v30 = vpop.permute.xlu0 %242 }
  0x93   : > { %231 = vrot.lane.b32.xlu1 %v1127_v12, %s1383_s18 }
  0x95   : > { %v1514_v41 = vpop.permute.xlu0 %297 }
  0xf5   : > { %v209_v13 = vpop.permute.xlu1 %208 }
  0xf6   : > { %v1468_v15 = vsel %vm201_vm0, %v209_v13, %v1433_v0 }
  0xf7   : > { %v289_v18 = vmul.f32 %v1464_v14, %v1468_v15  ;;  %v267_v26 = vmul.f32 %v1477_v20, %v1468_v15  ;;  %v245_v37 = vmul.f32 %v1492_v30, %v1468_v15  ;;  %v300_v46 = vmul.f32 %v1514_v41, %v1468_v15 }
  0xf9   : > { %v211_v16 = vpop.permute.xlu1 %210 }
  0xfa   : > { %v1471_v17 = vsel %vm201_vm0, %v211_v16, %v200_v1 }
  0xfb   : > { %v290_v19 = vmul.f32 %v1464_v14, %v1471_v17  ;;  %v268_v23 = vmul.f32 %v1477_v20, %v1471_v17  ;;  %v246_v35 = vmul.f32 %v1492_v30, %v1471_v17  ;;  %v301_v44 = vmul.f32 %v1514_v41, %v1471_v17 }
  0xfd   : > { %v1479_v21 = vpop.permute.xlu1 %275  ;;  %v1218_v22 = vpack.i.bf16 %v290_v19, %v289_v18  ;;  %v1228_v29 = vpack.i.bf16 %v268_v23, %v267_v26  ;;  %v1243_v42 = vpack.i.bf16 %v246_v35, %v245_v37  ;;  %v1253_v47 = vpack.i.bf16 %v301_v44, %v300_v46  ;;  %v1338_v35 = vld [vmem:[%s1792_s1] ss:$8 sps:$4 sm:$0xff]   ;;  %v1341_v37 = vld [vmem:[%s1792_s1 + $0x14] ss:$8 sps:$4 sm:$0xff]  }
  0xfe   : > { %v278_v24 = vmul.f32 %v1479_v21, %v1468_v15  ;;  %v279_v25 = vmul.f32 %v1479_v21, %v1471_v17 }
  0xff   : > { %1219 = vrot.lane.b32.xlu1 %v1218_v22, %s1384_s19 }
 0x100   : > { %v1223_v27 = vpack.i.bf16 %v279_v25, %v278_v24  ;;  %v1340_v25 = vld [vmem:[%s1792_s1 + $0x4] ss:$8 sps:$4 sm:$0xff]  }
 0x101   : > { %v1490_v28 = vpop.permute.xlu1 %253  ;;  %1138 = vmatprep.mubr.msk.bf16.mxu0 %vm433_vm1, %v1340_v25 }
 0x102   : > { %1224 = vrot.lane.b32.xlu0 %v1223_v27, %s1385_s20  ;;  %v256_v32 = vmul.f32 %v1490_v28, %v1468_v15  ;;  %v257_v33 = vmul.f32 %v1490_v28, %v1471_v17 }
 0x103   : > { %1229 = vrot.lane.b32.xlu1 %v1228_v29, %s1386_s22 }
 0x104   : > { %v1238_v34 = vpack.i.bf16 %v257_v33, %v256_v32 }
 0x105   : > { %v1503_v36 = vpop.permute.xlu1 %231 }
 0x106   : > { %1234 = vrot.lane.b32.xlu0 %v1233_v31, %s1387_s23  ;;  %v234_v38 = vmul.f32 %v1503_v36, %v1468_v15  ;;  %v235_v39 = vmul.f32 %v1503_v36, %v1471_v17 }
 0x107   : > { %1239 = vrot.lane.b32.xlu1 %v1238_v34, %s1388_s24 }
 0x108   : > { %v1248_v43 = vpack.i.bf16 %v235_v39, %v234_v38  ;;  %v1343_v38 = vld [vmem:[%s1792_s1 + $0x10] ss:$8 sps:$4 sm:$0xff]  }
 0x10a   : > { %1244 = vrot.lane.b32.xlu0 %v1243_v42, %s1390_s25 }
 0x10b   : > { %1249 = vrot.lane.b32.xlu1 %v1248_v43, %s1391_s26 }
 0x10e   : > { %220 = vrot.lane.b32.xlu0 %v1126_v45, %s1387_s23 }
 0x10f   : > { %1254 = vrot.lane.b32.xlu1 %v1253_v47, %s1392_s29 }
 0x171   : > { %v1220_v48 = vpop.permute.xlu1 %1219 }
 0x172   : > { %v1222_v49 = vunpack.i.h.bf16 %v1220_v48  ;;  %v1221_v50 = vunpack.i.l.bf16 %v1220_v48 }
 0x174   : > { %v373_v51 = vpack.c.bf16 %v1222_v49, %v1221_v50  ;;  %v1225_v52 = vpop.permute.xlu0 %1224 }
 0x175   : > { %v1227_v53 = vunpack.i.h.bf16 %v1225_v52  ;;  %v1226_v54 = vunpack.i.l.bf16 %v1225_v52  ;;  %v1230_v55 = vpop.permute.xlu1 %1229 }
 0x176   : > { %v1232_v56 = vunpack.i.h.bf16 %v1230_v55  ;;  %v1231_v57 = vunpack.i.l.bf16 %v1230_v55  ;;  %420 = vrot.lane.b32.xlu0 %v373_v51, %s1393_s30 }
 0x177   : > { %v372_v58 = vpack.c.bf16 %v1227_v53, %v1226_v54 }
 0x178   : > { %v371_v59 = vpack.c.bf16 %v1232_v56, %v1231_v57  ;;  %v1235_v60 = vpop.permute.xlu0 %1234 }
 0x179   : > { %v1237_v61 = vunpack.i.h.bf16 %v1235_v60  ;;  %v1236_v62 = vunpack.i.l.bf16 %v1235_v60  ;;  %v1240_v63 = vpop.permute.xlu1 %1239  ;;  %418 = vrot.lane.b32.xlu1 %v372_v58, %s1393_s30 }
 0x17a   : > { %v1242_v0 = vunpack.i.h.bf16 %v1240_v63  ;;  %v1241_v1 = vunpack.i.l.bf16 %v1240_v63  ;;  %416 = vrot.lane.b32.xlu0 %v371_v59, %s1393_s30 }
 0x17b   : > { %v370_v2 = vpack.c.bf16 %v1237_v61, %v1236_v62 }
 0x17c   : > { %v369_v3 = vpack.c.bf16 %v1242_v0, %v1241_v1  ;;  %v1245_v4 = vpop.permute.xlu0 %1244 }
 0x17d   : > { %v1247_v5 = vunpack.i.h.bf16 %v1245_v4  ;;  %v1246_v6 = vunpack.i.l.bf16 %v1245_v4  ;;  %v1250_v7 = vpop.permute.xlu1 %1249  ;;  %414 = vrot.lane.b32.xlu1 %v370_v2, %s1393_s30 }
 0x17e   : > { %v1252_v8 = vunpack.i.h.bf16 %v1250_v7  ;;  %v1251_v9 = vunpack.i.l.bf16 %v1250_v7  ;;  %412 = vrot.lane.b32.xlu0 %v369_v3, %s1393_s30 }
 0x17f   : > { %v368_v10 = vpack.c.bf16 %v1247_v5, %v1246_v6 }
 0x180   : > { %v367_v11 = vpack.c.bf16 %v1252_v8, %v1251_v9  ;;  %v1532_v12 = vpop.permute.xlu0 %220 }
 0x181   : > { %v1255_v13 = vpop.permute.xlu1 %1254  ;;  %410 = vrot.lane.b32.xlu1 %v368_v10, %s1393_s30  ;;  %v223_v16 = vmul.f32 %v1532_v12, %v1468_v15  ;;  %v224_v18 = vmul.f32 %v1532_v12, %v1471_v17 }
 0x182   : > { %v1257_v19 = vunpack.i.h.bf16 %v1255_v13  ;;  %v1256_v22 = vunpack.i.l.bf16 %v1255_v13  ;;  %408 = vrot.lane.b32.xlu0 %v367_v11, %s1393_s30 }
 0x183   : > { %v366_v23 = vpack.c.bf16 %v224_v18, %v223_v16 }
 0x184   : > { %v374_v24 = vpack.c.bf16 %v1257_v19, %v1256_v22 }
 0x185   : > { %406 = vrot.lane.b32.xlu1 %v366_v23, %s1393_s30 }
 0x186   : > { %422 = vrot.lane.b32.xlu0 %v374_v24, %s1393_s30 }
 0x1e8   : > { %v421_v15 = vpop.permute.xlu0 %420 }
 0x1e9   : > { %441 = vmatpush1.bf16.msra.mxu0 %v421_v15 }
 0x1ea   : > { %442 = vmatprep.subr.bf16.mxu0 %v1389_v40 }
 0x1eb   : > { %v419_v17 = vpop.permute.xlu1 %418 }
 0x1ec   : > { %v417_v26 = vpop.permute.xlu0 %416 }
 0x1ed   : > { %443 = vmatpush1.bf16.msra.mxu0 %v419_v17 }
 0x1ee   : > { %444 = vmatprep.subr.bf16.mxu0 %v1389_v40 }
 0x1ef   : > { %v415_v27 = vpop.permute.xlu1 %414 }
 0x1f0   : > { %v413_v29 = vpop.permute.xlu0 %412 }
 0x1f1   : > { %445 = vmatpush1.bf16.msra.mxu0 %v417_v26 }
 0x1f2   : > { %446 = vmatprep.subr.bf16.mxu0 %v1389_v40 }
 0x1f3   : > { %v411_v31 = vpop.permute.xlu1 %410 }
 0x1f4   : > { %v409_v32 = vpop.permute.xlu0 %408 }
 0x1f5   : > { %447 = vmatpush1.bf16.msra.mxu0 %v415_v27 }
 0x1f6   : > { %448 = vmatprep.subr.bf16.mxu0 %v1389_v40 }
 0x1f7   : > { %v407_v33 = vpop.permute.xlu1 %406 }
 0x1f8   : > { %v423_v34 = vpop.permute.xlu0 %422 }
 0x1f9   : > { %449 = vmatpush1.bf16.msra.mxu0 %v413_v29 }
 0x1fa   : > { %450 = vmatprep.subr.bf16.mxu0 %v1389_v40 }
 0x1fd   : > { %451 = vmatpush1.bf16.msra.mxu0 %v411_v31 }
 0x1fe   : > { %452 = vmatprep.subr.bf16.mxu0 %v1389_v40 }
 0x201   : > { %453 = vmatpush1.bf16.msra.mxu0 %v409_v32 }
 0x202   : > { %454 = vmatprep.subr.bf16.mxu0 %v1389_v40 }
 0x205   : > { %455 = vmatpush1.bf16.msra.mxu0 %v407_v33 }
 0x206   : > { %470 = vmatprep.subr.bf16.mxu0 %v1389_v40 }
 0x209   : > { %471 = vmatpush2.bf16.msra.mxu0 %v423_v34 }
 0x20c   : > { %473 = vmatmul.mubr.bf16.vlgmr.msra.gmra.mxu0 %v1338_v35 }
 0x20d   : > { %1139 = vmatprep.mubr.msk.bf16.mxu0 %vm433_vm1, %v1341_v37 }
 0x214   : > { %481 = vmatmul.mubr.bf16.gmra.mxu0 %v1343_v38 }
 0x2cc   : > { %v1564_v39 = vpop.f32.mrf.mxu0 }
 0x2cd   : > { %v489_v56 = vsel %vm433_vm1, %v1564_v39, 0.0  ;;  %v501_v57 = vmul.f32 %v1564_v39, %v1564_v39 }
 0x2ce   : > { %v476_v40 = vpop.f32.mrf.mxu0 }
 0x2cf   : > { %v505_v59 = vsel %vm433_vm1, %v501_v57, 0.0 }
 0x2d0   : > { %v1566_v42 = vpop.f32.mrf.mxu0 }
 0x2d1   : > { %v492_v50 = vsel %vm433_vm1, %v1566_v42, 0.0  ;;  %v502_v55 = vmul.f32 %v1566_v42, %v1566_v42 }
 0x2d2   : > { %v479_v43 = vpop.f32.mrf.mxu0 }
 0x2d3   : > { %v508_v58 = vsel %vm433_vm1, %v502_v55, 0.0 }
 0x2d4   : > { %v1568_v44 = vpop.f32.mrf.mxu0 }
 0x2d5   : > { %v495_v45 = vsel %vm433_vm1, %v1568_v44, 0.0  ;;  %v503_v46 = vmul.f32 %v1568_v44, %v1568_v44 }
 0x2d6   : > { %496 = vadd.xlane.f32.xlu1 %v495_v45  ;;  %v484_v47 = vpop.f32.mrf.mxu0 }
 0x2d7   : > { %v511_v48 = vsel %vm433_vm1, %v503_v46, 0.0 }
 0x2d8   : > { %512 = vadd.xlane.f32.xlu0 %v511_v48  ;;  %v1575_v49 = vpop.f32.mrf.mxu0 }
 0x2d9   : > { %v504_v51 = vmul.f32 %v1575_v49, %v1575_v49  ;;  %v498_v53 = vsel %vm433_vm1, %v1575_v49, 0.0 }
 0x2da   : > { %493 = vadd.xlane.f32.xlu1 %v492_v50  ;;  %v487_v52 = vpop.f32.mrf.mxu0 }
 0x2db   : > { %v514_v54 = vsel %vm433_vm1, %v504_v51, 0.0 }
 0x2dc   : > { %499 = vadd.xlane.f32.xlu0 %v498_v53 }
 0x2de   : > { %515 = vadd.xlane.f32.xlu1 %v514_v54 }
 0x2e0   : > { %490 = vadd.xlane.f32.xlu0 %v489_v56 }
 0x2e2   : > { %509 = vadd.xlane.f32.xlu1 %v508_v58 }
 0x2e4   : > { %506 = vadd.xlane.f32.xlu0 %v505_v59 }
 0x35f   : > { %v497_v60 = vpop.xlane.xlu1 %496 }
 0x360   : > { %v519_v61 = vmul.f32 0.0625, %v497_v60 }
 0x361   : > { %v513_v62 = vpop.xlane.xlu0 %512 }
 0x362   : > { %v527_v63 = vmul.f32 %v519_v61, %v519_v61  ;;  %v523_v0 = vmul.f32 0.0625, %v513_v62  ;;  %v539_v34 = vsub.f32 %v1568_v44, %v519_v61 }
 0x363   : > { %v494_v1 = vpop.xlane.xlu1 %493 }
 0x364   : > { %v531_v2 = vsub.f32 %v523_v0, %v527_v63  ;;  %v518_v8 = vmul.f32 0.0625, %v494_v1 }
 0x365   : > { %v500_v3 = vpop.xlane.xlu0 %499 }
 0x366   : > { %v535_v4 = vmax.f32 %v531_v2, 0.0  ;;  %v520_v5 = vmul.f32 0.0625, %v500_v3  ;;  %v526_v19 = vmul.f32 %v518_v8, %v518_v8  ;;  %v538_v47 = vsub.f32 %v1566_v42, %v518_v8 }
 0x367   : > { %v516_v6 = vpop.xlane.xlu1 %515 }
 0x368   : > { %v543_v7 = vadd.f32 1e-05, %v535_v4  ;;  %v528_v9 = vmul.f32 %v520_v5, %v520_v5  ;;  %v524_v10 = vmul.f32 0.0625, %v516_v6  ;;  %v540_v40 = vsub.f32 %v1575_v49, %v520_v5 }
 0x369   : > { %v491_v11 = vpop.xlane.xlu0 %490 }
 0x36a   : > { %1352 = vrsqrt.f32 %v543_v7  ;;  %v532_v13 = vsub.f32 %v524_v10, %v528_v9  ;;  %v517_v16 = vmul.f32 0.0625, %v491_v11 }
 0x36b   : > { %v510_v18 = vpop.xlane.xlu1 %509 }
 0x36c   : > { %v536_v22 = vmax.f32 %v532_v13, 0.0  ;;  %v522_v23 = vmul.f32 0.0625, %v510_v18  ;;  %v525_v15 = vmul.f32 %v517_v16, %v517_v16  ;;  %v537_v44 = vsub.f32 %v1564_v39, %v517_v16 }
 0x36d   : > { %v507_v24 = vpop.xlane.xlu0 %506 }
 0x36e   : > { %v544_v25 = vadd.f32 1e-05, %v536_v22  ;;  %v530_v17 = vsub.f32 %v522_v23, %v526_v19  ;;  %v521_v26 = vmul.f32 0.0625, %v507_v24 }
 0x370   : > { %1354 = vrsqrt.f32 %v544_v25  ;;  %v534_v27 = vmax.f32 %v530_v17, 0.0  ;;  %v529_v29 = vsub.f32 %v521_v26, %v525_v15 }
 0x372   : > { %v542_v31 = vadd.f32 1e-05, %v534_v27  ;;  %v533_v32 = vmax.f32 %v529_v29, 0.0 }
 0x374   : > { %1356 = vrsqrt.f32 %v542_v31  ;;  %v541_v33 = vadd.f32 1e-05, %v533_v32 }
 0x376   : > { %1358 = vrsqrt.f32 %v541_v33 }
 0x377   : > { %v1353_v35 = vpop.eup %1352 }
 0x378   : > { %v551_v37 = vmul.f32 %v1353_v35, %v539_v34 }
 0x37a   : > { %vm555_vm2 = vcmp.ge.f32.partialorder %v551_v37, 0.0  ;;  %v559_v38 = vmul.f32 0.2, %v551_v37 }
 0x37c   : > { %v1594_v43 = vsel %vm555_vm2, %v551_v37, %v559_v38 }
 0x37d   : > { %v1355_v45 = vpop.eup %1354  ;;  %571 = vrot.lane.b32.xlu0 %v1594_v43, %s1376_s21 }
 0x37e   : > { %v552_v46 = vmul.f32 %v1355_v45, %v540_v40 }
 0x380   : > { %vm556_vm3 = vcmp.ge.f32.partialorder %v552_v46, 0.0  ;;  %v560_v48 = vmul.f32 0.2, %v552_v46 }
 0x381   : > { %v1357_v50 = vpop.eup %1356 }
 0x382   : > { %v1600_v51 = vsel %vm556_vm3, %v552_v46, %v560_v48  ;;  %v550_v52 = vmul.f32 %v1357_v50, %v538_v47 }
 0x383   : > { %v1359_v53 = vpop.eup %1358  ;;  %574 = vrot.lane.b32.xlu1 %v1600_v51, %s1376_s21 }
 0x384   : > { %vm554_vm4 = vcmp.ge.f32.partialorder %v550_v52, 0.0  ;;  %v558_v49 = vmul.f32 0.2, %v550_v52  ;;  %v549_v54 = vmul.f32 %v1359_v53, %v537_v44 }
 0x386   : > { %v1604_v55 = vsel %vm554_vm4, %v550_v52, %v558_v49  ;;  %vm553_vm5 = vcmp.ge.f32.partialorder %v549_v54, 0.0  ;;  %v557_v56 = vmul.f32 0.2, %v549_v54 }
 0x387   : > { %568 = vrot.lane.b32.xlu0 %v1604_v55, %s1376_s21 }
 0x388   : > { %v1608_v42 = vsel %vm553_vm5, %v549_v54, %v557_v56 }
 0x389   : > { %565 = vrot.lane.b32.xlu1 %v1608_v42, %s1376_s21 }
 0x3ef   : > { %v572_v39 = vpop.permute.xlu0 %571 }
 0x3f0   : > { %v573_v57 = vsel %vm201_vm0, %v572_v39, %v1594_v43 }
 0x3f1   : > { %581 = vrot.lane.b32.xlu1 %v573_v57, %s1376_s21  ;;  %v1318_v57 = vpack.i.bf16 %v1600_v51, %v1594_v43 }
 0x3f5   : > { %v575_v58 = vpop.permute.xlu1 %574 }
 0x3f6   : > { %v576_v59 = vsel %vm201_vm0, %v575_v58, %v1600_v51  ;;  %v1323_v58 = vpack.i.bf16 %v1604_v55, %v1608_v42 }
 0x3f7   : > { %583 = vrot.lane.b32.xlu0 %v576_v59, %s1376_s21 }
 0x3f9   : > { %v569_v60 = vpop.permute.xlu0 %568 }
 0x3fa   : > { %v570_v61 = vsel %vm201_vm0, %v569_v60, %v1604_v55 }
 0x3fb   : > { %v566_v62 = vpop.permute.xlu1 %565  ;;  %579 = vrot.lane.b32.xlu0 %v570_v61, %s1376_s21 }
 0x3fc   : > { %v567_v63 = vsel %vm201_vm0, %v566_v62, %v1608_v42 }
 0x3fd   : > { %577 = vrot.lane.b32.xlu1 %v567_v63, %s1376_s21 }
 0x463   : > { %v582_v0 = vpop.permute.xlu1 %581 }
 0x464   : > { %v1626_v1 = vsel %vm201_vm0, %v582_v0, %v1594_v43 }
 0x465   : > { %v615_v4 = vmul.f32 %v1626_v1, %v1464_v14  ;;  %v603_v6 = vmul.f32 %v1626_v1, %v1490_v28  ;;  %v1652_v15 = vmul.f32 %v1626_v1, %v1532_v12  ;;  %v611_v29 = vmul.f32 %v1626_v1, %v1479_v21 }
 0x466   : > { %v607_v50 = vmul.f32 %v1626_v1, %v1477_v20  ;;  %v595_v44 = vmul.f32 %v1626_v1, %v1503_v36 }
 0x469   : > { %v584_v2 = vpop.permute.xlu0 %583 }
 0x46a   : > { %v588_v3 = vsel %vm201_vm0, %v584_v2, %v1600_v51 }
 0x46b   : > { %v616_v5 = vmul.f32 %v588_v3, %v1464_v14  ;;  %v604_v7 = vmul.f32 %v588_v3, %v1490_v28  ;;  %v1643_v18 = vmul.f32 %v588_v3, %v1532_v12  ;;  %v612_v25 = vmul.f32 %v588_v3, %v1479_v21 }
 0x46c   : > { %v600_v27 = vmul.f32 %v588_v3, %v1492_v30  ;;  %v608_v47 = vmul.f32 %v588_v3, %v1477_v20  ;;  %v596_v48 = vmul.f32 %v588_v3, %v1503_v36  ;;  %v620_v59 = vmul.f32 %v588_v3, %v1514_v41 }
 0x46d   : > { %v580_v8 = vpop.permute.xlu0 %579  ;;  %v1258_v9 = vpack.i.bf16 %v616_v5, %v615_v4  ;;  %v1268_v10 = vpack.i.bf16 %v604_v7, %v603_v6  ;;  %v1278_v33 = vpack.i.bf16 %v612_v25, %v611_v29 }
 0x46e   : > { %v586_v11 = vsel %vm201_vm0, %v580_v8, %v1604_v55  ;;  %v1298_v52 = vpack.i.bf16 %v608_v47, %v607_v50 }
 0x46f   : > { %v578_v13 = vpop.permute.xlu1 %577  ;;  %1259 = vrot.lane.b32.xlu1 %v1258_v9, %s1384_s19  ;;  %1269 = vrot.lane.b32.xlu0 %v1268_v10, %s1388_s24  ;;  %v614_v22 = vmul.f32 %v586_v11, %v1464_v14  ;;  %v602_v24 = vmul.f32 %v586_v11, %v1490_v28  ;;  %v1667_v32 = vmul.f32 %v586_v11, %v1532_v12 }
 0x470   : > { %v585_v16 = vsel %vm201_vm0, %v578_v13, %v1608_v42  ;;  %v610_v40 = vmul.f32 %v586_v11, %v1479_v21  ;;  %v598_v45 = vmul.f32 %v586_v11, %v1492_v30  ;;  %v606_v49 = vmul.f32 %v586_v11, %v1477_v20 }
 0x471   : > { %v613_v19 = vmul.f32 %v585_v16, %v1464_v14  ;;  %v601_v23 = vmul.f32 %v585_v16, %v1490_v28  ;;  %v750_v14 = vpack.c.bf16 %v1643_v18, %v1652_v15  ;;  %v599_v28 = vmul.f32 %v1626_v1, %v1492_v30 }
 0x472   : > { %v1664_v31 = vmul.f32 %v585_v16, %v1532_v12  ;;  %v609_v35 = vmul.f32 %v585_v16, %v1479_v21  ;;  %v597_v37 = vmul.f32 %v585_v16, %v1492_v30  ;;  %v1308_v21 = vpack.i.bf16 %v596_v48, %v595_v44 }
 0x473   : > { %v1263_v17 = vpack.i.bf16 %v614_v22, %v613_v19  ;;  %v1273_v26 = vpack.i.bf16 %v602_v24, %v601_v23  ;;  %v1288_v34 = vpack.i.bf16 %v600_v27, %v599_v28  ;;  %v605_v30 = vmul.f32 %v585_v16, %v1477_v20 }
 0x474   : > { %v749_v38 = vpack.c.bf16 %v1667_v32, %v1664_v31  ;;  %v1283_v46 = vpack.i.bf16 %v610_v40, %v609_v35  ;;  %v1293_v12 = vpack.i.bf16 %v598_v45, %v597_v37  ;;  %v593_v53 = vmul.f32 %v585_v16, %v1503_v36 }
 0x475   : > { %1264 = vrot.lane.b32.xlu1 %v1263_v17, %s1384_s19  ;;  %1274 = vrot.lane.b32.xlu0 %v1273_v26, %s1388_s24  ;;  %v594_v54 = vmul.f32 %v586_v11, %v1503_v36  ;;  %v1303_v56 = vpack.i.bf16 %v606_v49, %v605_v30  ;;  %v617_v60 = vmul.f32 %v585_v16, %v1514_v41  ;;  %v1346_v49 = vld [vmem:[%s1793_s2 + $0x4] ss:$12 sps:$4 sm:$0xff]  }
 0x476   : > { %v619_v20 = vmul.f32 %v1626_v1, %v1514_v41  ;;  %v618_v36 = vmul.f32 %v586_v11, %v1514_v41  ;;  %916 = vmatprep.mubr.bf16.mxu1 %v1346_v49 }
 0x477   : > { %v1313_v39 = vpack.i.bf16 %v594_v54, %v593_v53 }
 0x478   : > { %v1328_v61 = vpack.i.bf16 %v620_v59, %v619_v20  ;;  %v1333_v62 = vpack.i.bf16 %v618_v36, %v617_v60 }
 0x479   : > { %1279 = vrot.lane.b32.xlu1 %v1278_v33, %s1385_s20  ;;  %1289 = vrot.lane.b32.xlu0 %v1288_v34, %s1390_s25 }
 0x47d   : > { %1284 = vrot.lane.b32.xlu1 %v1283_v46, %s1385_s20  ;;  %1294 = vrot.lane.b32.xlu0 %v1293_v12, %s1390_s25 }
 0x481   : > { %1299 = vrot.lane.b32.xlu1 %v1298_v52, %s1386_s22  ;;  %1309 = vrot.lane.b32.xlu0 %v1308_v21, %s1391_s26 }
 0x485   : > { %1304 = vrot.lane.b32.xlu1 %v1303_v56, %s1386_s22  ;;  %1314 = vrot.lane.b32.xlu0 %v1313_v39, %s1391_s26 }
 0x489   : > { %1319 = vrot.lane.b32.xlu1 %v1318_v57, %s1387_s23  ;;  %1324 = vrot.lane.b32.xlu0 %v1323_v58, %s1387_s23 }
 0x48d   : > { %1329 = vrot.lane.b32.xlu1 %v1328_v61, %s1392_s29  ;;  %1334 = vrot.lane.b32.xlu0 %v1333_v62, %s1392_s29 }
 0x4e1   : > { %v1260_v43 = vpop.permute.xlu1 %1259  ;;  %v1270_v51 = vpop.permute.xlu0 %1269 }
 0x4e2   : > { %v1262_v55 = vunpack.i.h.bf16 %v1260_v43  ;;  %v1261_v42 = vunpack.i.l.bf16 %v1260_v43  ;;  %v1272_v63 = vunpack.i.h.bf16 %v1270_v51  ;;  %v1271_v0 = vunpack.i.l.bf16 %v1270_v51 }
 0x4e4   : > { %v764_v2 = vpack.c.bf16 %v1262_v55, %v1261_v42  ;;  %v756_v3 = vpack.c.bf16 %v1272_v63, %v1271_v0 }
 0x4e6   : > { %853 = vrot.lane.b32.xlu1 %v764_v2, %s1393_s30  ;;  %837 = vrot.lane.b32.xlu0 %v756_v3, %s1393_s30 }
 0x4e7   : > { %v1265_v1 = vpop.permute.xlu1 %1264  ;;  %v1275_v41 = vpop.permute.xlu0 %1274 }
 0x4e8   : > { %v1267_v4 = vunpack.i.h.bf16 %v1265_v1  ;;  %v1266_v5 = vunpack.i.l.bf16 %v1265_v1  ;;  %v1277_v6 = vunpack.i.h.bf16 %v1275_v41  ;;  %v1276_v7 = vunpack.i.l.bf16 %v1275_v41 }
 0x4ea   : > { %v763_v8 = vpack.c.bf16 %v1267_v4, %v1266_v5  ;;  %v755_v9 = vpack.c.bf16 %v1277_v6, %v1276_v7 }
 0x4eb   : > { %v1280_v10 = vpop.permute.xlu1 %1279  ;;  %v1290_v11 = vpop.permute.xlu0 %1289 }
 0x4ec   : > { %v1282_v13 = vunpack.i.h.bf16 %v1280_v10  ;;  %v1281_v16 = vunpack.i.l.bf16 %v1280_v10  ;;  %v1292_v19 = vunpack.i.h.bf16 %v1290_v11  ;;  %v1291_v22 = vunpack.i.l.bf16 %v1290_v11  ;;  %851 = vrot.lane.b32.xlu1 %v763_v8, %s1393_s30  ;;  %835 = vrot.lane.b32.xlu0 %v755_v9, %s1393_s30  ;;  %v1344_v11 = vld [vmem:[%s1793_s2] ss:$12 sps:$4 sm:$0xff]  }
 0x4ee   : > { %v762_v23 = vpack.c.bf16 %v1282_v13, %v1281_v16  ;;  %v754_v24 = vpack.c.bf16 %v1292_v19, %v1291_v22  ;;  %v1347_v13 = vld [vmem:[%s1793_s2 + $0x1c] ss:$12 sps:$4 sm:$0xff]   ;;  %v1349_v22 = vld [vmem:[%s1793_s2 + $0x18] ss:$12 sps:$4 sm:$0xff]  }
 0x4ef   : > { %v1285_v25 = vpop.permute.xlu1 %1284  ;;  %v1295_v17 = vpop.permute.xlu0 %1294 }
 0x4f0   : > { %v1287_v26 = vunpack.i.h.bf16 %v1285_v25  ;;  %v1286_v27 = vunpack.i.l.bf16 %v1285_v25  ;;  %v1297_v29 = vunpack.i.h.bf16 %v1295_v17  ;;  %v1296_v28 = vunpack.i.l.bf16 %v1295_v17  ;;  %849 = vrot.lane.b32.xlu1 %v762_v23, %s1393_s30  ;;  %833 = vrot.lane.b32.xlu0 %v754_v24, %s1393_s30  ;;  %v1350_v23 = vld [vmem:[%s1793_s2 + $0x8] ss:$12 sps:$4 sm:$0xff]   ;;  %v1351_v24 = vld [vmem:[%s1793_s2 + $0x20] ss:$12 sps:$4 sm:$0xff]  }
 0x4f2   : > { %v761_v33 = vpack.c.bf16 %v1287_v26, %v1286_v27  ;;  %v753_v34 = vpack.c.bf16 %v1297_v29, %v1296_v28 }
 0x4f3   : > { %v1300_v35 = vpop.permute.xlu1 %1299  ;;  %v1310_v37 = vpop.permute.xlu0 %1309 }
 0x4f4   : > { %v1302_v40 = vunpack.i.h.bf16 %v1300_v35  ;;  %v1301_v45 = vunpack.i.l.bf16 %v1300_v35  ;;  %v1312_v46 = vunpack.i.h.bf16 %v1310_v37  ;;  %v1311_v12 = vunpack.i.l.bf16 %v1310_v37  ;;  %847 = vrot.lane.b32.xlu1 %v761_v33, %s1393_s30  ;;  %831 = vrot.lane.b32.xlu0 %v753_v34, %s1393_s30 }
 0x4f6   : > { %v760_v47 = vpack.c.bf16 %v1302_v40, %v1301_v45  ;;  %v752_v48 = vpack.c.bf16 %v1312_v46, %v1311_v12 }
 0x4f7   : > { %v1305_v50 = vpop.permute.xlu1 %1304  ;;  %v1315_v44 = vpop.permute.xlu0 %1314 }
 0x4f8   : > { %v1307_v52 = vunpack.i.h.bf16 %v1305_v50  ;;  %v1306_v21 = vunpack.i.l.bf16 %v1305_v50  ;;  %v1317_v30 = vunpack.i.h.bf16 %v1315_v44  ;;  %v1316_v53 = vunpack.i.l.bf16 %v1315_v44  ;;  %845 = vrot.lane.b32.xlu1 %v760_v47, %s1393_s30  ;;  %829 = vrot.lane.b32.xlu0 %v752_v48, %s1393_s30 }
 0x4fa   : > { %v759_v54 = vpack.c.bf16 %v1307_v52, %v1306_v21  ;;  %v751_v56 = vpack.c.bf16 %v1317_v30, %v1316_v53 }
 0x4fb   : > { %v1320_v39 = vpop.permute.xlu1 %1319  ;;  %v1325_v57 = vpop.permute.xlu0 %1324 }
 0x4fc   : > { %v1322_v58 = vunpack.i.h.bf16 %v1320_v39  ;;  %v1321_v59 = vunpack.i.l.bf16 %v1320_v39  ;;  %843 = vrot.lane.b32.xlu1 %v759_v54, %s1393_s30  ;;  %827 = vrot.lane.b32.xlu0 %v751_v56, %s1393_s30  ;;  %v1327_v60 = vunpack.i.h.bf16 %v1325_v57  ;;  %v1326_v20 = vunpack.i.l.bf16 %v1325_v57 }
 0x4fe   : > { %v758_v36 = vpack.c.bf16 %v1322_v58, %v1321_v59  ;;  %v757_v43 = vpack.c.bf16 %v1327_v60, %v1326_v20 }
 0x4ff   : > { %v1330_v61 = vpop.permute.xlu1 %1329  ;;  %v1335_v62 = vpop.permute.xlu0 %1334 }
 0x500   : > { %841 = vrot.lane.b32.xlu1 %v758_v36, %s1393_s30  ;;  %825 = vrot.lane.b32.xlu0 %v750_v14, %s1393_s30  ;;  %v1332_v51 = vunpack.i.h.bf16 %v1330_v61  ;;  %v1331_v55 = vunpack.i.l.bf16 %v1330_v61  ;;  %v1337_v42 = vunpack.i.h.bf16 %v1335_v62  ;;  %v1336_v63 = vunpack.i.l.bf16 %v1335_v62 }
 0x502   : > { %v766_v0 = vpack.c.bf16 %v1332_v51, %v1331_v55  ;;  %v765_v2 = vpack.c.bf16 %v1337_v42, %v1336_v63 }
 0x504   : > { %839 = vrot.lane.b32.xlu1 %v757_v43, %s1393_s30  ;;  %823 = vrot.lane.b32.xlu0 %v749_v38, %s1393_s30 }
 0x508   : > { %857 = vrot.lane.b32.xlu1 %v766_v0, %s1393_s30  ;;  %855 = vrot.lane.b32.xlu0 %v765_v2, %s1393_s30  ;;  %s197_s30 = scalar_lea.vmem %s1795_s4, %s1151_s27 }
 0x558   : > { %v854_v18 = vpop.permute.xlu1 %853  ;;  %v838_v15 = vpop.permute.xlu0 %837 }
 0x559   : > { %1152 = vmatprep.subr.bf16.mxu1 %v854_v18 }
 0x55a   : > { %1153 = vmatpush3.bf16.msra.mxu1 %v838_v15 }
 0x55e   : > { %v852_v14 = vpop.permute.xlu1 %851  ;;  %v836_v3 = vpop.permute.xlu0 %835 }
 0x55f   : > { %1154 = vmatprep.subr.bf16.mxu1 %v852_v14 }
 0x560   : > { %1155 = vmatpush3.bf16.msra.mxu1 %v836_v3 }
 0x562   : > { %v850_v1 = vpop.permute.xlu1 %849  ;;  %v834_v41 = vpop.permute.xlu0 %833 }
 0x563   : > { %1156 = vmatprep.subr.bf16.mxu1 %v850_v1 }
 0x564   : > { %1157 = vmatpush3.bf16.msra.mxu1 %v834_v41 }
 0x566   : > { %v848_v31 = vpop.permute.xlu1 %847  ;;  %v832_v32 = vpop.permute.xlu0 %831 }
 0x567   : > { %1158 = vmatprep.subr.bf16.mxu1 %v848_v31 }
 0x568   : > { %1159 = vmatpush3.bf16.msra.mxu1 %v832_v32 }
 0x56a   : > { %v846_v38 = vpop.permute.xlu1 %845  ;;  %v830_v4 = vpop.permute.xlu0 %829 }
 0x56b   : > { %1160 = vmatprep.subr.bf16.mxu1 %v846_v38 }
 0x56c   : > { %1161 = vmatpush3.bf16.msra.mxu1 %v830_v4 }
 0x56e   : > { %v844_v5 = vpop.permute.xlu1 %843  ;;  %v828_v6 = vpop.permute.xlu0 %827 }
 0x56f   : > { %1162 = vmatprep.subr.bf16.mxu1 %v844_v5 }
 0x570   : > { %1163 = vmatpush3.bf16.msra.mxu1 %v828_v6 }
 0x572   : > { %v842_v7 = vpop.permute.xlu1 %841  ;;  %v826_v8 = vpop.permute.xlu0 %825 }
 0x573   : > { %1164 = vmatprep.subr.bf16.mxu1 %v842_v7 }
 0x574   : > { %1165 = vmatpush3.bf16.msra.mxu1 %v826_v8 }
 0x576   : > { %v840_v9 = vpop.permute.xlu1 %839  ;;  %v824_v10 = vpop.permute.xlu0 %823 }
 0x577   : > { %1166 = vmatprep.subr.bf16.mxu1 %v840_v9 }
 0x578   : > { %1167 = vmatpush3.bf16.msra.mxu1 %v824_v10 }
 0x57a   : > { %v858_v16 = vpop.permute.xlu1 %857  ;;  %v856_v19 = vpop.permute.xlu0 %855 }
 0x57b   : > { %917 = vmatmul.mubr.bf16.vlgmr.msra.gmra.mxu1 %v1344_v11  ;;  %1184 = vmatprep.subr.bf16.mxu1 %v858_v16 }
 0x57c   : > { %1185 = vmatpush3.bf16.msra.mxu1 %v858_v16  ;;  %924 = vmatprep.mubr.bf16.mxu1 %v1347_v13 }
 0x57d   : > { %1186 = vmatprep.subr.bf16.mxu1 %v856_v19 }
 0x580   : > { %1187 = vmatpush3.bf16.msra.mxu1 %v856_v19 }
 0x583   : > { %925 = vmatmul.mubr.bf16.gmra.mxu1 %v1349_v22 }
 0x584   : > { %1188 = vmatprep.mubr.msk.bf16.mxu1 %vm877_vm6, %v1350_v23 }
 0x58b   : > { %1189 = vmatmul.mubr.msk.bf16.vlgmr.msra.gmra.mxu1 %vm877_vm6, %v1351_v24 }
 0x63b   : > { %v1168_v25 = vpop.f32.mrf.mxu1 }
 0x63d   : > { %v1169_v17 = vpop.f32.mrf.mxu1 }
 0x63e   : > { %v1170_v40 = vadd.f32 %v1169_v17, %v1168_v25 }
 0x63f   : > { %v1171_v26 = vpop.f32.mrf.mxu1 }
 0x641   : > { %v1172_v27 = vpop.f32.mrf.mxu1 }
 0x642   : > { %v1173_v44 = vadd.f32 %v1172_v27, %v1171_v26 }
 0x643   : > { %v1174_v29 = vpop.f32.mrf.mxu1 }
 0x645   : > { %v1175_v28 = vpop.f32.mrf.mxu1 }
 0x646   : > { %v1176_v35 = vadd.f32 %v1175_v28, %v1174_v29 }
 0x647   : > { %v1177_v33 = vpop.f32.mrf.mxu1 }
 0x649   : > { %v1178_v34 = vpop.f32.mrf.mxu1 }
 0x64a   : > { %v1179_v12 = vadd.f32 %v1178_v34, %v1177_v33 }
 0x64b   : > { %v1190_v37 = vpop.f32.mrf.mxu1 }
 0x64c   : > { %v1748_v45 = vadd.f32 %v1190_v37, %v1176_v35 }
 0x64d   : > { %v967_v46 = vpop.f32.mrf.mxu1 }
 0x64e   : > { %v1750_v47 = vadd.f32 %v1170_v40, %v967_v46  ;;  %v988_v48 = vsel %vm433_vm1, %v1748_v45, 0.0  ;;  %v996_v58 = vmul.f32 %v1748_v45, %v1748_v45 }
 0x64f   : > { %989 = vadd.xlane.f32.xlu0 %v988_v48  ;;  %v1191_v50 = vpop.f32.mrf.mxu1 }
 0x650   : > { %v1754_v52 = vadd.f32 %v1191_v50, %v1179_v12  ;;  %v982_v21 = vsel %vm433_vm1, %v1750_v47, 0.0  ;;  %v994_v30 = vmul.f32 %v1750_v47, %v1750_v47  ;;  %v1004_v20 = vsel %vm433_vm1, %v996_v58, 0.0 }
 0x651   : > { %v970_v53 = vpop.f32.mrf.mxu1  ;;  %983 = vadd.xlane.f32.xlu1 %v982_v21 }
 0x652   : > { %v1760_v49 = vadd.f32 %v1173_v44, %v970_v53  ;;  %v998_v54 = vsel %vm433_vm1, %v994_v30, 0.0  ;;  %v991_v56 = vsel %vm433_vm1, %v1754_v52, 0.0  ;;  %v997_v60 = vmul.f32 %v1754_v52, %v1754_v52 }
 0x653   : > { %999 = vadd.xlane.f32.xlu0 %v998_v54 }
 0x654   : > { %v995_v39 = vmul.f32 %v1760_v49, %v1760_v49  ;;  %v985_v57 = vsel %vm433_vm1, %v1760_v49, 0.0  ;;  %v1007_v36 = vsel %vm433_vm1, %v997_v60, 0.0 }
 0x655   : > { %992 = vadd.xlane.f32.xlu1 %v991_v56 }
 0x656   : > { %v1001_v59 = vsel %vm433_vm1, %v995_v39, 0.0 }
 0x657   : > { %986 = vadd.xlane.f32.xlu0 %v985_v57 }
 0x659   : > { %1002 = vadd.xlane.f32.xlu1 %v1001_v59 }
 0x65b   : > { %1005 = vadd.xlane.f32.xlu0 %v1004_v20 }
 0x65d   : > { %1008 = vadd.xlane.f32.xlu1 %v1007_v36 }
 0x6d8   : > { %v990_v61 = vpop.xlane.xlu0 %989 }
 0x6d9   : > { %v1012_v18 = vmul.f32 0.0625, %v990_v61 }
 0x6da   : > { %v984_v62 = vpop.xlane.xlu1 %983 }
 0x6db   : > { %v1010_v43 = vmul.f32 0.0625, %v984_v62  ;;  %v1020_v4 = vmul.f32 %v1012_v18, %v1012_v18  ;;  %v1032_v34 = vsub.f32 %v1748_v45, %v1012_v18 }
 0x6dc   : > { %v1000_v51 = vpop.xlane.xlu0 %999 }
 0x6dd   : > { %v1018_v55 = vmul.f32 %v1010_v43, %v1010_v43  ;;  %v1014_v42 = vmul.f32 0.0625, %v1000_v51  ;;  %v1030_v25 = vsub.f32 %v1750_v47, %v1010_v43 }
 0x6de   : > { %v993_v63 = vpop.xlane.xlu1 %992 }
 0x6df   : > { %v1022_v0 = vsub.f32 %v1014_v42, %v1018_v55  ;;  %v1013_v41 = vmul.f32 0.0625, %v993_v63 }
 0x6e0   : > { %v987_v2 = vpop.xlane.xlu0 %986 }
 0x6e1   : > { %v1026_v15 = vmax.f32 %v1022_v0, 0.0  ;;  %v1011_v14 = vmul.f32 0.0625, %v987_v2  ;;  %v1021_v8 = vmul.f32 %v1013_v41, %v1013_v41  ;;  %v1033_v40 = vsub.f32 %v1754_v52, %v1013_v41 }
 0x6e2   : > { %v1003_v3 = vpop.xlane.xlu1 %1002 }
 0x6e3   : > { %v1034_v1 = vadd.f32 1e-05, %v1026_v15  ;;  %v1019_v31 = vmul.f32 %v1011_v14, %v1011_v14  ;;  %v1015_v32 = vmul.f32 0.0625, %v1003_v3  ;;  %v1031_v28 = vsub.f32 %v1760_v49, %v1011_v14 }
 0x6e4   : > { %v1006_v38 = vpop.xlane.xlu0 %1005 }
 0x6e5   : > { %1360 = vrsqrt.f32 %v1034_v1  ;;  %v1023_v5 = vsub.f32 %v1015_v32, %v1019_v31  ;;  %v1016_v6 = vmul.f32 0.0625, %v1006_v38 }
 0x6e6   : > { %v1009_v7 = vpop.xlane.xlu1 %1008 }
 0x6e7   : > { %v1027_v9 = vmax.f32 %v1023_v5, 0.0  ;;  %v1024_v10 = vsub.f32 %v1016_v6, %v1020_v4  ;;  %v1017_v11 = vmul.f32 0.0625, %v1009_v7 }
 0x6e9   : > { %v1035_v13 = vadd.f32 1e-05, %v1027_v9  ;;  %v1028_v16 = vmax.f32 %v1024_v10, 0.0  ;;  %v1025_v19 = vsub.f32 %v1017_v11, %v1021_v8 }
 0x6eb   : > { %1362 = vrsqrt.f32 %v1035_v13  ;;  %v1036_v22 = vadd.f32 1e-05, %v1028_v16  ;;  %v1029_v23 = vmax.f32 %v1025_v19, 0.0 }
 0x6ed   : > { %1364 = vrsqrt.f32 %v1036_v22  ;;  %v1037_v24 = vadd.f32 1e-05, %v1029_v23 }
 0x6ef   : > { %1366 = vrsqrt.f32 %v1037_v24 }
 0x6f2   : > { %v1361_v17 = vpop.eup %1360 }
 0x6f3   : > { %v1042_v26 = vmul.f32 %v1361_v17, %v1030_v25 }
 0x6f5   : > { %vm1046_vm7 = vcmp.ge.f32.partialorder %v1042_v26, 0.0  ;;  %v1050_v27 = vmul.f32 0.2, %v1042_v26 }
 0x6f7   : > { %v1054_v29 = vsel %vm1046_vm7, %v1042_v26, %v1050_v27 }
 0x6f8   : > { %v1363_v33 = vpop.eup %1362  ;;  %1058 = vst.msk [vmem:[%s197_s30] sm:$0xff] %vm433_vm1, %v1054_v29 }
 0x6f9   : > { %v1043_v35 = vmul.f32 %v1363_v33, %v1031_v28 }
 0x6fa   : > { %v1365_v37 = vpop.eup %1364 }
 0x6fb   : > { %vm1047_vm8 = vcmp.ge.f32.partialorder %v1043_v35, 0.0  ;;  %v1051_v46 = vmul.f32 0.2, %v1043_v35  ;;  %v1044_v12 = vmul.f32 %v1365_v37, %v1032_v34 }
 0x6fc   : > { %v1367_v47 = vpop.eup %1366 }
 0x6fd   : > { %v1055_v48 = vsel %vm1047_vm8, %v1043_v35, %v1051_v46  ;;  %vm1048_vm9 = vcmp.ge.f32.partialorder %v1044_v12, 0.0  ;;  %v1052_v50 = vmul.f32 0.2, %v1044_v12  ;;  %v1045_v44 = vmul.f32 %v1367_v47, %v1033_v40 }
 0x6fe   : > { %1059 = vst.msk [vmem:[%s197_s30 + $0x8] sm:$0xff] %vm433_vm1, %v1055_v48 }
 0x6ff   : > { %v1056_v21 = vsel %vm1048_vm9, %v1044_v12, %v1052_v50  ;;  %vm1049_vm10 = vcmp.ge.f32.partialorder %v1045_v44, 0.0  ;;  %v1053_v30 = vmul.f32 0.2, %v1045_v44 }
 0x700   : > { %1060 = vst.msk [vmem:[%s197_s30 + $0x10] sm:$0xff] %vm433_vm1, %v1056_v21 }
 0x701   : > { %v1057_v45 = vsel %vm1049_vm10, %v1045_v44, %v1053_v30 }
 0x702   : > { %1061 = vst.msk [vmem:[%s197_s30 + $0x18] sm:$0xff] %vm433_vm1, %v1057_v45 }
 0x703 PF: > { %s14_s15 = sadd.s32 1, %s1374_s15  }
 0x704   : > { %p11_p4 = scmp.ge.s32.totalorder %s14_s15, 4  }
 0x706   :  { %13 = sbr.rel (!%p11_p4) target bundleno = 1 (0x1), region = 66 }

// kernel: varnet_forward.14
= control target key start
LH: loop header
LB: loop body
LE: loop exit
PB: predicated region body
PF: predicated region fallthrough
CT: control target
= control target key end

     0   :  { %s2790_s0 = inlined_call_operand.vmem [shape: f32[2,2,256], index: 0, kind: input, shape index: {}, may-alias: {0,1}]   ;;  %s2791_s1 = inlined_call_operand.vmem [shape: f32[2,2,256], index: 1, kind: input, shape index: {}, may-alias: {0,1}]   ;;  %s2792_s2 = inlined_call_operand.vmem [shape: f32[2,2,4,256], index: 2, kind: input, shape index: {}]   ;;  %s2793_s3 = inlined_call_operand.hbm [shape: bf16[256,512], index: 3, kind: input, shape index: {}]   ;;  %s2794_s4 = inlined_call_operand.vmem [shape: bf16[8,18], index: 4, kind: input, shape index: {}]   ;;  %s2795_s5 = inlined_call_operand.vmem [shape: bf16[8,72], index: 5, kind: input, shape index: {}]   ;;  %s2796_s6 = inlined_call_operand.vmem [shape: f32[9,256], index: 6, kind: input, shape index: {}]   ;;  %s2797_s7 = inlined_call_operand.vmem [shape: bf16[256,64], index: 7, kind: input, shape index: {}]   ;;  %s2798_s8 = inlined_call_operand.<no memory space> [shape: f32[1,1], index: 8, kind: input, shape index: {}]   ;;  %s2799_s9 = inlined_call_operand.vmem [shape: f32[2,2,256], index: 9, kind: output, shape index: {0}]   ;;  %s2800_s10 = inlined_call_operand.vmem [shape: f32[2,8,256], index: 10, kind: output, shape index: {1}]   ;;  %s2801_s11 = inlined_call_operand.vmem [shape: f32[2,8,64], index: 11, kind: output, shape index: {2}]  }
   0x1   :  { %17 = sst [smem:[#allocation2]] %s2798_s8 }
   0x2   :  { %18 = vsyncpa [#allocation4], 0  ;;  %s2358_s19 = smov 0  }
   0x3 LB: > { %s2364_s20 = sadd.s32 4294967295, %s2279_s19   ;;  %p1958_p0 = scmp.ge.s32.totalorder %s2279_s19, 1  ;;  %s2279_s19 = sphi %s2358_s19, %s24_s19  }
   0x4   : > { %p311_p1 = scmp.lt.s32.totalorder %s2279_s19, 3  ;;  %s2281_s21 = smov [#allocation3]  }
   0x5   : > { %s323_s22 = sshll.u32 %s2281_s21, 4  ;;  %p2103_p3 = scmp.eq.s32.totalorder %s2364_s20, 0  ;;  %s324_s22 = int_to_ptr.vmem [resolvable:$true] %s323_s22 }
   0x6   : > { %p2368_p2 = pnand %p1958_p0, %p311_p1  ;;  %s2254_s23 = scalar_lea.vmem %s324_s22, 8192 }
   0x7   : > { %p2255_p7 = scmp.ne.s32.totalorder %s324_s22, %s2254_s23  ;;  %p2262_p10 = scmp.lt.s32.totalorder %s324_s22, %s324_s22 }
   0x8   : > { %p2099_p4 = pneg %p2368_p2  ;;  %p2263_p11 = scmp.lt.s32.totalorder %s2254_s23, %s2254_s23 }
   0xa   : > { %p2100_p5 = pnand %p2103_p3, %p2099_p4  ;;  %p2264_p12 = por %p2263_p11, %p2262_p10 }
   0xc   : > { %p2245_p6 = pneg %p2100_p5 }
   0xe   : > { %p2257_p8 = pnand %p2255_p7, %p2245_p6 }
  0x10   : > { %p2258_p9 = pneg %p2257_p8 }
  0x12   : > { %p2265_p13 = pnand %p2264_p12, %p2258_p9 }
  0x14   : > { %2268 = shalt.err (!%p2265_p13)
}
  0x15   : > { %s2282_s24 = smov 256   ;;  %s2283_s25 = smov 16  }
  0x16   : > { %2102 = dma.hbm_to_vmem [thread:$0]  (!%p2100_p5), %s2793_s3, 8192, %s324_s22, [#allocation4], %s2282_s24, %s2282_s24, %s2283_s25  }
  0x17   : > { %378 = sbr.rel (%p2368_p2) target bundleno = 1566 (0x61e), region = 56 }
  0x1c   : > { %2274 = dma.done.wait (%p2103_p3), [#allocation4], 8192  }
  0x1d   : > { %2276 = vsyncadd (%p2103_p3), [#allocation4], 4294959104  ;;  %v2127_v0 = vld [vmem:[#allocation3 + $0xe4] ss:$16 sps:$4 sm:$0xff]   ;;  %v2129_v1 = vld [vmem:[#allocation3 + $0xec] ss:$16 sps:$4 sm:$0xff]   ;;  %v473_v34 = vlaneseq }
  0x1e   : > { %918 = vmatprep.subr.bf16.mxu0 %v2127_v0  ;;  %v2131_v2 = vld [vmem:[#allocation3 + $0xe0] ss:$16 sps:$4 sm:$0xff]   ;;  %v2132_v3 = vld [vmem:[#allocation3 + $0xe8] ss:$16 sps:$4 sm:$0xff]   ;;  %959 = vmatprep.subr.bf16.mxu1 %v2129_v1  ;;  %v2133_v4 = vld [vmem:[#allocation3 + $0xc4] ss:$16 sps:$4 sm:$0xff]  }
  0x1f   : > { %919 = vmatpush1.bf16.msra.mxu0 %v2131_v2  ;;  %960 = vmatpush1.bf16.msra.mxu1 %v2132_v3  ;;  %v2135_v5 = vld [vmem:[#allocation3 + $0xcc] ss:$16 sps:$4 sm:$0xff]   ;;  %v2137_v6 = vld [vmem:[#allocation3 + $0xc0] ss:$16 sps:$4 sm:$0xff]   ;;  %v2138_v7 = vld [vmem:[#allocation3 + $0xc8] ss:$16 sps:$4 sm:$0xff]  }
  0x20   : > { %920 = vmatprep.subr.bf16.mxu0 %v2133_v4  ;;  %961 = vmatprep.subr.bf16.mxu1 %v2135_v5  ;;  %v2139_v8 = vld [vmem:[#allocation3 + $0xa4] ss:$16 sps:$4 sm:$0xff]   ;;  %v2141_v9 = vld [vmem:[#allocation3 + $0xac] ss:$16 sps:$4 sm:$0xff]   ;;  %v2143_v10 = vld [vmem:[#allocation3 + $0xa0] ss:$16 sps:$4 sm:$0xff]  }
  0x21   : > { %v2144_v11 = vld [vmem:[#allocation3 + $0xa8] ss:$16 sps:$4 sm:$0xff]   ;;  %v2145_v12 = vld [vmem:[#allocation3 + $0x84] ss:$16 sps:$4 sm:$0xff]   ;;  %v2147_v13 = vld [vmem:[#allocation3 + $0x8c] ss:$16 sps:$4 sm:$0xff]  }
  0x22   : > { %v2149_v14 = vld [vmem:[#allocation3 + $0x80] ss:$16 sps:$4 sm:$0xff]   ;;  %v2150_v15 = vld [vmem:[#allocation3 + $0x88] ss:$16 sps:$4 sm:$0xff]   ;;  %v2151_v16 = vld [vmem:[#allocation3 + $0x64] ss:$16 sps:$4 sm:$0xff]  }
  0x23   : > { %921 = vmatpush1.bf16.msra.mxu0 %v2137_v6  ;;  %962 = vmatpush1.bf16.msra.mxu1 %v2138_v7  ;;  %v2153_v17 = vld [vmem:[#allocation3 + $0x6c] ss:$16 sps:$4 sm:$0xff]   ;;  %v2155_v18 = vld [vmem:[#allocation3 + $0x60] ss:$16 sps:$4 sm:$0xff]   ;;  %v2156_v19 = vld [vmem:[#allocation3 + $0x68] ss:$16 sps:$4 sm:$0xff]  }
  0x24   : > { %922 = vmatprep.subr.bf16.mxu0 %v2139_v8  ;;  %963 = vmatprep.subr.bf16.mxu1 %v2141_v9  ;;  %v2157_v20 = vld [vmem:[#allocation3 + $0x44] ss:$16 sps:$4 sm:$0xff]   ;;  %v2159_v21 = vld [vmem:[#allocation3 + $0x4c] ss:$16 sps:$4 sm:$0xff]   ;;  %v2161_v22 = vld [vmem:[#allocation3 + $0x40] ss:$16 sps:$4 sm:$0xff]  }
  0x25   : > { %v2162_v23 = vld [vmem:[#allocation3 + $0x48] ss:$16 sps:$4 sm:$0xff]   ;;  %v2163_v24 = vld [vmem:[#allocation3 + $0x24] ss:$16 sps:$4 sm:$0xff]   ;;  %v2165_v25 = vld [vmem:[#allocation3 + $0x2c] ss:$16 sps:$4 sm:$0xff]  }
  0x26   : > { %v2167_v26 = vld [vmem:[#allocation3 + $0x20] ss:$16 sps:$4 sm:$0xff]   ;;  %v2168_v27 = vld [vmem:[#allocation3 + $0x28] ss:$16 sps:$4 sm:$0xff]   ;;  %v2169_v28 = vld [vmem:[#allocation3 + $0x4] ss:$16 sps:$4 sm:$0xff]  }
  0x27   : > { %923 = vmatpush1.bf16.msra.mxu0 %v2143_v10  ;;  %964 = vmatpush1.bf16.msra.mxu1 %v2144_v11  ;;  %v2171_v29 = vld [vmem:[#allocation3 + $0xc] ss:$16 sps:$4 sm:$0xff]   ;;  %v2173_v30 = vld [vmem:[#allocation3] ss:$16 sps:$4 sm:$0xff]   ;;  %v2174_v31 = vld [vmem:[#allocation3 + $0x8] ss:$16 sps:$4 sm:$0xff]  }
  0x28   : > { %924 = vmatprep.subr.bf16.mxu0 %v2145_v12  ;;  %965 = vmatprep.subr.bf16.mxu1 %v2147_v13  ;;  %v2175_v32 = vld [vmem:[#allocation3 + $0x1e4] ss:$16 sps:$4 sm:$0xff]   ;;  %p437_p0 = scmp.lt.s32.totalorder %s2364_s20, 1  ;;  %v2177_v33 = vld [vmem:[#allocation3 + $0x1ec] ss:$16 sps:$4 sm:$0xff]   ;;  %v2391_v39 = vshrl.u32 %v473_v34, 7 }
  0x29   : > { %v2179_v35 = vld [vmem:[#allocation3 + $0x1e0] ss:$16 sps:$4 sm:$0xff]   ;;  %v2180_v36 = vld [vmem:[#allocation3 + $0x1e8] ss:$16 sps:$4 sm:$0xff]   ;;  %v2181_v37 = vld [vmem:[#allocation3 + $0x1c4] ss:$16 sps:$4 sm:$0xff]  }
  0x2a   : > { %s2804_s20 = smov (!%p437_p0, %s2364_s20), 1  ;;  %v2183_v38 = vld [vmem:[#allocation3 + $0x1cc] ss:$16 sps:$4 sm:$0xff]   ;;  %v2185_v40 = vld [vmem:[#allocation3 + $0x1c0] ss:$16 sps:$4 sm:$0xff]   ;;  %v2398_v44 = vsub.s32 0, %v2391_v39 }
  0x2b   : > { %925 = vmatpush1.bf16.msra.mxu0 %v2149_v14  ;;  %966 = vmatpush1.bf16.msra.mxu1 %v2150_v15  ;;  %v2186_v41 = vld [vmem:[#allocation3 + $0x1c8] ss:$16 sps:$4 sm:$0xff]   ;;  %v2187_v42 = vld [vmem:[#allocation3 + $0x1a4] ss:$16 sps:$4 sm:$0xff]   ;;  %s2394_s28 = sshll.u32 %s2804_s20, 2  ;;  %s2070_s29 = sshll.u32 %s2804_s20, 4 }
  0x2c   : > { %926 = vmatprep.subr.bf16.mxu0 %v2151_v16  ;;  %967 = vmatprep.subr.bf16.mxu1 %v2153_v17  ;;  %v2189_v43 = vld [vmem:[#allocation3 + $0x1ac] ss:$16 sps:$4 sm:$0xff]   ;;  %v2401_v45 = vsub.s32 2, %v2391_v39  ;;  %v2191_v46 = vld [vmem:[#allocation3 + $0x1a0] ss:$16 sps:$4 sm:$0xff]   ;;  %s441_s13 = scalar_lea.vmem %s2790_s0, %s2394_s28  ;;  %v2408_v48 = vsub.s32 1, %v2391_v39  ;;  %s451_s16 = scalar_lea.vmem %s2792_s2, %s2070_s29 }
  0x2d   : > { %v2192_v47 = vld [vmem:[#allocation3 + $0x1a8] ss:$16 sps:$4 sm:$0xff]   ;;  %v2411_v49 = vsub.s32 3, %v2391_v39  ;;  %v2193_v50 = vld [vmem:[#allocation3 + $0x184] ss:$16 sps:$4 sm:$0xff]   ;;  %vm529_vm0 = vcmask 1043456   ;;  %s446_s21 = scalar_lea.vmem %s2791_s1, %s2394_s28  ;;  %s456_s24 = scalar_lea.vmem %s2799_s9, %s2394_s28 }
  0x2e   : > { %v2195_v51 = vld [vmem:[#allocation3 + $0x18c] ss:$16 sps:$4 sm:$0xff]   ;;  %v2197_v52 = vld [vmem:[#allocation3 + $0x180] ss:$16 sps:$4 sm:$0xff]   ;;  %v2198_v53 = vld [vmem:[#allocation3 + $0x188] ss:$16 sps:$4 sm:$0xff]  }
  0x2f   : > { %927 = vmatpush1.bf16.msra.mxu0 %v2155_v18  ;;  %968 = vmatpush1.bf16.msra.mxu1 %v2156_v19  ;;  %v2418_v54 = vld [vmem:[%s441_s13] sm:$0xf]  ;;  %v2199_v55 = vld [vmem:[#allocation3 + $0x164] ss:$16 sps:$4 sm:$0xff]   ;;  %v2201_v56 = vld [vmem:[#allocation3 + $0x16c] ss:$16 sps:$4 sm:$0xff]  }
  0x30   : > { %928 = vmatprep.subr.bf16.mxu0 %v2157_v20  ;;  %969 = vmatprep.subr.bf16.mxu1 %v2159_v21  ;;  %v476_v57 = vrot.slane %v2418_v54, %v2398_v44  ;;  %v480_v58 = vrot.slane %v2418_v54, %v2401_v45  ;;  %v499_v59 = vrot.slane %v2418_v54, %v2408_v48  ;;  %v2428_v61 = vld [vmem:[%s451_s16] sm:$0xff]  ;;  %v2430_v62 = vld [vmem:[%s451_s16 + $0x8] sm:$0xff]  ;;  %s471_s22 = sld [smem:[#allocation2]]  ;;  %vm1130_vm1 = vcmp.lt.s32.totalorder %v473_v34, 256  ;;  %s2286_s25 = smov 127  }
  0x31   : > { %v503_v60 = vrot.slane %v2418_v54, %v2411_v49  ;;  %v2203_v2 = vld [vmem:[#allocation3 + $0x160] ss:$16 sps:$4 sm:$0xff]   ;;  %v2204_v3 = vld [vmem:[#allocation3 + $0x168] ss:$16 sps:$4 sm:$0xff]   ;;  %v2205_v5 = vld [vmem:[#allocation3 + $0x144] ss:$16 sps:$4 sm:$0xff]  }
  0x32   : > { %v486_v63 = vrot.slane %v476_v57, %v2398_v44  ;;  %v490_v0 = vrot.slane %v480_v58, %v2398_v44  ;;  %v509_v1 = vrot.slane %v499_v59, %v2408_v48  ;;  %v2207_v6 = vld [vmem:[#allocation3 + $0x14c] ss:$16 sps:$4 sm:$0xff]   ;;  %v2209_v11 = vld [vmem:[#allocation3 + $0x140] ss:$16 sps:$4 sm:$0xff]   ;;  %v2210_v12 = vld [vmem:[#allocation3 + $0x148] ss:$16 sps:$4 sm:$0xff]  }
  0x33   : > { %929 = vmatpush1.bf16.msra.mxu0 %v2161_v22  ;;  %970 = vmatpush1.bf16.msra.mxu1 %v2162_v23  ;;  %v513_v4 = vrot.slane %v503_v60, %v2408_v48  ;;  %v2211_v15 = vld [vmem:[#allocation3 + $0x124] ss:$16 sps:$4 sm:$0xff]   ;;  %v2213_v16 = vld [vmem:[#allocation3 + $0x12c] ss:$16 sps:$4 sm:$0xff]   ;;  %v2215_v20 = vld [vmem:[#allocation3 + $0x120] ss:$16 sps:$4 sm:$0xff]  }
  0x34   : > { %930 = vmatprep.subr.bf16.mxu0 %v2163_v24  ;;  %971 = vmatprep.subr.bf16.mxu1 %v2165_v25  ;;  %v493_v7 = vcombine.low %v486_v63, %v490_v0  ;;  %v2216_v21 = vld [vmem:[#allocation3 + $0x128] ss:$16 sps:$4 sm:$0xff]   ;;  %v2217_v24 = vld [vmem:[#allocation3 + $0x104] ss:$16 sps:$4 sm:$0xff]   ;;  %v2219_v25 = vld [vmem:[#allocation3 + $0x10c] ss:$16 sps:$4 sm:$0xff]  }
  0x35   : > { %v516_v8 = vcombine.low %v509_v1, %v513_v4  ;;  %vm1165_vm2 = vcmask 1040384   ;;  %s2287_s26 = smov 16   ;;  %s2288_s27 = smov 15   ;;  %vm1381_vm10 = vcmask 1041408   ;;  %vm1386_vm12 = vcmask 1045504  }
  0x36   : > { %v495_v9 = vmul.f32 %v493_v7, %v2428_v61  ;;  %v521_v10 = vmul.f32 %v493_v7, %v2430_v62  ;;  %s2289_s28 = smov 113   ;;  %s2290_s30 = smov 111   ;;  %vm1400_vm13 = vcmask 146432  }
  0x37   : > { %931 = vmatpush1.bf16.msra.mxu0 %v2167_v26  ;;  %972 = vmatpush1.bf16.msra.mxu1 %v2168_v27  ;;  %v518_v13 = vmul.f32 %v516_v8, %v2430_v62  ;;  %v520_v14 = vmul.f32 %v516_v8, %v2428_v61  ;;  %v2221_v27 = vld [vmem:[#allocation3 + $0x100] ss:$16 sps:$4 sm:$0xff]   ;;  %s2291_s12 = smov 17   ;;  %s2292_s13 = smov 1  }
  0x38   : > { %932 = vmatprep.subr.bf16.mxu0 %v2169_v28  ;;  %973 = vmatprep.subr.bf16.mxu1 %v2171_v29  ;;  %v2222_v28 = vld [vmem:[#allocation3 + $0x108] ss:$16 sps:$4 sm:$0xff]   ;;  %s2294_s14 = smov 112  }
  0x39   : > { %v519_v17 = vsub.f32 %v495_v9, %v518_v13  ;;  %v522_v18 = vadd.f32 %v521_v10, %v520_v14  ;;  %v468_v10 = vld [vmem:[%s446_s21] sm:$0xf] }
  0x3b   : > { %933 = vmatpush1.bf16.msra.mxu0 %v2173_v30  ;;  %974 = vmatpush1.bf16.msra.mxu1 %v2174_v31  ;;  %v524_v19 = vcombine.high %v519_v17, %v519_v17  ;;  %v527_v22 = vcombine.low %v522_v18, %v522_v18 }
  0x3c   : > { %934 = vmatprep.subr.bf16.mxu0 %v2175_v32  ;;  %975 = vmatprep.subr.bf16.mxu1 %v2177_v33 }
  0x3d   : > { %v531_v23 = vsel %vm529_vm0, %v524_v19, %v522_v18  ;;  %v530_v29 = vsel %vm529_vm0, %v519_v17, %v527_v22  ;;  %v1068_v19 = vrot.slane %v468_v10, %v2398_v44  ;;  %v1095_v22 = vrot.slane %v468_v10, %v2408_v48 }
  0x3e   : > { %v533_v26 = vpack.c.bf16 %v531_v23, %v531_v23  ;;  %v532_v30 = vpack.c.bf16 %v530_v29, %v530_v29 }
  0x3f   : > { %935 = vmatpush2.bf16.msra.mxu0 %v2179_v35  ;;  %976 = vmatpush2.bf16.msra.mxu1 %v2180_v36 }
  0x40   : > { %936 = vmatprep.subr.bf16.mxu0 %v2181_v37  ;;  %977 = vmatprep.subr.bf16.mxu1 %v2183_v38 }
  0x41   : > { %950 = vmatprep.mubr.bf16.mxu0 %v533_v26  ;;  %991 = vmatprep.mubr.bf16.mxu1 %v533_v26 }
  0x43   : > { %937 = vmatpush2.bf16.msra.mxu0 %v2185_v40  ;;  %978 = vmatpush2.bf16.msra.mxu1 %v2186_v41 }
  0x44   : > { %938 = vmatprep.subr.bf16.mxu0 %v2187_v42  ;;  %979 = vmatprep.subr.bf16.mxu1 %v2189_v43 }
  0x47   : > { %939 = vmatpush2.bf16.msra.mxu0 %v2191_v46  ;;  %980 = vmatpush2.bf16.msra.mxu1 %v2192_v47 }
  0x48   : > { %940 = vmatprep.subr.bf16.mxu0 %v2193_v50  ;;  %981 = vmatprep.subr.bf16.mxu1 %v2195_v51 }
  0x4b   : > { %941 = vmatpush2.bf16.msra.mxu0 %v2197_v52  ;;  %982 = vmatpush2.bf16.msra.mxu1 %v2198_v53 }
  0x4c   : > { %942 = vmatprep.subr.bf16.mxu0 %v2199_v55  ;;  %983 = vmatprep.subr.bf16.mxu1 %v2201_v56 }
  0x4f   : > { %943 = vmatpush2.bf16.msra.mxu0 %v2203_v2  ;;  %984 = vmatpush2.bf16.msra.mxu1 %v2204_v3 }
  0x50   : > { %944 = vmatprep.subr.bf16.mxu0 %v2205_v5  ;;  %985 = vmatprep.subr.bf16.mxu1 %v2207_v6 }
  0x53   : > { %945 = vmatpush2.bf16.msra.mxu0 %v2209_v11  ;;  %986 = vmatpush2.bf16.msra.mxu1 %v2210_v12 }
  0x54   : > { %946 = vmatprep.subr.bf16.mxu0 %v2211_v15  ;;  %987 = vmatprep.subr.bf16.mxu1 %v2213_v16 }
  0x57   : > { %947 = vmatpush2.bf16.msra.mxu0 %v2215_v20  ;;  %988 = vmatpush2.bf16.msra.mxu1 %v2216_v21  ;;  %v2284_v20 = vmov 1983009808  }
  0x58   : > { %948 = vmatprep.subr.bf16.mxu0 %v2217_v24  ;;  %989 = vmatprep.subr.bf16.mxu1 %v2219_v25  ;;  %v1084_v21 = vunpack.c.l.s4 %v2284_v20  ;;  %v2043_v20 = vld [vmem:[%s2796_s6 + $0x6] ss:$8 sm:$0x3] }
  0x5b   : > { %949 = vmatpush2.bf16.msra.mxu0 %v2221_v27  ;;  %990 = vmatpush2.bf16.msra.mxu1 %v2222_v28  ;;  %v1072_v27 = vrot.slane %v468_v10, %v2401_v45  ;;  %v1099_v28 = vrot.slane %v468_v10, %v2411_v49 }
  0x5e   : > { %951 = vmatmul.mubr.bf16.vlgmr.msra.gmra.mxu0 %v532_v30  ;;  %992 = vmatmul.mubr.bf16.vlgmr.msra.gmra.mxu1 %v532_v30 }
 0x11e   : > { %v952_v31 = vpop.f32.mrf.mxu0  ;;  %v993_v32 = vpop.f32.mrf.mxu1 }
 0x11f   : > { %v1010_v33 = vrot.slane %v952_v31, 4  ;;  %v1002_v35 = vrot.slane %v993_v32, 4 }
 0x120   : > { %v954_v36 = vpop.f32.mrf.mxu0  ;;  %v995_v37 = vpop.f32.mrf.mxu1 }
 0x121   : > { %v1011_v38 = vrot.slane %v954_v36, 4  ;;  %v1003_v40 = vrot.slane %v995_v37, 4  ;;  %v1006_v43 = vsub.f32 %v952_v31, %v1002_v35  ;;  %v1014_v46 = vadd.f32 %v1010_v33, %v993_v32 }
 0x122   : > { %v956_v41 = vpop.f32.mrf.mxu0  ;;  %v997_v42 = vpop.f32.mrf.mxu1  ;;  %v1085_v33 = vunpack.c.0.s8 %v1084_v21  ;;  %v2285_v35 = vmov 1966171168  }
 0x123   : > { %v1007_v47 = vsub.f32 %v954_v36, %v1003_v40  ;;  %v1015_v50 = vadd.f32 %v1011_v38, %v995_v37  ;;  %v1121_v36 = vunpack.c.l.s4 %v2285_v35  ;;  %v1077_v42 = vstv %s471_s22 }
 0x124   : > { %v957_v51 = vpop.f32.mrf.mxu0  ;;  %v998_v52 = vpop.f32.mrf.mxu1 }
 0x125   : > { %v1018_v53 = vcombine.low %v1006_v43, %v1007_v47  ;;  %v1023_v55 = vcombine.low %v1014_v46, %v1015_v50  ;;  %v1088_v47 = vsub.s32 %v1085_v33, %v2391_v39  ;;  %v1122_v50 = vunpack.c.0.s8 %v1121_v36 }
 0x127   : > { %v1020_v56 = vmul.f32 %v1018_v53, %v2428_v61  ;;  %v1025_v57 = vmul.f32 %v1023_v55, %v2430_v62  ;;  %v1044_v58 = vmul.f32 %v1023_v55, %v2428_v61  ;;  %v1045_v59 = vmul.f32 %v1018_v53, %v2430_v62 }
 0x129   : > { %v1026_v60 = vadd.f32 %v1025_v57, %v1020_v56  ;;  %v1046_v63 = vsub.f32 %v1044_v58, %v1045_v59 }
 0x12b   : > { %v1028_v0 = vcombine.high %v1026_v60, %v1026_v60  ;;  %v1030_v1 = vsel %vm529_vm0, %v1026_v60, 0.0  ;;  %v1048_v2 = vcombine.high %v1046_v63, %v1046_v63  ;;  %v1050_v3 = vsel %vm529_vm0, %v1046_v63, 0.0 }
 0x12c   : > { %v1031_v4 = vrot.slane %v1030_v1, 4  ;;  %v1051_v5 = vrot.slane %v1050_v3, 4  ;;  %v1125_v60 = vsub.s32 %v1122_v50, %v2391_v39 }
 0x12d   : > { %v1037_v6 = vsel %vm529_vm0, %v1028_v0, 0.0  ;;  %v1057_v61 = vsel %vm529_vm0, %v1048_v2, 0.0 }
 0x12e   : > { %v1032_v7 = vadd.f32 %v1031_v4, %v1030_v1  ;;  %v1038_v62 = vrot.slane %v1037_v6, 4  ;;  %v1052_v8 = vadd.f32 %v1051_v5, %v1050_v3  ;;  %v1058_v9 = vrot.slane %v1057_v61, 4 }
 0x130   : > { %v1033_v11 = vrot.slane %v1032_v7, 2  ;;  %v1039_v12 = vadd.f32 %v1038_v62, %v1037_v6  ;;  %v1053_v13 = vrot.slane %v1052_v8, 2  ;;  %v1059_v14 = vadd.f32 %v1058_v9, %v1057_v61 }
 0x132   : > { %v1034_v15 = vadd.f32 %v1033_v11, %v1032_v7  ;;  %v1040_v16 = vrot.slane %v1039_v12, 2  ;;  %v1054_v17 = vadd.f32 %v1053_v13, %v1052_v8  ;;  %v1060_v18 = vrot.slane %v1059_v14, 2 }
 0x133   : > { %v2516_v13 = vand.u32 127, %v473_v34 }
 0x134   : > { %v1035_v23 = vrot.slane %v1034_v15, 1  ;;  %v1041_v24 = vadd.f32 %v1040_v16, %v1039_v12  ;;  %v1055_v25 = vrot.slane %v1054_v17, 1  ;;  %v1061_v26 = vadd.f32 %v1060_v18, %v1059_v14  ;;  %v2042_v12 = vld [vmem:[%s2796_s6 + $0x5] ss:$8 sm:$0x3] }
 0x135   : > { %v2045_v14 = vld [vmem:[%s2796_s6 + $0x10] ss:$8 sm:$0x3]  ;;  %v2525_v18 = vrot.slane %v2042_v12, %v2398_v44  ;;  %v2531_v34 = vrot.slane %v2042_v12, %v2408_v48  ;;  %vm1327_vm3 = vcmp.lt.s32.totalorder %v2516_v13, 111  ;;  %vm1261_vm4 = vcmp.lt.s32.totalorder %v2516_v13, 127 }
 0x136   : > { %v1036_v29 = vadd.f32 %v1035_v23, %v1034_v15  ;;  %v1042_v30 = vrot.slane %v1041_v24, 1  ;;  %v1056_v31 = vadd.f32 %v1055_v25, %v1054_v17  ;;  %v1062_v32 = vrot.slane %v1061_v26, 1  ;;  %v2039_v15 = vld [vmem:[%s2796_s6 + $0x1] ss:$8 sm:$0x3] }
 0x137   : > { %v2538_v21 = vrot.slane %v2045_v14, %v2398_v44  ;;  %vm1195_vm5 = vcmp.lt.s32.totalorder %v2516_v13, 16  ;;  %v2546_v23 = vrot.slane %v2039_v15, %v2398_v44  ;;  %v1177_v25 = vld [vmem:[%s2796_s6] ss:$8 sm:$0x3]  ;;  %vm1217_vm6 = vcmp.lt.s32.totalorder %v2516_v13, 15 }
 0x138   : > { %v1043_v37 = vadd.f32 %v1042_v30, %v1041_v24  ;;  %v1063_v38 = vadd.f32 %v1062_v32, %v1061_v26  ;;  %v1075_v40 = vsub.f32 %v1036_v29, %v1068_v19  ;;  %v1102_v41 = vsub.f32 %v1056_v31, %v1095_v22  ;;  %v2040_v19 = vld [vmem:[%s2796_s6 + $0x2] ss:$8 sm:$0x3] }
 0x139   : > { %v2541_v22 = vrot.slane %v2045_v14, %v2408_v48  ;;  %v2549_v24 = vrot.slane %v2039_v15, %v2408_v48  ;;  %v2556_v26 = vrot.slane %v2040_v19, %v2398_v44  ;;  %vm1283_vm7 = vcmp.lt.s32.totalorder %v2516_v13, 113 }
 0x13a   : > { %v1076_v43 = vsub.f32 %v1043_v37, %v1072_v27  ;;  %v1103_v46 = vsub.f32 %v1063_v38, %v1099_v28  ;;  %v1078_v51 = vmul.f32 %v1077_v42, %v1075_v40  ;;  %v1104_v53 = vmul.f32 %v1102_v41, %v1077_v42  ;;  %v2041_v38 = vld [vmem:[%s2796_s6 + $0x3] ss:$8 sm:$0x3] }
 0x13b   : > { %v2559_v27 = vrot.slane %v2040_v19, %v2408_v48  ;;  %v2563_v30 = vrot.slane %v2043_v20, %v2398_v44  ;;  %v2566_v31 = vrot.slane %v2043_v20, %v2408_v48  ;;  %vm1174_vm8 = vcmp.lt.s32.totalorder %v2516_v13, 17 }
 0x13c   : > { %v1079_v52 = vmul.f32 %v1077_v42, %v1076_v43  ;;  %v1105_v55 = vmul.f32 %v1103_v46, %v1077_v42  ;;  %v2576_v37 = vrot.slane %v1177_v25, %v2398_v44  ;;  %v2586_v42 = vrot.slane %v1177_v25, %v2408_v48 }
 0x13d   : > { %vm1239_vm9 = vcmp.lt.s32.totalorder %v2516_v13, 1  ;;  %vm1305_vm11 = vcmp.lt.s32.totalorder %v2516_v13, 112 }
 0x13e   : > { %v1082_v56 = vcombine.low %v1078_v51, %v1079_v52  ;;  %v1108_v57 = vcombine.low %v1104_v53, %v1105_v55 }
 0x140   : > { %v1089_v58 = vrot.slane %v1082_v56, %v1088_v47  ;;  %v1115_v59 = vrot.slane %v1108_v57, %v1088_v47  ;;  %v2598_v56 = vrot.slane %v2041_v38, %v2398_v44  ;;  %v2601_v57 = vrot.slane %v2041_v38, %v2408_v48 }
 0x142   : > { %v1091_v63 = vsub.f32 %v2418_v54, %v1089_v58  ;;  %v1116_v0 = vrot.slane %v1115_v59, 7 }
 0x144   : > { %v1118_v1 = vsub.f32 %v2418_v54, %v1116_v0  ;;  %v1126_v2 = vrot.slane %v1091_v63, %v1125_v60  ;;  %v1148_v4 = vrot.slane %v1091_v63, %v2398_v44  ;;  %v1152_v54 = vrot.slane %v1091_v63, %v2401_v45 }
 0x145   : > { %v2293_v45 = vmov 0  }
 0x146   : > { %1132 = vst.msk [vmem:[%s456_s24] ss:$2 sm:$0x3] %vm1130_vm1, %v1126_v2  ;;  %v1140_v3 = vrot.slane %v1118_v1, %v1125_v60  ;;  %v1158_v5 = vrot.slane %v1118_v1, %v2408_v48  ;;  %v1162_v61 = vrot.slane %v1118_v1, %v2411_v49  ;;  %1442 = vmatprep.mubr.bf16.mxu1 %v2293_v45 }
 0x148   : > { %v1141_v39 = vcombine.high %v1140_v3, %v1140_v3  ;;  %v2470_v6 = vsel %vm1165_vm2, %v1148_v4, %v1158_v5  ;;  %v2479_v7 = vsel %vm1165_vm2, %v1152_v54, %v1162_v61  ;;  %v2044_v3 = vld [vmem:[%s2796_s6 + $0x7] ss:$8 sm:$0x3] }
 0x149   : > { %1257 = vrot.lane.b32.xlu1 %v2470_v6, %s2286_s25  ;;  %1191 = vrot.lane.b32.xlu0 %v2470_v6, %s2287_s26  ;;  %v2637_v15 = vrot.slane %v2044_v3, %v2408_v48 }
 0x14a   : > { %2038 = vst.msk [vmem:[%s456_s24 + $0x1] ss:$2 sm:$0x3] %vm1130_vm1, %v1141_v39 }
 0x14d   : > { %1259 = vrot.lane.b32.xlu1 %v2479_v7, %s2286_s25  ;;  %1193 = vrot.lane.b32.xlu0 %v2479_v7, %s2287_s26 }
 0x151   : > { %1215 = vrot.lane.b32.xlu1 %v2479_v7, %s2288_s27  ;;  %1213 = vrot.lane.b32.xlu0 %v2470_v6, %s2288_s27 }
 0x155   : > { %1281 = vrot.lane.b32.xlu1 %v2479_v7, %s2289_s28  ;;  %1279 = vrot.lane.b32.xlu0 %v2470_v6, %s2289_s28 }
 0x159   : > { %1325 = vrot.lane.b32.xlu1 %v2479_v7, %s2290_s30  ;;  %1323 = vrot.lane.b32.xlu0 %v2470_v6, %s2290_s30 }
 0x15d   : > { %1170 = vrot.lane.b32.xlu1 %v2479_v7, %s2291_s12  ;;  %1168 = vrot.lane.b32.xlu0 %v2470_v6, %s2291_s12 }
 0x161   : > { %1237 = vrot.lane.b32.xlu1 %v2479_v7, %s2292_s13  ;;  %1235 = vrot.lane.b32.xlu0 %v2470_v6, %s2292_s13 }
 0x165   : > { %1303 = vrot.lane.b32.xlu1 %v2479_v7, %s2294_s14  ;;  %1301 = vrot.lane.b32.xlu0 %v2470_v6, %s2294_s14 }
 0x1bb   : > { %v1258_v49 = vpop.permute.xlu1 %1257  ;;  %v1192_v62 = vpop.permute.xlu0 %1191 }
 0x1bf   : > { %v1260_v8 = vpop.permute.xlu1 %1259  ;;  %v1194_v9 = vpop.permute.xlu0 %1193 }
 0x1c0   : > { %v1262_v40 = vsel %vm1261_vm4, %v1258_v49, %v1260_v8  ;;  %v1263_v41 = vsel %vm1261_vm4, %v1260_v8, %v1258_v49  ;;  %v1196_v43 = vsel %vm1195_vm5, %v1192_v62, %v1194_v9  ;;  %v1197_v46 = vsel %vm1195_vm5, %v1194_v9, %v1192_v62 }
 0x1c1   : > { %v1277_v63 = vmul.f32 %v2525_v18, %v1262_v40  ;;  %v1278_v0 = vmul.f32 %v2531_v34, %v1263_v41  ;;  %v1211_v1 = vmul.f32 %v2546_v23, %v1197_v46  ;;  %v1212_v2 = vmul.f32 %v2549_v24, %v1196_v43 }
 0x1c3   : > { %v2510_v10 = vpop.permute.xlu1 %1215  ;;  %v1214_v11 = vpop.permute.xlu0 %1213  ;;  %v1365_v25 = vrot.slane %v1277_v63, 6 }
 0x1c4   : > { %v1218_v4 = vsel %vm1217_vm6, %v1214_v11, %v2510_v10  ;;  %v1219_v5 = vsel %vm1217_vm6, %v2510_v10, %v1214_v11  ;;  %v2634_v11 = vrot.slane %v2044_v3, %v2398_v44 }
 0x1c5   : > { %v1233_v19 = vmul.f32 %v2556_v26, %v1219_v5  ;;  %v1234_v20 = vmul.f32 %v2559_v27, %v1218_v4 }
 0x1c7   : > { %v1282_v16 = vpop.permute.xlu1 %1281  ;;  %v1280_v17 = vpop.permute.xlu0 %1279 }
 0x1c8   : > { %v1284_v53 = vsel %vm1283_vm7, %v1280_v17, %v1282_v16  ;;  %v1285_v55 = vsel %vm1283_vm7, %v1282_v16, %v1280_v17  ;;  %v1347_v16 = vrot.slane %v1211_v1, 6  ;;  %v1348_v17 = vrot.slane %v1212_v2, 6 }
 0x1c9   : > { %v1299_v39 = vmul.f32 %v2563_v30, %v1284_v53  ;;  %v1300_v61 = vmul.f32 %v2566_v31, %v1285_v55 }
 0x1cb   : > { %v1326_v28 = vpop.permute.xlu1 %1325  ;;  %v1324_v29 = vpop.permute.xlu0 %1323 }
 0x1cc   : > { %v1328_v32 = vsel %vm1327_vm3, %v1324_v29, %v1326_v28  ;;  %v1329_v33 = vsel %vm1327_vm3, %v1326_v28, %v1324_v29  ;;  %v1366_v28 = vrot.slane %v1278_v0, 6  ;;  %v1371_v29 = vrot.slane %v1299_v39, 4 }
 0x1cd   : > { %v1343_v35 = vmul.f32 %v2538_v21, %v1328_v32  ;;  %v1344_v36 = vmul.f32 %v2541_v22, %v1329_v33  ;;  %v1372_v32 = vrot.slane %v1300_v61, 4 }
 0x1cf   : > { %v1397_v47 = vpack.c.bf16 %v1343_v35, %v1343_v35  ;;  %v1398_v50 = vpack.c.bf16 %v1344_v36, %v1344_v36  ;;  %v1171_v51 = vpop.permute.xlu1 %1170  ;;  %v1169_v52 = vpop.permute.xlu0 %1168 }
 0x1d0   : > { %v1175_v58 = vsel %vm1174_vm8, %v1169_v52, %v1171_v51  ;;  %v1176_v59 = vsel %vm1174_vm8, %v1171_v51, %v1169_v52  ;;  %v1389_v51 = vsel %vm1381_vm10, %v2470_v6, %v1365_v25  ;;  %v1390_v52 = vsel %vm1381_vm10, %v2479_v7, %v1366_v28  ;;  %v1399_v6 = vld [vmem:[%s2794_s4] sm:$0xf] }
 0x1d1   : > { %2046 = vmatprep.subr.msk.bf16.mxu1 %vm1165_vm2, %v1398_v50  ;;  %v1405_v60 = vsel %vm1165_vm2, %v1397_v47, 0  ;;  %v1189_v62 = vmul.f32 %v2576_v37, %v1176_v59  ;;  %v1190_v8 = vmul.f32 %v2586_v42, %v1175_v58  ;;  %v1353_v47 = vrot.slane %v1233_v19, 4 }
 0x1d2   : > { %1423 = vmatpush1.bf16.msra.mxu1 %v1405_v60  ;;  %v1354_v50 = vrot.slane %v1234_v20, 4  ;;  %v1391_v58 = vsel %vm529_vm0, %v1389_v51, %v1371_v29  ;;  %v1392_v63 = vsel %vm529_vm0, %v1390_v52, %v1372_v32 }
 0x1d3   : > { %v1238_v54 = vpop.permute.xlu1 %1237  ;;  %v1236_v49 = vpop.permute.xlu0 %1235  ;;  %v1382_v36 = vsel %vm1381_vm10, %v1189_v62, %v1347_v16  ;;  %v1383_v44 = vsel %vm1381_vm10, %v1190_v8, %v1348_v17 }
 0x1d4   : > { %v1240_v9 = vsel %vm1239_vm9, %v1236_v49, %v1238_v54  ;;  %v1241_v12 = vsel %vm1239_vm9, %v1238_v54, %v1236_v49  ;;  %v1384_v59 = vsel %vm529_vm0, %v1382_v36, %v1353_v47  ;;  %v1385_v60 = vsel %vm529_vm0, %v1383_v44, %v1354_v50 }
 0x1d5   : > { %v1255_v14 = vmul.f32 %v2598_v56, %v1241_v12  ;;  %v1256_v10 = vmul.f32 %v2601_v57, %v1240_v9 }
 0x1d7   : > { %v1304_v33 = vpop.permute.xlu1 %1303  ;;  %v1302_v35 = vpop.permute.xlu0 %1301  ;;  %v1359_v40 = vrot.slane %v1255_v14, 2  ;;  %v1360_v41 = vrot.slane %v1256_v10, 2 }
 0x1d8   : > { %v1306_v48 = vsel %vm1305_vm11, %v1302_v35, %v1304_v33  ;;  %v1307_v38 = vsel %vm1305_vm11, %v1304_v33, %v1302_v35 }
 0x1d9   : > { %v1321_v43 = vmul.f32 %v2634_v11, %v1306_v48  ;;  %v1322_v46 = vmul.f32 %v2637_v15, %v1307_v38  ;;  %v1387_v0 = vsel %vm1386_vm12, %v1384_v59, %v1359_v40  ;;  %v1388_v2 = vsel %vm1386_vm12, %v1385_v60, %v1360_v41 }
 0x1db   : > { %v1377_v53 = vrot.slane %v1321_v43, 2  ;;  %v1378_v55 = vrot.slane %v1322_v46, 2 }
 0x1dd   : > { %v1393_v1 = vsel %vm1386_vm12, %v1391_v58, %v1377_v53  ;;  %v1394_v3 = vsel %vm1386_vm12, %v1392_v63, %v1378_v55 }
 0x1de   : > { %v1396_v4 = vpack.c.bf16 %v1394_v3, %v1388_v2  ;;  %v1395_v5 = vpack.c.bf16 %v1393_v1, %v1387_v0 }
 0x1e0   : > { %1424 = vmatprep.subr.bf16.mxu1 %v1396_v4 }
 0x1e1   : > { %1425 = vmatpush1.bf16.msra.mxu1 %v1395_v5 }
 0x1e4   : > { %2047 = vmatmul.mubr.msk.bf16.vlgmr.msra.gmra.mxu1 %vm1400_vm13, %v1399_v6 }
 0x1e5   : > { %1593 = vmatprep.mubr.bf16.mxu1 %v2293_v45 }
 0x2a4   : > { %v1444_v7 = vpop.f32.mrf.mxu1 }
 0x2a5   : > { %v1454_v54 = vmul.f32 %v1444_v7, %v1444_v7 }
 0x2a6   : > { %v1446_v39 = vpop.f32.mrf.mxu1 }
 0x2a7   : > { %v1451_v61 = vadd.f32 %v1446_v39, %v1444_v7  ;;  %v1455_v49 = vmul.f32 %v1446_v39, %v1446_v39 }
 0x2a8   : > { %v1448_v62 = vpop.f32.mrf.mxu1 }
 0x2a9   : > { %1452 = vadd.xlane.f32.xlu0 %v1451_v61  ;;  %v1456_v8 = vadd.f32 %v1455_v49, %v1454_v54 }
 0x2aa   : > { %v1449_v9 = vpop.f32.mrf.mxu1 }
 0x2ab   : > { %1457 = vadd.xlane.f32.xlu1 %v1456_v8 }
 0x332   : > { %v1453_v12 = vpop.xlane.xlu0 %1452 }
 0x333   : > { %v1459_v14 = vmul.f32 0.00390625, %v1453_v12 }
 0x334   : > { %v1458_v10 = vpop.xlane.xlu1 %1457 }
 0x335   : > { %v1460_v16 = vmul.f32 0.00390625, %v1458_v10  ;;  %v1461_v17 = vmul.f32 %v1459_v14, %v1459_v14  ;;  %v1464_v45 = vsub.f32 %v1444_v7, %v1459_v14  ;;  %v1465_v28 = vsub.f32 %v1446_v39, %v1459_v14 }
 0x337   : > { %v1462_v19 = vsub.f32 %v1460_v16, %v1461_v17 }
 0x339   : > { %v1463_v20 = vmax.f32 %v1462_v19, 0.0 }
 0x33b   : > { %v1466_v25 = vadd.f32 1e-05, %v1463_v20 }
 0x33d   : > { %2239 = vrsqrt.f32 %v1466_v25 }
 0x34a   : > { %v2240_v29 = vpop.eup %2239 }
 0x34b   : > { %v1468_v32 = vmul.f32 %v2240_v29, %v1464_v45  ;;  %v1469_v33 = vmul.f32 %v2240_v29, %v1465_v28 }
 0x34d   : > { %v1472_v35 = vmul.f32 0.2, %v1468_v32  ;;  %v1473_v36 = vmul.f32 0.2, %v1469_v33  ;;  %vm1471_vm14 = vcmp.ge.f32.partialorder %v1469_v33, 0.0  ;;  %vm1470_vm15 = vcmp.ge.f32.partialorder %v1468_v32, 0.0 }
 0x34f   : > { %v1475_v44 = vsel %vm1471_vm14, %v1469_v33, %v1473_v36  ;;  %v1474_v48 = vsel %vm1470_vm15, %v1468_v32, %v1472_v35 }
 0x350   : > { %1534 = vrot.lane.b32.xlu1 %v1475_v44, %s2290_s30  ;;  %1532 = vrot.lane.b32.xlu0 %v1474_v48, %s2290_s30 }
 0x354   : > { %1518 = vrot.lane.b32.xlu1 %v1475_v44, %s2289_s28  ;;  %1516 = vrot.lane.b32.xlu0 %v1474_v48, %s2289_s28  ;;  %s1973_s28 = sshll.u32 %s2804_s20, 3 }
 0x358   : > { %1526 = vrot.lane.b32.xlu1 %v1475_v44, %s2294_s14  ;;  %1524 = vrot.lane.b32.xlu0 %v1474_v48, %s2294_s14 }
 0x35c   : > { %1510 = vrot.lane.b32.xlu1 %v1475_v44, %s2286_s25  ;;  %1508 = vrot.lane.b32.xlu0 %v1474_v48, %s2286_s25 }
 0x360   : > { %1494 = vrot.lane.b32.xlu1 %v1475_v44, %s2288_s27  ;;  %1492 = vrot.lane.b32.xlu0 %v1474_v48, %s2288_s27  ;;  %s461_s27 = scalar_lea.vmem %s2800_s10, %s2070_s29 }
 0x364   : > { %1502 = vrot.lane.b32.xlu1 %v1475_v44, %s2292_s13  ;;  %1500 = vrot.lane.b32.xlu0 %v1474_v48, %s2292_s13  ;;  %s465_s13 = scalar_lea.vmem %s2801_s11, %s1973_s28 }
 0x368   : > { %1478 = vrot.lane.b32.xlu1 %v1475_v44, %s2291_s12  ;;  %1476 = vrot.lane.b32.xlu0 %v1474_v48, %s2291_s12 }
 0x36c   : > { %1486 = vrot.lane.b32.xlu1 %v1475_v44, %s2287_s26  ;;  %1484 = vrot.lane.b32.xlu0 %v1474_v48, %s2287_s26 }
 0x3c2   : > { %v1535_v38 = vpop.permute.xlu1 %1534  ;;  %v1533_v40 = vpop.permute.xlu0 %1532 }
 0x3c3   : > { %v1536_v41 = vsel %vm1327_vm3, %v1533_v40, %v1535_v38  ;;  %v1537_v43 = vsel %vm1327_vm3, %v1535_v38, %v1533_v40  ;;  %v1550_v38 = vld [vmem:[%s2795_s5] sm:$0xf]  ;;  %vm1799_vm3 = vcmask 523264  }
 0x3c4   : > { %v1538_v46 = vmul.f32 %v1536_v41, %v2538_v21  ;;  %v1539_v47 = vmul.f32 %v1537_v43, %v2541_v22 }
 0x3c6   : > { %v1548_v50 = vpack.c.bf16 %v1538_v46, %v1538_v46  ;;  %v1549_v51 = vpack.c.bf16 %v1539_v47, %v1539_v47  ;;  %v1519_v52 = vpop.permute.xlu1 %1518  ;;  %v1517_v53 = vpop.permute.xlu0 %1516  ;;  %v2224_v47 = vld [vmem:[%s2797_s7 + $0x38] sm:$0xff]  }
 0x3c7   : > { %v1520_v58 = vsel %vm1283_vm7, %v1517_v53, %v1519_v52  ;;  %v1521_v59 = vsel %vm1283_vm7, %v1519_v52, %v1517_v53  ;;  %v2227_v52 = vld [vmem:[%s2797_s7 + $0x68] sm:$0xff]  }
 0x3c8   : > { %2048 = vmatprep.subr.msk.bf16.mxu1 %vm529_vm0, %v1549_v51  ;;  %v1556_v55 = vsel %vm529_vm0, %v1548_v50, 0  ;;  %v1522_v0 = vmul.f32 %v1520_v58, %v2563_v30  ;;  %v1523_v1 = vmul.f32 %v1521_v59, %v2566_v31  ;;  %vm1551_vm0 = vcmask 588800   ;;  %v2225_v50 = vld [vmem:[%s2797_s7 + $0x70] sm:$0xff]   ;;  %v2228_v53 = vld [vmem:[%s2797_s7 + $0x28] sm:$0xff]   ;;  %v2230_v58 = vld [vmem:[%s2797_s7 + $0x20] sm:$0xff]  }
 0x3c9   : > { %1568 = vmatpush1.bf16.msra.mxu1 %v1556_v55  ;;  %v2226_v51 = vld [vmem:[%s2797_s7 + $0x30] sm:$0xff]   ;;  %v2229_v55 = vld [vmem:[%s2797_s7 + $0x60] sm:$0xff]   ;;  %v2231_v59 = vld [vmem:[%s2797_s7 + $0x58] sm:$0xff]  }
 0x3ca   : > { %v1527_v60 = vpop.permute.xlu1 %1526  ;;  %v1525_v63 = vpop.permute.xlu0 %1524 }
 0x3cb   : > { %v1528_v21 = vsel %vm1305_vm11, %v1525_v63, %v1527_v60  ;;  %v1529_v22 = vsel %vm1305_vm11, %v1527_v60, %v1525_v63  ;;  %v2232_v60 = vld [vmem:[%s2797_s7 + $0x18] sm:$0xff]   ;;  %v2233_v63 = vld [vmem:[%s2797_s7 + $0x50] sm:$0xff]  }
 0x3cc   : > { %v1530_v2 = vmul.f32 %v1528_v21, %v2634_v11  ;;  %v1531_v3 = vmul.f32 %v1529_v22, %v2637_v15  ;;  %v2234_v21 = vld [vmem:[%s2797_s7 + $0x10] sm:$0xff]   ;;  %v2235_v22 = vld [vmem:[%s2797_s7 + $0x48] sm:$0xff]  }
 0x3ce   : > { %v1546_v4 = vpack.c.bf16 %v1530_v2, %v1522_v0  ;;  %v1511_v5 = vpop.permute.xlu1 %1510  ;;  %v1509_v6 = vpop.permute.xlu0 %1508  ;;  %v1547_v7 = vpack.c.bf16 %v1531_v3, %v1523_v1  ;;  %v2236_v0 = vld [vmem:[%s2797_s7 + $0x8] sm:$0xff]   ;;  %v2237_v1 = vld [vmem:[%s2797_s7 + $0x40] sm:$0xff]  }
 0x3cf   : > { %v1512_v39 = vsel %vm1261_vm4, %v1509_v6, %v1511_v5  ;;  %v1513_v61 = vsel %vm1261_vm4, %v1511_v5, %v1509_v6  ;;  %v2238_v2 = vld [vmem:[%s2797_s7] sm:$0xff]  }
 0x3d0   : > { %v1514_v54 = vmul.f32 %v1512_v39, %v2525_v18  ;;  %v1515_v30 = vmul.f32 %v1513_v61, %v2531_v34  ;;  %1569 = vmatprep.subr.bf16.mxu1 %v1547_v7 }
 0x3d1   : > { %1570 = vmatpush1.bf16.msra.mxu1 %v1546_v4 }
 0x3d2   : > { %v1544_v31 = vpack.c.bf16 %v1514_v54, %v1474_v48  ;;  %v1495_v11 = vpop.permute.xlu1 %1494  ;;  %v1493_v49 = vpop.permute.xlu0 %1492  ;;  %v1545_v15 = vpack.c.bf16 %v1515_v30, %v1475_v44 }
 0x3d3   : > { %v1496_v62 = vsel %vm1217_vm6, %v1493_v49, %v1495_v11  ;;  %v1497_v8 = vsel %vm1217_vm6, %v1495_v11, %v1493_v49 }
 0x3d4   : > { %1571 = vmatprep.subr.bf16.mxu1 %v1545_v15  ;;  %v1498_v14 = vmul.f32 %v1497_v8, %v2556_v26  ;;  %v1499_v10 = vmul.f32 %v1496_v62, %v2559_v27 }
 0x3d5   : > { %1572 = vmatpush1.bf16.msra.mxu1 %v1544_v31 }
 0x3d6   : > { %v1503_v9 = vpop.permute.xlu1 %1502  ;;  %v1501_v12 = vpop.permute.xlu0 %1500 }
 0x3d7   : > { %v1504_v18 = vsel %vm1239_vm9, %v1501_v12, %v1503_v9  ;;  %v1505_v34 = vsel %vm1239_vm9, %v1503_v9, %v1501_v12 }
 0x3d8   : > { %v1506_v16 = vmul.f32 %v1505_v34, %v2598_v56  ;;  %v1507_v17 = vmul.f32 %v1504_v18, %v2601_v57 }
 0x3da   : > { %v1542_v19 = vpack.c.bf16 %v1506_v16, %v1498_v14  ;;  %v1479_v20 = vpop.permute.xlu1 %1478  ;;  %v1477_v25 = vpop.permute.xlu0 %1476  ;;  %v1543_v45 = vpack.c.bf16 %v1507_v17, %v1499_v10 }
 0x3db   : > { %v1480_v28 = vsel %vm1174_vm8, %v1477_v25, %v1479_v20  ;;  %v1481_v29 = vsel %vm1174_vm8, %v1479_v20, %v1477_v25 }
 0x3dc   : > { %1573 = vmatprep.subr.bf16.mxu1 %v1543_v45  ;;  %v1482_v57 = vmul.f32 %v1481_v29, %v2576_v37  ;;  %v1483_v33 = vmul.f32 %v1480_v28, %v2586_v42 }
 0x3dd   : > { %1574 = vmatpush1.bf16.msra.mxu1 %v1542_v19 }
 0x3de   : > { %v1487_v32 = vpop.permute.xlu1 %1486  ;;  %v1485_v26 = vpop.permute.xlu0 %1484 }
 0x3df   : > { %v1488_v27 = vsel %vm1195_vm5, %v1485_v26, %v1487_v32  ;;  %v1489_v56 = vsel %vm1195_vm5, %v1487_v32, %v1485_v26 }
 0x3e0   : > { %v1490_v35 = vmul.f32 %v1489_v56, %v2546_v23  ;;  %v1491_v36 = vmul.f32 %v1488_v27, %v2549_v24  ;;  %v2223_v24 = vld [vmem:[%s2797_s7 + $0x78] sm:$0xff]  }
 0x3e1   : > { %2073 = vmatprep.subr.bf16.mxu0 %v2223_v24 }
 0x3e2   : > { %v1540_v44 = vpack.c.bf16 %v1490_v35, %v1482_v57  ;;  %v1541_v48 = vpack.c.bf16 %v1491_v36, %v1483_v33  ;;  %2074 = vmatpush3.bf16.msra.mxu0 %v2224_v47 }
 0x3e3   : > { %2075 = vmatprep.subr.bf16.mxu0 %v2225_v50 }
 0x3e4   : > { %1575 = vmatprep.subr.bf16.mxu1 %v1541_v48 }
 0x3e5   : > { %1576 = vmatpush1.bf16.msra.mxu1 %v1540_v44 }
 0x3e6   : > { %2076 = vmatpush3.bf16.msra.mxu0 %v2226_v51 }
 0x3e7   : > { %2077 = vmatprep.subr.bf16.mxu0 %v2227_v52 }
 0x3e8   : > { %2049 = vmatmul.mubr.msk.bf16.vlgmr.msra.gmra.mxu1 %vm1551_vm0, %v1550_v38 }
 0x3ea   : > { %2078 = vmatpush3.bf16.msra.mxu0 %v2228_v53 }
 0x3eb   : > { %2079 = vmatprep.subr.bf16.mxu0 %v2229_v55 }
 0x3ee   : > { %2080 = vmatpush3.bf16.msra.mxu0 %v2230_v58 }
 0x3ef   : > { %2081 = vmatprep.subr.bf16.mxu0 %v2231_v59 }
 0x3f2   : > { %2082 = vmatpush3.bf16.msra.mxu0 %v2232_v60 }
 0x3f3   : > { %2083 = vmatprep.subr.bf16.mxu0 %v2233_v63 }
 0x3f6   : > { %2084 = vmatpush3.bf16.msra.mxu0 %v2234_v21 }
 0x3f7   : > { %2085 = vmatprep.subr.bf16.mxu0 %v2235_v22 }
 0x3fa   : > { %2086 = vmatpush3.bf16.msra.mxu0 %v2236_v0 }
 0x3fb   : > { %2087 = vmatprep.subr.bf16.mxu0 %v2237_v1 }
 0x3fe   : > { %2088 = vmatpush3.bf16.msra.mxu0 %v2238_v2 }
 0x4a8   : > { %v1595_v13 = vpop.f32.mrf.mxu1 }
 0x4a9   : > { %v1605_v37 = vmul.f32 %v1595_v13, %v1595_v13 }
 0x4aa   : > { %v1597_v40 = vpop.f32.mrf.mxu1 }
 0x4ab   : > { %v1602_v41 = vadd.f32 %v1597_v40, %v1595_v13  ;;  %v1606_v43 = vmul.f32 %v1597_v40, %v1597_v40 }
 0x4ac   : > { %v1599_v42 = vpop.f32.mrf.mxu1 }
 0x4ad   : > { %1603 = vadd.xlane.f32.xlu0 %v1602_v41  ;;  %v1607_v23 = vadd.f32 %v1606_v43, %v1605_v37 }
 0x4ae   : > { %v1600_v46 = vpop.f32.mrf.mxu1 }
 0x4af   : > { %1608 = vadd.xlane.f32.xlu1 %v1607_v23 }
 0x536   : > { %v1604_v3 = vpop.xlane.xlu0 %1603 }
 0x537   : > { %v1610_v4 = vmul.f32 0.00390625, %v1604_v3 }
 0x538   : > { %v1609_v5 = vpop.xlane.xlu1 %1608 }
 0x539   : > { %v1611_v6 = vmul.f32 0.00390625, %v1609_v5  ;;  %v1612_v7 = vmul.f32 %v1610_v4, %v1610_v4  ;;  %v1615_v30 = vsub.f32 %v1595_v13, %v1610_v4  ;;  %v1616_v31 = vsub.f32 %v1597_v40, %v1610_v4 }
 0x53b   : > { %v1613_v39 = vsub.f32 %v1611_v6, %v1612_v7 }
 0x53d   : > { %v1614_v61 = vmax.f32 %v1613_v39, 0.0 }
 0x53f   : > { %v1617_v54 = vadd.f32 1e-05, %v1614_v61 }
 0x541   : > { %2241 = vrsqrt.f32 %v1617_v54 }
 0x54e   : > { %v2242_v11 = vpop.eup %2241 }
 0x54f   : > { %v1620_v49 = vmul.f32 %v2242_v11, %v1616_v31  ;;  %v1619_v15 = vmul.f32 %v2242_v11, %v1615_v30 }
 0x551   : > { %vm1622_vm1 = vcmp.ge.f32.partialorder %v1620_v49, 0.0  ;;  %v1624_v62 = vmul.f32 0.2, %v1620_v49  ;;  %vm1621_vm2 = vcmp.ge.f32.partialorder %v1619_v15, 0.0  ;;  %v1623_v8 = vmul.f32 0.2, %v1619_v15 }
 0x553   : > { %v1626_v9 = vsel %vm1622_vm1, %v1620_v49, %v1624_v62  ;;  %v1625_v12 = vsel %vm1621_vm2, %v1619_v15, %v1623_v8 }
 0x554   : > { %1628 = vst [vmem:[%s461_s27 + $0x8] sm:$0xff] %v1626_v9  ;;  %v1630_v18 = vpack.c.bf16 %v1626_v9, %v1626_v9  ;;  %1627 = vst [vmem:[%s461_s27] sm:$0xff] %v1625_v12  ;;  %v1629_v34 = vpack.c.bf16 %v1625_v12, %v1625_v12 }
 0x556   : > { %1791 = vmatprep.mubr.bf16.mxu0 %v1630_v18 }
 0x557   : > { %1792 = vmatmul.mubr.bf16.vlgmr.msra.gmra.mxu0 %v1629_v34 }
 0x617   : > { %v2089_v14 = vpop.f32.mrf.mxu0 }
 0x619   : > { %v2090_v10 = vpop.f32.mrf.mxu0 }
 0x61a   : > { %v2091_v16 = vadd.f32 %v2090_v10, %v2089_v14 }
 0x61b   : > { %v2092_v17 = vpop.f32.mrf.mxu0 }
 0x61c   : > { %1800 = vst.msk [vmem:[%s465_s13] sm:$0xff] %vm1799_vm3, %v2091_v16 }
 0x61d   : > { %v2093_v19 = vpop.f32.mrf.mxu0 }
 0x61e PF: > { %s24_s19 = sadd.s32 1, %s2279_s19  }
 0x61f   : > { %p21_p1 = scmp.ge.s32.totalorder %s24_s19, 4  }
 0x621   :  { %23 = sbr.rel (!%p21_p1) target bundleno = 3 (0x3), region = 129 }
 0x626   :  { %1852 = vsyncpa [#allocation4], 1 }
 0x627   :  { %1854 = vsyncpa [#allocation4 + $0x1], 1 }

// kernel: varnet_forward.19
= control target key start
LH: loop header
LB: loop body
LE: loop exit
PB: predicated region body
PF: predicated region fallthrough
CT: control target
= control target key end

     0   :  { %s413_s9 = smov 0   ;;  %s453_s0 = inlined_call_operand.vmem [shape: f32[2,16,64], index: 0, kind: input, shape index: {}]   ;;  %s454_s1 = inlined_call_operand.vmem [shape: bf16[32,16], index: 1, kind: input, shape index: {}]   ;;  %s455_s2 = inlined_call_operand.vmem [shape: f32[2,8,256], index: 2, kind: output, shape index: {}]  }
   0x1 LB: > { %s350_s10 = sadd.s32 4294967295, %s395_s9   ;;  %p354_p0 = scmp.ge.s32.totalorder %s395_s9, 1  ;;  %s395_s9 = sphi %s413_s9, %s12_s9  }
   0x2   : > { %p112_p1 = scmp.lt.s32.totalorder %s395_s9, 3 }
   0x4   : > { %p113_p2 = pnand %p354_p0, %p112_p1 }
   0x5   : > { %p134_p3 = scmp.lt.s32.totalorder (!%p113_p2), %s350_s10, 1  ;;  %s397_s22 = smov (!%p113_p2), 64  }
   0x6   : > { %116 = sbr.rel (%p113_p2) target bundleno = 512 (0x200), region = 28 }
   0xb   : > { %v385_v0 = vld [vmem:[%s454_s1] sm:$0xff]   ;;  %vm162_vm0 = vcmask 130048   ;;  %s457_s10 = smov (!%p134_p3, %s350_s10), 1  ;;  %v386_v4 = vld [vmem:[%s454_s1 + $0x8] sm:$0xff]   ;;  %vm218_vm1 = vcmask 523264   ;;  %vm277_vm6 = vcmask 1048064  }
   0xc   : > { %372 = vmatprep.mubr.msk.bf16.mxu0 %vm162_vm0, %v385_v0  ;;  %s365_s13 = sshll.u32 %s457_s10, 4 }
   0xd   : > { %s138_s16 = scalar_lea.vmem %s453_s0, %s365_s13  ;;  %s143_s21 = scalar_lea.vmem %s455_s2, %s365_s13 }
   0xe   : > { %v149_v1 = vld [vmem:[%s138_s16] sm:$0xff]  ;;  %v150_v2 = vld [vmem:[%s138_s16 + $0x8] sm:$0xff] }
   0xf   : > { %v151_v3 = vpack.c.bf16 %v150_v2, %v149_v1 }
  0x11   : > { %370 = vmatprep.subr.bf16.mxu0 %v151_v3 }
  0x12   : > { %371 = vmatpush3.bf16.msra.mxu0 %v151_v3 }
  0x15   : > { %373 = vmatmul.mubr.msk.bf16.vlgmr.msra.gmra.mxu0 %vm162_vm0, %v386_v4 }
  0xd5   : > { %v374_v5 = vpop.f32.mrf.mxu0 }
  0xd6   : > { %v237_v6 = vsel %vm218_vm1, %v374_v5, 0.0  ;;  %v241_v7 = vmul.f32 %v374_v5, %v374_v5 }
  0xd7   : > { %238 = vadd.xlane.f32.xlu0 %v237_v6  ;;  %v203_v8 = vpop.f32.mrf.mxu0 }
  0xd8   : > { %v242_v9 = vsel %vm218_vm1, %v241_v7, 0.0  ;;  %v223_v10 = vmul.f32 %v203_v8, %v203_v8  ;;  %v219_v12 = vsel %vm218_vm1, %v203_v8, 0.0 }
  0xd9   : > { %243 = vadd.xlane.f32.xlu1 %v242_v9  ;;  %v375_v11 = vpop.f32.mrf.mxu0 }
  0xda   : > { %v224_v15 = vsel %vm218_vm1, %v223_v10, 0.0  ;;  %v250_v18 = vmul.f32 %v375_v11, %v375_v11  ;;  %v246_v19 = vsel %vm218_vm1, %v375_v11, 0.0 }
  0xdb   : > { %220 = vadd.xlane.f32.xlu0 %v219_v12  ;;  %v206_v13 = vpop.f32.mrf.mxu0 }
  0xdc   : > { %v232_v14 = vmul.f32 %v206_v13, %v206_v13  ;;  %v228_v16 = vsel %vm218_vm1, %v206_v13, 0.0  ;;  %v251_v20 = vsel %vm218_vm1, %v250_v18, 0.0 }
  0xdd   : > { %225 = vadd.xlane.f32.xlu1 %v224_v15 }
  0xde   : > { %v233_v17 = vsel %vm218_vm1, %v232_v14, 0.0 }
  0xdf   : > { %229 = vadd.xlane.f32.xlu0 %v228_v16 }
  0xe1   : > { %234 = vadd.xlane.f32.xlu1 %v233_v17 }
  0xe3   : > { %247 = vadd.xlane.f32.xlu0 %v246_v19 }
  0xe5   : > { %252 = vadd.xlane.f32.xlu1 %v251_v20 }
 0x160   : > { %v239_v21 = vpop.xlane.xlu0 %238 }
 0x162   : > { %v244_v22 = vpop.xlane.xlu1 %243 }
 0x164   : > { %v221_v23 = vpop.xlane.xlu0 %220 }
 0x166   : > { %v226_v24 = vpop.xlane.xlu1 %225 }
 0x168   : > { %v230_v25 = vpop.xlane.xlu0 %229 }
 0x169   : > { %v231_v26 = vadd.f32 %v230_v25, %v221_v23 }
 0x16a   : > { %v235_v27 = vpop.xlane.xlu1 %234 }
 0x16b   : > { %v236_v28 = vadd.f32 %v235_v27, %v226_v24  ;;  %v240_v29 = vadd.f32 %v239_v21, %v231_v26 }
 0x16c   : > { %v248_v30 = vpop.xlane.xlu0 %247 }
 0x16d   : > { %v249_v31 = vadd.f32 %v248_v30, %v240_v29  ;;  %v245_v32 = vadd.f32 %v244_v22, %v236_v28 }
 0x16e   : > { %v253_v33 = vpop.xlane.xlu1 %252 }
 0x16f   : > { %v255_v34 = vmul.f32 0.00390625, %v249_v31  ;;  %v254_v35 = vadd.f32 %v253_v33, %v245_v32 }
 0x171   : > { %v256_v36 = vmul.f32 0.00390625, %v254_v35  ;;  %v257_v37 = vmul.f32 %v255_v34, %v255_v34  ;;  %v262_v41 = vsub.f32 %v203_v8, %v255_v34  ;;  %v279_v42 = vsub.f32 %v374_v5, %v255_v34 }
 0x172   : > { %v285_v43 = vsub.f32 %v375_v11, %v255_v34  ;;  %v268_v44 = vsub.f32 %v206_v13, %v255_v34 }
 0x173   : > { %v258_v38 = vsub.f32 %v256_v36, %v257_v37 }
 0x175   : > { %v259_v39 = vmax.f32 %v258_v38, 0.0 }
 0x177   : > { %v260_v40 = vadd.f32 1e-05, %v259_v39 }
 0x179   : > { %387 = vrsqrt.f32 %v260_v40 }
 0x186   : > { %v388_v45 = vpop.eup %387 }
 0x187   : > { %v286_v46 = vmul.f32 %v388_v45, %v285_v43  ;;  %v269_v47 = vmul.f32 %v388_v45, %v268_v44  ;;  %v280_v48 = vmul.f32 %v388_v45, %v279_v42  ;;  %v263_v49 = vmul.f32 %v388_v45, %v262_v41 }
 0x189   : > { %vm287_vm2 = vcmp.ge.f32.partialorder %v286_v46, 0.0  ;;  %v288_v50 = vmul.f32 0.2, %v286_v46  ;;  %vm270_vm3 = vcmp.ge.f32.partialorder %v269_v47, 0.0  ;;  %v271_v51 = vmul.f32 0.2, %v269_v47 }
 0x18a   : > { %vm281_vm4 = vcmp.ge.f32.partialorder %v280_v48, 0.0  ;;  %v282_v52 = vmul.f32 0.2, %v280_v48  ;;  %vm264_vm5 = vcmp.ge.f32.partialorder %v263_v49, 0.0  ;;  %v265_v53 = vmul.f32 0.2, %v263_v49 }
 0x18b   : > { %v289_v54 = vsel %vm287_vm2, %v286_v46, %v288_v50  ;;  %v272_v55 = vsel %vm270_vm3, %v269_v47, %v271_v51 }
 0x18c   : > { %291 = vrot.lane.b32.xlu1 %v289_v54, %s397_s22  ;;  %274 = vrot.lane.b32.xlu0 %v272_v55, %s397_s22  ;;  %v283_v56 = vsel %vm281_vm4, %v280_v48, %v282_v52  ;;  %v266_v57 = vsel %vm264_vm5, %v263_v49, %v265_v53 }
 0x18d   : > { %284 = vst.msk [vmem:[%s143_s21 + $0x8] sm:$0xff] %vm218_vm1, %v283_v56  ;;  %267 = vst.msk [vmem:[%s143_s21] sm:$0xff] %vm218_vm1, %v266_v57 }
 0x1fe   : > { %v292_v58 = vpop.permute.xlu1 %291  ;;  %v275_v59 = vpop.permute.xlu0 %274 }
 0x1ff   : > { %294 = vst.msk [vmem:[%s143_s21 + $0x8] sm:$0xff] %vm277_vm6, %v292_v58  ;;  %278 = vst.msk [vmem:[%s143_s21] sm:$0xff] %vm277_vm6, %v275_v59 }
 0x200 PF: > { %s12_s9 = sadd.s32 1, %s395_s9  }
 0x201   : > { %p9_p4 = scmp.ge.s32.totalorder %s12_s9, 4  }
 0x203   :  { %11 = sbr.rel (!%p9_p4) target bundleno = 1 (0x1), region = 58 }

// kernel: varnet_forward.18
= control target key start
LH: loop header
LB: loop body
LE: loop exit
PB: predicated region body
PF: predicated region fallthrough
CT: control target
= control target key end

     0   :  { %s1326_s18 = smov 0   ;;  %s1622_s0 = inlined_call_operand.vmem [shape: f32[2,16,64], index: 0, kind: input, shape index: {}]   ;;  %s1623_s1 = inlined_call_operand.vmem [shape: f32[2,16,64], index: 1, kind: input, shape index: {}]   ;;  %s1624_s2 = inlined_call_operand.vmem [shape: bf16[16,288], index: 2, kind: input, shape index: {}]   ;;  %s1625_s3 = inlined_call_operand.vmem [shape: bf16[16,144], index: 3, kind: input, shape index: {}]   ;;  %s1626_s4 = inlined_call_operand.vmem [shape: f32[9,64], index: 4, kind: input, shape index: {}]   ;;  %s1627_s5 = inlined_call_operand.vmem [shape: f32[2,16,64], index: 5, kind: output, shape index: {}]  }
   0x1 LB: > { %s1041_s19 = sadd.s32 4294967295, %s1274_s18   ;;  %p1045_p0 = scmp.ge.s32.totalorder %s1274_s18, 1  ;;  %s1274_s18 = sphi %s1326_s18, %s15_s18  }
   0x2   : > { %p197_p1 = scmp.lt.s32.totalorder %s1274_s18, 3 }
   0x4   : > { %p198_p2 = pnand %p1045_p0, %p197_p1 }
   0x5   : > { %p230_p3 = scmp.lt.s32.totalorder (!%p198_p2), %s1041_s19, 1  ;;  %s1276_s27 = smov (!%p198_p2), 64  }
   0x6   : > { %201 = sbr.rel (%p198_p2) target bundleno = 1771 (0x6eb), region = 40  ;;  %s1277_s7 = smov (!%p198_p2), 8  }
   0x7   : > { %s1278_s8 = smov (!%p198_p2), 63   ;;  %s1279_s11 = smov (!%p198_p2), 7  }
   0x8   : > { %s1280_s16 = smov (!%p198_p2), 1   ;;  %s1281_s17 = smov (!%p198_p2), 57  }
   0x9   : > { %s1282_s24 = smov (!%p198_p2), 9   ;;  %s1283_s25 = smov (!%p198_p2), 56  }
   0xa   : > { %s1285_s28 = smov (!%p198_p2), 120   ;;  %s1286_s29 = smov (!%p198_p2), 48  }
   0xb   : > { %s1629_s19 = smov (!%p230_p3, %s1041_s19), 1  ;;  %v1058_v4 = vld [vmem:[%s1626_s4 + $0x7] ss:$0 sm:$0xff]  ;;  %v1055_v5 = vld [vmem:[%s1626_s4 + $0x3] ss:$0 sm:$0xff]  ;;  %vm250_vm0 = vcmask 1048064  }
   0xc   : > { %s1334_s20 = sshll.u32 %s1629_s19, 4  ;;  %v1057_v13 = vld [vmem:[%s1626_s4 + $0x6] ss:$0 sm:$0xff]  ;;  %v1056_v15 = vld [vmem:[%s1626_s4 + $0x5] ss:$0 sm:$0xff]  ;;  %s1287_s30 = smov 126  }
   0xd   : > { %s239_s23 = scalar_lea.vmem %s1623_s1, %s1334_s20  ;;  %s234_s26 = scalar_lea.vmem %s1622_s0, %s1334_s20  ;;  %v1054_v16 = vld [vmem:[%s1626_s4 + $0x2] ss:$0 sm:$0xff]  ;;  %v1059_v17 = vld [vmem:[%s1626_s4 + $0x8] ss:$0 sm:$0xff]  ;;  %v1053_v18 = vld [vmem:[%s1626_s4 + $0x1] ss:$0 sm:$0xff] }
   0xe   : > { %v1340_v0 = vld [vmem:[%s239_s23] sm:$0xff]  ;;  %v1350_v2 = vld [vmem:[%s239_s23 + $0x8] sm:$0xff]  ;;  %s1288_s6 = smov 54   ;;  %s1290_s10 = smov 55   ;;  %vm1294_vm1 = vmmov 0   ;;  %vm616_vm2 = vcmask 261120  }
   0xf   : > { %257 = vrot.lane.b32.xlu0 %v1340_v0, %s1276_s27  ;;  %v1348_v1 = vld [vmem:[%s234_s26] sm:$0xff]  ;;  %v1354_v3 = vld [vmem:[%s234_s26 + $0x8] sm:$0xff]  ;;  %s1284_s26 = smov 47   ;;  %s1292_s12 = smov 73   ;;  %vm702_vm3 = vcmask 523264   ;;  %vm889_vm6 = vcmask 130048  }
  0x10   : > { %251 = vrot.lane.b32.xlu1 %v1348_v1, %s1276_s27 }
  0x13   : > { %260 = vrot.lane.b32.xlu0 %v1350_v2, %s1276_s27 }
  0x14   : > { %254 = vrot.lane.b32.xlu1 %v1354_v3, %s1276_s27 }
  0x17   : > { %359 = vrot.lane.b32.xlu0 %v1058_v4, %s1277_s7  ;;  %s1289_s7 = smov 127  }
  0x18   : > { %320 = vrot.lane.b32.xlu1 %v1055_v5, %s1278_s8 }
  0x81   : > { %v258_v6 = vpop.permute.xlu0 %257 }
  0x82   : > { %v259_v7 = vsel %vm250_vm0, %v258_v6, %v1340_v0  ;;  %v252_v8 = vpop.permute.xlu1 %251 }
  0x83   : > { %267 = vrot.lane.b32.xlu0 %v259_v7, %s1276_s27  ;;  %v253_v9 = vsel %vm250_vm0, %v252_v8, %v1348_v1 }
  0x85   : > { %v261_v10 = vpop.permute.xlu0 %260 }
  0x86   : > { %v262_v11 = vsel %vm250_vm0, %v261_v10, %v1350_v2  ;;  %v255_v12 = vpop.permute.xlu1 %254  ;;  %v1193_v10 = vpack.i.bf16 %v1350_v2, %v1340_v0 }
  0x87   : > { %269 = vrot.lane.b32.xlu1 %v262_v11, %s1276_s27  ;;  %263 = vrot.lane.b32.xlu0 %v253_v9, %s1276_s27  ;;  %v256_v14 = vsel %vm250_vm0, %v255_v12, %v1354_v3  ;;  %v1052_v11 = vld [vmem:[%s1626_s4] ss:$0 sm:$0xff] }
  0x89   : > { %v1393_v19 = vpop.permute.xlu0 %359 }
  0x8a   : > { %v1395_v20 = vpop.permute.xlu1 %320 }
  0x8b   : > { %346 = vrot.lane.b32.xlu0 %v1057_v13, %s1279_s11  ;;  %265 = vrot.lane.b32.xlu1 %v256_v14, %s1276_s27  ;;  %v1198_v14 = vpack.i.bf16 %v1354_v3, %v1348_v1  ;;  %s1291_s11 = smov 46  }
  0x8f   : > { %333 = vrot.lane.b32.xlu0 %v1056_v15, %s1280_s16  ;;  %307 = vrot.lane.b32.xlu1 %v1054_v16, %s1281_s17 }
  0x93   : > { %372 = vrot.lane.b32.xlu0 %v1059_v17, %s1282_s24  ;;  %294 = vrot.lane.b32.xlu1 %v1053_v18, %s1283_s25 }
  0xf5   : > { %v268_v21 = vpop.permute.xlu0 %267 }
  0xf6   : > { %v1399_v22 = vsel %vm250_vm0, %v268_v21, %v1340_v0 }
  0xf7   : > { %v364_v26 = vmul.f32 %v1393_v19, %v1399_v22  ;;  %v325_v29 = vmul.f32 %v1395_v20, %v1399_v22 }
  0xf9   : > { %v264_v23 = vpop.permute.xlu0 %263  ;;  %v270_v24 = vpop.permute.xlu1 %269 }
  0xfa   : > { %v1403_v25 = vsel %vm250_vm0, %v270_v24, %v1350_v2  ;;  %v1409_v27 = vsel %vm250_vm0, %v264_v23, %v1348_v1 }
  0xfb   : > { %v365_v28 = vmul.f32 %v1393_v19, %v1403_v25  ;;  %v326_v30 = vmul.f32 %v1395_v20, %v1403_v25  ;;  %v362_v36 = vmul.f32 %v1393_v19, %v1409_v27  ;;  %v323_v38 = vmul.f32 %v1395_v20, %v1409_v27 }
  0xfd   : > { %v266_v31 = vpop.permute.xlu1 %265  ;;  %v1133_v32 = vpack.i.bf16 %v365_v28, %v364_v26  ;;  %v1138_v33 = vpack.i.bf16 %v326_v30, %v325_v29  ;;  %v1417_v34 = vpop.permute.xlu0 %346 }
  0xfe   : > { %v1421_v35 = vsel %vm250_vm0, %v266_v31, %v1354_v3  ;;  %v351_v43 = vmul.f32 %v1417_v34, %v1399_v22  ;;  %v352_v44 = vmul.f32 %v1417_v34, %v1403_v25  ;;  %v349_v48 = vmul.f32 %v1417_v34, %v1409_v27 }
  0xff   : > { %1134 = vrot.lane.b32.xlu1 %v1133_v32, %s1284_s26  ;;  %1139 = vrot.lane.b32.xlu0 %v1138_v33, %s1285_s28  ;;  %v363_v37 = vmul.f32 %v1393_v19, %v1421_v35  ;;  %v324_v39 = vmul.f32 %v1395_v20, %v1421_v35  ;;  %v350_v49 = vmul.f32 %v1417_v34, %v1421_v35 }
 0x100   : > { %v1153_v51 = vpack.i.bf16 %v352_v44, %v351_v43 }
 0x101   : > { %v1433_v40 = vpop.permute.xlu1 %307  ;;  %v1143_v41 = vpack.i.bf16 %v363_v37, %v362_v36  ;;  %v1148_v42 = vpack.i.bf16 %v324_v39, %v323_v38  ;;  %v1449_v50 = vpop.permute.xlu0 %333  ;;  %v1163_v55 = vpack.i.bf16 %v350_v49, %v349_v48 }
 0x102   : > { %v312_v45 = vmul.f32 %v1433_v40, %v1399_v22  ;;  %v313_v46 = vmul.f32 %v1433_v40, %v1403_v25  ;;  %v310_v52 = vmul.f32 %v1433_v40, %v1409_v27  ;;  %v311_v53 = vmul.f32 %v1433_v40, %v1421_v35 }
 0x103   : > { %1144 = vrot.lane.b32.xlu1 %v1143_v41, %s1284_s26  ;;  %1149 = vrot.lane.b32.xlu0 %v1148_v42, %s1285_s28  ;;  %v338_v56 = vmul.f32 %v1449_v50, %v1399_v22  ;;  %v339_v58 = vmul.f32 %v1449_v50, %v1403_v25  ;;  %v336_v61 = vmul.f32 %v1449_v50, %v1409_v27 }
 0x104   : > { %v1158_v47 = vpack.i.bf16 %v313_v46, %v312_v45  ;;  %v1168_v57 = vpack.i.bf16 %v311_v53, %v310_v52  ;;  %v337_v62 = vmul.f32 %v1449_v50, %v1421_v35 }
 0x105   : > { %v1455_v54 = vpop.permute.xlu1 %294  ;;  %v1173_v63 = vpack.i.bf16 %v339_v58, %v338_v56  ;;  %v1479_v9 = vpop.permute.xlu0 %372 }
 0x106   : > { %v299_v59 = vmul.f32 %v1455_v54, %v1399_v22  ;;  %v300_v60 = vmul.f32 %v1455_v54, %v1403_v25  ;;  %v297_v5 = vmul.f32 %v1455_v54, %v1409_v27  ;;  %v298_v6 = vmul.f32 %v1455_v54, %v1421_v35 }
 0x107   : > { %1154 = vrot.lane.b32.xlu1 %v1153_v51, %s1286_s29  ;;  %1159 = vrot.lane.b32.xlu0 %v1158_v47, %s1287_s30  ;;  %v1183_v7 = vpack.i.bf16 %v337_v62, %v336_v61  ;;  %v377_v12 = vmul.f32 %v1479_v9, %v1399_v22  ;;  %v378_v13 = vmul.f32 %v1479_v9, %v1403_v25 }
 0x108   : > { %v1178_v4 = vpack.i.bf16 %v300_v60, %v299_v59  ;;  %v1188_v8 = vpack.i.bf16 %v298_v6, %v297_v5  ;;  %v375_v0 = vmul.f32 %v1479_v9, %v1409_v27  ;;  %v376_v2 = vmul.f32 %v1479_v9, %v1421_v35 }
 0x109   : > { %v1203_v15 = vpack.i.bf16 %v378_v13, %v377_v12  ;;  %v1255_v12 = vld [vmem:[%s1624_s2 + $0x4] ss:$12 sps:$4 sm:$0xff]  }
 0x10a   : > { %v1208_v16 = vpack.i.bf16 %v376_v2, %v375_v0  ;;  %652 = vmatprep.mubr.bf16.mxu0 %v1255_v12 }
 0x10b   : > { %1164 = vrot.lane.b32.xlu1 %v1163_v55, %s1286_s29  ;;  %1169 = vrot.lane.b32.xlu0 %v1168_v57, %s1287_s30 }
 0x10f   : > { %1174 = vrot.lane.b32.xlu1 %v1173_v63, %s1288_s6  ;;  %1179 = vrot.lane.b32.xlu0 %v1178_v4, %s1289_s7 }
 0x113   : > { %1184 = vrot.lane.b32.xlu1 %v1183_v7, %s1288_s6  ;;  %1189 = vrot.lane.b32.xlu0 %v1188_v8, %s1289_s7 }
 0x117   : > { %281 = vrot.lane.b32.xlu1 %v1052_v11, %s1290_s10  ;;  %1194 = vrot.lane.b32.xlu0 %v1193_v10, %s1290_s10 }
 0x11b   : > { %1199 = vrot.lane.b32.xlu1 %v1198_v14, %s1290_s10  ;;  %1204 = vrot.lane.b32.xlu0 %v1203_v15, %s1291_s11 }
 0x11f   : > { %1209 = vrot.lane.b32.xlu1 %v1208_v16, %s1291_s11 }
 0x171   : > { %v1140_v17 = vpop.permute.xlu0 %1139  ;;  %v1135_v18 = vpop.permute.xlu1 %1134 }
 0x172   : > { %v1142_v21 = vunpack.i.h.bf16 %v1140_v17  ;;  %v1141_v23 = vunpack.i.l.bf16 %v1140_v17  ;;  %v1137_v1 = vunpack.i.h.bf16 %v1135_v18  ;;  %v1136_v3 = vunpack.i.l.bf16 %v1135_v18 }
 0x174   : > { %v514_v24 = vpack.c.bf16 %v1142_v21, %v1141_v23  ;;  %v522_v26 = vpack.c.bf16 %v1137_v1, %v1136_v3 }
 0x175   : > { %v1150_v28 = vpop.permute.xlu0 %1149  ;;  %v1145_v29 = vpop.permute.xlu1 %1144 }
 0x176   : > { %v1152_v30 = vunpack.i.h.bf16 %v1150_v28  ;;  %v1151_v31 = vunpack.i.l.bf16 %v1150_v28  ;;  %v1147_v32 = vunpack.i.h.bf16 %v1145_v29  ;;  %v1146_v33 = vunpack.i.l.bf16 %v1145_v29  ;;  %576 = vrot.lane.b32.xlu1 %v514_v24, %s1292_s12  ;;  %592 = vrot.lane.b32.xlu0 %v522_v26, %s1292_s12 }
 0x178   : > { %v513_v36 = vpack.c.bf16 %v1152_v30, %v1151_v31  ;;  %v521_v37 = vpack.c.bf16 %v1147_v32, %v1146_v33 }
 0x179   : > { %v1160_v38 = vpop.permute.xlu0 %1159  ;;  %v1155_v39 = vpop.permute.xlu1 %1154 }
 0x17a   : > { %v1162_v41 = vunpack.i.h.bf16 %v1160_v38  ;;  %v1161_v42 = vunpack.i.l.bf16 %v1160_v38  ;;  %v1157_v43 = vunpack.i.h.bf16 %v1155_v39  ;;  %v1156_v44 = vunpack.i.l.bf16 %v1155_v39  ;;  %574 = vrot.lane.b32.xlu1 %v513_v36, %s1292_s12  ;;  %590 = vrot.lane.b32.xlu0 %v521_v37, %s1292_s12 }
 0x17c   : > { %v512_v45 = vpack.c.bf16 %v1162_v41, %v1161_v42  ;;  %v520_v46 = vpack.c.bf16 %v1157_v43, %v1156_v44 }
 0x17d   : > { %v1170_v47 = vpop.permute.xlu0 %1169  ;;  %v1165_v48 = vpop.permute.xlu1 %1164 }
 0x17e   : > { %v1172_v49 = vunpack.i.h.bf16 %v1170_v47  ;;  %v1171_v51 = vunpack.i.l.bf16 %v1170_v47  ;;  %v1167_v52 = vunpack.i.h.bf16 %v1165_v48  ;;  %v1166_v53 = vunpack.i.l.bf16 %v1165_v48  ;;  %572 = vrot.lane.b32.xlu1 %v512_v45, %s1292_s12  ;;  %588 = vrot.lane.b32.xlu0 %v520_v46, %s1292_s12 }
 0x180   : > { %v511_v55 = vpack.c.bf16 %v1172_v49, %v1171_v51  ;;  %v519_v56 = vpack.c.bf16 %v1167_v52, %v1166_v53 }
 0x181   : > { %v1180_v57 = vpop.permute.xlu0 %1179  ;;  %v1175_v58 = vpop.permute.xlu1 %1174 }
 0x182   : > { %v1182_v59 = vunpack.i.h.bf16 %v1180_v57  ;;  %v1181_v60 = vunpack.i.l.bf16 %v1180_v57  ;;  %v1177_v61 = vunpack.i.h.bf16 %v1175_v58  ;;  %v1176_v62 = vunpack.i.l.bf16 %v1175_v58  ;;  %570 = vrot.lane.b32.xlu1 %v511_v55, %s1292_s12  ;;  %586 = vrot.lane.b32.xlu0 %v519_v56, %s1292_s12  ;;  %v1253_v56 = vld [vmem:[%s1624_s2] ss:$12 sps:$4 sm:$0xff]  }
 0x183   : > { %v1293_v57 = vmov 0.0  }
 0x184   : > { %v510_v63 = vpack.c.bf16 %v1182_v59, %v1181_v60  ;;  %v518_v4 = vpack.c.bf16 %v1177_v61, %v1176_v62  ;;  %v1256_v60 = vld [vmem:[%s1624_s2 + $0x8] ss:$12 sps:$4 sm:$0xff]  }
 0x185   : > { %v1190_v5 = vpop.permute.xlu0 %1189  ;;  %v1185_v6 = vpop.permute.xlu1 %1184 }
 0x186   : > { %v1192_v7 = vunpack.i.h.bf16 %v1190_v5  ;;  %v1191_v8 = vunpack.i.l.bf16 %v1190_v5  ;;  %v1187_v10 = vunpack.i.h.bf16 %v1185_v6  ;;  %v1186_v11 = vunpack.i.l.bf16 %v1185_v6  ;;  %568 = vrot.lane.b32.xlu1 %v510_v63, %s1292_s12  ;;  %584 = vrot.lane.b32.xlu0 %v518_v4, %s1292_s12 }
 0x188   : > { %v509_v13 = vpack.c.bf16 %v1192_v7, %v1191_v8  ;;  %v517_v14 = vpack.c.bf16 %v1187_v10, %v1186_v11 }
 0x189   : > { %v1195_v15 = vpop.permute.xlu0 %1194  ;;  %v1516_v0 = vpop.permute.xlu1 %281 }
 0x18a   : > { %v1197_v2 = vunpack.i.h.bf16 %v1195_v15  ;;  %v1196_v16 = vunpack.i.l.bf16 %v1195_v15  ;;  %566 = vrot.lane.b32.xlu1 %v509_v13, %s1292_s12  ;;  %582 = vrot.lane.b32.xlu0 %v517_v14, %s1292_s12  ;;  %v286_v17 = vmul.f32 %v1516_v0, %v1399_v22  ;;  %v287_v18 = vmul.f32 %v1516_v0, %v1403_v25 }
 0x18b   : > { %v284_v1 = vmul.f32 %v1516_v0, %v1409_v27  ;;  %v285_v3 = vmul.f32 %v1516_v0, %v1421_v35 }
 0x18c   : > { %v516_v21 = vpack.c.bf16 %v1197_v2, %v1196_v16  ;;  %v508_v23 = vpack.c.bf16 %v287_v18, %v286_v17 }
 0x18d   : > { %v1205_v24 = vpop.permute.xlu0 %1204  ;;  %v1200_v26 = vpop.permute.xlu1 %1199  ;;  %v507_v25 = vpack.c.bf16 %v285_v3, %v284_v1 }
 0x18e   : > { %v1202_v28 = vunpack.i.h.bf16 %v1200_v26  ;;  %v1201_v29 = vunpack.i.l.bf16 %v1200_v26  ;;  %564 = vrot.lane.b32.xlu1 %v508_v23, %s1292_s12  ;;  %580 = vrot.lane.b32.xlu0 %v516_v21, %s1292_s12  ;;  %v1207_v22 = vunpack.i.h.bf16 %v1205_v24  ;;  %v1206_v30 = vunpack.i.l.bf16 %v1205_v24 }
 0x190   : > { %v515_v31 = vpack.c.bf16 %v1202_v28, %v1201_v29  ;;  %v524_v27 = vpack.c.bf16 %v1207_v22, %v1206_v30 }
 0x191   : > { %v1210_v32 = vpop.permute.xlu1 %1209 }
 0x192   : > { %v1212_v33 = vunpack.i.h.bf16 %v1210_v32  ;;  %v1211_v36 = vunpack.i.l.bf16 %v1210_v32  ;;  %562 = vrot.lane.b32.xlu1 %v507_v25, %s1292_s12  ;;  %578 = vrot.lane.b32.xlu0 %v515_v31, %s1292_s12 }
 0x194   : > { %v523_v35 = vpack.c.bf16 %v1212_v33, %v1211_v36 }
 0x196   : > { %594 = vrot.lane.b32.xlu1 %v523_v35, %s1292_s12  ;;  %596 = vrot.lane.b32.xlu0 %v524_v27, %s1292_s12 }
 0x1e8   : > { %v577_v37 = vpop.permute.xlu1 %576  ;;  %v593_v38 = vpop.permute.xlu0 %592 }
 0x1e9   : > { %1072 = vmatprep.subr.bf16.mxu0 %v593_v38 }
 0x1ea   : > { %1073 = vmatpush3.bf16.msra.mxu0 %v577_v37 }
 0x1ec   : > { %v575_v39 = vpop.permute.xlu1 %574  ;;  %v591_v41 = vpop.permute.xlu0 %590 }
 0x1ed   : > { %1074 = vmatprep.subr.bf16.mxu0 %v591_v41 }
 0x1ee   : > { %1075 = vmatpush3.bf16.msra.mxu0 %v575_v39 }
 0x1f0   : > { %v573_v42 = vpop.permute.xlu1 %572  ;;  %v589_v43 = vpop.permute.xlu0 %588 }
 0x1f1   : > { %1076 = vmatprep.subr.bf16.mxu0 %v589_v43 }
 0x1f2   : > { %1077 = vmatpush3.bf16.msra.mxu0 %v573_v42 }
 0x1f4   : > { %v571_v44 = vpop.permute.xlu1 %570  ;;  %v587_v45 = vpop.permute.xlu0 %586 }
 0x1f5   : > { %1078 = vmatprep.subr.bf16.mxu0 %v587_v45 }
 0x1f6   : > { %1079 = vmatpush3.bf16.msra.mxu0 %v571_v44 }
 0x1f8   : > { %v569_v46 = vpop.permute.xlu1 %568  ;;  %v585_v47 = vpop.permute.xlu0 %584 }
 0x1f9   : > { %1080 = vmatprep.subr.bf16.mxu0 %v585_v47 }
 0x1fa   : > { %1081 = vmatpush3.bf16.msra.mxu0 %v569_v46 }
 0x1fc   : > { %v567_v48 = vpop.permute.xlu1 %566  ;;  %v583_v49 = vpop.permute.xlu0 %582 }
 0x1fd   : > { %1082 = vmatprep.subr.bf16.mxu0 %v583_v49 }
 0x1fe   : > { %1083 = vmatpush3.bf16.msra.mxu0 %v567_v48 }
 0x200   : > { %v565_v51 = vpop.permute.xlu1 %564  ;;  %v581_v52 = vpop.permute.xlu0 %580 }
 0x201   : > { %1084 = vmatprep.subr.bf16.mxu0 %v581_v52 }
 0x202   : > { %1085 = vmatpush3.bf16.msra.mxu0 %v565_v51 }
 0x204   : > { %v563_v53 = vpop.permute.xlu1 %562  ;;  %v579_v55 = vpop.permute.xlu0 %578 }
 0x205   : > { %1086 = vmatprep.subr.bf16.mxu0 %v579_v55 }
 0x206   : > { %1087 = vmatpush3.bf16.msra.mxu0 %v563_v53 }
 0x207   : > { %1097 = vmatprep.subr.bf16.mxu0 %v1293_v57 }
 0x208   : > { %v597_v58 = vpop.permute.xlu0 %596  ;;  %v595_v59 = vpop.permute.xlu1 %594 }
 0x209   : > { %653 = vmatmul.mubr.bf16.vlgmr.msra.gmra.mxu0 %v1253_v56 }
 0x20a   : > { %1098 = vmatpush3.bf16.msra.mxu0 %v597_v58  ;;  %1101 = vmatprep.mubr.msk.bf16.mxu0 %vm1294_vm1, %v1293_v57 }
 0x20b   : > { %1099 = vmatprep.subr.bf16.mxu0 %v1293_v57 }
 0x20e   : > { %1100 = vmatpush3.bf16.msra.mxu0 %v595_v59 }
 0x211   : > { %1102 = vmatmul.mubr.msk.bf16.vlgmr.msra.gmra.mxu0 %vm616_vm2, %v1256_v60 }
 0x2c9   : > { %v1088_v61 = vpop.f32.mrf.mxu0 }
 0x2cb   : > { %v1089_v62 = vpop.f32.mrf.mxu0 }
 0x2cc   : > { %v1090_v5 = vadd.f32 %v1089_v62, %v1088_v61 }
 0x2cd   : > { %v1091_v63 = vpop.f32.mrf.mxu0 }
 0x2cf   : > { %v1092_v4 = vpop.f32.mrf.mxu0 }
 0x2d0   : > { %v1093_v10 = vadd.f32 %v1092_v4, %v1091_v63 }
 0x2d1   : > { %v695_v6 = vpop.f32.mrf.mxu0 }
 0x2d2   : > { %v696_v7 = vadd.f32 %v1090_v5, %v695_v6 }
 0x2d3   : > { %v1103_v8 = vpop.f32.mrf.mxu0 }
 0x2d4   : > { %v703_v11 = vsel %vm702_vm3, %v696_v7, 0.0  ;;  %v709_v12 = vmul.f32 %v696_v7, %v696_v7 }
 0x2d5   : > { %704 = vadd.xlane.f32.xlu0 %v703_v11  ;;  %v698_v13 = vpop.f32.mrf.mxu0 }
 0x2d6   : > { %v699_v14 = vadd.f32 %v1093_v10, %v698_v13  ;;  %v711_v2 = vsel %vm702_vm3, %v709_v12, 0.0 }
 0x2d7   : > { %v1104_v15 = vpop.f32.mrf.mxu0 }
 0x2d8   : > { %v706_v16 = vsel %vm702_vm3, %v699_v14, 0.0  ;;  %v710_v17 = vmul.f32 %v699_v14, %v699_v14 }
 0x2d9   : > { %712 = vadd.xlane.f32.xlu0 %v711_v2  ;;  %707 = vadd.xlane.f32.xlu1 %v706_v16  ;;  %v1295_v16 = vmov 0  }
 0x2da   : > { %v714_v18 = vsel %vm702_vm3, %v710_v17, 0.0  ;;  %893 = vmatprep.subr.bf16.mxu1 %v1295_v16 }
 0x2dd   : > { %715 = vadd.xlane.f32.xlu0 %v714_v18 }
 0x35e   : > { %v705_v21 = vpop.xlane.xlu0 %704 }
 0x35f   : > { %v717_v23 = vmul.f32 0.015625, %v705_v21 }
 0x361   : > { %v721_v24 = vmul.f32 %v717_v23, %v717_v23  ;;  %v727_v35 = vsub.f32 %v696_v7, %v717_v23 }
 0x362   : > { %v713_v1 = vpop.xlane.xlu0 %712  ;;  %v708_v3 = vpop.xlane.xlu1 %707 }
 0x363   : > { %v719_v26 = vmul.f32 0.015625, %v713_v1  ;;  %v718_v28 = vmul.f32 0.015625, %v708_v3 }
 0x365   : > { %v723_v29 = vsub.f32 %v719_v26, %v721_v24  ;;  %v722_v31 = vmul.f32 %v718_v28, %v718_v28  ;;  %v728_v39 = vsub.f32 %v699_v14, %v718_v28 }
 0x366   : > { %v716_v22 = vpop.xlane.xlu0 %715 }
 0x367   : > { %v725_v30 = vmax.f32 %v723_v29, 0.0  ;;  %v720_v25 = vmul.f32 0.015625, %v716_v22 }
 0x369   : > { %v729_v32 = vadd.f32 1e-05, %v725_v30  ;;  %v724_v33 = vsub.f32 %v720_v25, %v722_v31 }
 0x36b   : > { %1260 = vrsqrt.f32 %v729_v32  ;;  %v726_v36 = vmax.f32 %v724_v33, 0.0 }
 0x36d   : > { %v730_v27 = vadd.f32 1e-05, %v726_v36 }
 0x36f   : > { %1262 = vrsqrt.f32 %v730_v27 }
 0x378   : > { %v1261_v37 = vpop.eup %1260 }
 0x379   : > { %v733_v38 = vmul.f32 %v1261_v37, %v727_v35 }
 0x37b   : > { %vm735_vm4 = vcmp.ge.f32.partialorder %v733_v38, 0.0  ;;  %v737_v41 = vmul.f32 0.2, %v733_v38 }
 0x37c   : > { %v1263_v42 = vpop.eup %1262 }
 0x37d   : > { %v739_v43 = vsel %vm735_vm4, %v733_v38, %v737_v41  ;;  %v734_v44 = vmul.f32 %v1263_v42, %v728_v39 }
 0x37e   : > { %741 = vrot.lane.b32.xlu1 %v739_v43, %s1276_s27 }
 0x37f   : > { %vm736_vm5 = vcmp.ge.f32.partialorder %v734_v44, 0.0  ;;  %v738_v45 = vmul.f32 0.2, %v734_v44 }
 0x381   : > { %v740_v46 = vsel %vm736_vm5, %v734_v44, %v738_v45 }
 0x382   : > { %744 = vrot.lane.b32.xlu0 %v740_v46, %s1276_s27 }
 0x3f0   : > { %v742_v47 = vpop.permute.xlu1 %741 }
 0x3f1   : > { %v743_v48 = vsel %vm250_vm0, %v742_v47, %v739_v43 }
 0x3f2   : > { %747 = vrot.lane.b32.xlu1 %v743_v48, %s1276_s27 }
 0x3f4   : > { %v745_v49 = vpop.permute.xlu0 %744 }
 0x3f5   : > { %v746_v51 = vsel %vm250_vm0, %v745_v49, %v740_v46  ;;  %v1259_v49 = vld [vmem:[%s1625_s3 + $0x4] ss:$8 sps:$4 sm:$0xff]  }
 0x3f6   : > { %749 = vrot.lane.b32.xlu1 %v746_v51, %s1276_s27  ;;  %1066 = vmatprep.mubr.msk.bf16.mxu1 %vm889_vm6, %v1259_v49 }
 0x464   : > { %v748_v52 = vpop.permute.xlu1 %747 }
 0x465   : > { %v751_v53 = vsel %vm250_vm0, %v748_v52, %v739_v43 }
 0x466   : > { %v765_v57 = vmul.f32 %v751_v53, %v1393_v19  ;;  %v763_v59 = vmul.f32 %v751_v53, %v1417_v34  ;;  %v1557_v61 = vmul.f32 %v751_v53, %v1516_v0  ;;  %v759_v10 = vmul.f32 %v751_v53, %v1395_v20 }
 0x467   : > { %v757_v11 = vmul.f32 %v751_v53, %v1433_v40  ;;  %v767_v15 = vmul.f32 %v751_v53, %v1479_v9  ;;  %v755_v2 = vmul.f32 %v751_v53, %v1455_v54 }
 0x468   : > { %v750_v55 = vpop.permute.xlu1 %749 }
 0x469   : > { %v752_v56 = vsel %vm250_vm0, %v750_v55, %v740_v46 }
 0x46a   : > { %v766_v58 = vmul.f32 %v752_v56, %v1393_v19  ;;  %v764_v60 = vmul.f32 %v752_v56, %v1417_v34  ;;  %v1560_v62 = vmul.f32 %v752_v56, %v1516_v0  ;;  %v762_v5 = vmul.f32 %v752_v56, %v1449_v50 }
 0x46b   : > { %v761_v19 = vmul.f32 %v751_v53, %v1449_v50  ;;  %v1228_v34 = vpack.i.bf16 %v740_v46, %v739_v43  ;;  %v760_v8 = vmul.f32 %v752_v56, %v1395_v20  ;;  %v758_v0 = vmul.f32 %v752_v56, %v1433_v40 }
 0x46c   : > { %v1213_v63 = vpack.i.bf16 %v766_v58, %v765_v57  ;;  %v1218_v4 = vpack.i.bf16 %v764_v60, %v763_v59  ;;  %v833_v6 = vpack.c.bf16 %v1560_v62, %v1557_v61  ;;  %v768_v14 = vmul.f32 %v752_v56, %v1479_v9  ;;  %v1257_v61 = vld [vmem:[%s1625_s3] ss:$8 sps:$4 sm:$0xff]  }
 0x46d   : > { %v1223_v7 = vpack.i.bf16 %v762_v5, %v761_v19  ;;  %v1233_v12 = vpack.i.bf16 %v760_v8, %v759_v10  ;;  %v1238_v13 = vpack.i.bf16 %v758_v0, %v757_v11  ;;  %v756_v50 = vmul.f32 %v752_v56, %v1455_v54 }
 0x46e   : > { %1214 = vrot.lane.b32.xlu0 %v1213_v63, %s1284_s26  ;;  %1219 = vrot.lane.b32.xlu1 %v1218_v4, %s1286_s29  ;;  %v1248_v20 = vpack.i.bf16 %v768_v14, %v767_v15  ;;  %s244_s26 = scalar_lea.vmem %s1627_s5, %s1334_s20 }
 0x46f   : > { %v1243_v17 = vpack.i.bf16 %v756_v50, %v755_v2 }
 0x472   : > { %1229 = vrot.lane.b32.xlu1 %v1228_v34, %s1290_s10  ;;  %1224 = vrot.lane.b32.xlu0 %v1223_v7, %s1288_s6 }
 0x476   : > { %1234 = vrot.lane.b32.xlu0 %v1233_v12, %s1285_s28  ;;  %1239 = vrot.lane.b32.xlu1 %v1238_v13, %s1287_s30 }
 0x47a   : > { %1249 = vrot.lane.b32.xlu1 %v1248_v20, %s1291_s11  ;;  %1244 = vrot.lane.b32.xlu0 %v1243_v17, %s1289_s7 }
 0x4e0   : > { %v1215_v40 = vpop.permute.xlu0 %1214  ;;  %v1220_v18 = vpop.permute.xlu1 %1219 }
 0x4e1   : > { %v1217_v21 = vunpack.i.h.bf16 %v1215_v40  ;;  %v1216_v23 = vunpack.i.l.bf16 %v1215_v40  ;;  %v1222_v1 = vunpack.i.h.bf16 %v1220_v18  ;;  %v1221_v3 = vunpack.i.l.bf16 %v1220_v18 }
 0x4e3   : > { %v840_v24 = vpack.c.bf16 %v1217_v21, %v1216_v23  ;;  %v839_v26 = vpack.c.bf16 %v1222_v1, %v1221_v3 }
 0x4e4   : > { %v1230_v9 = vpop.permute.xlu1 %1229  ;;  %v1225_v28 = vpop.permute.xlu0 %1224 }
 0x4e5   : > { %v1232_v54 = vunpack.i.h.bf16 %v1230_v9  ;;  %v1231_v29 = vunpack.i.l.bf16 %v1230_v9  ;;  %v1227_v22 = vunpack.i.h.bf16 %v1225_v28  ;;  %v1226_v30 = vunpack.i.l.bf16 %v1225_v28  ;;  %874 = vrot.lane.b32.xlu1 %v839_v26, %s1292_s12  ;;  %876 = vrot.lane.b32.xlu0 %v840_v24, %s1292_s12 }
 0x4e7   : > { %v837_v31 = vpack.c.bf16 %v1232_v54, %v1231_v29  ;;  %v838_v25 = vpack.c.bf16 %v1227_v22, %v1226_v30 }
 0x4e8   : > { %v1235_v32 = vpop.permute.xlu0 %1234  ;;  %v1240_v33 = vpop.permute.xlu1 %1239 }
 0x4e9   : > { %v1237_v36 = vunpack.i.h.bf16 %v1235_v32  ;;  %v1236_v27 = vunpack.i.l.bf16 %v1235_v32  ;;  %v1242_v35 = vunpack.i.h.bf16 %v1240_v33  ;;  %v1241_v37 = vunpack.i.l.bf16 %v1240_v33  ;;  %870 = vrot.lane.b32.xlu1 %v837_v31, %s1292_s12  ;;  %872 = vrot.lane.b32.xlu0 %v838_v25, %s1292_s12 }
 0x4eb   : > { %v836_v38 = vpack.c.bf16 %v1237_v36, %v1236_v27  ;;  %v835_v39 = vpack.c.bf16 %v1242_v35, %v1241_v37 }
 0x4ec   : > { %v1250_v41 = vpop.permute.xlu1 %1249  ;;  %v1245_v42 = vpop.permute.xlu0 %1244 }
 0x4ed   : > { %v1247_v43 = vunpack.i.h.bf16 %v1245_v42  ;;  %v1246_v44 = vunpack.i.l.bf16 %v1245_v42  ;;  %866 = vrot.lane.b32.xlu1 %v835_v39, %s1292_s12  ;;  %868 = vrot.lane.b32.xlu0 %v836_v38, %s1292_s12  ;;  %v1252_v45 = vunpack.i.h.bf16 %v1250_v41  ;;  %v1251_v46 = vunpack.i.l.bf16 %v1250_v41 }
 0x4ef   : > { %v834_v47 = vpack.c.bf16 %v1247_v43, %v1246_v44  ;;  %v841_v48 = vpack.c.bf16 %v1252_v45, %v1251_v46 }
 0x4f1   : > { %864 = vrot.lane.b32.xlu0 %v834_v47, %s1292_s12  ;;  %862 = vrot.lane.b32.xlu1 %v833_v6, %s1292_s12 }
 0x4f5   : > { %878 = vrot.lane.b32.xlu0 %v841_v48, %s1292_s12 }
 0x557   : > { %v877_v51 = vpop.permute.xlu0 %876  ;;  %v875_v52 = vpop.permute.xlu1 %874 }
 0x558   : > { %894 = vmatpush1.bf16.msra.mxu1 %v877_v51 }
 0x559   : > { %895 = vmatprep.subr.bf16.mxu1 %v1295_v16 }
 0x55b   : > { %v873_v53 = vpop.permute.xlu0 %872  ;;  %v871_v55 = vpop.permute.xlu1 %870 }
 0x55c   : > { %896 = vmatpush1.bf16.msra.mxu1 %v875_v52 }
 0x55d   : > { %897 = vmatprep.subr.bf16.mxu1 %v1295_v16 }
 0x55f   : > { %v869_v56 = vpop.permute.xlu0 %868  ;;  %v867_v57 = vpop.permute.xlu1 %866 }
 0x560   : > { %898 = vmatpush1.bf16.msra.mxu1 %v873_v53 }
 0x561   : > { %899 = vmatprep.subr.bf16.mxu1 %v1295_v16 }
 0x563   : > { %v865_v58 = vpop.permute.xlu0 %864  ;;  %v863_v59 = vpop.permute.xlu1 %862 }
 0x564   : > { %900 = vmatpush1.bf16.msra.mxu1 %v871_v55 }
 0x565   : > { %901 = vmatprep.subr.bf16.mxu1 %v1295_v16 }
 0x567   : > { %v879_v60 = vpop.permute.xlu0 %878 }
 0x568   : > { %902 = vmatpush1.bf16.msra.mxu1 %v869_v56 }
 0x569   : > { %903 = vmatprep.subr.bf16.mxu1 %v1295_v16 }
 0x56c   : > { %904 = vmatpush1.bf16.msra.mxu1 %v867_v57 }
 0x56d   : > { %905 = vmatprep.subr.bf16.mxu1 %v1295_v16 }
 0x570   : > { %906 = vmatpush1.bf16.msra.mxu1 %v865_v58 }
 0x571   : > { %907 = vmatprep.subr.bf16.mxu1 %v1295_v16 }
 0x574   : > { %908 = vmatpush1.bf16.msra.mxu1 %v863_v59 }
 0x575   : > { %923 = vmatprep.subr.bf16.mxu1 %v1295_v16 }
 0x578   : > { %924 = vmatpush2.bf16.msra.mxu1 %v879_v60 }
 0x57b   : > { %926 = vmatmul.mubr.bf16.vlgmr.msra.gmra.mxu1 %v1257_v61 }
 0x63b   : > { %v927_v62 = vpop.f32.mrf.mxu1 }
 0x63c   : > { %v934_v63 = vsel %vm702_vm3, %v927_v62, 0.0  ;;  %v940_v34 = vmul.f32 %v927_v62, %v927_v62 }
 0x63d   : > { %935 = vadd.xlane.f32.xlu1 %v934_v63  ;;  %v929_v4 = vpop.f32.mrf.mxu1 }
 0x63e   : > { %v942_v0 = vsel %vm702_vm3, %v940_v34, 0.0 }
 0x63f   : > { %v930_v5 = vpop.f32.mrf.mxu1 }
 0x640   : > { %v937_v6 = vsel %vm702_vm3, %v930_v5, 0.0  ;;  %v941_v19 = vmul.f32 %v930_v5, %v930_v5 }
 0x641   : > { %938 = vadd.xlane.f32.xlu0 %v937_v6  ;;  %v932_v7 = vpop.f32.mrf.mxu1 }
 0x642   : > { %v945_v8 = vsel %vm702_vm3, %v941_v19, 0.0 }
 0x643   : > { %946 = vadd.xlane.f32.xlu1 %v945_v8 }
 0x645   : > { %943 = vadd.xlane.f32.xlu0 %v942_v0 }
 0x6c6   : > { %v936_v10 = vpop.xlane.xlu1 %935 }
 0x6c7   : > { %v948_v12 = vmul.f32 0.015625, %v936_v10 }
 0x6c9   : > { %v952_v16 = vmul.f32 %v948_v12, %v948_v12  ;;  %v958_v26 = vsub.f32 %v927_v62, %v948_v12 }
 0x6ca   : > { %v939_v11 = vpop.xlane.xlu0 %938 }
 0x6cb   : > { %v949_v13 = vmul.f32 0.015625, %v939_v11 }
 0x6cc   : > { %v947_v14 = vpop.xlane.xlu1 %946 }
 0x6cd   : > { %v953_v50 = vmul.f32 %v949_v13, %v949_v13  ;;  %v951_v15 = vmul.f32 0.015625, %v947_v14  ;;  %v959_v3 = vsub.f32 %v930_v5, %v949_v13 }
 0x6ce   : > { %v944_v2 = vpop.xlane.xlu0 %943 }
 0x6cf   : > { %v955_v20 = vsub.f32 %v951_v15, %v953_v50  ;;  %v950_v17 = vmul.f32 0.015625, %v944_v2 }
 0x6d1   : > { %v957_v40 = vmax.f32 %v955_v20, 0.0  ;;  %v954_v18 = vsub.f32 %v950_v17, %v952_v16 }
 0x6d3   : > { %v961_v21 = vadd.f32 1e-05, %v957_v40  ;;  %v956_v23 = vmax.f32 %v954_v18, 0.0 }
 0x6d5   : > { %1264 = vrsqrt.f32 %v961_v21  ;;  %v960_v1 = vadd.f32 1e-05, %v956_v23 }
 0x6d7   : > { %1266 = vrsqrt.f32 %v960_v1 }
 0x6e2   : > { %v1265_v24 = vpop.eup %1264 }
 0x6e3   : > { %v965_v9 = vmul.f32 %v1265_v24, %v959_v3 }
 0x6e4   : > { %v1267_v28 = vpop.eup %1266 }
 0x6e5   : > { %vm967_vm7 = vcmp.ge.f32.partialorder %v965_v9, 0.0  ;;  %v969_v54 = vmul.f32 0.2, %v965_v9  ;;  %v964_v29 = vmul.f32 %v1267_v28, %v958_v26 }
 0x6e7   : > { %v971_v22 = vsel %vm967_vm7, %v965_v9, %v969_v54  ;;  %vm966_vm8 = vcmp.ge.f32.partialorder %v964_v29, 0.0  ;;  %v968_v30 = vmul.f32 0.2, %v964_v29 }
 0x6e8   : > { %973 = vst.msk [vmem:[%s244_s26 + $0x8] sm:$0xff] %vm702_vm3, %v971_v22 }
 0x6e9   : > { %v970_v31 = vsel %vm966_vm8, %v964_v29, %v968_v30 }
 0x6ea   : > { %972 = vst.msk [vmem:[%s244_s26] sm:$0xff] %vm702_vm3, %v970_v31 }
 0x6eb PF: > { %s15_s18 = sadd.s32 1, %s1274_s18  }
 0x6ec   : > { %p12_p4 = scmp.ge.s32.totalorder %s15_s18, 4  }
 0x6ee   :  { %14 = sbr.rel (!%p12_p4) target bundleno = 1 (0x1), region = 73 }

// kernel: varnet_forward.20
= control target key start
LH: loop header
LB: loop body
LE: loop exit
PB: predicated region body
PF: predicated region fallthrough
CT: control target
= control target key end

     0   :  { %s1113_s27 = smov 0   ;;  %s1498_s0 = inlined_call_operand.vmem [shape: f32[2,8,256], index: 0, kind: input, shape index: {}]   ;;  %s1499_s1 = inlined_call_operand.vmem [shape: f32[2,8,256], index: 1, kind: input, shape index: {}]   ;;  %s1500_s2 = inlined_call_operand.vmem [shape: f32[2,2,256], index: 2, kind: input, shape index: {}]   ;;  %s1501_s3 = inlined_call_operand.vmem [shape: bf16[8,144], index: 3, kind: input, shape index: {}]   ;;  %s1502_s4 = inlined_call_operand.vmem [shape: bf16[8,72], index: 4, kind: input, shape index: {}]   ;;  %s1503_s5 = inlined_call_operand.vmem [shape: f32[9,256], index: 5, kind: input, shape index: {}]   ;;  %s1504_s6 = inlined_call_operand.vmem [shape: bf16[2,8], index: 6, kind: input, shape index: {}]   ;;  %s1505_s7 = inlined_call_operand.vmem [shape: f32[2,1], index: 7, kind: input, shape index: {}]   ;;  %s1506_s8 = inlined_call_operand.vmem [shape: f32[2,2,256], index: 8, kind: output, shape index: {}]  }
   0x1 LB: > { %s992_s28 = sadd.s32 4294967295, %s1056_s27   ;;  %p996_p0 = scmp.ge.s32.totalorder %s1056_s27, 1  ;;  %s1056_s27 = sphi %s1113_s27, %s18_s27  }
   0x2   : > { %p282_p1 = scmp.lt.s32.totalorder %s1056_s27, 3 }
   0x4   : > { %p283_p2 = pnand %p996_p0, %p282_p1 }
   0x5   : > { %p326_p3 = scmp.lt.s32.totalorder (!%p283_p2), %s992_s28, 1  ;;  %s1058_s14 = smov (!%p283_p2), 112  }
   0x6   : > { %286 = sbr.rel (%p283_p2) target bundleno = 1289 (0x509), region = 52  ;;  %s1059_s15 = smov (!%p283_p2), 113  }
   0x7   : > { %s1060_s16 = smov (!%p283_p2), 127   ;;  %s1061_s17 = smov (!%p283_p2), 1  }
   0x8   : > { %s1062_s18 = smov (!%p283_p2), 15   ;;  %s1063_s19 = smov (!%p283_p2), 16  }
   0x9   : > { %s1064_s20 = smov (!%p283_p2), 17   ;;  %s1065_s23 = smov (!%p283_p2), 111  }
   0xb   : > { %s1508_s28 = smov (!%p326_p3, %s992_s28), 1  ;;  %v1201_v6 = vld [vmem:[%s1501_s3] sm:$0xff]  ;;  %vm617_vm0 = vcmask 130048   ;;  %v359_v8 = vlaneseq  ;;  %vm766_vm11 = vcmask 1043456   ;;  %vm762_vm12 = vcmask 588800  }
   0xc   : > { %s1021_s29 = sshll.u32 %s1508_s28, 4  ;;  %v1013_v7 = vcombine.high %v1201_v6, %v1201_v6  ;;  %v1010_v13 = vld [vmem:[%s1503_s5 + $0x7] ss:$8 sm:$0x3]  ;;  %vm848_vm15 = vcmask 64512  }
   0xd   : > { %s330_s10 = scalar_lea.vmem %s1498_s0, %s1021_s29  ;;  %s335_s13 = scalar_lea.vmem %s1499_s1, %s1021_s29  ;;  %v1213_v9 = vshrl.u32 %v359_v8, 7  ;;  %v1215_v10 = vand.u32 127, %v359_v8  ;;  %v1009_v28 = vld [vmem:[%s1503_s5 + $0x6] ss:$8 sm:$0x3] }
   0xe   : > { %v1130_v0 = vld [vmem:[%s330_s10 + $0x8] sm:$0xff]  ;;  %v1132_v1 = vld [vmem:[%s330_s10] sm:$0xff]  ;;  %1014 = vmatprep.mubr.msk.bf16.mxu0 %vm617_vm0, %v1013_v7 }
   0xf   : > { %536 = vrot.lane.b32.xlu1 %v1130_v0, %s1058_s14  ;;  %532 = vrot.lane.b32.xlu0 %v1132_v1, %s1058_s14  ;;  %v1138_v2 = vld [vmem:[%s335_s13 + $0x8] sm:$0xff]  ;;  %v1140_v3 = vld [vmem:[%s335_s13] sm:$0xff]  ;;  %v1218_v11 = vsub.s32 0, %v1213_v9  ;;  %v1221_v12 = vsub.s32 1, %v1213_v9  ;;  %vm540_vm1 = vcmp.lt.s32.totalorder %v1215_v10, 112  ;;  %vm510_vm2 = vcmp.lt.s32.totalorder %v1215_v10, 113 }
  0x10   : > { %v601_v4 = vpack.c.bf16 %v1138_v2, %v1130_v0  ;;  %v600_v5 = vpack.c.bf16 %v1140_v3, %v1132_v1  ;;  %v1008_v45 = vld [vmem:[%s1503_s5 + $0x5] ss:$8 sm:$0x3]  ;;  %vm480_vm3 = vcmp.lt.s32.totalorder %v1215_v10, 127  ;;  %vm450_vm4 = vcmp.lt.s32.totalorder %v1215_v10, 1 }
  0x11   : > { %v1228_v16 = vrot.slane %v1010_v13, %v1218_v11  ;;  %v1231_v17 = vrot.slane %v1010_v13, %v1221_v12  ;;  %v1250_v33 = vrot.slane %v1009_v28, %v1218_v11  ;;  %v1253_v34 = vrot.slane %v1009_v28, %v1221_v12  ;;  %v1007_v62 = vld [vmem:[%s1503_s5 + $0x3] ss:$8 sm:$0x3] }
  0x12   : > { %v1272_v50 = vrot.slane %v1008_v45, %v1218_v11  ;;  %v1275_v51 = vrot.slane %v1008_v45, %v1221_v12  ;;  %vm420_vm5 = vcmp.lt.s32.totalorder %v1215_v10, 15  ;;  %vm390_vm6 = vcmp.lt.s32.totalorder %v1215_v10, 16 }
  0x13   : > { %538 = vrot.lane.b32.xlu1 %v1138_v2, %s1058_s14  ;;  %534 = vrot.lane.b32.xlu0 %v1140_v3, %s1058_s14  ;;  %vm361_vm7 = vcmp.lt.s32.totalorder %v1215_v10, 17  ;;  %vm570_vm8 = vcmp.lt.s32.totalorder %v1215_v10, 111 }
  0x17   : > { %504 = vrot.lane.b32.xlu1 %v1140_v3, %s1059_s15  ;;  %502 = vrot.lane.b32.xlu0 %v1132_v1, %s1059_s15 }
  0x1b   : > { %508 = vrot.lane.b32.xlu1 %v1138_v2, %s1059_s15  ;;  %506 = vrot.lane.b32.xlu0 %v1130_v0, %s1059_s15 }
  0x1f   : > { %474 = vrot.lane.b32.xlu1 %v1140_v3, %s1060_s16  ;;  %472 = vrot.lane.b32.xlu0 %v1132_v1, %s1060_s16 }
  0x23   : > { %478 = vrot.lane.b32.xlu1 %v1138_v2, %s1060_s16  ;;  %476 = vrot.lane.b32.xlu0 %v1130_v0, %s1060_s16 }
  0x27   : > { %444 = vrot.lane.b32.xlu1 %v1140_v3, %s1061_s17  ;;  %442 = vrot.lane.b32.xlu0 %v1132_v1, %s1061_s17 }
  0x2b   : > { %448 = vrot.lane.b32.xlu1 %v1138_v2, %s1061_s17  ;;  %446 = vrot.lane.b32.xlu0 %v1130_v0, %s1061_s17 }
  0x2f   : > { %414 = vrot.lane.b32.xlu1 %v1140_v3, %s1062_s18  ;;  %412 = vrot.lane.b32.xlu0 %v1132_v1, %s1062_s18 }
  0x33   : > { %418 = vrot.lane.b32.xlu1 %v1138_v2, %s1062_s18  ;;  %416 = vrot.lane.b32.xlu0 %v1130_v0, %s1062_s18 }
  0x37   : > { %384 = vrot.lane.b32.xlu1 %v1140_v3, %s1063_s19  ;;  %382 = vrot.lane.b32.xlu0 %v1132_v1, %s1063_s19 }
  0x3b   : > { %388 = vrot.lane.b32.xlu1 %v1138_v2, %s1063_s19  ;;  %386 = vrot.lane.b32.xlu0 %v1130_v0, %s1063_s19 }
  0x3f   : > { %353 = vrot.lane.b32.xlu1 %v1140_v3, %s1064_s20  ;;  %351 = vrot.lane.b32.xlu0 %v1132_v1, %s1064_s20 }
  0x43   : > { %357 = vrot.lane.b32.xlu1 %v1138_v2, %s1064_s20  ;;  %355 = vrot.lane.b32.xlu0 %v1130_v0, %s1064_s20 }
  0x47   : > { %564 = vrot.lane.b32.xlu1 %v1140_v3, %s1065_s23  ;;  %562 = vrot.lane.b32.xlu0 %v1132_v1, %s1065_s23 }
  0x4b   : > { %568 = vrot.lane.b32.xlu1 %v1138_v2, %s1065_s23  ;;  %566 = vrot.lane.b32.xlu0 %v1130_v0, %s1065_s23  ;;  %v1006_v2 = vld [vmem:[%s1503_s5 + $0x2] ss:$8 sm:$0x3] }
  0x81   : > { %v537_v14 = vpop.permute.xlu1 %536  ;;  %v533_v15 = vpop.permute.xlu0 %532 }
  0x82   : > { %v541_v18 = vsel %vm540_vm1, %v533_v15, %v537_v14  ;;  %v543_v19 = vsel %vm540_vm1, %v537_v14, %v533_v15  ;;  %v1294_v14 = vrot.slane %v1007_v62, %v1218_v11  ;;  %v1297_v15 = vrot.slane %v1007_v62, %v1221_v12 }
  0x83   : > { %v558_v24 = vmul.f32 %v1228_v16, %v541_v18  ;;  %v559_v26 = vmul.f32 %v1231_v17, %v543_v19 }
  0x85   : > { %v539_v20 = vpop.permute.xlu1 %538  ;;  %v535_v21 = vpop.permute.xlu0 %534 }
  0x86   : > { %v542_v22 = vsel %vm540_vm1, %v535_v21, %v539_v20  ;;  %v544_v23 = vsel %vm540_vm1, %v539_v20, %v535_v21 }
  0x87   : > { %v560_v25 = vmul.f32 %v1228_v16, %v542_v22  ;;  %v561_v27 = vmul.f32 %v1231_v17, %v544_v23 }
  0x89   : > { %v505_v29 = vpop.permute.xlu1 %504  ;;  %v503_v30 = vpop.permute.xlu0 %502  ;;  %v607_v31 = vpack.c.bf16 %v561_v27, %v559_v26  ;;  %v606_v32 = vpack.c.bf16 %v560_v25, %v558_v24 }
  0x8b   : > { %621 = vmatprep.subr.bf16.mxu0 %v607_v31  ;;  %v1325_v31 = vrot.slane %v1006_v2, %v1221_v12 }
  0x8c   : > { %622 = vmatpush1.bf16.msra.mxu0 %v606_v32 }
  0x8d   : > { %v509_v35 = vpop.permute.xlu1 %508  ;;  %v507_v36 = vpop.permute.xlu0 %506 }
  0x8e   : > { %v512_v37 = vsel %vm510_vm2, %v505_v29, %v509_v35  ;;  %v514_v38 = vsel %vm510_vm2, %v509_v35, %v505_v29  ;;  %v511_v39 = vsel %vm510_vm2, %v503_v30, %v507_v36  ;;  %v513_v40 = vsel %vm510_vm2, %v507_v36, %v503_v30 }
  0x8f   : > { %v530_v41 = vmul.f32 %v1250_v33, %v512_v37  ;;  %v531_v42 = vmul.f32 %v1253_v34, %v514_v38  ;;  %v528_v43 = vmul.f32 %v1250_v33, %v511_v39  ;;  %v529_v44 = vmul.f32 %v1253_v34, %v513_v40 }
  0x90   : > { %v1322_v30 = vrot.slane %v1006_v2, %v1218_v11  ;;  %v1011_v2 = vld [vmem:[%s1503_s5 + $0x10] ss:$8 sm:$0x3] }
  0x91   : > { %v475_v46 = vpop.permute.xlu1 %474  ;;  %v473_v47 = vpop.permute.xlu0 %472  ;;  %v605_v48 = vpack.c.bf16 %v531_v42, %v529_v44  ;;  %v604_v49 = vpack.c.bf16 %v530_v41, %v528_v43  ;;  %v1005_v41 = vld [vmem:[%s1503_s5 + $0x1] ss:$8 sm:$0x3] }
  0x93   : > { %623 = vmatprep.subr.bf16.mxu0 %v605_v48 }
  0x94   : > { %624 = vmatpush1.bf16.msra.mxu0 %v604_v49 }
  0x95   : > { %v479_v52 = vpop.permute.xlu1 %478  ;;  %v477_v53 = vpop.permute.xlu0 %476 }
  0x96   : > { %v482_v54 = vsel %vm480_vm3, %v475_v46, %v479_v52  ;;  %v484_v55 = vsel %vm480_vm3, %v479_v52, %v475_v46  ;;  %v481_v56 = vsel %vm480_vm3, %v473_v47, %v477_v53  ;;  %v483_v57 = vsel %vm480_vm3, %v477_v53, %v473_v47 }
  0x97   : > { %v500_v58 = vmul.f32 %v1272_v50, %v482_v54  ;;  %v501_v59 = vmul.f32 %v1275_v51, %v484_v55  ;;  %v498_v60 = vmul.f32 %v1272_v50, %v481_v56  ;;  %v499_v61 = vmul.f32 %v1275_v51, %v483_v57 }
  0x98   : > { %v1344_v46 = vrot.slane %v1005_v41, %v1218_v11  ;;  %v1347_v47 = vrot.slane %v1005_v41, %v1221_v12 }
  0x99   : > { %v445_v63 = vpop.permute.xlu1 %444  ;;  %v443_v7 = vpop.permute.xlu0 %442  ;;  %v603_v8 = vpack.c.bf16 %v501_v59, %v499_v61  ;;  %v602_v13 = vpack.c.bf16 %v500_v58, %v498_v60  ;;  %v366_v60 = vld [vmem:[%s1503_s5] ss:$8 sm:$0x3] }
  0x9b   : > { %625 = vmatprep.subr.bf16.mxu0 %v603_v8  ;;  %v1366_v8 = vrot.slane %v366_v60, %v1218_v11 }
  0x9c   : > { %626 = vmatpush1.bf16.msra.mxu0 %v602_v13  ;;  %v1369_v13 = vrot.slane %v366_v60, %v1221_v12 }
  0x9d   : > { %v449_v18 = vpop.permute.xlu1 %448  ;;  %v447_v19 = vpop.permute.xlu0 %446  ;;  %627 = vmatprep.subr.bf16.mxu0 %v601_v4 }
  0x9e   : > { %v452_v20 = vsel %vm450_vm4, %v445_v63, %v449_v18  ;;  %v454_v21 = vsel %vm450_vm4, %v449_v18, %v445_v63  ;;  %v451_v22 = vsel %vm450_vm4, %v443_v7, %v447_v19  ;;  %v453_v23 = vsel %vm450_vm4, %v447_v19, %v443_v7 }
  0x9f   : > { %v470_v24 = vmul.f32 %v1294_v14, %v454_v21  ;;  %v471_v25 = vmul.f32 %v1297_v15, %v452_v20  ;;  %v468_v26 = vmul.f32 %v1294_v14, %v453_v23  ;;  %v469_v0 = vmul.f32 %v1297_v15, %v451_v22 }
  0xa0   : > { %628 = vmatpush1.bf16.msra.mxu0 %v600_v5 }
  0xa1   : > { %v415_v4 = vpop.permute.xlu1 %414  ;;  %v413_v27 = vpop.permute.xlu0 %412  ;;  %v599_v28 = vpack.c.bf16 %v471_v25, %v469_v0  ;;  %v598_v29 = vpack.c.bf16 %v470_v24, %v468_v26 }
  0xa3   : > { %629 = vmatprep.subr.bf16.mxu0 %v599_v28 }
  0xa4   : > { %630 = vmatpush1.bf16.msra.mxu0 %v598_v29 }
  0xa5   : > { %v419_v1 = vpop.permute.xlu1 %418  ;;  %v417_v3 = vpop.permute.xlu0 %416 }
  0xa6   : > { %v422_v5 = vsel %vm420_vm5, %v415_v4, %v419_v1  ;;  %v424_v32 = vsel %vm420_vm5, %v419_v1, %v415_v4  ;;  %v421_v35 = vsel %vm420_vm5, %v413_v27, %v417_v3  ;;  %v423_v36 = vsel %vm420_vm5, %v417_v3, %v413_v27 }
  0xa7   : > { %v440_v37 = vmul.f32 %v1322_v30, %v424_v32  ;;  %v441_v38 = vmul.f32 %v1325_v31, %v422_v5  ;;  %v438_v39 = vmul.f32 %v1322_v30, %v423_v36  ;;  %v439_v40 = vmul.f32 %v1325_v31, %v421_v35 }
  0xa8   : > { %v1388_v1 = vrot.slane %v1011_v2, %v1218_v11  ;;  %v1391_v3 = vrot.slane %v1011_v2, %v1221_v12 }
  0xa9   : > { %v385_v42 = vpop.permute.xlu1 %384  ;;  %v383_v43 = vpop.permute.xlu0 %382  ;;  %v597_v44 = vpack.c.bf16 %v441_v38, %v439_v40  ;;  %v596_v45 = vpack.c.bf16 %v440_v37, %v438_v39 }
  0xab   : > { %631 = vmatprep.subr.bf16.mxu0 %v597_v44 }
  0xac   : > { %632 = vmatpush1.bf16.msra.mxu0 %v596_v45 }
  0xad   : > { %v389_v48 = vpop.permute.xlu1 %388  ;;  %v387_v49 = vpop.permute.xlu0 %386 }
  0xae   : > { %v392_v52 = vsel %vm390_vm6, %v385_v42, %v389_v48  ;;  %v394_v53 = vsel %vm390_vm6, %v389_v48, %v385_v42  ;;  %v391_v54 = vsel %vm390_vm6, %v383_v43, %v387_v49  ;;  %v393_v55 = vsel %vm390_vm6, %v387_v49, %v383_v43 }
  0xaf   : > { %v410_v56 = vmul.f32 %v1344_v46, %v394_v53  ;;  %v411_v57 = vmul.f32 %v1347_v47, %v392_v52  ;;  %v408_v58 = vmul.f32 %v1344_v46, %v393_v55  ;;  %v409_v59 = vmul.f32 %v1347_v47, %v391_v54 }
  0xb0   : > { %v1012_v43 = vcombine.low %v1201_v6, %v1201_v6 }
  0xb1   : > { %v354_v61 = vpop.permute.xlu1 %353  ;;  %v352_v62 = vpop.permute.xlu0 %351  ;;  %v595_v63 = vpack.c.bf16 %v411_v57, %v409_v59  ;;  %v594_v7 = vpack.c.bf16 %v410_v56, %v408_v58 }
  0xb3   : > { %633 = vmatprep.subr.bf16.mxu0 %v595_v63 }
  0xb4   : > { %634 = vmatpush1.bf16.msra.mxu0 %v594_v7 }
  0xb5   : > { %v358_v18 = vpop.permute.xlu1 %357  ;;  %v356_v19 = vpop.permute.xlu0 %355 }
  0xb6   : > { %v363_v20 = vsel %vm361_vm7, %v354_v61, %v358_v18  ;;  %v365_v21 = vsel %vm361_vm7, %v358_v18, %v354_v61  ;;  %v362_v22 = vsel %vm361_vm7, %v352_v62, %v356_v19  ;;  %v364_v23 = vsel %vm361_vm7, %v356_v19, %v352_v62 }
  0xb7   : > { %v380_v24 = vmul.f32 %v1366_v8, %v365_v21  ;;  %v381_v25 = vmul.f32 %v1369_v13, %v363_v20  ;;  %v378_v26 = vmul.f32 %v1366_v8, %v364_v23  ;;  %v379_v0 = vmul.f32 %v1369_v13, %v362_v22 }
  0xb9   : > { %v565_v4 = vpop.permute.xlu1 %564  ;;  %v563_v27 = vpop.permute.xlu0 %562  ;;  %v593_v28 = vpack.c.bf16 %v381_v25, %v379_v0  ;;  %v592_v29 = vpack.c.bf16 %v380_v24, %v378_v26  ;;  %v1066_v25 = vmov 0  }
  0xba   : > { %805 = vmatprep.mubr.bf16.mxu1 %v1066_v25  ;;  %1043 = vset.pattern.permute.xlu0 %v1066_v25 }
  0xbb   : > { %635 = vmatprep.subr.bf16.mxu0 %v593_v28 }
  0xbc   : > { %636 = vmatpush1.bf16.msra.mxu0 %v592_v29 }
  0xbd   : > { %v569_v5 = vpop.permute.xlu1 %568  ;;  %v567_v32 = vpop.permute.xlu0 %566 }
  0xbe   : > { %v572_v35 = vsel %vm570_vm8, %v565_v4, %v569_v5  ;;  %v574_v36 = vsel %vm570_vm8, %v569_v5, %v565_v4  ;;  %v571_v37 = vsel %vm570_vm8, %v563_v27, %v567_v32  ;;  %v573_v38 = vsel %vm570_vm8, %v567_v32, %v563_v27 }
  0xbf   : > { %v590_v11 = vmul.f32 %v1388_v1, %v572_v35  ;;  %v591_v12 = vmul.f32 %v1391_v3, %v574_v36  ;;  %v588_v39 = vmul.f32 %v1388_v1, %v571_v37  ;;  %v589_v40 = vmul.f32 %v1391_v3, %v573_v38 }
  0xc1   : > { %v609_v41 = vpack.c.bf16 %v591_v12, %v589_v40  ;;  %v608_v42 = vpack.c.bf16 %v590_v11, %v588_v39 }
  0xc3   : > { %651 = vmatprep.subr.bf16.mxu0 %v609_v41 }
  0xc4   : > { %652 = vmatpush2.bf16.msra.mxu0 %v608_v42 }
  0xc7   : > { %654 = vmatmul.mubr.bf16.vlgmr.msra.gmra.mxu0 %v1012_v43 }
 0x187   : > { %v655_v44 = vpop.f32.mrf.mxu0 }
 0x188   : > { %v665_v49 = vmul.f32 %v655_v44, %v655_v44 }
 0x189   : > { %v657_v45 = vpop.f32.mrf.mxu0 }
 0x18a   : > { %v662_v48 = vadd.f32 %v657_v45, %v655_v44  ;;  %v666_v52 = vmul.f32 %v657_v45, %v657_v45 }
 0x18b   : > { %v659_v53 = vpop.f32.mrf.mxu0 }
 0x18c   : > { %663 = vadd.xlane.f32.xlu0 %v662_v48  ;;  %v667_v54 = vadd.f32 %v666_v52, %v665_v49 }
 0x18d   : > { %v660_v55 = vpop.f32.mrf.mxu0 }
 0x18e   : > { %668 = vadd.xlane.f32.xlu1 %v667_v54 }
 0x215   : > { %v664_v56 = vpop.xlane.xlu0 %663 }
 0x216   : > { %v670_v57 = vmul.f32 0.00390625, %v664_v56 }
 0x217   : > { %v669_v58 = vpop.xlane.xlu1 %668 }
 0x218   : > { %v671_v59 = vmul.f32 0.00390625, %v669_v58  ;;  %v672_v60 = vmul.f32 %v670_v57, %v670_v57  ;;  %v675_v63 = vsub.f32 %v655_v44, %v670_v57  ;;  %v676_v7 = vsub.f32 %v657_v45, %v670_v57 }
 0x21a   : > { %v673_v61 = vsub.f32 %v671_v59, %v672_v60 }
 0x21c   : > { %v674_v62 = vmax.f32 %v673_v61, 0.0 }
 0x21e   : > { %v677_v6 = vadd.f32 1e-05, %v674_v62 }
 0x220   : > { %1046 = vrsqrt.f32 %v677_v6 }
 0x22d   : > { %v1047_v18 = vpop.eup %1046 }
 0x22e   : > { %v679_v19 = vmul.f32 %v1047_v18, %v675_v63  ;;  %v680_v20 = vmul.f32 %v1047_v18, %v676_v7 }
 0x230   : > { %v683_v21 = vmul.f32 0.2, %v679_v19  ;;  %v684_v22 = vmul.f32 0.2, %v680_v20  ;;  %vm682_vm9 = vcmp.ge.f32.partialorder %v680_v20, 0.0  ;;  %vm681_vm10 = vcmp.ge.f32.partialorder %v679_v19, 0.0 }
 0x232   : > { %v686_v23 = vsel %vm682_vm9, %v680_v20, %v684_v22  ;;  %v685_v24 = vsel %vm681_vm10, %v679_v19, %v683_v21 }
 0x233   : > { %745 = vrot.lane.b32.xlu1 %v686_v23, %s1065_s23  ;;  %743 = vrot.lane.b32.xlu0 %v685_v24, %s1065_s23 }
 0x237   : > { %729 = vrot.lane.b32.xlu1 %v686_v23, %s1059_s15  ;;  %727 = vrot.lane.b32.xlu0 %v685_v24, %s1059_s15 }
 0x23b   : > { %737 = vrot.lane.b32.xlu1 %v686_v23, %s1058_s14  ;;  %735 = vrot.lane.b32.xlu0 %v685_v24, %s1058_s14 }
 0x23f   : > { %721 = vrot.lane.b32.xlu1 %v686_v23, %s1060_s16  ;;  %719 = vrot.lane.b32.xlu0 %v685_v24, %s1060_s16 }
 0x243   : > { %705 = vrot.lane.b32.xlu1 %v686_v23, %s1062_s18  ;;  %703 = vrot.lane.b32.xlu0 %v685_v24, %s1062_s18 }
 0x247   : > { %713 = vrot.lane.b32.xlu1 %v686_v23, %s1061_s17  ;;  %711 = vrot.lane.b32.xlu0 %v685_v24, %s1061_s17 }
 0x24b   : > { %689 = vrot.lane.b32.xlu1 %v686_v23, %s1064_s20  ;;  %687 = vrot.lane.b32.xlu0 %v685_v24, %s1064_s20  ;;  %s1023_s20 = sshll.u32 %s1508_s28, 2 }
 0x24c   : > { %s340_s9 = scalar_lea.vmem %s1500_s2, %s1023_s20  ;;  %s345_s12 = scalar_lea.vmem %s1506_s8, %s1023_s20 }
 0x24f   : > { %697 = vrot.lane.b32.xlu1 %v686_v23, %s1063_s19  ;;  %695 = vrot.lane.b32.xlu0 %v685_v24, %s1063_s19 }
 0x2a5   : > { %v746_v26 = vpop.permute.xlu1 %745  ;;  %v744_v0 = vpop.permute.xlu0 %743 }
 0x2a6   : > { %v747_v2 = vsel %vm570_vm8, %v744_v0, %v746_v26  ;;  %v748_v4 = vsel %vm570_vm8, %v746_v26, %v744_v0 }
 0x2a7   : > { %v749_v27 = vmul.f32 %v747_v2, %v1388_v1  ;;  %v750_v28 = vmul.f32 %v748_v4, %v1391_v3  ;;  %v761_v2 = vld [vmem:[%s1502_s4] sm:$0xf] }
 0x2a9   : > { %v730_v29 = vpop.permute.xlu1 %729  ;;  %v728_v5 = vpop.permute.xlu0 %727  ;;  %v760_v32 = vpack.c.bf16 %v750_v28, %v750_v28  ;;  %v759_v35 = vpack.c.bf16 %v749_v27, %v749_v27 }
 0x2aa   : > { %v731_v37 = vsel %vm510_vm2, %v728_v5, %v730_v29  ;;  %v732_v38 = vsel %vm510_vm2, %v730_v29, %v728_v5  ;;  %v842_v29 = vld [vmem:[%s1505_s7] sm:$0x3] }
 0x2ab   : > { %1015 = vmatprep.subr.msk.bf16.mxu1 %vm766_vm11, %v760_v32  ;;  %v768_v36 = vsel %vm766_vm11, %v759_v35, 0  ;;  %v733_v39 = vmul.f32 %v731_v37, %v1250_v33  ;;  %v734_v40 = vmul.f32 %v732_v38, %v1253_v34 }
 0x2ac   : > { %780 = vmatpush1.bf16.msra.mxu1 %v768_v36 }
 0x2ad   : > { %v738_v11 = vpop.permute.xlu1 %737  ;;  %v736_v1 = vpop.permute.xlu0 %735 }
 0x2ae   : > { %v739_v3 = vsel %vm540_vm1, %v736_v1, %v738_v11  ;;  %v740_v12 = vsel %vm540_vm1, %v738_v11, %v736_v1 }
 0x2af   : > { %v741_v41 = vmul.f32 %v739_v3, %v1228_v16  ;;  %v742_v42 = vmul.f32 %v740_v12, %v1231_v17 }
 0x2b1   : > { %v722_v43 = vpop.permute.xlu1 %721  ;;  %v720_v44 = vpop.permute.xlu0 %719  ;;  %v758_v45 = vpack.c.bf16 %v742_v42, %v734_v40  ;;  %v757_v48 = vpack.c.bf16 %v741_v41, %v733_v39 }
 0x2b2   : > { %v723_v49 = vsel %vm480_vm3, %v720_v44, %v722_v43  ;;  %v724_v52 = vsel %vm480_vm3, %v722_v43, %v720_v44 }
 0x2b3   : > { %v725_v53 = vmul.f32 %v723_v49, %v1272_v50  ;;  %v726_v33 = vmul.f32 %v724_v52, %v1275_v51  ;;  %781 = vmatprep.subr.bf16.mxu1 %v758_v45  ;;  %v839_v52 = vld [vmem:[%s1504_s6] sm:$0x1] }
 0x2b4   : > { %782 = vmatpush1.bf16.msra.mxu1 %v757_v48 }
 0x2b5   : > { %v706_v34 = vpop.permute.xlu1 %705  ;;  %v704_v16 = vpop.permute.xlu0 %703  ;;  %v756_v54 = vpack.c.bf16 %v726_v33, %v686_v23  ;;  %v755_v17 = vpack.c.bf16 %v725_v53, %v685_v24  ;;  %v1067_v53 = vmov 1983009808  }
 0x2b6   : > { %v707_v55 = vsel %vm420_vm5, %v704_v16, %v706_v34  ;;  %v708_v56 = vsel %vm420_vm5, %v706_v34, %v704_v16  ;;  %v904_v33 = vunpack.c.l.s4 %v1067_v53 }
 0x2b7   : > { %783 = vmatprep.subr.bf16.mxu1 %v756_v54  ;;  %v709_v59 = vmul.f32 %v708_v56, %v1322_v30  ;;  %v710_v60 = vmul.f32 %v707_v55, %v1325_v31 }
 0x2b8   : > { %784 = vmatpush1.bf16.msra.mxu1 %v755_v17  ;;  %v905_v34 = vunpack.c.0.s8 %v904_v33 }
 0x2b9   : > { %v714_v57 = vpop.permute.xlu1 %713  ;;  %v712_v58 = vpop.permute.xlu0 %711 }
 0x2ba   : > { %v715_v50 = vsel %vm450_vm4, %v712_v58, %v714_v57  ;;  %v716_v51 = vsel %vm450_vm4, %v714_v57, %v712_v58  ;;  %v908_v55 = vsub.s32 %v905_v34, %v1213_v9 }
 0x2bb   : > { %v717_v61 = vmul.f32 %v716_v51, %v1294_v14  ;;  %v718_v62 = vmul.f32 %v715_v50, %v1297_v15  ;;  %v899_v51 = vld [vmem:[%s340_s9] sm:$0xf] }
 0x2bd   : > { %v690_v6 = vpop.permute.xlu1 %689  ;;  %v688_v63 = vpop.permute.xlu0 %687  ;;  %v754_v7 = vpack.c.bf16 %v718_v62, %v710_v60  ;;  %v753_v18 = vpack.c.bf16 %v717_v61, %v709_v59 }
 0x2be   : > { %v691_v19 = vsel %vm361_vm7, %v688_v63, %v690_v6  ;;  %v692_v20 = vsel %vm361_vm7, %v690_v6, %v688_v63 }
 0x2bf   : > { %785 = vmatprep.subr.bf16.mxu1 %v754_v7  ;;  %v693_v15 = vmul.f32 %v692_v20, %v1366_v8  ;;  %v694_v22 = vmul.f32 %v691_v19, %v1369_v13 }
 0x2c0   : > { %786 = vmatpush1.bf16.msra.mxu1 %v753_v18 }
 0x2c1   : > { %v698_v21 = vpop.permute.xlu1 %697  ;;  %v696_v30 = vpop.permute.xlu0 %695 }
 0x2c2   : > { %v699_v31 = vsel %vm390_vm6, %v696_v30, %v698_v21  ;;  %v700_v14 = vsel %vm390_vm6, %v698_v21, %v696_v30 }
 0x2c3   : > { %v701_v23 = vmul.f32 %v700_v14, %v1344_v46  ;;  %v702_v24 = vmul.f32 %v699_v31, %v1347_v47 }
 0x2c5   : > { %v752_v26 = vpack.c.bf16 %v702_v24, %v694_v22  ;;  %v751_v0 = vpack.c.bf16 %v701_v23, %v693_v15 }
 0x2c7   : > { %787 = vmatprep.subr.bf16.mxu1 %v752_v26 }
 0x2c8   : > { %788 = vmatpush1.bf16.msra.mxu1 %v751_v0 }
 0x2cb   : > { %1016 = vmatmul.mubr.msk.bf16.vlgmr.msra.gmra.mxu1 %vm762_vm12, %v761_v2 }
 0x2cc   : > { %890 = vmatprep.mubr.bf16.mxu1 %v1066_v25 }
 0x38b   : > { %v807_v10 = vpop.f32.mrf.mxu1 }
 0x38c   : > { %v817_v13 = vmul.f32 %v807_v10, %v807_v10 }
 0x38d   : > { %v809_v8 = vpop.f32.mrf.mxu1 }
 0x38e   : > { %v814_v4 = vadd.f32 %v809_v8, %v807_v10  ;;  %v818_v27 = vmul.f32 %v809_v8, %v809_v8 }
 0x38f   : > { %v811_v46 = vpop.f32.mrf.mxu1 }
 0x390   : > { %815 = vadd.xlane.f32.xlu0 %v814_v4  ;;  %v819_v47 = vadd.f32 %v818_v27, %v817_v13 }
 0x391   : > { %v812_v28 = vpop.f32.mrf.mxu1 }
 0x392   : > { %820 = vadd.xlane.f32.xlu1 %v819_v47 }
 0x3a6   : > { %845 = vperm.xlu0 %1043, %v842_v29  }
 0x419   : > { %v816_v5 = vpop.xlane.xlu0 %815 }
 0x41a   : > { %v822_v32 = vmul.f32 0.00390625, %v816_v5 }
 0x41b   : > { %v821_v35 = vpop.xlane.xlu1 %820 }
 0x41c   : > { %v823_v36 = vmul.f32 0.00390625, %v821_v35  ;;  %v824_v25 = vmul.f32 %v822_v32, %v822_v32  ;;  %v827_v1 = vsub.f32 %v807_v10, %v822_v32  ;;  %v828_v3 = vsub.f32 %v809_v8, %v822_v32 }
 0x41e   : > { %v825_v37 = vsub.f32 %v823_v36, %v824_v25 }
 0x420   : > { %v826_v38 = vmax.f32 %v825_v37, 0.0 }
 0x421   : > { %v846_v54 = vpop.permute.xlu0 %845 }
 0x422   : > { %v829_v11 = vadd.f32 1e-05, %v826_v38 }
 0x424   : > { %1048 = vrsqrt.f32 %v829_v11 }
 0x431   : > { %v1049_v12 = vpop.eup %1048 }
 0x432   : > { %v832_v39 = vmul.f32 %v1049_v12, %v828_v3  ;;  %v831_v40 = vmul.f32 %v1049_v12, %v827_v1 }
 0x434   : > { %vm834_vm13 = vcmp.ge.f32.partialorder %v832_v39, 0.0  ;;  %v836_v41 = vmul.f32 0.2, %v832_v39  ;;  %vm833_vm14 = vcmp.ge.f32.partialorder %v831_v40, 0.0  ;;  %v835_v42 = vmul.f32 0.2, %v831_v40 }
 0x436   : > { %v838_v43 = vsel %vm834_vm13, %v832_v39, %v836_v41  ;;  %v837_v44 = vsel %vm833_vm14, %v831_v40, %v835_v42 }
 0x437   : > { %v841_v45 = vpack.c.bf16 %v838_v43, %v838_v43  ;;  %v840_v48 = vpack.c.bf16 %v837_v44, %v837_v44 }
 0x439   : > { %1017 = vmatprep.subr.msk.bf16.mxu1 %vm766_vm11, %v841_v45  ;;  %v853_v49 = vsel %vm766_vm11, %v840_v48, 0 }
 0x43a   : > { %873 = vmatpush1.bf16.msra.mxu1 %v853_v49 }
 0x43d   : > { %1018 = vmatmul.mubr.msk.bf16.vlgmr.msra.gmra.mxu1 %vm848_vm15, %v839_v52 }
 0x4fd   : > { %v892_v16 = vpop.f32.mrf.mxu1 }
 0x4fe   : > { %v893_v56 = vadd.f32 %v892_v16, %v846_v54 }
 0x4ff   : > { %v894_v17 = vpop.f32.mrf.mxu1 }
 0x500   : > { %v895_v57 = vadd.f32 %v894_v17, %v846_v54 }
 0x501   : > { %v896_v58 = vpop.f32.mrf.mxu1 }
 0x502   : > { %v902_v50 = vcombine.low %v893_v56, %v895_v57 }
 0x503   : > { %v897_v59 = vpop.f32.mrf.mxu1 }
 0x504   : > { %v909_v60 = vrot.slane %v902_v50, %v908_v55 }
 0x506   : > { %v911_v61 = vsub.f32 %v899_v51, %v909_v60 }
 0x508   : > { %912 = vst [vmem:[%s345_s12] sm:$0xf] %v911_v61 }
 0x509 PF: > { %s18_s27 = sadd.s32 1, %s1056_s27  }
 0x50a   : > { %p15_p4 = scmp.ge.s32.totalorder %s18_s27, 4  }
 0x50c   :  { %17 = sbr.rel (!%p15_p4) target bundleno = 1 (0x1), region = 95 }

// kernel: varnet_forward.21
= control target key start
LH: loop header
LB: loop body
LE: loop exit
PB: predicated region body
PF: predicated region fallthrough
CT: control target
= control target key end

     0   :  { %s2283_s19 = smov 0   ;;  %s2889_s0 = inlined_call_operand.vmem [shape: f32[2,2,256], index: 0, kind: input, shape index: {}]   ;;  %s2890_s1 = inlined_call_operand.vmem [shape: f32[2,2,256], index: 1, kind: input, shape index: {}]   ;;  %s2891_s2 = inlined_call_operand.vmem [shape: f32[2,2,4,256], index: 2, kind: input, shape index: {}]   ;;  %s2892_s3 = inlined_call_operand.vmem [shape: bf16[256,512], index: 3, kind: input, shape index: {}]   ;;  %s2893_s4 = inlined_call_operand.vmem [shape: bf16[8,18], index: 4, kind: input, shape index: {}]   ;;  %s2894_s5 = inlined_call_operand.vmem [shape: bf16[8,72], index: 5, kind: input, shape index: {}]   ;;  %s2895_s6 = inlined_call_operand.vmem [shape: f32[9,256], index: 6, kind: input, shape index: {}]   ;;  %s2896_s7 = inlined_call_operand.vmem [shape: bf16[256,64], index: 7, kind: input, shape index: {}]   ;;  %s2897_s8 = inlined_call_operand.<no memory space> [shape: f32[1,1], index: 8, kind: input, shape index: {}]   ;;  %s2898_s9 = inlined_call_operand.vmem [shape: f32[2,2,256], index: 9, kind: output, shape index: {0}]   ;;  %s2899_s10 = inlined_call_operand.vmem [shape: f32[2,8,256], index: 10, kind: output, shape index: {1}]   ;;  %s2900_s11 = inlined_call_operand.vmem [shape: f32[2,8,64], index: 11, kind: output, shape index: {2}]  }
   0x1   :  { %17 = sst [smem:[#allocation2]] %s2897_s8 }
   0x2 LB: > { %s1929_s20 = sadd.s32 4294967295, %s2207_s19   ;;  %p1933_p0 = scmp.ge.s32.totalorder %s2207_s19, 1  ;;  %s2207_s19 = sphi %s2283_s19, %s23_s19  }
   0x3   : > { %p363_p1 = scmp.lt.s32.totalorder %s2207_s19, 3 }
   0x5   : > { %p364_p2 = pnand %p1933_p0, %p363_p1 }
   0x6   : > { %p422_p3 = scmp.lt.s32.totalorder (!%p364_p2), %s1929_s20, 1  ;;  %s456_s22 = sld [smem:[#allocation2]] (!%p364_p2) }
   0x7   : > { %367 = sbr.rel (%p364_p2) target bundleno = 1549 (0x60d), region = 56  ;;  %s2211_s25 = smov (!%p364_p2), 127  }
   0x8   : > { %s2213_s26 = smov (!%p364_p2), 15   ;;  %s2214_s27 = smov (!%p364_p2), 113  }
   0x9   : > { %s2215_s28 = smov (!%p364_p2), 111   ;;  %s2217_s12 = smov (!%p364_p2), 1  }
   0xa   : > { %s2219_s13 = smov (!%p364_p2), 112  }
   0xc   : > { %v2085_v0 = vld [vmem:[%s2892_s3 + $0xe4] ss:$16 sps:$4 sm:$0xff]   ;;  %v2087_v1 = vld [vmem:[%s2892_s3 + $0xec] ss:$16 sps:$4 sm:$0xff]   ;;  %v2089_v2 = vld [vmem:[%s2892_s3 + $0xe0] ss:$16 sps:$4 sm:$0xff]   ;;  %v458_v34 = vlaneseq }
   0xd   : > { %903 = vmatprep.subr.bf16.mxu0 %v2085_v0  ;;  %v2090_v3 = vld [vmem:[%s2892_s3 + $0xe8] ss:$16 sps:$4 sm:$0xff]   ;;  %944 = vmatprep.subr.bf16.mxu1 %v2087_v1  ;;  %v2091_v4 = vld [vmem:[%s2892_s3 + $0xc4] ss:$16 sps:$4 sm:$0xff]   ;;  %v2093_v5 = vld [vmem:[%s2892_s3 + $0xcc] ss:$16 sps:$4 sm:$0xff]  }
   0xe   : > { %904 = vmatpush1.bf16.msra.mxu0 %v2089_v2  ;;  %945 = vmatpush1.bf16.msra.mxu1 %v2090_v3  ;;  %v2095_v6 = vld [vmem:[%s2892_s3 + $0xc0] ss:$16 sps:$4 sm:$0xff]   ;;  %v2096_v7 = vld [vmem:[%s2892_s3 + $0xc8] ss:$16 sps:$4 sm:$0xff]   ;;  %v2097_v8 = vld [vmem:[%s2892_s3 + $0xa4] ss:$16 sps:$4 sm:$0xff]  }
   0xf   : > { %905 = vmatprep.subr.bf16.mxu0 %v2091_v4  ;;  %946 = vmatprep.subr.bf16.mxu1 %v2093_v5  ;;  %v2099_v9 = vld [vmem:[%s2892_s3 + $0xac] ss:$16 sps:$4 sm:$0xff]   ;;  %v2101_v10 = vld [vmem:[%s2892_s3 + $0xa0] ss:$16 sps:$4 sm:$0xff]   ;;  %v2102_v11 = vld [vmem:[%s2892_s3 + $0xa8] ss:$16 sps:$4 sm:$0xff]  }
  0x10   : > { %v2103_v12 = vld [vmem:[%s2892_s3 + $0x84] ss:$16 sps:$4 sm:$0xff]   ;;  %v2105_v13 = vld [vmem:[%s2892_s3 + $0x8c] ss:$16 sps:$4 sm:$0xff]   ;;  %v2107_v14 = vld [vmem:[%s2892_s3 + $0x80] ss:$16 sps:$4 sm:$0xff]  }
  0x11   : > { %v2108_v15 = vld [vmem:[%s2892_s3 + $0x88] ss:$16 sps:$4 sm:$0xff]   ;;  %v2109_v16 = vld [vmem:[%s2892_s3 + $0x64] ss:$16 sps:$4 sm:$0xff]   ;;  %v2111_v17 = vld [vmem:[%s2892_s3 + $0x6c] ss:$16 sps:$4 sm:$0xff]  }
  0x12   : > { %906 = vmatpush1.bf16.msra.mxu0 %v2095_v6  ;;  %947 = vmatpush1.bf16.msra.mxu1 %v2096_v7  ;;  %v2113_v18 = vld [vmem:[%s2892_s3 + $0x60] ss:$16 sps:$4 sm:$0xff]   ;;  %v2114_v19 = vld [vmem:[%s2892_s3 + $0x68] ss:$16 sps:$4 sm:$0xff]   ;;  %v2115_v20 = vld [vmem:[%s2892_s3 + $0x44] ss:$16 sps:$4 sm:$0xff]  }
  0x13   : > { %907 = vmatprep.subr.bf16.mxu0 %v2097_v8  ;;  %948 = vmatprep.subr.bf16.mxu1 %v2099_v9  ;;  %v2117_v21 = vld [vmem:[%s2892_s3 + $0x4c] ss:$16 sps:$4 sm:$0xff]   ;;  %v2119_v22 = vld [vmem:[%s2892_s3 + $0x40] ss:$16 sps:$4 sm:$0xff]   ;;  %v2120_v23 = vld [vmem:[%s2892_s3 + $0x48] ss:$16 sps:$4 sm:$0xff]  }
  0x14   : > { %v2121_v24 = vld [vmem:[%s2892_s3 + $0x24] ss:$16 sps:$4 sm:$0xff]   ;;  %v2123_v25 = vld [vmem:[%s2892_s3 + $0x2c] ss:$16 sps:$4 sm:$0xff]   ;;  %v2125_v26 = vld [vmem:[%s2892_s3 + $0x20] ss:$16 sps:$4 sm:$0xff]  }
  0x15   : > { %v2126_v27 = vld [vmem:[%s2892_s3 + $0x28] ss:$16 sps:$4 sm:$0xff]   ;;  %v2127_v28 = vld [vmem:[%s2892_s3 + $0x4] ss:$16 sps:$4 sm:$0xff]   ;;  %v2129_v29 = vld [vmem:[%s2892_s3 + $0xc] ss:$16 sps:$4 sm:$0xff]  }
  0x16   : > { %908 = vmatpush1.bf16.msra.mxu0 %v2101_v10  ;;  %949 = vmatpush1.bf16.msra.mxu1 %v2102_v11  ;;  %v2131_v30 = vld [vmem:[%s2892_s3] ss:$16 sps:$4 sm:$0xff]   ;;  %v2132_v31 = vld [vmem:[%s2892_s3 + $0x8] ss:$16 sps:$4 sm:$0xff]   ;;  %v2133_v32 = vld [vmem:[%s2892_s3 + $0x1e4] ss:$16 sps:$4 sm:$0xff]  }
  0x17   : > { %909 = vmatprep.subr.bf16.mxu0 %v2103_v12  ;;  %950 = vmatprep.subr.bf16.mxu1 %v2105_v13  ;;  %v2135_v33 = vld [vmem:[%s2892_s3 + $0x1ec] ss:$16 sps:$4 sm:$0xff]   ;;  %v2137_v35 = vld [vmem:[%s2892_s3 + $0x1e0] ss:$16 sps:$4 sm:$0xff]   ;;  %v2138_v36 = vld [vmem:[%s2892_s3 + $0x1e8] ss:$16 sps:$4 sm:$0xff]  }
  0x18   : > { %v2139_v37 = vld [vmem:[%s2892_s3 + $0x1c4] ss:$16 sps:$4 sm:$0xff]   ;;  %s2902_s20 = smov (!%p422_p3, %s1929_s20), 1  ;;  %v2141_v38 = vld [vmem:[%s2892_s3 + $0x1cc] ss:$16 sps:$4 sm:$0xff]   ;;  %v2412_v39 = vshrl.u32 %v458_v34, 7 }
  0x19   : > { %v2143_v40 = vld [vmem:[%s2892_s3 + $0x1c0] ss:$16 sps:$4 sm:$0xff]   ;;  %v2144_v41 = vld [vmem:[%s2892_s3 + $0x1c8] ss:$16 sps:$4 sm:$0xff]   ;;  %v2145_v42 = vld [vmem:[%s2892_s3 + $0x1a4] ss:$16 sps:$4 sm:$0xff]  }
  0x1a   : > { %910 = vmatpush1.bf16.msra.mxu0 %v2107_v14  ;;  %951 = vmatpush1.bf16.msra.mxu1 %v2108_v15  ;;  %s2424_s30 = sshll.u32 %s2902_s20, 2  ;;  %v2147_v43 = vld [vmem:[%s2892_s3 + $0x1ac] ss:$16 sps:$4 sm:$0xff]   ;;  %s2041_s14 = sshll.u32 %s2902_s20, 4  ;;  %v2431_v44 = vsub.s32 0, %v2412_v39  ;;  %v2434_v45 = vsub.s32 2, %v2412_v39 }
  0x1b   : > { %911 = vmatprep.subr.bf16.mxu0 %v2109_v16  ;;  %952 = vmatprep.subr.bf16.mxu1 %v2111_v17  ;;  %v2149_v46 = vld [vmem:[%s2892_s3 + $0x1a0] ss:$16 sps:$4 sm:$0xff]   ;;  %v2150_v47 = vld [vmem:[%s2892_s3 + $0x1a8] ss:$16 sps:$4 sm:$0xff]   ;;  %s426_s8 = scalar_lea.vmem %s2889_s0, %s2424_s30  ;;  %v2447_v48 = vsub.s32 1, %v2412_v39  ;;  %v2450_v49 = vsub.s32 3, %v2412_v39  ;;  %s436_s29 = scalar_lea.vmem %s2891_s2, %s2041_s14 }
  0x1c   : > { %v2151_v50 = vld [vmem:[%s2892_s3 + $0x184] ss:$16 sps:$4 sm:$0xff]   ;;  %v2153_v51 = vld [vmem:[%s2892_s3 + $0x18c] ss:$16 sps:$4 sm:$0xff]   ;;  %v2155_v52 = vld [vmem:[%s2892_s3 + $0x180] ss:$16 sps:$4 sm:$0xff]   ;;  %s431_s21 = scalar_lea.vmem %s2890_s1, %s2424_s30  ;;  %s441_s24 = scalar_lea.vmem %s2898_s9, %s2424_s30 }
  0x1d   : > { %v2156_v53 = vld [vmem:[%s2892_s3 + $0x188] ss:$16 sps:$4 sm:$0xff]   ;;  %v2469_v54 = vld [vmem:[%s426_s8] sm:$0xf]  ;;  %v2157_v55 = vld [vmem:[%s2892_s3 + $0x164] ss:$16 sps:$4 sm:$0xff]  }
  0x1e   : > { %912 = vmatpush1.bf16.msra.mxu0 %v2113_v18  ;;  %953 = vmatpush1.bf16.msra.mxu1 %v2114_v19  ;;  %v2159_v56 = vld [vmem:[%s2892_s3 + $0x16c] ss:$16 sps:$4 sm:$0xff]   ;;  %v461_v57 = vrot.slane %v2469_v54, %v2431_v44  ;;  %v465_v58 = vrot.slane %v2469_v54, %v2434_v45  ;;  %v484_v59 = vrot.slane %v2469_v54, %v2447_v48  ;;  %v2485_v61 = vld [vmem:[%s436_s29] sm:$0xff]  ;;  %vm514_vm0 = vcmask 1043456   ;;  %v2162_v3 = vld [vmem:[%s2892_s3 + $0x168] ss:$16 sps:$4 sm:$0xff]  }
  0x1f   : > { %913 = vmatprep.subr.bf16.mxu0 %v2115_v20  ;;  %954 = vmatprep.subr.bf16.mxu1 %v2117_v21  ;;  %v488_v60 = vrot.slane %v2469_v54, %v2450_v49  ;;  %v2487_v62 = vld [vmem:[%s436_s29 + $0x8] sm:$0xff]  ;;  %v2161_v2 = vld [vmem:[%s2892_s3 + $0x160] ss:$16 sps:$4 sm:$0xff]   ;;  %v2163_v5 = vld [vmem:[%s2892_s3 + $0x144] ss:$16 sps:$4 sm:$0xff]   ;;  %vm1115_vm1 = vcmp.lt.s32.totalorder %v458_v34, 256 }
  0x20   : > { %v471_v63 = vrot.slane %v461_v57, %v2431_v44  ;;  %v475_v0 = vrot.slane %v465_v58, %v2431_v44  ;;  %v494_v1 = vrot.slane %v484_v59, %v2447_v48  ;;  %v2165_v6 = vld [vmem:[%s2892_s3 + $0x14c] ss:$16 sps:$4 sm:$0xff]   ;;  %v2167_v11 = vld [vmem:[%s2892_s3 + $0x140] ss:$16 sps:$4 sm:$0xff]   ;;  %v2168_v12 = vld [vmem:[%s2892_s3 + $0x148] ss:$16 sps:$4 sm:$0xff]  }
  0x21   : > { %v498_v4 = vrot.slane %v488_v60, %v2447_v48  ;;  %v2169_v15 = vld [vmem:[%s2892_s3 + $0x124] ss:$16 sps:$4 sm:$0xff]   ;;  %v2171_v16 = vld [vmem:[%s2892_s3 + $0x12c] ss:$16 sps:$4 sm:$0xff]   ;;  %v2173_v20 = vld [vmem:[%s2892_s3 + $0x120] ss:$16 sps:$4 sm:$0xff]  }
  0x22   : > { %914 = vmatpush1.bf16.msra.mxu0 %v2119_v22  ;;  %955 = vmatpush1.bf16.msra.mxu1 %v2120_v23  ;;  %v478_v7 = vcombine.low %v471_v63, %v475_v0  ;;  %v2174_v21 = vld [vmem:[%s2892_s3 + $0x128] ss:$16 sps:$4 sm:$0xff]   ;;  %vm1150_vm2 = vcmask 1040384   ;;  %s2212_s30 = smov 16   ;;  %s2216_s29 = smov 17   ;;  %vm1366_vm10 = vcmask 1041408  }
  0x23   : > { %915 = vmatprep.subr.bf16.mxu0 %v2121_v24  ;;  %956 = vmatprep.subr.bf16.mxu1 %v2123_v25  ;;  %v501_v8 = vcombine.low %v494_v1, %v498_v4  ;;  %v2175_v24 = vld [vmem:[%s2892_s3 + $0x104] ss:$16 sps:$4 sm:$0xff]   ;;  %v2177_v25 = vld [vmem:[%s2892_s3 + $0x10c] ss:$16 sps:$4 sm:$0xff]   ;;  %vm1371_vm12 = vcmask 1045504   ;;  %vm1385_vm13 = vcmask 146432  }
  0x24   : > { %v480_v9 = vmul.f32 %v478_v7, %v2485_v61  ;;  %v506_v10 = vmul.f32 %v478_v7, %v2487_v62 }
  0x25   : > { %v503_v13 = vmul.f32 %v501_v8, %v2487_v62  ;;  %v505_v14 = vmul.f32 %v501_v8, %v2485_v61 }
  0x26   : > { %916 = vmatpush1.bf16.msra.mxu0 %v2125_v26  ;;  %957 = vmatpush1.bf16.msra.mxu1 %v2126_v27  ;;  %v2179_v27 = vld [vmem:[%s2892_s3 + $0x100] ss:$16 sps:$4 sm:$0xff]  }
  0x27   : > { %917 = vmatprep.subr.bf16.mxu0 %v2127_v28  ;;  %958 = vmatprep.subr.bf16.mxu1 %v2129_v29  ;;  %v504_v17 = vsub.f32 %v480_v9, %v503_v13  ;;  %v507_v18 = vadd.f32 %v506_v10, %v505_v14  ;;  %v2180_v28 = vld [vmem:[%s2892_s3 + $0x108] ss:$16 sps:$4 sm:$0xff]   ;;  %v453_v10 = vld [vmem:[%s431_s21] sm:$0xf] }
  0x29   : > { %v509_v19 = vcombine.high %v504_v17, %v504_v17  ;;  %v512_v22 = vcombine.low %v507_v18, %v507_v18 }
  0x2a   : > { %918 = vmatpush1.bf16.msra.mxu0 %v2131_v30  ;;  %959 = vmatpush1.bf16.msra.mxu1 %v2132_v31 }
  0x2b   : > { %919 = vmatprep.subr.bf16.mxu0 %v2133_v32  ;;  %960 = vmatprep.subr.bf16.mxu1 %v2135_v33  ;;  %v516_v23 = vsel %vm514_vm0, %v509_v19, %v507_v18  ;;  %v515_v29 = vsel %vm514_vm0, %v504_v17, %v512_v22  ;;  %v1053_v19 = vrot.slane %v453_v10, %v2431_v44 }
  0x2c   : > { %v518_v26 = vpack.c.bf16 %v516_v23, %v516_v23  ;;  %v517_v30 = vpack.c.bf16 %v515_v29, %v515_v29  ;;  %v1080_v22 = vrot.slane %v453_v10, %v2447_v48 }
  0x2e   : > { %920 = vmatpush2.bf16.msra.mxu0 %v2137_v35  ;;  %961 = vmatpush2.bf16.msra.mxu1 %v2138_v36 }
  0x2f   : > { %921 = vmatprep.subr.bf16.mxu0 %v2139_v37  ;;  %962 = vmatprep.subr.bf16.mxu1 %v2141_v38 }
  0x30   : > { %935 = vmatprep.mubr.bf16.mxu0 %v518_v26  ;;  %976 = vmatprep.mubr.bf16.mxu1 %v518_v26 }
  0x32   : > { %922 = vmatpush2.bf16.msra.mxu0 %v2143_v40  ;;  %963 = vmatpush2.bf16.msra.mxu1 %v2144_v41 }
  0x33   : > { %923 = vmatprep.subr.bf16.mxu0 %v2145_v42  ;;  %964 = vmatprep.subr.bf16.mxu1 %v2147_v43 }
  0x36   : > { %924 = vmatpush2.bf16.msra.mxu0 %v2149_v46  ;;  %965 = vmatpush2.bf16.msra.mxu1 %v2150_v47 }
  0x37   : > { %925 = vmatprep.subr.bf16.mxu0 %v2151_v50  ;;  %966 = vmatprep.subr.bf16.mxu1 %v2153_v51 }
  0x3a   : > { %926 = vmatpush2.bf16.msra.mxu0 %v2155_v52  ;;  %967 = vmatpush2.bf16.msra.mxu1 %v2156_v53 }
  0x3b   : > { %927 = vmatprep.subr.bf16.mxu0 %v2157_v55  ;;  %968 = vmatprep.subr.bf16.mxu1 %v2159_v56 }
  0x3e   : > { %928 = vmatpush2.bf16.msra.mxu0 %v2161_v2  ;;  %969 = vmatpush2.bf16.msra.mxu1 %v2162_v3 }
  0x3f   : > { %929 = vmatprep.subr.bf16.mxu0 %v2163_v5  ;;  %970 = vmatprep.subr.bf16.mxu1 %v2165_v6 }
  0x42   : > { %930 = vmatpush2.bf16.msra.mxu0 %v2167_v11  ;;  %971 = vmatpush2.bf16.msra.mxu1 %v2168_v12 }
  0x43   : > { %931 = vmatprep.subr.bf16.mxu0 %v2169_v15  ;;  %972 = vmatprep.subr.bf16.mxu1 %v2171_v16 }
  0x46   : > { %932 = vmatpush2.bf16.msra.mxu0 %v2173_v20  ;;  %973 = vmatpush2.bf16.msra.mxu1 %v2174_v21  ;;  %v2209_v20 = vmov 1983009808  }
  0x47   : > { %933 = vmatprep.subr.bf16.mxu0 %v2175_v24  ;;  %974 = vmatprep.subr.bf16.mxu1 %v2177_v25  ;;  %v1069_v21 = vunpack.c.l.s4 %v2209_v20  ;;  %v2014_v20 = vld [vmem:[%s2895_s6 + $0x6] ss:$8 sm:$0x3] }
  0x4a   : > { %934 = vmatpush2.bf16.msra.mxu0 %v2179_v27  ;;  %975 = vmatpush2.bf16.msra.mxu1 %v2180_v28  ;;  %v1057_v27 = vrot.slane %v453_v10, %v2434_v45  ;;  %v1084_v28 = vrot.slane %v453_v10, %v2450_v49 }
  0x4d   : > { %936 = vmatmul.mubr.bf16.vlgmr.msra.gmra.mxu0 %v517_v30  ;;  %977 = vmatmul.mubr.bf16.vlgmr.msra.gmra.mxu1 %v517_v30 }
 0x10d   : > { %v937_v31 = vpop.f32.mrf.mxu0  ;;  %v978_v32 = vpop.f32.mrf.mxu1 }
 0x10e   : > { %v995_v33 = vrot.slane %v937_v31, 4  ;;  %v987_v35 = vrot.slane %v978_v32, 4 }
 0x10f   : > { %v939_v36 = vpop.f32.mrf.mxu0  ;;  %v980_v37 = vpop.f32.mrf.mxu1 }
 0x110   : > { %v996_v38 = vrot.slane %v939_v36, 4  ;;  %v988_v40 = vrot.slane %v980_v37, 4  ;;  %v991_v43 = vsub.f32 %v937_v31, %v987_v35  ;;  %v999_v46 = vadd.f32 %v995_v33, %v978_v32 }
 0x111   : > { %v941_v41 = vpop.f32.mrf.mxu0  ;;  %v982_v42 = vpop.f32.mrf.mxu1  ;;  %v1070_v33 = vunpack.c.0.s8 %v1069_v21  ;;  %v2210_v35 = vmov 1966171168  }
 0x112   : > { %v992_v47 = vsub.f32 %v939_v36, %v988_v40  ;;  %v1000_v50 = vadd.f32 %v996_v38, %v980_v37  ;;  %v1106_v36 = vunpack.c.l.s4 %v2210_v35  ;;  %v1062_v42 = vstv %s456_s22 }
 0x113   : > { %v942_v51 = vpop.f32.mrf.mxu0  ;;  %v983_v52 = vpop.f32.mrf.mxu1 }
 0x114   : > { %v1003_v53 = vcombine.low %v991_v43, %v992_v47  ;;  %v1008_v55 = vcombine.low %v999_v46, %v1000_v50  ;;  %v1073_v47 = vsub.s32 %v1070_v33, %v2412_v39  ;;  %v1107_v50 = vunpack.c.0.s8 %v1106_v36 }
 0x116   : > { %v1005_v56 = vmul.f32 %v1003_v53, %v2485_v61  ;;  %v1010_v57 = vmul.f32 %v1008_v55, %v2487_v62  ;;  %v1029_v58 = vmul.f32 %v1008_v55, %v2485_v61  ;;  %v1030_v59 = vmul.f32 %v1003_v53, %v2487_v62 }
 0x118   : > { %v1011_v60 = vadd.f32 %v1010_v57, %v1005_v56  ;;  %v1031_v63 = vsub.f32 %v1029_v58, %v1030_v59 }
 0x11a   : > { %v1013_v0 = vcombine.high %v1011_v60, %v1011_v60  ;;  %v1015_v1 = vsel %vm514_vm0, %v1011_v60, 0.0  ;;  %v1033_v2 = vcombine.high %v1031_v63, %v1031_v63  ;;  %v1035_v3 = vsel %vm514_vm0, %v1031_v63, 0.0 }
 0x11b   : > { %v1016_v4 = vrot.slane %v1015_v1, 4  ;;  %v1036_v5 = vrot.slane %v1035_v3, 4  ;;  %v1110_v60 = vsub.s32 %v1107_v50, %v2412_v39 }
 0x11c   : > { %v1022_v6 = vsel %vm514_vm0, %v1013_v0, 0.0  ;;  %v1042_v61 = vsel %vm514_vm0, %v1033_v2, 0.0 }
 0x11d   : > { %v1017_v7 = vadd.f32 %v1016_v4, %v1015_v1  ;;  %v1023_v62 = vrot.slane %v1022_v6, 4  ;;  %v1037_v8 = vadd.f32 %v1036_v5, %v1035_v3  ;;  %v1043_v9 = vrot.slane %v1042_v61, 4 }
 0x11f   : > { %v1018_v11 = vrot.slane %v1017_v7, 2  ;;  %v1024_v12 = vadd.f32 %v1023_v62, %v1022_v6  ;;  %v1038_v13 = vrot.slane %v1037_v8, 2  ;;  %v1044_v14 = vadd.f32 %v1043_v9, %v1042_v61 }
 0x121   : > { %v1019_v15 = vadd.f32 %v1018_v11, %v1017_v7  ;;  %v1025_v16 = vrot.slane %v1024_v12, 2  ;;  %v1039_v17 = vadd.f32 %v1038_v13, %v1037_v8  ;;  %v1045_v18 = vrot.slane %v1044_v14, 2 }
 0x122   : > { %v2615_v13 = vand.u32 127, %v458_v34 }
 0x123   : > { %v1020_v23 = vrot.slane %v1019_v15, 1  ;;  %v1026_v24 = vadd.f32 %v1025_v16, %v1024_v12  ;;  %v1040_v25 = vrot.slane %v1039_v17, 1  ;;  %v1046_v26 = vadd.f32 %v1045_v18, %v1044_v14  ;;  %v2013_v12 = vld [vmem:[%s2895_s6 + $0x5] ss:$8 sm:$0x3] }
 0x124   : > { %v2016_v14 = vld [vmem:[%s2895_s6 + $0x10] ss:$8 sm:$0x3]  ;;  %v2624_v18 = vrot.slane %v2013_v12, %v2431_v44  ;;  %v2630_v34 = vrot.slane %v2013_v12, %v2447_v48  ;;  %vm1312_vm3 = vcmp.lt.s32.totalorder %v2615_v13, 111  ;;  %vm1246_vm4 = vcmp.lt.s32.totalorder %v2615_v13, 127 }
 0x125   : > { %v1021_v29 = vadd.f32 %v1020_v23, %v1019_v15  ;;  %v1027_v30 = vrot.slane %v1026_v24, 1  ;;  %v1041_v31 = vadd.f32 %v1040_v25, %v1039_v17  ;;  %v1047_v32 = vrot.slane %v1046_v26, 1  ;;  %v2010_v15 = vld [vmem:[%s2895_s6 + $0x1] ss:$8 sm:$0x3] }
 0x126   : > { %v2637_v21 = vrot.slane %v2016_v14, %v2431_v44  ;;  %vm1180_vm5 = vcmp.lt.s32.totalorder %v2615_v13, 16  ;;  %v2645_v23 = vrot.slane %v2010_v15, %v2431_v44  ;;  %v1162_v25 = vld [vmem:[%s2895_s6] ss:$8 sm:$0x3]  ;;  %vm1202_vm6 = vcmp.lt.s32.totalorder %v2615_v13, 15 }
 0x127   : > { %v1028_v37 = vadd.f32 %v1027_v30, %v1026_v24  ;;  %v1048_v38 = vadd.f32 %v1047_v32, %v1046_v26  ;;  %v1060_v40 = vsub.f32 %v1021_v29, %v1053_v19  ;;  %v1087_v41 = vsub.f32 %v1041_v31, %v1080_v22  ;;  %v2011_v19 = vld [vmem:[%s2895_s6 + $0x2] ss:$8 sm:$0x3] }
 0x128   : > { %v2640_v22 = vrot.slane %v2016_v14, %v2447_v48  ;;  %v2648_v24 = vrot.slane %v2010_v15, %v2447_v48  ;;  %v2655_v26 = vrot.slane %v2011_v19, %v2431_v44  ;;  %vm1268_vm7 = vcmp.lt.s32.totalorder %v2615_v13, 113 }
 0x129   : > { %v1061_v43 = vsub.f32 %v1028_v37, %v1057_v27  ;;  %v1088_v46 = vsub.f32 %v1048_v38, %v1084_v28  ;;  %v1063_v51 = vmul.f32 %v1062_v42, %v1060_v40  ;;  %v1089_v53 = vmul.f32 %v1087_v41, %v1062_v42  ;;  %v2012_v38 = vld [vmem:[%s2895_s6 + $0x3] ss:$8 sm:$0x3] }
 0x12a   : > { %v2658_v27 = vrot.slane %v2011_v19, %v2447_v48  ;;  %v2662_v30 = vrot.slane %v2014_v20, %v2431_v44  ;;  %v2665_v31 = vrot.slane %v2014_v20, %v2447_v48  ;;  %vm1159_vm8 = vcmp.lt.s32.totalorder %v2615_v13, 17 }
 0x12b   : > { %v1064_v52 = vmul.f32 %v1062_v42, %v1061_v43  ;;  %v1090_v55 = vmul.f32 %v1088_v46, %v1062_v42  ;;  %v2675_v37 = vrot.slane %v1162_v25, %v2431_v44  ;;  %v2685_v42 = vrot.slane %v1162_v25, %v2447_v48 }
 0x12c   : > { %vm1224_vm9 = vcmp.lt.s32.totalorder %v2615_v13, 1  ;;  %vm1290_vm11 = vcmp.lt.s32.totalorder %v2615_v13, 112 }
 0x12d   : > { %v1067_v56 = vcombine.low %v1063_v51, %v1064_v52  ;;  %v1093_v57 = vcombine.low %v1089_v53, %v1090_v55 }
 0x12f   : > { %v1074_v58 = vrot.slane %v1067_v56, %v1073_v47  ;;  %v1100_v59 = vrot.slane %v1093_v57, %v1073_v47  ;;  %v2697_v56 = vrot.slane %v2012_v38, %v2431_v44  ;;  %v2700_v57 = vrot.slane %v2012_v38, %v2447_v48 }
 0x131   : > { %v1076_v63 = vsub.f32 %v2469_v54, %v1074_v58  ;;  %v1101_v0 = vrot.slane %v1100_v59, 7 }
 0x133   : > { %v1103_v1 = vsub.f32 %v2469_v54, %v1101_v0  ;;  %v1111_v2 = vrot.slane %v1076_v63, %v1110_v60  ;;  %v1133_v4 = vrot.slane %v1076_v63, %v2431_v44  ;;  %v1137_v54 = vrot.slane %v1076_v63, %v2434_v45 }
 0x134   : > { %v2218_v45 = vmov 0  }
 0x135   : > { %1117 = vst.msk [vmem:[%s441_s24] ss:$2 sm:$0x3] %vm1115_vm1, %v1111_v2  ;;  %v1125_v3 = vrot.slane %v1103_v1, %v1110_v60  ;;  %v1143_v5 = vrot.slane %v1103_v1, %v2447_v48  ;;  %v1147_v61 = vrot.slane %v1103_v1, %v2450_v49  ;;  %1427 = vmatprep.mubr.bf16.mxu1 %v2218_v45 }
 0x137   : > { %v1126_v39 = vcombine.high %v1125_v3, %v1125_v3  ;;  %v2569_v6 = vsel %vm1150_vm2, %v1133_v4, %v1143_v5  ;;  %v2578_v7 = vsel %vm1150_vm2, %v1137_v54, %v1147_v61  ;;  %v2015_v3 = vld [vmem:[%s2895_s6 + $0x7] ss:$8 sm:$0x3] }
 0x138   : > { %1242 = vrot.lane.b32.xlu1 %v2569_v6, %s2211_s25  ;;  %1176 = vrot.lane.b32.xlu0 %v2569_v6, %s2212_s30  ;;  %v2736_v15 = vrot.slane %v2015_v3, %v2447_v48 }
 0x139   : > { %2009 = vst.msk [vmem:[%s441_s24 + $0x1] ss:$2 sm:$0x3] %vm1115_vm1, %v1126_v39 }
 0x13c   : > { %1244 = vrot.lane.b32.xlu1 %v2578_v7, %s2211_s25  ;;  %1178 = vrot.lane.b32.xlu0 %v2578_v7, %s2212_s30 }
 0x140   : > { %1200 = vrot.lane.b32.xlu1 %v2578_v7, %s2213_s26  ;;  %1198 = vrot.lane.b32.xlu0 %v2569_v6, %s2213_s26 }
 0x144   : > { %1266 = vrot.lane.b32.xlu1 %v2578_v7, %s2214_s27  ;;  %1264 = vrot.lane.b32.xlu0 %v2569_v6, %s2214_s27 }
 0x148   : > { %1310 = vrot.lane.b32.xlu1 %v2578_v7, %s2215_s28  ;;  %1308 = vrot.lane.b32.xlu0 %v2569_v6, %s2215_s28 }
 0x14c   : > { %1155 = vrot.lane.b32.xlu1 %v2578_v7, %s2216_s29  ;;  %1153 = vrot.lane.b32.xlu0 %v2569_v6, %s2216_s29 }
 0x150   : > { %1222 = vrot.lane.b32.xlu1 %v2578_v7, %s2217_s12  ;;  %1220 = vrot.lane.b32.xlu0 %v2569_v6, %s2217_s12 }
 0x154   : > { %1288 = vrot.lane.b32.xlu1 %v2578_v7, %s2219_s13  ;;  %1286 = vrot.lane.b32.xlu0 %v2569_v6, %s2219_s13 }
 0x1aa   : > { %v1243_v49 = vpop.permute.xlu1 %1242  ;;  %v1177_v62 = vpop.permute.xlu0 %1176 }
 0x1ae   : > { %v1245_v8 = vpop.permute.xlu1 %1244  ;;  %v1179_v9 = vpop.permute.xlu0 %1178 }
 0x1af   : > { %v1247_v40 = vsel %vm1246_vm4, %v1243_v49, %v1245_v8  ;;  %v1248_v41 = vsel %vm1246_vm4, %v1245_v8, %v1243_v49  ;;  %v1181_v43 = vsel %vm1180_vm5, %v1177_v62, %v1179_v9  ;;  %v1182_v46 = vsel %vm1180_vm5, %v1179_v9, %v1177_v62 }
 0x1b0   : > { %v1262_v63 = vmul.f32 %v2624_v18, %v1247_v40  ;;  %v1263_v0 = vmul.f32 %v2630_v34, %v1248_v41  ;;  %v1196_v1 = vmul.f32 %v2645_v23, %v1182_v46  ;;  %v1197_v2 = vmul.f32 %v2648_v24, %v1181_v43 }
 0x1b2   : > { %v2609_v10 = vpop.permute.xlu1 %1200  ;;  %v1199_v11 = vpop.permute.xlu0 %1198  ;;  %v1350_v25 = vrot.slane %v1262_v63, 6 }
 0x1b3   : > { %v1203_v4 = vsel %vm1202_vm6, %v1199_v11, %v2609_v10  ;;  %v1204_v5 = vsel %vm1202_vm6, %v2609_v10, %v1199_v11  ;;  %v2733_v11 = vrot.slane %v2015_v3, %v2431_v44 }
 0x1b4   : > { %v1218_v19 = vmul.f32 %v2655_v26, %v1204_v5  ;;  %v1219_v20 = vmul.f32 %v2658_v27, %v1203_v4 }
 0x1b6   : > { %v1267_v16 = vpop.permute.xlu1 %1266  ;;  %v1265_v17 = vpop.permute.xlu0 %1264 }
 0x1b7   : > { %v1269_v53 = vsel %vm1268_vm7, %v1265_v17, %v1267_v16  ;;  %v1270_v55 = vsel %vm1268_vm7, %v1267_v16, %v1265_v17  ;;  %v1332_v16 = vrot.slane %v1196_v1, 6  ;;  %v1333_v17 = vrot.slane %v1197_v2, 6 }
 0x1b8   : > { %v1284_v39 = vmul.f32 %v2662_v30, %v1269_v53  ;;  %v1285_v61 = vmul.f32 %v2665_v31, %v1270_v55 }
 0x1ba   : > { %v1311_v28 = vpop.permute.xlu1 %1310  ;;  %v1309_v29 = vpop.permute.xlu0 %1308 }
 0x1bb   : > { %v1313_v32 = vsel %vm1312_vm3, %v1309_v29, %v1311_v28  ;;  %v1314_v33 = vsel %vm1312_vm3, %v1311_v28, %v1309_v29  ;;  %v1351_v28 = vrot.slane %v1263_v0, 6  ;;  %v1356_v29 = vrot.slane %v1284_v39, 4 }
 0x1bc   : > { %v1328_v35 = vmul.f32 %v2637_v21, %v1313_v32  ;;  %v1329_v36 = vmul.f32 %v2640_v22, %v1314_v33  ;;  %v1357_v32 = vrot.slane %v1285_v61, 4 }
 0x1be   : > { %v1382_v47 = vpack.c.bf16 %v1328_v35, %v1328_v35  ;;  %v1383_v50 = vpack.c.bf16 %v1329_v36, %v1329_v36  ;;  %v1156_v51 = vpop.permute.xlu1 %1155  ;;  %v1154_v52 = vpop.permute.xlu0 %1153 }
 0x1bf   : > { %v1160_v58 = vsel %vm1159_vm8, %v1154_v52, %v1156_v51  ;;  %v1161_v59 = vsel %vm1159_vm8, %v1156_v51, %v1154_v52  ;;  %v1374_v51 = vsel %vm1366_vm10, %v2569_v6, %v1350_v25  ;;  %v1375_v52 = vsel %vm1366_vm10, %v2578_v7, %v1351_v28  ;;  %v1384_v6 = vld [vmem:[%s2893_s4] sm:$0xf] }
 0x1c0   : > { %2017 = vmatprep.subr.msk.bf16.mxu1 %vm1150_vm2, %v1383_v50  ;;  %v1390_v60 = vsel %vm1150_vm2, %v1382_v47, 0  ;;  %v1174_v62 = vmul.f32 %v2675_v37, %v1161_v59  ;;  %v1175_v8 = vmul.f32 %v2685_v42, %v1160_v58  ;;  %v1338_v47 = vrot.slane %v1218_v19, 4 }
 0x1c1   : > { %1408 = vmatpush1.bf16.msra.mxu1 %v1390_v60  ;;  %v1339_v50 = vrot.slane %v1219_v20, 4  ;;  %v1376_v58 = vsel %vm514_vm0, %v1374_v51, %v1356_v29  ;;  %v1377_v63 = vsel %vm514_vm0, %v1375_v52, %v1357_v32 }
 0x1c2   : > { %v1223_v54 = vpop.permute.xlu1 %1222  ;;  %v1221_v49 = vpop.permute.xlu0 %1220  ;;  %v1367_v36 = vsel %vm1366_vm10, %v1174_v62, %v1332_v16  ;;  %v1368_v44 = vsel %vm1366_vm10, %v1175_v8, %v1333_v17 }
 0x1c3   : > { %v1225_v9 = vsel %vm1224_vm9, %v1221_v49, %v1223_v54  ;;  %v1226_v12 = vsel %vm1224_vm9, %v1223_v54, %v1221_v49  ;;  %v1369_v59 = vsel %vm514_vm0, %v1367_v36, %v1338_v47  ;;  %v1370_v60 = vsel %vm514_vm0, %v1368_v44, %v1339_v50 }
 0x1c4   : > { %v1240_v14 = vmul.f32 %v2697_v56, %v1226_v12  ;;  %v1241_v10 = vmul.f32 %v2700_v57, %v1225_v9 }
 0x1c6   : > { %v1289_v33 = vpop.permute.xlu1 %1288  ;;  %v1287_v35 = vpop.permute.xlu0 %1286  ;;  %v1344_v40 = vrot.slane %v1240_v14, 2  ;;  %v1345_v41 = vrot.slane %v1241_v10, 2 }
 0x1c7   : > { %v1291_v48 = vsel %vm1290_vm11, %v1287_v35, %v1289_v33  ;;  %v1292_v38 = vsel %vm1290_vm11, %v1289_v33, %v1287_v35 }
 0x1c8   : > { %v1306_v43 = vmul.f32 %v2733_v11, %v1291_v48  ;;  %v1307_v46 = vmul.f32 %v2736_v15, %v1292_v38  ;;  %v1372_v0 = vsel %vm1371_vm12, %v1369_v59, %v1344_v40  ;;  %v1373_v2 = vsel %vm1371_vm12, %v1370_v60, %v1345_v41 }
 0x1ca   : > { %v1362_v53 = vrot.slane %v1306_v43, 2  ;;  %v1363_v55 = vrot.slane %v1307_v46, 2 }
 0x1cc   : > { %v1378_v1 = vsel %vm1371_vm12, %v1376_v58, %v1362_v53  ;;  %v1379_v3 = vsel %vm1371_vm12, %v1377_v63, %v1363_v55 }
 0x1cd   : > { %v1381_v4 = vpack.c.bf16 %v1379_v3, %v1373_v2  ;;  %v1380_v5 = vpack.c.bf16 %v1378_v1, %v1372_v0 }
 0x1cf   : > { %1409 = vmatprep.subr.bf16.mxu1 %v1381_v4 }
 0x1d0   : > { %1410 = vmatpush1.bf16.msra.mxu1 %v1380_v5 }
 0x1d3   : > { %2018 = vmatmul.mubr.msk.bf16.vlgmr.msra.gmra.mxu1 %vm1385_vm13, %v1384_v6 }
 0x1d4   : > { %1578 = vmatprep.mubr.bf16.mxu1 %v2218_v45 }
 0x293   : > { %v1429_v7 = vpop.f32.mrf.mxu1 }
 0x294   : > { %v1439_v54 = vmul.f32 %v1429_v7, %v1429_v7 }
 0x295   : > { %v1431_v39 = vpop.f32.mrf.mxu1 }
 0x296   : > { %v1436_v61 = vadd.f32 %v1431_v39, %v1429_v7  ;;  %v1440_v49 = vmul.f32 %v1431_v39, %v1431_v39 }
 0x297   : > { %v1433_v62 = vpop.f32.mrf.mxu1 }
 0x298   : > { %1437 = vadd.xlane.f32.xlu0 %v1436_v61  ;;  %v1441_v8 = vadd.f32 %v1440_v49, %v1439_v54 }
 0x299   : > { %v1434_v9 = vpop.f32.mrf.mxu1 }
 0x29a   : > { %1442 = vadd.xlane.f32.xlu1 %v1441_v8 }
 0x321   : > { %v1438_v12 = vpop.xlane.xlu0 %1437 }
 0x322   : > { %v1444_v14 = vmul.f32 0.00390625, %v1438_v12 }
 0x323   : > { %v1443_v10 = vpop.xlane.xlu1 %1442 }
 0x324   : > { %v1445_v16 = vmul.f32 0.00390625, %v1443_v10  ;;  %v1446_v17 = vmul.f32 %v1444_v14, %v1444_v14  ;;  %v1449_v45 = vsub.f32 %v1429_v7, %v1444_v14  ;;  %v1450_v28 = vsub.f32 %v1431_v39, %v1444_v14 }
 0x326   : > { %v1447_v19 = vsub.f32 %v1445_v16, %v1446_v17 }
 0x328   : > { %v1448_v20 = vmax.f32 %v1447_v19, 0.0 }
 0x32a   : > { %v1451_v25 = vadd.f32 1e-05, %v1448_v20 }
 0x32c   : > { %2197 = vrsqrt.f32 %v1451_v25 }
 0x339   : > { %v2198_v29 = vpop.eup %2197 }
 0x33a   : > { %v1453_v32 = vmul.f32 %v2198_v29, %v1449_v45  ;;  %v1454_v33 = vmul.f32 %v2198_v29, %v1450_v28 }
 0x33c   : > { %v1457_v35 = vmul.f32 0.2, %v1453_v32  ;;  %v1458_v36 = vmul.f32 0.2, %v1454_v33  ;;  %vm1456_vm14 = vcmp.ge.f32.partialorder %v1454_v33, 0.0  ;;  %vm1455_vm15 = vcmp.ge.f32.partialorder %v1453_v32, 0.0 }
 0x33e   : > { %v1460_v44 = vsel %vm1456_vm14, %v1454_v33, %v1458_v36  ;;  %v1459_v48 = vsel %vm1455_vm15, %v1453_v32, %v1457_v35 }
 0x33f   : > { %1519 = vrot.lane.b32.xlu1 %v1460_v44, %s2215_s28  ;;  %1517 = vrot.lane.b32.xlu0 %v1459_v48, %s2215_s28 }
 0x343   : > { %1503 = vrot.lane.b32.xlu1 %v1460_v44, %s2214_s27  ;;  %1501 = vrot.lane.b32.xlu0 %v1459_v48, %s2214_s27  ;;  %s1944_s27 = sshll.u32 %s2902_s20, 3 }
 0x347   : > { %1511 = vrot.lane.b32.xlu1 %v1460_v44, %s2219_s13  ;;  %1509 = vrot.lane.b32.xlu0 %v1459_v48, %s2219_s13 }
 0x34b   : > { %1495 = vrot.lane.b32.xlu1 %v1460_v44, %s2211_s25  ;;  %1493 = vrot.lane.b32.xlu0 %v1459_v48, %s2211_s25 }
 0x34f   : > { %1479 = vrot.lane.b32.xlu1 %v1460_v44, %s2213_s26  ;;  %1477 = vrot.lane.b32.xlu0 %v1459_v48, %s2213_s26  ;;  %s446_s26 = scalar_lea.vmem %s2899_s10, %s2041_s14 }
 0x353   : > { %1487 = vrot.lane.b32.xlu1 %v1460_v44, %s2217_s12  ;;  %1485 = vrot.lane.b32.xlu0 %v1459_v48, %s2217_s12  ;;  %s450_s12 = scalar_lea.vmem %s2900_s11, %s1944_s27 }
 0x357   : > { %1463 = vrot.lane.b32.xlu1 %v1460_v44, %s2216_s29  ;;  %1461 = vrot.lane.b32.xlu0 %v1459_v48, %s2216_s29 }
 0x35b   : > { %1471 = vrot.lane.b32.xlu1 %v1460_v44, %s2212_s30  ;;  %1469 = vrot.lane.b32.xlu0 %v1459_v48, %s2212_s30 }
 0x3b1   : > { %v1520_v38 = vpop.permute.xlu1 %1519  ;;  %v1518_v40 = vpop.permute.xlu0 %1517 }
 0x3b2   : > { %v1521_v41 = vsel %vm1312_vm3, %v1518_v40, %v1520_v38  ;;  %v1522_v43 = vsel %vm1312_vm3, %v1520_v38, %v1518_v40  ;;  %v1535_v38 = vld [vmem:[%s2894_s5] sm:$0xf]  ;;  %vm1784_vm3 = vcmask 523264  }
 0x3b3   : > { %v1523_v46 = vmul.f32 %v1521_v41, %v2637_v21  ;;  %v1524_v47 = vmul.f32 %v1522_v43, %v2640_v22 }
 0x3b5   : > { %v1533_v50 = vpack.c.bf16 %v1523_v46, %v1523_v46  ;;  %v1534_v51 = vpack.c.bf16 %v1524_v47, %v1524_v47  ;;  %v1504_v52 = vpop.permute.xlu1 %1503  ;;  %v1502_v53 = vpop.permute.xlu0 %1501  ;;  %v2182_v47 = vld [vmem:[%s2896_s7 + $0x38] sm:$0xff]  }
 0x3b6   : > { %v1505_v58 = vsel %vm1268_vm7, %v1502_v53, %v1504_v52  ;;  %v1506_v59 = vsel %vm1268_vm7, %v1504_v52, %v1502_v53  ;;  %v2185_v52 = vld [vmem:[%s2896_s7 + $0x68] sm:$0xff]  }
 0x3b7   : > { %2019 = vmatprep.subr.msk.bf16.mxu1 %vm514_vm0, %v1534_v51  ;;  %v1541_v55 = vsel %vm514_vm0, %v1533_v50, 0  ;;  %v1507_v0 = vmul.f32 %v1505_v58, %v2662_v30  ;;  %v1508_v1 = vmul.f32 %v1506_v59, %v2665_v31  ;;  %vm1536_vm0 = vcmask 588800   ;;  %v2183_v50 = vld [vmem:[%s2896_s7 + $0x70] sm:$0xff]   ;;  %v2186_v53 = vld [vmem:[%s2896_s7 + $0x28] sm:$0xff]   ;;  %v2188_v58 = vld [vmem:[%s2896_s7 + $0x20] sm:$0xff]  }
 0x3b8   : > { %1553 = vmatpush1.bf16.msra.mxu1 %v1541_v55  ;;  %v2184_v51 = vld [vmem:[%s2896_s7 + $0x30] sm:$0xff]   ;;  %v2187_v55 = vld [vmem:[%s2896_s7 + $0x60] sm:$0xff]   ;;  %v2189_v59 = vld [vmem:[%s2896_s7 + $0x58] sm:$0xff]  }
 0x3b9   : > { %v1512_v60 = vpop.permute.xlu1 %1511  ;;  %v1510_v63 = vpop.permute.xlu0 %1509 }
 0x3ba   : > { %v1513_v21 = vsel %vm1290_vm11, %v1510_v63, %v1512_v60  ;;  %v1514_v22 = vsel %vm1290_vm11, %v1512_v60, %v1510_v63  ;;  %v2190_v60 = vld [vmem:[%s2896_s7 + $0x18] sm:$0xff]   ;;  %v2191_v63 = vld [vmem:[%s2896_s7 + $0x50] sm:$0xff]  }
 0x3bb   : > { %v1515_v2 = vmul.f32 %v1513_v21, %v2733_v11  ;;  %v1516_v3 = vmul.f32 %v1514_v22, %v2736_v15  ;;  %v2192_v21 = vld [vmem:[%s2896_s7 + $0x10] sm:$0xff]   ;;  %v2193_v22 = vld [vmem:[%s2896_s7 + $0x48] sm:$0xff]  }
 0x3bd   : > { %v1531_v4 = vpack.c.bf16 %v1515_v2, %v1507_v0  ;;  %v1496_v5 = vpop.permute.xlu1 %1495  ;;  %v1494_v6 = vpop.permute.xlu0 %1493  ;;  %v1532_v7 = vpack.c.bf16 %v1516_v3, %v1508_v1  ;;  %v2194_v0 = vld [vmem:[%s2896_s7 + $0x8] sm:$0xff]   ;;  %v2195_v1 = vld [vmem:[%s2896_s7 + $0x40] sm:$0xff]  }
 0x3be   : > { %v1497_v39 = vsel %vm1246_vm4, %v1494_v6, %v1496_v5  ;;  %v1498_v61 = vsel %vm1246_vm4, %v1496_v5, %v1494_v6  ;;  %v2196_v2 = vld [vmem:[%s2896_s7] sm:$0xff]  }
 0x3bf   : > { %v1499_v54 = vmul.f32 %v1497_v39, %v2624_v18  ;;  %v1500_v30 = vmul.f32 %v1498_v61, %v2630_v34  ;;  %1554 = vmatprep.subr.bf16.mxu1 %v1532_v7 }
 0x3c0   : > { %1555 = vmatpush1.bf16.msra.mxu1 %v1531_v4 }
 0x3c1   : > { %v1529_v31 = vpack.c.bf16 %v1499_v54, %v1459_v48  ;;  %v1480_v11 = vpop.permute.xlu1 %1479  ;;  %v1478_v49 = vpop.permute.xlu0 %1477  ;;  %v1530_v15 = vpack.c.bf16 %v1500_v30, %v1460_v44 }
 0x3c2   : > { %v1481_v62 = vsel %vm1202_vm6, %v1478_v49, %v1480_v11  ;;  %v1482_v8 = vsel %vm1202_vm6, %v1480_v11, %v1478_v49 }
 0x3c3   : > { %1556 = vmatprep.subr.bf16.mxu1 %v1530_v15  ;;  %v1483_v14 = vmul.f32 %v1482_v8, %v2655_v26  ;;  %v1484_v10 = vmul.f32 %v1481_v62, %v2658_v27 }
 0x3c4   : > { %1557 = vmatpush1.bf16.msra.mxu1 %v1529_v31 }
 0x3c5   : > { %v1488_v9 = vpop.permute.xlu1 %1487  ;;  %v1486_v12 = vpop.permute.xlu0 %1485 }
 0x3c6   : > { %v1489_v18 = vsel %vm1224_vm9, %v1486_v12, %v1488_v9  ;;  %v1490_v34 = vsel %vm1224_vm9, %v1488_v9, %v1486_v12 }
 0x3c7   : > { %v1491_v16 = vmul.f32 %v1490_v34, %v2697_v56  ;;  %v1492_v17 = vmul.f32 %v1489_v18, %v2700_v57 }
 0x3c9   : > { %v1527_v19 = vpack.c.bf16 %v1491_v16, %v1483_v14  ;;  %v1464_v20 = vpop.permute.xlu1 %1463  ;;  %v1462_v25 = vpop.permute.xlu0 %1461  ;;  %v1528_v45 = vpack.c.bf16 %v1492_v17, %v1484_v10 }
 0x3ca   : > { %v1465_v28 = vsel %vm1159_vm8, %v1462_v25, %v1464_v20  ;;  %v1466_v29 = vsel %vm1159_vm8, %v1464_v20, %v1462_v25 }
 0x3cb   : > { %1558 = vmatprep.subr.bf16.mxu1 %v1528_v45  ;;  %v1467_v57 = vmul.f32 %v1466_v29, %v2675_v37  ;;  %v1468_v33 = vmul.f32 %v1465_v28, %v2685_v42 }
 0x3cc   : > { %1559 = vmatpush1.bf16.msra.mxu1 %v1527_v19 }
 0x3cd   : > { %v1472_v32 = vpop.permute.xlu1 %1471  ;;  %v1470_v26 = vpop.permute.xlu0 %1469 }
 0x3ce   : > { %v1473_v27 = vsel %vm1180_vm5, %v1470_v26, %v1472_v32  ;;  %v1474_v56 = vsel %vm1180_vm5, %v1472_v32, %v1470_v26 }
 0x3cf   : > { %v1475_v35 = vmul.f32 %v1474_v56, %v2645_v23  ;;  %v1476_v36 = vmul.f32 %v1473_v27, %v2648_v24  ;;  %v2181_v24 = vld [vmem:[%s2896_s7 + $0x78] sm:$0xff]  }
 0x3d0   : > { %2044 = vmatprep.subr.bf16.mxu0 %v2181_v24 }
 0x3d1   : > { %v1525_v44 = vpack.c.bf16 %v1475_v35, %v1467_v57  ;;  %v1526_v48 = vpack.c.bf16 %v1476_v36, %v1468_v33  ;;  %2045 = vmatpush3.bf16.msra.mxu0 %v2182_v47 }
 0x3d2   : > { %2046 = vmatprep.subr.bf16.mxu0 %v2183_v50 }
 0x3d3   : > { %1560 = vmatprep.subr.bf16.mxu1 %v1526_v48 }
 0x3d4   : > { %1561 = vmatpush1.bf16.msra.mxu1 %v1525_v44 }
 0x3d5   : > { %2047 = vmatpush3.bf16.msra.mxu0 %v2184_v51 }
 0x3d6   : > { %2048 = vmatprep.subr.bf16.mxu0 %v2185_v52 }
 0x3d7   : > { %2020 = vmatmul.mubr.msk.bf16.vlgmr.msra.gmra.mxu1 %vm1536_vm0, %v1535_v38 }
 0x3d9   : > { %2049 = vmatpush3.bf16.msra.mxu0 %v2186_v53 }
 0x3da   : > { %2050 = vmatprep.subr.bf16.mxu0 %v2187_v55 }
 0x3dd   : > { %2051 = vmatpush3.bf16.msra.mxu0 %v2188_v58 }
 0x3de   : > { %2052 = vmatprep.subr.bf16.mxu0 %v2189_v59 }
 0x3e1   : > { %2053 = vmatpush3.bf16.msra.mxu0 %v2190_v60 }
 0x3e2   : > { %2054 = vmatprep.subr.bf16.mxu0 %v2191_v63 }
 0x3e5   : > { %2055 = vmatpush3.bf16.msra.mxu0 %v2192_v21 }
 0x3e6   : > { %2056 = vmatprep.subr.bf16.mxu0 %v2193_v22 }
 0x3e9   : > { %2057 = vmatpush3.bf16.msra.mxu0 %v2194_v0 }
 0x3ea   : > { %2058 = vmatprep.subr.bf16.mxu0 %v2195_v1 }
 0x3ed   : > { %2059 = vmatpush3.bf16.msra.mxu0 %v2196_v2 }
 0x497   : > { %v1580_v13 = vpop.f32.mrf.mxu1 }
 0x498   : > { %v1590_v37 = vmul.f32 %v1580_v13, %v1580_v13 }
 0x499   : > { %v1582_v40 = vpop.f32.mrf.mxu1 }
 0x49a   : > { %v1587_v41 = vadd.f32 %v1582_v40, %v1580_v13  ;;  %v1591_v43 = vmul.f32 %v1582_v40, %v1582_v40 }
 0x49b   : > { %v1584_v42 = vpop.f32.mrf.mxu1 }
 0x49c   : > { %1588 = vadd.xlane.f32.xlu0 %v1587_v41  ;;  %v1592_v23 = vadd.f32 %v1591_v43, %v1590_v37 }
 0x49d   : > { %v1585_v46 = vpop.f32.mrf.mxu1 }
 0x49e   : > { %1593 = vadd.xlane.f32.xlu1 %v1592_v23 }
 0x525   : > { %v1589_v3 = vpop.xlane.xlu0 %1588 }
 0x526   : > { %v1595_v4 = vmul.f32 0.00390625, %v1589_v3 }
 0x527   : > { %v1594_v5 = vpop.xlane.xlu1 %1593 }
 0x528   : > { %v1596_v6 = vmul.f32 0.00390625, %v1594_v5  ;;  %v1597_v7 = vmul.f32 %v1595_v4, %v1595_v4  ;;  %v1600_v30 = vsub.f32 %v1580_v13, %v1595_v4  ;;  %v1601_v31 = vsub.f32 %v1582_v40, %v1595_v4 }
 0x52a   : > { %v1598_v39 = vsub.f32 %v1596_v6, %v1597_v7 }
 0x52c   : > { %v1599_v61 = vmax.f32 %v1598_v39, 0.0 }
 0x52e   : > { %v1602_v54 = vadd.f32 1e-05, %v1599_v61 }
 0x530   : > { %2199 = vrsqrt.f32 %v1602_v54 }
 0x53d   : > { %v2200_v11 = vpop.eup %2199 }
 0x53e   : > { %v1604_v49 = vmul.f32 %v2200_v11, %v1600_v30  ;;  %v1605_v15 = vmul.f32 %v2200_v11, %v1601_v31 }
 0x540   : > { %vm1606_vm1 = vcmp.ge.f32.partialorder %v1604_v49, 0.0  ;;  %vm1607_vm2 = vcmp.ge.f32.partialorder %v1605_v15, 0.0  ;;  %v1608_v62 = vmul.f32 0.2, %v1604_v49  ;;  %v1609_v8 = vmul.f32 0.2, %v1605_v15 }
 0x542   : > { %v1610_v9 = vsel %vm1606_vm1, %v1604_v49, %v1608_v62  ;;  %v1611_v12 = vsel %vm1607_vm2, %v1605_v15, %v1609_v8 }
 0x543   : > { %1612 = vst [vmem:[%s446_s26] sm:$0xff] %v1610_v9  ;;  %1613 = vst [vmem:[%s446_s26 + $0x8] sm:$0xff] %v1611_v12  ;;  %v1615_v18 = vpack.c.bf16 %v1611_v12, %v1611_v12  ;;  %v1614_v34 = vpack.c.bf16 %v1610_v9, %v1610_v9 }
 0x545   : > { %1776 = vmatprep.mubr.bf16.mxu0 %v1615_v18 }
 0x546   : > { %1777 = vmatmul.mubr.bf16.vlgmr.msra.gmra.mxu0 %v1614_v34 }
 0x606   : > { %v2060_v14 = vpop.f32.mrf.mxu0 }
 0x608   : > { %v2061_v10 = vpop.f32.mrf.mxu0 }
 0x609   : > { %v2062_v16 = vadd.f32 %v2061_v10, %v2060_v14 }
 0x60a   : > { %v2063_v17 = vpop.f32.mrf.mxu0 }
 0x60b   : > { %1785 = vst.msk [vmem:[%s450_s12] sm:$0xff] %vm1784_vm3, %v2062_v16 }
 0x60c   : > { %v2064_v19 = vpop.f32.mrf.mxu0 }
 0x60d PF: > { %s23_s19 = sadd.s32 1, %s2207_s19  }
 0x60e   : > { %p20_p4 = scmp.ge.s32.totalorder %s23_s19, 4  }
 0x610   :  { %22 = sbr.rel (!%p20_p4) target bundleno = 2 (0x2), region = 124 }

</bundles_post_ra>
